<compile_context>
chip_gen: v7x
topology: tpu7x:2x2x1
jax: 0.10.0
libtpu: 0.0.40
codegen_flags: <defaults>
</compile_context>

<pallas_src>
import functools

import jax
import jax.numpy as jnp
from jax import lax
from jax.experimental import pallas as pl
from jax.experimental.pallas import tpu as pltpu


# ----------------------------- in-kernel helpers -----------------------------

def _erf(x):
    # TODO(synk): exact lax.erf lowering in Mosaic is not guaranteed; use the
    # Abramowitz&Stegun 7.1.26 polynomial (max abs err ~1.5e-7, f32 noise level).
    a1, a2, a3, a4, a5 = 0.254829592, -0.284496736, 1.421413741, -1.453152027, 1.061405429
    p = 0.3275911
    s = jnp.where(x >= 0.0, 1.0, -1.0)
    z = jnp.abs(x)
    t = 1.0 / (1.0 + p * z)
    poly = ((((a5 * t + a4) * t + a3) * t + a2) * t + a1) * t
    return s * (1.0 - poly * jnp.exp(-z * z))


def _gelu(x):
    # exact (erf-based) GELU, matching torch.nn.GELU() default
    return 0.5 * x * (1.0 + _erf(x * 0.7071067811865476))


# --------------------------------- the kernel --------------------------------

def _stn_kernel(xq_ref, xall_ref, sq_ref, xa_ref, xb_ref,
                bn1s_ref, bn1b_ref, w2_ref, bn3s_ref, bn3b_ref, wlin_ref,
                o_ref, sel_ref, *, k, tq):
    x_q = xq_ref[0]                     # (TQ, Dp) f32 query tile (lane dim = Dp)
    x_all = xall_ref[0]                 # (Dp, N)  f32 all points (lane dim = N)
    n = x_all.shape[1]
    c1 = xa_ref.shape[2]                # 64
    c2 = w2_ref.shape[1]                # 128

    # ---- distances for this query tile vs all points (f32) -------------------
    # |x_i|^2 is constant per row -> it never changes the per-row argmin, so it
    # is dropped; padded columns carry sq = 1e30 and are never selected.
    gram = jnp.dot(x_q, x_all, preferred_element_type=jnp.float32)     # (TQ, N)
    d0 = sq_ref[0] - 2.0 * gram                                        # (TQ, N)

    iota = lax.broadcasted_iota(jnp.int32, (tq, n), 1)

    # ---- kNN selection only: emit k one-hot masks into VMEM scratch ----------
    def select_step(kk, d):
        mval = jnp.min(d, axis=-1, keepdims=True)
        cand = jnp.where(d <= mval, iota, n)        # lowest-index tie-break
        idx = jnp.min(cand, axis=-1, keepdims=True)
        sel = iota == idx                           # (TQ, N) exact one-hot
        off = pl.multiple_of(kk * tq, tq)
        sel_ref[pl.ds(off, tq), :] = sel.astype(jnp.bfloat16)
        return jnp.where(sel, jnp.float32(jnp.inf), d)   # exclude chosen neighbor

    lax.fori_loop(0, k, select_step, d0, unroll=(k <= 8))

    # ---- batched gather + EdgeConv convs: two big bf16 matmuls ---------------
    sel_all = sel_ref[...]                                             # (k*TQ, N) bf16
    nbr = jnp.dot(sel_all, xa_ref[0],
                  preferred_element_type=jnp.float32)                  # (k*TQ, 64)
    h1 = nbr.reshape(k, tq, c1) + xb_ref[0][None, :, :]                # + center term
    h1 = _gelu(h1 * bn1s_ref[...] + bn1b_ref[...])                     # Conv2d(6,64)+BN+GELU
    h2 = jnp.dot(h1.reshape(k * tq, c1).astype(jnp.bfloat16), w2_ref[...],
                 preferred_element_type=jnp.float32)                   # Conv2d(64,128)
    edge = jnp.max(h2.reshape(k, tq, c2), axis=0)                      # max over k
    edge = _gelu(edge * bn3s_ref[...] + bn3b_ref[...])                 # BN1d(128)+GELU

    # ---- lin Conv1d(128->1024) in bf16, fused with the max over this tile ----
    z = jnp.dot(edge.astype(jnp.bfloat16), wlin_ref[...],
                preferred_element_type=jnp.float32)                    # (TQ, 1024)
    o_ref[0, 0] = jnp.max(z, axis=0, keepdims=True)                    # (1, 1024)


# --------------------------------- wrapper ------------------------------------

def _round_up(a, m):
    return (a + m - 1) // m * m


@functools.partial(jax.jit, static_argnames=("k",))
def spatial_transform_net(x_bcn, params, *, k):
    """x_bcn: (B, C=in_dim, N) point cloud (PyTorch layout). Returns (B, 9)."""
    x = x_bcn.astype(jnp.float32)                 # keep native (B, D, N) layout
    B, D, N = x.shape

    tq = min(64, _round_up(N, 8))                 # TQ=64: no vreg spills in the kNN loop
    n_pad = _round_up(N, tq)
    nq = n_pad // tq

    # pad the point axis by replicating point 0: padded columns are masked out
    # of neighbor selection below, padded query rows duplicate point 0 so the
    # global max over points is unchanged.
    if n_pad != N:
        x = jnp.concatenate(
            [x, jnp.broadcast_to(x[:, :, :1], (B, D, n_pad - N))], axis=2)

    w1a = params["w1a"]                           # multiplies x_j  (neighbor)
    w1d = params["w1b"] - params["w1a"]           # multiplies x_i  (fold of [x_j-x_i, x_i])

    # ---- q-invariant per-batch precompute, hoisted out of the kernel ---------
    sq = jnp.sum(x * x, axis=1, keepdims=True)                          # (B, 1, Np)
    col = lax.broadcasted_iota(jnp.int32, (1, 1, n_pad), 2)
    sq = jnp.where(col < N, sq, jnp.float32(1e30))                      # mask padded cols
    xa = jnp.einsum("bdn,dc->bnc", x, w1a).astype(jnp.bfloat16)         # (B, Np, 64)
    xb = jnp.einsum("bdn,dc->bnc", x, w1d)                              # (B, Np, 64) f32

    # distance operands: lane-dense (B, Dp, Np) plus its (B, Np, Dp) transpose
    # so the in-kernel gram is a standard (TQ, Dp) @ (Dp, Np) matmul.
    d_pad = _round_up(D, 8)
    x_dn = x if d_pad == D else jnp.concatenate(
        [x, jnp.zeros((B, d_pad - D, n_pad), jnp.float32)], axis=1)     # (B, Dp, Np)
    x_nd = jnp.transpose(x_dn, (0, 2, 1))                               # (B, Np, Dp)

    w2_bf = params["w2"].astype(jnp.bfloat16)
    wlin_bf = params["wlin"].astype(jnp.bfloat16)
    c1 = w1a.shape[1]                 # 64
    clin = wlin_bf.shape[1]           # 1024

    kernel_inputs = (
        x_nd, x_dn, sq, xa, xb,
        params["bn1_s"], params["bn1_b"], w2_bf,
        params["bn3_s"], params["bn3_b"], wlin_bf,
    )

    def _resident(a):                 # small weights: VMEM-resident, index (0,..)
        nd = a.ndim
        return pl.BlockSpec(a.shape, lambda b, q: (0,) * nd)

    in_specs = [
        pl.BlockSpec((1, tq, d_pad), lambda b, q: (b, q, 0)),       # query tile (TQ, Dp)
        pl.BlockSpec((1, d_pad, n_pad), lambda b, q: (b, 0, 0)),    # all points (Dp, N)
        pl.BlockSpec((1, 1, n_pad), lambda b, q: (b, 0, 0)),        # sq (1, N)
        pl.BlockSpec((1, n_pad, c1), lambda b, q: (b, 0, 0)),       # x @ W1a (N, 64) bf16
        pl.BlockSpec((1, tq, c1), lambda b, q: (b, q, 0)),          # x @ W1d tile (TQ, 64)
    ] + [_resident(a) for a in kernel_inputs[5:]]

    out = pl.pallas_call(
        functools.partial(_stn_kernel, k=k, tq=tq),
        out_shape=jax.ShapeDtypeStruct((B, nq, 1, clin), jnp.float32),
        grid=(B, nq),
        in_specs=in_specs,
        out_specs=pl.BlockSpec((1, 1, 1, clin), lambda b, q: (b, q, 0, 0)),
        scratch_shapes=[pltpu.VMEM((k * tq, n_pad), jnp.bfloat16)],
        compiler_params=pltpu.CompilerParams(
            dimension_semantics=("parallel", "parallel"),
            vmem_limit_bytes=16 * 1024 * 1024),
    )(*kernel_inputs)

    zmax = jnp.max(out, axis=(1, 2))                                 # (B, 1024)

    # ---- global BN + GELU and the tiny head MLP: plain XLA, outside the kernel
    gelu = functools.partial(jax.nn.gelu, approximate=False)
    g = gelu(zmax * params["bn4_s"] + params["bn4_b"])
    h = gelu(jnp.dot(g, params["wh1"]) * params["bn5_s"] + params["bn5_b"])
    h = gelu(jnp.dot(h, params["wh2"]) * params["bn6_s"] + params["bn6_b"])
    return jnp.dot(h, params["wh3"]) + params["bh3"]


# --------------------------- deterministic parameters --------------------------

def _bn_fold(c, eps=1e-5):
    # PyTorch BN defaults: gamma=1, beta=0, running_mean=0, running_var=1 (eval)
    gamma = jnp.ones((1, c), jnp.float32)
    beta = jnp.zeros((1, c), jnp.float32)
    rm = jnp.zeros((1, c), jnp.float32)
    rv = jnp.ones((1, c), jnp.float32)
    scale = gamma / jnp.sqrt(rv + eps)
    shift = beta - rm * scale
    return scale, shift


def init_params(key, in_dim=3):
    d2 = 2 * in_dim
    ks = jax.random.split(key, 5)
    s = 0.1
    w1 = jax.random.normal(ks[0], (d2, 64), jnp.float32) * s      # Conv2d(6,64,1), channels-last
    w2 = jax.random.normal(ks[1], (64, 128), jnp.float32) * s     # Conv2d(64,128,1)
    wlin = jax.random.normal(ks[2], (128, 1024), jnp.float32) * s # Conv1d(128,1024,1)
    wh1 = jax.random.normal(ks[3], (1024, 512), jnp.float32) * s  # Linear(1024,512)
    wh2 = jax.random.normal(ks[4], (512, 256), jnp.float32) * s   # Linear(512,256)
    wh3 = jnp.zeros((256, 9), jnp.float32)                        # constant_(weight, 0)
    bh3 = jnp.eye(3, dtype=jnp.float32).reshape(1, 9)             # eye_ on bias.view(3,3)

    bn1_s, bn1_b = _bn_fold(64)     # BN2d inside EdgeConv mlp
    bn3_s, bn3_b = _bn_fold(128)    # EdgeConv.norm BN1d
    bn4_s, bn4_b = _bn_fold(1024)   # self.norm
    bn5_s, bn5_b = _bn_fold(512)    # head BN
    bn6_s, bn6_b = _bn_fold(256)    # head BN

    return dict(
        w1a=w1[:in_dim], w1b=w1[in_dim:],   # split: diff channels / center channels
        bn1_s=bn1_s, bn1_b=bn1_b,
        w2=w2, bn3_s=bn3_s, bn3_b=bn3_b,
        wlin=wlin, bn4_s=bn4_s, bn4_b=bn4_b,
        wh1=wh1, bn5_s=bn5_s, bn5_b=bn5_b,
        wh2=wh2, bn6_s=bn6_s, bn6_b=bn6_b,
        wh3=wh3, bh3=bh3,
    )


if __name__ == "__main__":
    key = jax.random.PRNGKey(0)
    kx, kp = jax.random.split(key)

    B, D, N, K = 2, 3, 256, 8                     # batch, in_dim, num points, knn k
    x = jax.random.normal(kx, (B, D, N), jnp.float32)   # PyTorch layout (B, C, N)
    params = init_params(kp, in_dim=D)

    out = spatial_transform_net(x, params, k=K)
    out = jax.block_until_ready(out)
    assert out.shape == (B, 9) and out.dtype == jnp.float32
    assert bool(jnp.all(jnp.isfinite(out)))
    print("KERNEL_OK")
</pallas_src>

<mosaic_0001>
module attributes {stable_mosaic.version = 11 : i64} {
  func.func @_stn_kernel(%arg0: i32, %arg1: i32, %arg2: memref<1x64x8xf32, #tpu.memory_space<vmem>>, %arg3: memref<1x8x256xf32, #tpu.memory_space<vmem>>, %arg4: memref<1x1x256xf32, #tpu.memory_space<vmem>>, %arg5: memref<1x256x64xbf16, #tpu.memory_space<vmem>>, %arg6: memref<1x64x64xf32, #tpu.memory_space<vmem>>, %arg7: memref<1x64xf32, #tpu.memory_space<vmem>>, %arg8: memref<1x64xf32, #tpu.memory_space<vmem>>, %arg9: memref<64x128xbf16, #tpu.memory_space<vmem>>, %arg10: memref<1x128xf32, #tpu.memory_space<vmem>>, %arg11: memref<1x128xf32, #tpu.memory_space<vmem>>, %arg12: memref<128x1024xbf16, #tpu.memory_space<vmem>>, %arg13: memref<1x1x1x1024xf32, #tpu.memory_space<vmem>>, %arg14: memref<512x256xbf16, #tpu.memory_space<vmem>>) attributes {dimension_semantics = [#tpu.dimension_semantics<parallel>, #tpu.dimension_semantics<parallel>], iteration_bounds = array<i64: 2, 4>, scalar_prefetch = 0 : i64, scratch_operands = 1 : i64, tpu.core_type = #tpu.core_type<tc>, window_params = [{transform_indices = @transform_0, window_bounds = array<i64: 1, 64, 8>}, {transform_indices = @transform_1, window_bounds = array<i64: 1, 8, 256>}, {transform_indices = @transform_2, window_bounds = array<i64: 1, 1, 256>}, {transform_indices = @transform_3, window_bounds = array<i64: 1, 256, 64>}, {transform_indices = @transform_4, window_bounds = array<i64: 1, 64, 64>}, {pipeline_mode = #tpu.pipeline_mode<synchronous>, transform_indices = @transform_5, window_bounds = array<i64: 1, 64>}, {pipeline_mode = #tpu.pipeline_mode<synchronous>, transform_indices = @transform_6, window_bounds = array<i64: 1, 64>}, {pipeline_mode = #tpu.pipeline_mode<synchronous>, transform_indices = @transform_7, window_bounds = array<i64: 64, 128>}, {pipeline_mode = #tpu.pipeline_mode<synchronous>, transform_indices = @transform_8, window_bounds = array<i64: 1, 128>}, {pipeline_mode = #tpu.pipeline_mode<synchronous>, transform_indices = @transform_9, window_bounds = array<i64: 1, 128>}, {pipeline_mode = #tpu.pipeline_mode<synchronous>, transform_indices = @transform_10, window_bounds = array<i64: 128, 1024>}, {transform_indices = @transform_11, window_bounds = array<i64: 1, 1, 1, 1024>}]} {
    %c0 = arith.constant 0 : index
    %c0_0 = arith.constant 0 : index
    %c0_1 = arith.constant 0 : index
    %0 = vector.load %arg2[%c0, %c0_0, %c0_1] : memref<1x64x8xf32, #tpu.memory_space<vmem>>, vector<1x64x8xf32>
    %1 = vector.shape_cast %0 : vector<1x64x8xf32> to vector<64x8xf32>
    %c0_2 = arith.constant 0 : index
    %c0_3 = arith.constant 0 : index
    %c0_4 = arith.constant 0 : index
    %2 = vector.load %arg3[%c0_2, %c0_3, %c0_4] : memref<1x8x256xf32, #tpu.memory_space<vmem>>, vector<1x8x256xf32>
    %3 = vector.shape_cast %2 : vector<1x8x256xf32> to vector<8x256xf32>
    %cst = arith.constant dense<0.000000e+00> : vector<64x256xf32>
    %4 = tpu.matmul %1, %3, %cst {dimension_numbers = #tpu.dot_dimension_numbers<[1], [0], [0], [1], [0, 0, 1, 1], [], []>} : vector<64x8xf32>, vector<8x256xf32>, vector<64x256xf32> -> vector<64x256xf32>
    %c0_5 = arith.constant 0 : index
    %c0_6 = arith.constant 0 : index
    %c0_7 = arith.constant 0 : index
    %5 = vector.load %arg4[%c0_5, %c0_6, %c0_7] : memref<1x1x256xf32, #tpu.memory_space<vmem>>, vector<1x1x256xf32>
    %6 = vector.shape_cast %5 : vector<1x1x256xf32> to vector<1x256xf32>
    %cst_8 = arith.constant 2.000000e+00 : f32
    %7 = vector.broadcast %cst_8 : f32 to vector<64x256xf32>
    %8 = arith.mulf %7, %4 : vector<64x256xf32>
    %9 = vector.broadcast %6 : vector<1x256xf32> to vector<64x256xf32>
    %10 = arith.subf %9, %8 : vector<64x256xf32>
    %11 = tpu.iota {dimensions = array<i32: 1>} : vector<64x256xi32>
    %c0_i32 = arith.constant 0 : i32
    %cst_9 = arith.constant dense<0x7F800000> : vector<64xf32>
    %12 = vector.multi_reduction <minimumf>, %10, %cst_9 [1] : vector<64x256xf32> to vector<64xf32>
    %13 = vector.shape_cast %12 : vector<64xf32> to vector<64x1xf32>
    %14 = vector.broadcast %13 : vector<64x1xf32> to vector<64x256xf32>
    %15 = arith.cmpf ole, %10, %14 : vector<64x256xf32>
    %c256_i32 = arith.constant 256 : i32
    %16 = vector.broadcast %c256_i32 : i32 to vector<64x256xi32>
    %17 = arith.select %15, %11, %16 : vector<64x256xi1>, vector<64x256xi32>
    %cst_10 = arith.constant dense<2147483647> : vector<64xi32>
    %18 = vector.multi_reduction <minsi>, %17, %cst_10 [1] : vector<64x256xi32> to vector<64xi32>
    %19 = vector.shape_cast %18 : vector<64xi32> to vector<64x1xi32>
    %20 = vector.broadcast %19 : vector<64x1xi32> to vector<64x256xi32>
    %21 = arith.cmpi eq, %11, %20 : vector<64x256xi32>
    %c64_i32 = arith.constant 64 : i32
    %22 = arith.muli %c0_i32, %c64_i32 : i32
    %23 = tpu.assume_multiple %22, 64 : i32
    %24 = arith.extui %21 : vector<64x256xi1> to vector<64x256xi32>
    %25 = arith.sitofp %24 : vector<64x256xi32> to vector<64x256xf32>
    %26 = arith.truncf %25 : vector<64x256xf32> to vector<64x256xbf16>
    %27 = arith.index_cast %23 : i32 to index
    %c0_11 = arith.constant 0 : index
    %28 = vector.load %arg14[%27, %c0_11] : memref<512x256xbf16, #tpu.memory_space<vmem>>, vector<64x256xbf16>
    tpu.vector_store %arg14[%27, %c0_11], %26 {strides = array<i32>} : memref<512x256xbf16, #tpu.memory_space<vmem>>, vector<64x256xbf16>,
    %cst_12 = arith.constant 0x7F800000 : f32
    %29 = vector.broadcast %cst_12 : f32 to vector<64x256xf32>
    %30 = arith.select %21, %29, %10 : vector<64x256xi1>, vector<64x256xf32>
    %c1_i32 = arith.constant 1 : i32
    %cst_13 = arith.constant dense<0x7F800000> : vector<64xf32>
    %31 = vector.multi_reduction <minimumf>, %30, %cst_13 [1] : vector<64x256xf32> to vector<64xf32>
    %32 = vector.shape_cast %31 : vector<64xf32> to vector<64x1xf32>
    %33 = vector.broadcast %32 : vector<64x1xf32> to vector<64x256xf32>
    %34 = arith.cmpf ole, %30, %33 : vector<64x256xf32>
    %c256_i32_14 = arith.constant 256 : i32
    %35 = vector.broadcast %c256_i32_14 : i32 to vector<64x256xi32>
    %36 = arith.select %34, %11, %35 : vector<64x256xi1>, vector<64x256xi32>
    %cst_15 = arith.constant dense<2147483647> : vector<64xi32>
    %37 = vector.multi_reduction <minsi>, %36, %cst_15 [1] : vector<64x256xi32> to vector<64xi32>
    %38 = vector.shape_cast %37 : vector<64xi32> to vector<64x1xi32>
    %39 = vector.broadcast %38 : vector<64x1xi32> to vector<64x256xi32>
    %40 = arith.cmpi eq, %11, %39 : vector<64x256xi32>
    %c64_i32_16 = arith.constant 64 : i32
    %41 = arith.muli %c1_i32, %c64_i32_16 : i32
    %42 = tpu.assume_multiple %41, 64 : i32
    %43 = arith.extui %40 : vector<64x256xi1> to vector<64x256xi32>
    %44 = arith.sitofp %43 : vector<64x256xi32> to vector<64x256xf32>
    %45 = arith.truncf %44 : vector<64x256xf32> to vector<64x256xbf16>
    %46 = arith.index_cast %42 : i32 to index
    %c0_17 = arith.constant 0 : index
    %47 = vector.load %arg14[%46, %c0_17] : memref<512x256xbf16, #tpu.memory_space<vmem>>, vector<64x256xbf16>
    tpu.vector_store %arg14[%46, %c0_17], %45 {strides = array<i32>} : memref<512x256xbf16, #tpu.memory_space<vmem>>, vector<64x256xbf16>,
    %cst_18 = arith.constant 0x7F800000 : f32
    %48 = vector.broadcast %cst_18 : f32 to vector<64x256xf32>
    %49 = arith.select %40, %48, %30 : vector<64x256xi1>, vector<64x256xf32>
    %c2_i32 = arith.constant 2 : i32
    %cst_19 = arith.constant dense<0x7F800000> : vector<64xf32>
    %50 = vector.multi_reduction <minimumf>, %49, %cst_19 [1] : vector<64x256xf32> to vector<64xf32>
    %51 = vector.shape_cast %50 : vector<64xf32> to vector<64x1xf32>
    %52 = vector.broadcast %51 : vector<64x1xf32> to vector<64x256xf32>
    %53 = arith.cmpf ole, %49, %52 : vector<64x256xf32>
    %c256_i32_20 = arith.constant 256 : i32
    %54 = vector.broadcast %c256_i32_20 : i32 to vector<64x256xi32>
    %55 = arith.select %53, %11, %54 : vector<64x256xi1>, vector<64x256xi32>
    %cst_21 = arith.constant dense<2147483647> : vector<64xi32>
    %56 = vector.multi_reduction <minsi>, %55, %cst_21 [1] : vector<64x256xi32> to vector<64xi32>
    %57 = vector.shape_cast %56 : vector<64xi32> to vector<64x1xi32>
    %58 = vector.broadcast %57 : vector<64x1xi32> to vector<64x256xi32>
    %59 = arith.cmpi eq, %11, %58 : vector<64x256xi32>
    %c64_i32_22 = arith.constant 64 : i32
    %60 = arith.muli %c2_i32, %c64_i32_22 : i32
    %61 = tpu.assume_multiple %60, 64 : i32
    %62 = arith.extui %59 : vector<64x256xi1> to vector<64x256xi32>
    %63 = arith.sitofp %62 : vector<64x256xi32> to vector<64x256xf32>
    %64 = arith.truncf %63 : vector<64x256xf32> to vector<64x256xbf16>
    %65 = arith.index_cast %61 : i32 to index
    %c0_23 = arith.constant 0 : index
    %66 = vector.load %arg14[%65, %c0_23] : memref<512x256xbf16, #tpu.memory_space<vmem>>, vector<64x256xbf16>
    tpu.vector_store %arg14[%65, %c0_23], %64 {strides = array<i32>} : memref<512x256xbf16, #tpu.memory_space<vmem>>, vector<64x256xbf16>,
    %cst_24 = arith.constant 0x7F800000 : f32
    %67 = vector.broadcast %cst_24 : f32 to vector<64x256xf32>
    %68 = arith.select %59, %67, %49 : vector<64x256xi1>, vector<64x256xf32>
    %c3_i32 = arith.constant 3 : i32
    %cst_25 = arith.constant dense<0x7F800000> : vector<64xf32>
    %69 = vector.multi_reduction <minimumf>, %68, %cst_25 [1] : vector<64x256xf32> to vector<64xf32>
    %70 = vector.shape_cast %69 : vector<64xf32> to vector<64x1xf32>
    %71 = vector.broadcast %70 : vector<64x1xf32> to vector<64x256xf32>
    %72 = arith.cmpf ole, %68, %71 : vector<64x256xf32>
    %c256_i32_26 = arith.constant 256 : i32
    %73 = vector.broadcast %c256_i32_26 : i32 to vector<64x256xi32>
    %74 = arith.select %72, %11, %73 : vector<64x256xi1>, vector<64x256xi32>
    %cst_27 = arith.constant dense<2147483647> : vector<64xi32>
    %75 = vector.multi_reduction <minsi>, %74, %cst_27 [1] : vector<64x256xi32> to vector<64xi32>
    %76 = vector.shape_cast %75 : vector<64xi32> to vector<64x1xi32>
    %77 = vector.broadcast %76 : vector<64x1xi32> to vector<64x256xi32>
    %78 = arith.cmpi eq, %11, %77 : vector<64x256xi32>
    %c64_i32_28 = arith.constant 64 : i32
    %79 = arith.muli %c3_i32, %c64_i32_28 : i32
    %80 = tpu.assume_multiple %79, 64 : i32
    %81 = arith.extui %78 : vector<64x256xi1> to vector<64x256xi32>
    %82 = arith.sitofp %81 : vector<64x256xi32> to vector<64x256xf32>
    %83 = arith.truncf %82 : vector<64x256xf32> to vector<64x256xbf16>
    %84 = arith.index_cast %80 : i32 to index
    %c0_29 = arith.constant 0 : index
    %85 = vector.load %arg14[%84, %c0_29] : memref<512x256xbf16, #tpu.memory_space<vmem>>, vector<64x256xbf16>
    tpu.vector_store %arg14[%84, %c0_29], %83 {strides = array<i32>} : memref<512x256xbf16, #tpu.memory_space<vmem>>, vector<64x256xbf16>,
    %cst_30 = arith.constant 0x7F800000 : f32
    %86 = vector.broadcast %cst_30 : f32 to vector<64x256xf32>
    %87 = arith.select %78, %86, %68 : vector<64x256xi1>, vector<64x256xf32>
    %c4_i32 = arith.constant 4 : i32
    %cst_31 = arith.constant dense<0x7F800000> : vector<64xf32>
    %88 = vector.multi_reduction <minimumf>, %87, %cst_31 [1] : vector<64x256xf32> to vector<64xf32>
    %89 = vector.shape_cast %88 : vector<64xf32> to vector<64x1xf32>
    %90 = vector.broadcast %89 : vector<64x1xf32> to vector<64x256xf32>
    %91 = arith.cmpf ole, %87, %90 : vector<64x256xf32>
    %c256_i32_32 = arith.constant 256 : i32
    %92 = vector.broadcast %c256_i32_32 : i32 to vector<64x256xi32>
    %93 = arith.select %91, %11, %92 : vector<64x256xi1>, vector<64x256xi32>
    %cst_33 = arith.constant dense<2147483647> : vector<64xi32>
    %94 = vector.multi_reduction <minsi>, %93, %cst_33 [1] : vector<64x256xi32> to vector<64xi32>
    %95 = vector.shape_cast %94 : vector<64xi32> to vector<64x1xi32>
    %96 = vector.broadcast %95 : vector<64x1xi32> to vector<64x256xi32>
    %97 = arith.cmpi eq, %11, %96 : vector<64x256xi32>
    %c64_i32_34 = arith.constant 64 : i32
    %98 = arith.muli %c4_i32, %c64_i32_34 : i32
    %99 = tpu.assume_multiple %98, 64 : i32
    %100 = arith.extui %97 : vector<64x256xi1> to vector<64x256xi32>
    %101 = arith.sitofp %100 : vector<64x256xi32> to vector<64x256xf32>
    %102 = arith.truncf %101 : vector<64x256xf32> to vector<64x256xbf16>
    %103 = arith.index_cast %99 : i32 to index
    %c0_35 = arith.constant 0 : index
    %104 = vector.load %arg14[%103, %c0_35] : memref<512x256xbf16, #tpu.memory_space<vmem>>, vector<64x256xbf16>
    tpu.vector_store %arg14[%103, %c0_35], %102 {strides = array<i32>} : memref<512x256xbf16, #tpu.memory_space<vmem>>, vector<64x256xbf16>,
    %cst_36 = arith.constant 0x7F800000 : f32
    %105 = vector.broadcast %cst_36 : f32 to vector<64x256xf32>
    %106 = arith.select %97, %105, %87 : vector<64x256xi1>, vector<64x256xf32>
    %c5_i32 = arith.constant 5 : i32
    %cst_37 = arith.constant dense<0x7F800000> : vector<64xf32>
    %107 = vector.multi_reduction <minimumf>, %106, %cst_37 [1] : vector<64x256xf32> to vector<64xf32>
    %108 = vector.shape_cast %107 : vector<64xf32> to vector<64x1xf32>
    %109 = vector.broadcast %108 : vector<64x1xf32> to vector<64x256xf32>
    %110 = arith.cmpf ole, %106, %109 : vector<64x256xf32>
    %c256_i32_38 = arith.constant 256 : i32
    %111 = vector.broadcast %c256_i32_38 : i32 to vector<64x256xi32>
    %112 = arith.select %110, %11, %111 : vector<64x256xi1>, vector<64x256xi32>
    %cst_39 = arith.constant dense<2147483647> : vector<64xi32>
    %113 = vector.multi_reduction <minsi>, %112, %cst_39 [1] : vector<64x256xi32> to vector<64xi32>
    %114 = vector.shape_cast %113 : vector<64xi32> to vector<64x1xi32>
    %115 = vector.broadcast %114 : vector<64x1xi32> to vector<64x256xi32>
    %116 = arith.cmpi eq, %11, %115 : vector<64x256xi32>
    %c64_i32_40 = arith.constant 64 : i32
    %117 = arith.muli %c5_i32, %c64_i32_40 : i32
    %118 = tpu.assume_multiple %117, 64 : i32
    %119 = arith.extui %116 : vector<64x256xi1> to vector<64x256xi32>
    %120 = arith.sitofp %119 : vector<64x256xi32> to vector<64x256xf32>
    %121 = arith.truncf %120 : vector<64x256xf32> to vector<64x256xbf16>
    %122 = arith.index_cast %118 : i32 to index
    %c0_41 = arith.constant 0 : index
    %123 = vector.load %arg14[%122, %c0_41] : memref<512x256xbf16, #tpu.memory_space<vmem>>, vector<64x256xbf16>
    tpu.vector_store %arg14[%122, %c0_41], %121 {strides = array<i32>} : memref<512x256xbf16, #tpu.memory_space<vmem>>, vector<64x256xbf16>,
    %cst_42 = arith.constant 0x7F800000 : f32
    %124 = vector.broadcast %cst_42 : f32 to vector<64x256xf32>
    %125 = arith.select %116, %124, %106 : vector<64x256xi1>, vector<64x256xf32>
    %c6_i32 = arith.constant 6 : i32
    %cst_43 = arith.constant dense<0x7F800000> : vector<64xf32>
    %126 = vector.multi_reduction <minimumf>, %125, %cst_43 [1] : vector<64x256xf32> to vector<64xf32>
    %127 = vector.shape_cast %126 : vector<64xf32> to vector<64x1xf32>
    %128 = vector.broadcast %127 : vector<64x1xf32> to vector<64x256xf32>
    %129 = arith.cmpf ole, %125, %128 : vector<64x256xf32>
    %c256_i32_44 = arith.constant 256 : i32
    %130 = vector.broadcast %c256_i32_44 : i32 to vector<64x256xi32>
    %131 = arith.select %129, %11, %130 : vector<64x256xi1>, vector<64x256xi32>
    %cst_45 = arith.constant dense<2147483647> : vector<64xi32>
    %132 = vector.multi_reduction <minsi>, %131, %cst_45 [1] : vector<64x256xi32> to vector<64xi32>
    %133 = vector.shape_cast %132 : vector<64xi32> to vector<64x1xi32>
    %134 = vector.broadcast %133 : vector<64x1xi32> to vector<64x256xi32>
    %135 = arith.cmpi eq, %11, %134 : vector<64x256xi32>
    %c64_i32_46 = arith.constant 64 : i32
    %136 = arith.muli %c6_i32, %c64_i32_46 : i32
    %137 = tpu.assume_multiple %136, 64 : i32
    %138 = arith.extui %135 : vector<64x256xi1> to vector<64x256xi32>
    %139 = arith.sitofp %138 : vector<64x256xi32> to vector<64x256xf32>
    %140 = arith.truncf %139 : vector<64x256xf32> to vector<64x256xbf16>
    %141 = arith.index_cast %137 : i32 to index
    %c0_47 = arith.constant 0 : index
    %142 = vector.load %arg14[%141, %c0_47] : memref<512x256xbf16, #tpu.memory_space<vmem>>, vector<64x256xbf16>
    tpu.vector_store %arg14[%141, %c0_47], %140 {strides = array<i32>} : memref<512x256xbf16, #tpu.memory_space<vmem>>, vector<64x256xbf16>,
    %cst_48 = arith.constant 0x7F800000 : f32
    %143 = vector.broadcast %cst_48 : f32 to vector<64x256xf32>
    %144 = arith.select %135, %143, %125 : vector<64x256xi1>, vector<64x256xf32>
    %c7_i32 = arith.constant 7 : i32
    %cst_49 = arith.constant dense<0x7F800000> : vector<64xf32>
    %145 = vector.multi_reduction <minimumf>, %144, %cst_49 [1] : vector<64x256xf32> to vector<64xf32>
    %146 = vector.shape_cast %145 : vector<64xf32> to vector<64x1xf32>
    %147 = vector.broadcast %146 : vector<64x1xf32> to vector<64x256xf32>
    %148 = arith.cmpf ole, %144, %147 : vector<64x256xf32>
    %c256_i32_50 = arith.constant 256 : i32
    %149 = vector.broadcast %c256_i32_50 : i32 to vector<64x256xi32>
    %150 = arith.select %148, %11, %149 : vector<64x256xi1>, vector<64x256xi32>
    %cst_51 = arith.constant dense<2147483647> : vector<64xi32>
    %151 = vector.multi_reduction <minsi>, %150, %cst_51 [1] : vector<64x256xi32> to vector<64xi32>
    %152 = vector.shape_cast %151 : vector<64xi32> to vector<64x1xi32>
    %153 = vector.broadcast %152 : vector<64x1xi32> to vector<64x256xi32>
    %154 = arith.cmpi eq, %11, %153 : vector<64x256xi32>
    %c64_i32_52 = arith.constant 64 : i32
    %155 = arith.muli %c7_i32, %c64_i32_52 : i32
    %156 = tpu.assume_multiple %155, 64 : i32
    %157 = arith.extui %154 : vector<64x256xi1> to vector<64x256xi32>
    %158 = arith.sitofp %157 : vector<64x256xi32> to vector<64x256xf32>
    %159 = arith.truncf %158 : vector<64x256xf32> to vector<64x256xbf16>
    %160 = arith.index_cast %156 : i32 to index
    %c0_53 = arith.constant 0 : index
    %161 = vector.load %arg14[%160, %c0_53] : memref<512x256xbf16, #tpu.memory_space<vmem>>, vector<64x256xbf16>
    tpu.vector_store %arg14[%160, %c0_53], %159 {strides = array<i32>} : memref<512x256xbf16, #tpu.memory_space<vmem>>, vector<64x256xbf16>,
    %cst_54 = arith.constant 0x7F800000 : f32
    %162 = vector.broadcast %cst_54 : f32 to vector<64x256xf32>
    %163 = arith.select %154, %162, %144 : vector<64x256xi1>, vector<64x256xf32>
    %c8_i32 = arith.constant 8 : i32
    %c0_55 = arith.constant 0 : index
    %c0_56 = arith.constant 0 : index
    %164 = vector.load %arg14[%c0_55, %c0_56] : memref<512x256xbf16, #tpu.memory_space<vmem>>, vector<512x256xbf16>
    %c0_57 = arith.constant 0 : index
    %c0_58 = arith.constant 0 : index
    %c0_59 = arith.constant 0 : index
    %165 = vector.load %arg5[%c0_57, %c0_58, %c0_59] : memref<1x256x64xbf16, #tpu.memory_space<vmem>>, vector<1x256x64xbf16>
    %166 = vector.shape_cast %165 : vector<1x256x64xbf16> to vector<256x64xbf16>
    %cst_60 = arith.constant dense<0.000000e+00> : vector<512x64xf32>
    %167 = tpu.matmul %164, %166, %cst_60 {dimension_numbers = #tpu.dot_dimension_numbers<[1], [0], [0], [1], [0, 0, 1, 1], [], []>} : vector<512x256xbf16>, vector<256x64xbf16>, vector<512x64xf32> -> vector<512x64xf32>
    %168 = vector.shape_cast %167 : vector<512x64xf32> to vector<8x64x64xf32>
    %c0_61 = arith.constant 0 : index
    %c0_62 = arith.constant 0 : index
    %c0_63 = arith.constant 0 : index
    %169 = vector.load %arg6[%c0_61, %c0_62, %c0_63] : memref<1x64x64xf32, #tpu.memory_space<vmem>>, vector<1x64x64xf32>
    %170 = vector.shape_cast %169 : vector<1x64x64xf32> to vector<64x64xf32>
    %171 = vector.shape_cast %170 : vector<64x64xf32> to vector<1x64x64xf32>
    %172 = vector.broadcast %171 : vector<1x64x64xf32> to vector<8x64x64xf32>
    %173 = arith.addf %168, %172 : vector<8x64x64xf32>
    %c0_64 = arith.constant 0 : index
    %c0_65 = arith.constant 0 : index
    %174 = vector.load %arg7[%c0_64, %c0_65] : memref<1x64xf32, #tpu.memory_space<vmem>>, vector<1x64xf32>
    %175 = vector.shape_cast %174 : vector<1x64xf32> to vector<1x1x64xf32>
    %176 = vector.broadcast %175 : vector<1x1x64xf32> to vector<8x64x64xf32>
    %177 = arith.mulf %173, %176 : vector<8x64x64xf32>
    %c0_66 = arith.constant 0 : index
    %c0_67 = arith.constant 0 : index
    %178 = vector.load %arg8[%c0_66, %c0_67] : memref<1x64xf32, #tpu.memory_space<vmem>>, vector<1x64xf32>
    %179 = vector.shape_cast %178 : vector<1x64xf32> to vector<1x1x64xf32>
    %180 = vector.broadcast %179 : vector<1x1x64xf32> to vector<8x64x64xf32>
    %181 = arith.addf %177, %180 : vector<8x64x64xf32>
    %cst_68 = arith.constant 5.000000e-01 : f32
    %182 = vector.broadcast %cst_68 : f32 to vector<8x64x64xf32>
    %183 = arith.mulf %182, %181 : vector<8x64x64xf32>
    %cst_69 = arith.constant 0.707106769 : f32
    %184 = vector.broadcast %cst_69 : f32 to vector<8x64x64xf32>
    %185 = arith.mulf %181, %184 : vector<8x64x64xf32>
    %cst_70 = arith.constant 0.000000e+00 : f32
    %186 = vector.broadcast %cst_70 : f32 to vector<8x64x64xf32>
    %187 = arith.cmpf oge, %185, %186 : vector<8x64x64xf32>
    %cst_71 = arith.constant 1.000000e+00 : f32
    %cst_72 = arith.constant -1.000000e+00 : f32
    %188 = vector.broadcast %cst_71 : f32 to vector<8x64x64xf32>
    %189 = vector.broadcast %cst_72 : f32 to vector<8x64x64xf32>
    %190 = arith.select %187, %188, %189 : vector<8x64x64xi1>, vector<8x64x64xf32>
    %191 = math.absf %185 : vector<8x64x64xf32>
    %cst_73 = arith.constant 0.327591091 : f32
    %192 = vector.broadcast %cst_73 : f32 to vector<8x64x64xf32>
    %193 = arith.mulf %192, %191 : vector<8x64x64xf32>
    %cst_74 = arith.constant 1.000000e+00 : f32
    %194 = vector.broadcast %cst_74 : f32 to vector<8x64x64xf32>
    %195 = arith.addf %194, %193 : vector<8x64x64xf32>
    %cst_75 = arith.constant 1.000000e+00 : f32
    %196 = vector.broadcast %cst_75 : f32 to vector<8x64x64xf32>
    %197 = arith.divf %196, %195 : vector<8x64x64xf32>
    %cst_76 = arith.constant 1.06140542 : f32
    %198 = vector.broadcast %cst_76 : f32 to vector<8x64x64xf32>
    %199 = arith.mulf %198, %197 : vector<8x64x64xf32>
    %cst_77 = arith.constant -1.45315206 : f32
    %200 = vector.broadcast %cst_77 : f32 to vector<8x64x64xf32>
    %201 = arith.addf %199, %200 : vector<8x64x64xf32>
    %202 = arith.mulf %201, %197 : vector<8x64x64xf32>
    %cst_78 = arith.constant 1.42141378 : f32
    %203 = vector.broadcast %cst_78 : f32 to vector<8x64x64xf32>
    %204 = arith.addf %202, %203 : vector<8x64x64xf32>
    %205 = arith.mulf %204, %197 : vector<8x64x64xf32>
    %cst_79 = arith.constant -0.284496725 : f32
    %206 = vector.broadcast %cst_79 : f32 to vector<8x64x64xf32>
    %207 = arith.addf %205, %206 : vector<8x64x64xf32>
    %208 = arith.mulf %207, %197 : vector<8x64x64xf32>
    %cst_80 = arith.constant 0.254829586 : f32
    %209 = vector.broadcast %cst_80 : f32 to vector<8x64x64xf32>
    %210 = arith.addf %208, %209 : vector<8x64x64xf32>
    %211 = arith.mulf %210, %197 : vector<8x64x64xf32>
    %cst_81 = arith.constant 0.000000e+00 : f32
    %212 = vector.broadcast %cst_81 : f32 to vector<8x64x64xf32>
    %213 = arith.subf %212, %191 : vector<8x64x64xf32>
    %214 = arith.mulf %213, %191 : vector<8x64x64xf32>
    %215 = math.exp %214 : vector<8x64x64xf32>
    %216 = arith.mulf %211, %215 : vector<8x64x64xf32>
    %cst_82 = arith.constant 1.000000e+00 : f32
    %217 = vector.broadcast %cst_82 : f32 to vector<8x64x64xf32>
    %218 = arith.subf %217, %216 : vector<8x64x64xf32>
    %219 = arith.mulf %190, %218 : vector<8x64x64xf32>
    %cst_83 = arith.constant 1.000000e+00 : f32
    %220 = vector.broadcast %cst_83 : f32 to vector<8x64x64xf32>
    %221 = arith.addf %220, %219 : vector<8x64x64xf32>
    %222 = arith.mulf %183, %221 : vector<8x64x64xf32>
    %223 = vector.shape_cast %222 : vector<8x64x64xf32> to vector<512x64xf32>
    %224 = arith.truncf %223 : vector<512x64xf32> to vector<512x64xbf16>
    %c0_84 = arith.constant 0 : index
    %c0_85 = arith.constant 0 : index
    %225 = vector.load %arg9[%c0_84, %c0_85] : memref<64x128xbf16, #tpu.memory_space<vmem>>, vector<64x128xbf16>
    %cst_86 = arith.constant dense<0.000000e+00> : vector<512x128xf32>
    %226 = tpu.matmul %224, %225, %cst_86 {dimension_numbers = #tpu.dot_dimension_numbers<[1], [0], [0], [1], [0, 0, 1, 1], [], []>} : vector<512x64xbf16>, vector<64x128xbf16>, vector<512x128xf32> -> vector<512x128xf32>
    %227 = vector.shape_cast %226 : vector<512x128xf32> to vector<8x64x128xf32>
    %cst_87 = arith.constant dense<0xFF800000> : vector<64x128xf32>
    %228 = vector.multi_reduction <maximumf>, %227, %cst_87 [0] : vector<8x64x128xf32> to vector<64x128xf32>
    %c0_88 = arith.constant 0 : index
    %c0_89 = arith.constant 0 : index
    %229 = vector.load %arg10[%c0_88, %c0_89] : memref<1x128xf32, #tpu.memory_space<vmem>>, vector<1x128xf32>
    %230 = vector.broadcast %229 : vector<1x128xf32> to vector<64x128xf32>
    %231 = arith.mulf %228, %230 : vector<64x128xf32>
    %c0_90 = arith.constant 0 : index
    %c0_91 = arith.constant 0 : index
    %232 = vector.load %arg11[%c0_90, %c0_91] : memref<1x128xf32, #tpu.memory_space<vmem>>, vector<1x128xf32>
    %233 = vector.broadcast %232 : vector<1x128xf32> to vector<64x128xf32>
    %234 = arith.addf %231, %233 : vector<64x128xf32>
    %cst_92 = arith.constant 5.000000e-01 : f32
    %235 = vector.broadcast %cst_92 : f32 to vector<64x128xf32>
    %236 = arith.mulf %235, %234 : vector<64x128xf32>
    %cst_93 = arith.constant 0.707106769 : f32
    %237 = vector.broadcast %cst_93 : f32 to vector<64x128xf32>
    %238 = arith.mulf %234, %237 : vector<64x128xf32>
    %cst_94 = arith.constant 0.000000e+00 : f32
    %239 = vector.broadcast %cst_94 : f32 to vector<64x128xf32>
    %240 = arith.cmpf oge, %238, %239 : vector<64x128xf32>
    %cst_95 = arith.constant 1.000000e+00 : f32
    %cst_96 = arith.constant -1.000000e+00 : f32
    %241 = vector.broadcast %cst_95 : f32 to vector<64x128xf32>
    %242 = vector.broadcast %cst_96 : f32 to vector<64x128xf32>
    %243 = arith.select %240, %241, %242 : vector<64x128xi1>, vector<64x128xf32>
    %244 = math.absf %238 : vector<64x128xf32>
    %cst_97 = arith.constant 0.327591091 : f32
    %245 = vector.broadcast %cst_97 : f32 to vector<64x128xf32>
    %246 = arith.mulf %245, %244 : vector<64x128xf32>
    %cst_98 = arith.constant 1.000000e+00 : f32
    %247 = vector.broadcast %cst_98 : f32 to vector<64x128xf32>
    %248 = arith.addf %247, %246 : vector<64x128xf32>
    %cst_99 = arith.constant 1.000000e+00 : f32
    %249 = vector.broadcast %cst_99 : f32 to vector<64x128xf32>
    %250 = arith.divf %249, %248 : vector<64x128xf32>
    %cst_100 = arith.constant 1.06140542 : f32
    %251 = vector.broadcast %cst_100 : f32 to vector<64x128xf32>
    %252 = arith.mulf %251, %250 : vector<64x128xf32>
    %cst_101 = arith.constant -1.45315206 : f32
    %253 = vector.broadcast %cst_101 : f32 to vector<64x128xf32>
    %254 = arith.addf %252, %253 : vector<64x128xf32>
    %255 = arith.mulf %254, %250 : vector<64x128xf32>
    %cst_102 = arith.constant 1.42141378 : f32
    %256 = vector.broadcast %cst_102 : f32 to vector<64x128xf32>
    %257 = arith.addf %255, %256 : vector<64x128xf32>
    %258 = arith.mulf %257, %250 : vector<64x128xf32>
    %cst_103 = arith.constant -0.284496725 : f32
    %259 = vector.broadcast %cst_103 : f32 to vector<64x128xf32>
    %260 = arith.addf %258, %259 : vector<64x128xf32>
    %261 = arith.mulf %260, %250 : vector<64x128xf32>
    %cst_104 = arith.constant 0.254829586 : f32
    %262 = vector.broadcast %cst_104 : f32 to vector<64x128xf32>
    %263 = arith.addf %261, %262 : vector<64x128xf32>
    %264 = arith.mulf %263, %250 : vector<64x128xf32>
    %cst_105 = arith.constant 0.000000e+00 : f32
    %265 = vector.broadcast %cst_105 : f32 to vector<64x128xf32>
    %266 = arith.subf %265, %244 : vector<64x128xf32>
    %267 = arith.mulf %266, %244 : vector<64x128xf32>
    %268 = math.exp %267 : vector<64x128xf32>
    %269 = arith.mulf %264, %268 : vector<64x128xf32>
    %cst_106 = arith.constant 1.000000e+00 : f32
    %270 = vector.broadcast %cst_106 : f32 to vector<64x128xf32>
    %271 = arith.subf %270, %269 : vector<64x128xf32>
    %272 = arith.mulf %243, %271 : vector<64x128xf32>
    %cst_107 = arith.constant 1.000000e+00 : f32
    %273 = vector.broadcast %cst_107 : f32 to vector<64x128xf32>
    %274 = arith.addf %273, %272 : vector<64x128xf32>
    %275 = arith.mulf %236, %274 : vector<64x128xf32>
    %276 = arith.truncf %275 : vector<64x128xf32> to vector<64x128xbf16>
    %c0_108 = arith.constant 0 : index
    %c0_109 = arith.constant 0 : index
    %277 = vector.load %arg12[%c0_108, %c0_109] : memref<128x1024xbf16, #tpu.memory_space<vmem>>, vector<128x1024xbf16>
    %cst_110 = arith.constant dense<0.000000e+00> : vector<64x1024xf32>
    %278 = tpu.matmul %276, %277, %cst_110 {dimension_numbers = #tpu.dot_dimension_numbers<[1], [0], [0], [1], [0, 0, 1, 1], [], []>} : vector<64x128xbf16>, vector<128x1024xbf16>, vector<64x1024xf32> -> vector<64x1024xf32>
    %cst_111 = arith.constant dense<0xFF800000> : vector<1024xf32>
    %279 = vector.multi_reduction <maximumf>, %278, %cst_111 [0] : vector<64x1024xf32> to vector<1024xf32>
    %280 = vector.shape_cast %279 : vector<1024xf32> to vector<1x1024xf32>
    %c0_112 = arith.constant 0 : index
    %c0_113 = arith.constant 0 : index
    %c0_114 = arith.constant 0 : index
    %c0_115 = arith.constant 0 : index
    %281 = vector.load %arg13[%c0_112, %c0_113, %c0_114, %c0_115] : memref<1x1x1x1024xf32, #tpu.memory_space<vmem>>, vector<1x1x1x1024xf32>
    %282 = vector.shape_cast %281 : vector<1x1x1x1024xf32> to vector<1x1024xf32>
    %283 = vector.shape_cast %280 : vector<1x1024xf32> to vector<1x1x1x1024xf32>
    tpu.vector_store %arg13[%c0_112, %c0_113, %c0_114, %c0_115], %283 {strides = array<i32>} : memref<1x1x1x1024xf32, #tpu.memory_space<vmem>>, vector<1x1x1x1024xf32>,
    return
  }
  func.func @transform_0(%arg0: i32, %arg1: i32) -> (i32, i32, i32) {
    %c0_i32 = arith.constant 0 : i32
    %c0_i32_0 = arith.constant 0 : i32
    return %arg0, %arg1, %c0_i32 : i32, i32, i32
  }
  func.func @transform_1(%arg0: i32, %arg1: i32) -> (i32, i32, i32) {
    %c0_i32 = arith.constant 0 : i32
    %c0_i32_0 = arith.constant 0 : i32
    %c0_i32_1 = arith.constant 0 : i32
    return %arg0, %c0_i32, %c0_i32_0 : i32, i32, i32
  }
  func.func @transform_2(%arg0: i32, %arg1: i32) -> (i32, i32, i32) {
    %c0_i32 = arith.constant 0 : i32
    %c0_i32_0 = arith.constant 0 : i32
    %c0_i32_1 = arith.constant 0 : i32
    return %arg0, %c0_i32, %c0_i32_0 : i32, i32, i32
  }
  func.func @transform_3(%arg0: i32, %arg1: i32) -> (i32, i32, i32) {
    %c0_i32 = arith.constant 0 : i32
    %c0_i32_0 = arith.constant 0 : i32
    %c0_i32_1 = arith.constant 0 : i32
    return %arg0, %c0_i32, %c0_i32_0 : i32, i32, i32
  }
  func.func @transform_4(%arg0: i32, %arg1: i32) -> (i32, i32, i32) {
    %c0_i32 = arith.constant 0 : i32
    %c0_i32_0 = arith.constant 0 : i32
    return %arg0, %arg1, %c0_i32 : i32, i32, i32
  }
  func.func @transform_5(%arg0: i32, %arg1: i32) -> (i32, i32) {
    %c0_i32 = arith.constant 0 : i32
    %c0_i32_0 = arith.constant 0 : i32
    %c0_i32_1 = arith.constant 0 : i32
    return %c0_i32, %c0_i32_0 : i32, i32
  }
  func.func @transform_6(%arg0: i32, %arg1: i32) -> (i32, i32) {
    %c0_i32 = arith.constant 0 : i32
    %c0_i32_0 = arith.constant 0 : i32
    %c0_i32_1 = arith.constant 0 : i32
    return %c0_i32, %c0_i32_0 : i32, i32
  }
  func.func @transform_7(%arg0: i32, %arg1: i32) -> (i32, i32) {
    %c0_i32 = arith.constant 0 : i32
    %c0_i32_0 = arith.constant 0 : i32
    %c0_i32_1 = arith.constant 0 : i32
    return %c0_i32, %c0_i32_0 : i32, i32
  }
  func.func @transform_8(%arg0: i32, %arg1: i32) -> (i32, i32) {
    %c0_i32 = arith.constant 0 : i32
    %c0_i32_0 = arith.constant 0 : i32
    %c0_i32_1 = arith.constant 0 : i32
    return %c0_i32, %c0_i32_0 : i32, i32
  }
  func.func @transform_9(%arg0: i32, %arg1: i32) -> (i32, i32) {
    %c0_i32 = arith.constant 0 : i32
    %c0_i32_0 = arith.constant 0 : i32
    %c0_i32_1 = arith.constant 0 : i32
    return %c0_i32, %c0_i32_0 : i32, i32
  }
  func.func @transform_10(%arg0: i32, %arg1: i32) -> (i32, i32) {
    %c0_i32 = arith.constant 0 : i32
    %c0_i32_0 = arith.constant 0 : i32
    %c0_i32_1 = arith.constant 0 : i32
    return %c0_i32, %c0_i32_0 : i32, i32
  }
  func.func @transform_11(%arg0: i32, %arg1: i32) -> (i32, i32, i32, i32) {
    %c0_i32 = arith.constant 0 : i32
    %c0_i32_0 = arith.constant 0 : i32
    %c0_i32_1 = arith.constant 0 : i32
    return %arg0, %arg1, %c0_i32, %c0_i32_0 : i32, i32, i32, i32
  }
}

</mosaic_0001>

<bundles_post_ra>
// kernel: spatial_transform_net.1
= control target key start
LH: loop header
LB: loop body
LE: loop exit
PB: predicated region body
PF: predicated region fallthrough
CT: control target
= control target key end

     0   :  { %s12411_s0 = inlined_call_operand.vmem [shape: f32[2,256,8], index: 0, kind: input, shape index: {}]   ;;  %s12412_s1 = inlined_call_operand.vmem [shape: f32[2,8,256], index: 1, kind: input, shape index: {}]   ;;  %s12413_s2 = inlined_call_operand.vmem [shape: f32[2,1,256], index: 2, kind: input, shape index: {}]   ;;  %s12414_s3 = inlined_call_operand.vmem [shape: bf16[2,256,64], index: 3, kind: input, shape index: {}]   ;;  %s12415_s4 = inlined_call_operand.vmem [shape: f32[2,256,64], index: 4, kind: input, shape index: {}]   ;;  %s12416_s5 = inlined_call_operand.hbm [shape: f32[1,64], index: 5, kind: input, shape index: {}]   ;;  %s12417_s6 = inlined_call_operand.hbm [shape: f32[1,64], index: 6, kind: input, shape index: {}]   ;;  %s12418_s7 = inlined_call_operand.vmem [shape: bf16[64,128], index: 7, kind: input, shape index: {}]   ;;  %s12419_s8 = inlined_call_operand.hbm [shape: f32[1,128], index: 8, kind: input, shape index: {}]   ;;  %s12420_s9 = inlined_call_operand.hbm [shape: f32[1,128], index: 9, kind: input, shape index: {}]   ;;  %s12421_s10 = inlined_call_operand.vmem [shape: bf16[128,1024], index: 10, kind: input, shape index: {}]   ;;  %s12422_s11 = inlined_call_operand.vmem [shape: f32[2,4,1,1024], index: 11, kind: output, shape index: {}]  }
   0x1   :  { %12606 = sst [smem:[#allocation51_spill]] %s12417_s6 }
   0x2   :  { %16 = vsyncpa [#allocation4], 0 }
   0x3   :  { %17 = vsyncpa [#allocation6], 0 }
   0x4   :  { %18 = vsyncpa [#allocation9], 0  ;;  %s8301_s17 = smov 0   ;;  %s8303_s18 = smov 0  }
   0x5   :  { %s8305_s19 = smov 0   ;;  %s8307_s20 = smov 0  }
   0x6   :  { %s8309_s21 = smov 0  }
   0x7 LB: > { %12607 = sst [smem:[#allocation13_spill]] %s8222_s19  ;;  %s8232_s22 = smov [#allocation5]   ;;  %s8230_s21 = sphi %s8309_s21, %s24_s21   ;;  %s8226_s20 = sphi %s8307_s20, %s12998_s20   ;;  %s8222_s19 = sphi %s8305_s19, %s12997_s19   ;;  %s8218_s18 = sphi %s8303_s18, %s12996_s18   ;;  %s8214_s17 = sphi %s8301_s17, %s12995_s17  }
   0x8   : > { %12608 = sst [smem:[#allocation14_spill]] %s8226_s20  ;;  %s353_s23 = sshll.u32 %s8232_s22, 4  ;;  %s354_s23 = int_to_ptr.vmem [resolvable:$true] %s353_s23 }
   0x9   : > { %s7090_s24 = sadd.s32 4294967295, %s8230_s21   ;;  %p7092_p0 = scmp.ge.s32.totalorder %s8230_s21, 1 }
   0xa   : > { %p329_p1 = scmp.lt.s32.totalorder %s8230_s21, 9  ;;  %p8329_p2 = scmp.eq.s32.totalorder %s7090_s24, 0 }
   0xb   : > { %s33_s28 = sadd.s32 1, %s8222_s19  ;;  %s12613_s6 = sld [smem:[#allocation51_spill]] }
   0xc   : > { %s12609_s25 = scalar_select %p8329_p2, 1, 0 }
   0xd   : > { %p8333_p3 = pnand %p7092_p0, %p329_p1  ;;  %p8346_p6 = scmp.ge.s32.totalorder %s33_s28, 4 }
   0xf   : > { %s12610_s26 = scalar_select %p8333_p3, 1, 0 }
  0x10   : > { %p7628_p4 = pneg %p8333_p3 }
  0x11   : > { %s12612_s29 = scalar_select %p8346_p6, 1, 0 }
  0x12   : > { %p8341_p5 = pnand %p8329_p2, %p7628_p4  ;;  %s8068_s13 = scalar_lea.hbm %s12613_s6, 16 }
  0x13   : > { %p8069_p7 = scmp.ne.s32.totalorder %s12613_s6, %s8068_s13  ;;  %p8075_p11 = scmp.lt.u32.totalorder %s8068_s13, %s12613_s6 }
  0x14   : > { %p8358_p8 = pneg %p8341_p5 }
  0x16   : > { %p8071_p9 = pnand %p8358_p8, %p8069_p7 }
  0x18   : > { %p8072_p10 = pneg %p8071_p9 }
  0x1a   : > { %p8077_p12 = pnand %p8075_p11, %p8072_p10 }
  0x1c   : > { %8080 = shalt.err (!%p8077_p12)
}
  0x1d   : > { %s8081_s30 = scalar_lea.vmem %s354_s23, 16  ;;  %s8088_s12 = scalar_lea.vmem %s354_s23, 32 }
  0x1e   : > { %p8082_p13 = scmp.ne.s32.totalorder %s354_s23, %s8081_s30  ;;  %p8089_p4 = scmp.lt.s32.totalorder %s354_s23, %s354_s23 }
  0x1f   : > { %p8090_p2 = scmp.lt.s32.totalorder %s8088_s12, %s8081_s30 }
  0x20   : > { %p8084_p0 = pnand %p8082_p13, %p8358_p8 }
  0x21   : > { %p8091_p3 = por %p8090_p2, %p8089_p4 }
  0x22   : > { %p8085_p1 = pneg %p8084_p0 }
  0x24   : > { %p8092_p6 = pnand %p8091_p3, %p8085_p1 }
  0x26   : > { %8095 = shalt.err (!%p8092_p6)
}
  0x27   : > { %7634 = dma.hbm_to_vmem [thread:$0]  (!%p8341_p5), %s12613_s6, 16, %s354_s23, [#allocation6]  }
  0x28   : > { %p12615_p7 = scmp.ne.s32.totalorder %s12612_s29, 0  ;;  %s36_s13 = sadd.s32 1, %s8226_s20 }
  0x29   : > { %s8233_s22 = smov [#allocation3]   ;;  %s8096_s14 = scalar_lea.hbm %s12416_s5, 16 }
  0x2a   : > { %s13000_s28 = smov (%p12615_p7, %s33_s28), 0  ;;  %s13002_s13 = smov (!%p12615_p7, %s36_s13), %s8226_s20 }
  0x2b   : > { %12616 = sst [smem:[#allocation15_spill]] %s13000_s28  ;;  %s342_s24 = sshll.u32 %s8233_s22, 4  ;;  %s343_s24 = int_to_ptr.vmem [resolvable:$true] %s342_s24 }
  0x2c   : > { %p8097_p3 = scmp.ne.s32.totalorder %s12416_s5, %s8096_s14  ;;  %p8103_p10 = scmp.lt.u32.totalorder %s8096_s14, %s12416_s5 }
  0x2e   : > { %p8099_p6 = pnand %p8097_p3, %p8358_p8 }
  0x30   : > { %p8100_p9 = pneg %p8099_p6 }
  0x32   : > { %p8105_p11 = pnand %p8103_p10, %p8100_p9 }
  0x34   : > { %8108 = shalt.err (!%p8105_p11)
}
  0x35   : > { %s8109_s29 = scalar_lea.vmem %s343_s24, 16  ;;  %s8116_s22 = scalar_lea.vmem %s343_s24, 32 }
  0x36   : > { %p8110_p12 = scmp.ne.s32.totalorder %s343_s24, %s8109_s29  ;;  %p8117_p1 = scmp.lt.s32.totalorder %s343_s24, %s343_s24 }
  0x37   : > { %p8118_p4 = scmp.lt.s32.totalorder %s8116_s22, %s8109_s29 }
  0x38   : > { %p8112_p13 = pnand %p8110_p12, %p8358_p8 }
  0x39   : > { %p8119_p7 = por %p8118_p4, %p8117_p1 }
  0x3a   : > { %p8113_p0 = pneg %p8112_p13 }
  0x3c   : > { %p8120_p2 = pnand %p8119_p7, %p8113_p0 }
  0x3e   : > { %8123 = shalt.err (!%p8120_p2)
}
  0x3f   : > { %7631 = dma.hbm_to_vmem [thread:$0]  (!%p8341_p5), %s12416_s5, 16, %s343_s24, [#allocation4]  }
  0x40   : > { %p12617_p3 = scmp.ge.s32.totalorder %s13002_s13, 2  ;;  %s8234_s6 = smov [#allocation7]  }
  0x41   : > { %s367_s12 = sshll.u32 %s8234_s6, 4  ;;  %s8235_s14 = smov [#allocation8]   ;;  %s368_s12 = int_to_ptr.vmem [resolvable:$true] %s367_s12 }
  0x42   : > { %s13004_s13 = smov (%p12617_p3, %s13002_s13), 0  ;;  %s378_s15 = sshll.u32 %s8235_s14, 4  ;;  %s379_s15 = int_to_ptr.vmem [resolvable:$true] %s378_s15 }
  0x43   : > { %s8124_s22 = scalar_lea.hbm %s12419_s8, 16 }
  0x44   : > { %p8125_p2 = scmp.ne.s32.totalorder %s12419_s8, %s8124_s22  ;;  %p8131_p10 = scmp.lt.u32.totalorder %s8124_s22, %s12419_s8 }
  0x46   : > { %p8127_p6 = pnand %p8125_p2, %p8358_p8 }
  0x48   : > { %p8128_p9 = pneg %p8127_p6 }
  0x4a   : > { %p8133_p11 = pnand %p8131_p10, %p8128_p9 }
  0x4c   : > { %8136 = shalt.err (!%p8133_p11)
}
  0x4d   : > { %s8137_s30 = scalar_lea.vmem %s368_s12, 16  ;;  %s8144_s6 = scalar_lea.vmem %s368_s12, 32 }
  0x4e   : > { %p8138_p12 = scmp.ne.s32.totalorder %s368_s12, %s8137_s30  ;;  %p8145_p1 = scmp.lt.s32.totalorder %s368_s12, %s368_s12 }
  0x4f   : > { %p8146_p4 = scmp.lt.s32.totalorder %s8144_s6, %s8137_s30 }
  0x50   : > { %p8140_p13 = pnand %p8138_p12, %p8358_p8 }
  0x51   : > { %p8147_p7 = por %p8146_p4, %p8145_p1 }
  0x52   : > { %p8141_p0 = pneg %p8140_p13 }
  0x54   : > { %p8148_p3 = pnand %p8147_p7, %p8141_p0 }
  0x56   : > { %8151 = shalt.err (!%p8148_p3)
}
  0x57   : > { %7637 = dma.hbm_to_vmem [thread:$0]  (!%p8341_p5), %s12419_s8, 16, %s368_s12, [#allocation6]  }
  0x58   : > { %s8152_s29 = scalar_lea.hbm %s12420_s9, 16 }
  0x59   : > { %p8153_p2 = scmp.ne.s32.totalorder %s12420_s9, %s8152_s29  ;;  %p8159_p10 = scmp.lt.u32.totalorder %s8152_s29, %s12420_s9 }
  0x5b   : > { %p8155_p6 = pnand %p8153_p2, %p8358_p8 }
  0x5d   : > { %p8156_p9 = pneg %p8155_p6 }
  0x5f   : > { %p8161_p11 = pnand %p8159_p10, %p8156_p9 }
  0x61   : > { %8164 = shalt.err (!%p8161_p11)
}
  0x62   : > { %s8165_s6 = scalar_lea.vmem %s379_s15, 16  ;;  %s8172_s12 = scalar_lea.vmem %s379_s15, 32 }
  0x63   : > { %p8166_p12 = scmp.ne.s32.totalorder %s379_s15, %s8165_s6  ;;  %p8173_p1 = scmp.lt.s32.totalorder %s379_s15, %s379_s15 }
  0x64   : > { %p8174_p4 = scmp.lt.s32.totalorder %s8172_s12, %s8165_s6 }
  0x65   : > { %p8168_p13 = pnand %p8166_p12, %p8358_p8 }
  0x66   : > { %p8175_p7 = por %p8174_p4, %p8173_p1 }
  0x67   : > { %p8169_p0 = pneg %p8168_p13 }
  0x69   : > { %p8176_p3 = pnand %p8175_p7, %p8169_p0 }
  0x6b   : > { %8179 = shalt.err (!%p8176_p3)
}
  0x6c   : > { %7640 = dma.hbm_to_vmem [thread:$0]  (!%p8341_p5), %s12420_s9, 16, %s379_s15, [#allocation9]  }
  0x6d   : > { %p12618_p2 = scmp.ne.s32.totalorder %s12610_s26, 0 }
  0x6f   : > { %443 = sbr.rel (%p12618_p2) target bundleno = 4831 (0x12df), region = 64 }
  0x76   : > { %p12619_p6 = scmp.ne.s32.totalorder %s12609_s25, 0 }
  0x78   : > { %8201 = dma.done.wait (%p12619_p6), [#allocation4], 16  }
  0x79   : > { %8203 = vsyncadd (%p12619_p6), [#allocation4], 4294967280 }
  0x7a   : > { %8205 = dma.done.wait (%p12619_p6), [#allocation6], 32  }
  0x7b   : > { %8207 = vsyncadd (%p12619_p6), [#allocation6], 4294967264 }
  0x7c   : > { %8209 = dma.done.wait (%p12619_p6), [#allocation9], 16  }
  0x7d   : > { %8211 = vsyncadd (%p12619_p6), [#allocation9], 4294967280  ;;  %s7103_s26 = sshll.u32 %s8214_s17, 3  ;;  %p526_p5 = scmp.lt.s32.totalorder %s8218_s18, 1  ;;  %v8236_v0 = vmov 0.0   ;;  %vm578_vm0 = vcmask 64512   ;;  %v734_v11 = vlaneseq }
  0x7e   : > { %p528_p8 = scmp.lt.s32.totalorder %s7103_s26, 31  ;;  %667 = vmatprep.mubr.f32.mxu0 %v8236_v0  ;;  %p561_p9 = scmp.lt.s32.totalorder %s8214_s17, 3 }
  0x7f   : > { %s13006_s18 = smov (!%p526_p5, %s8218_s18), 1  ;;  %v8489_v12 = vshrl.u32 %v734_v11, 7 }
  0x80   : > { %s13008_s26 = smov (!%p528_p8, %s7103_s26), 31  ;;  %s7104_s27 = sshll.u32 %s13006_s18, 5 }
  0x81   : > { %s7374_s16 = sshll.u32 %s13006_s18, 4  ;;  %s8462_s25 = sadd.s32 %s7104_s27, %s13008_s26  ;;  %12620 = vst [vmem:[#allocation16_spill] sm:$0xff] %v8489_v12  ;;  %v736_v13 = vsub.s32 0, %v8489_v12  ;;  %v740_v15 = vsub.s32 1, %v8489_v12 }
  0x82   : > { %s539_s23 = scalar_lea.vmem %s12412_s1, %s7374_s16  ;;  %s7105_s29 = sshll.u32 %s8462_s25, 3 }
  0x83   : > { %s533_s19 = scalar_lea.vmem %s12411_s0, %s7105_s29  ;;  %v577_v1 = vld [vmem:[%s539_s23 + $0x8] sm:$0xff]  ;;  %v576_v2 = vld [vmem:[%s539_s23] sm:$0xff]  ;;  %s7375_s30 = sshll.u32 %s13006_s18, 7 }
  0x84   : > { %603 = vmatprep.subr.mxu0 %v577_v1  ;;  %v568_v3 = vld [vmem:[%s533_s19] sm:$0xff]  ;;  %s8477_s20 = scalar_lea.vmem %s12414_s3, %s7375_s30  ;;  %v569_v4 = vld [vmem:[%s533_s19 + $0x8] sm:$0xff]  ;;  %v570_v5 = vld [vmem:[%s533_s19 + $0x10] sm:$0xff]  ;;  %s7108_s28 = sshll.u32 %s13006_s18, 1 }
  0x85   : > { %604 = vmatpush1.msra.mxu0 %v576_v2  ;;  %v571_v6 = vld [vmem:[%s533_s19 + $0x18] sm:$0xff]  ;;  %v572_v7 = vld [vmem:[%s533_s19 + $0x20] sm:$0xff]  ;;  %v573_v8 = vld [vmem:[%s533_s19 + $0x28] sm:$0xff]  ;;  %s543_s15 = scalar_lea.vmem %s12413_s2, %s7108_s28  ;;  %s8895_s26 = scalar_lea.vmem %s12415_s4, %s7105_s29 }
  0x86   : > { %7116 = vmatmul.mubr.msk.f32.vlgmr.msra.gmra.mrb[0].mxu0 %vm578_vm0, %v568_v3  ;;  %v574_v9 = vld [vmem:[%s533_s19 + $0x30] sm:$0xff]  ;;  %v575_v10 = vld [vmem:[%s533_s19 + $0x38] sm:$0xff]  ;;  %v716_v14 = vld [vmem:[%s543_s15] sm:$0x3]  ;;  %s13010_s17 = smov (!%p561_p9, %s8214_s17), 3 }
  0x87   : > { %673 = vmatprep.mubr.f32.mxu0 %v8236_v0  ;;  %v737_v16 = vrot.slane %v716_v14, %v736_v13  ;;  %v741_v17 = vrot.slane %v716_v14, %v740_v15  ;;  %s7114_s19 = sshll.u32 %s13010_s17, 3 }
  0x88   : > { %s565_s30 = sadd.s32 %s7114_s19, %s7104_s27 }
  0x8a   : > { %7117 = vmatmul.mubr.msk.f32.gmra.mrb[2].mxu0 %vm578_vm0, %v569_v4 }
  0x8b   : > { %679 = vmatprep.mubr.f32.mxu0 %v8236_v0 }
  0x8e   : > { %7118 = vmatmul.mubr.msk.f32.gmra.mrb[4].mxu0 %vm578_vm0, %v570_v5 }
  0x8f   : > { %685 = vmatprep.mubr.f32.mxu0 %v8236_v0 }
  0x92   : > { %7119 = vmatmul.mubr.msk.f32.gmra.mrb[6].mxu0 %vm578_vm0, %v571_v6 }
  0x93   : > { %691 = vmatprep.mubr.f32.mxu0 %v8236_v0 }
  0x96   : > { %7120 = vmatmul.mubr.msk.f32.gmra.mrb[8].mxu0 %vm578_vm0, %v572_v7 }
  0x97   : > { %697 = vmatprep.mubr.f32.mxu0 %v8236_v0 }
  0x9a   : > { %7121 = vmatmul.mubr.msk.f32.gmra.mrb[10].mxu0 %vm578_vm0, %v573_v8 }
  0x9b   : > { %703 = vmatprep.mubr.f32.mxu0 %v8236_v0 }
  0x9e   : > { %7122 = vmatmul.mubr.msk.f32.gmra.mrb[12].mxu0 %vm578_vm0, %v574_v9 }
  0x9f   : > { %709 = vmatprep.mubr.f32.mxu0 %v8236_v0 }
  0xa2   : > { %7123 = vmatmul.mubr.msk.f32.gmra.mrb[14].mxu0 %vm578_vm0, %v575_v10  ;;  %v8545_v10 = vand.u32 127, %v734_v11 }
  0xa4   : > { %12621 = vst [vmem:[#allocation17_spill] sm:$0xff] %v8545_v10  ;;  %v8548_v13 = vadd.s32 128, %v8545_v10 }
  0xa6   : > { %12622 = vst [vmem:[#allocation18_spill] sm:$0xff] %v8548_v13 }
 0x159   : > { %v669_v18 = vpop.f32.mrb[0].mxu0 }
 0x15a   : > { %v717_v19 = vmul.f32 2.0, %v669_v18  ;;  %v671_v20 = vpop.f32.mrb[1].mxu0 }
 0x15b   : > { %v718_v21 = vmul.f32 2.0, %v671_v20 }
 0x15c   : > { %v8496_v22 = vsub.f32 %v737_v16, %v717_v19 }
 0x15d   : > { %v8498_v23 = vsub.f32 %v741_v17, %v718_v21  ;;  %v675_v24 = vpop.f32.mrb[2].mxu0 }
 0x15e   : > { %v719_v25 = vmul.f32 2.0, %v675_v24  ;;  %v677_v26 = vpop.f32.mrb[3].mxu0 }
 0x15f   : > { %v720_v27 = vmul.f32 2.0, %v677_v26  ;;  %v763_v28 = vmin.f32 %v8496_v22, %v8498_v23 }
 0x160   : > { %v8502_v29 = vsub.f32 %v737_v16, %v719_v25 }
 0x161   : > { %v8504_v30 = vsub.f32 %v741_v17, %v720_v27  ;;  %764 = vmin.xlane.f32.xlu0 %v763_v28  ;;  %v681_v31 = vpop.f32.mrb[4].mxu0 }
 0x162   : > { %v721_v32 = vmul.f32 2.0, %v681_v31  ;;  %v683_v33 = vpop.f32.mrb[5].mxu0 }
 0x163   : > { %v722_v34 = vmul.f32 2.0, %v683_v33  ;;  %v766_v35 = vmin.f32 %v8502_v29, %v8504_v30 }
 0x164   : > { %v8508_v36 = vsub.f32 %v737_v16, %v721_v32 }
 0x165   : > { %v8510_v37 = vsub.f32 %v741_v17, %v722_v34  ;;  %767 = vmin.xlane.f32.xlu0 %v766_v35  ;;  %v687_v38 = vpop.f32.mrb[6].mxu0 }
 0x166   : > { %v723_v39 = vmul.f32 2.0, %v687_v38  ;;  %v689_v40 = vpop.f32.mrb[7].mxu0 }
 0x167   : > { %v724_v41 = vmul.f32 2.0, %v689_v40  ;;  %v769_v42 = vmin.f32 %v8508_v36, %v8510_v37 }
 0x168   : > { %v8514_v43 = vsub.f32 %v737_v16, %v723_v39 }
 0x169   : > { %v8516_v44 = vsub.f32 %v741_v17, %v724_v41  ;;  %770 = vmin.xlane.f32.xlu1 %v769_v42  ;;  %v693_v45 = vpop.f32.mrb[8].mxu0 }
 0x16a   : > { %v725_v46 = vmul.f32 2.0, %v693_v45  ;;  %v695_v47 = vpop.f32.mrb[9].mxu0 }
 0x16b   : > { %v726_v48 = vmul.f32 2.0, %v695_v47  ;;  %v772_v49 = vmin.f32 %v8514_v43, %v8516_v44 }
 0x16c   : > { %v8520_v50 = vsub.f32 %v737_v16, %v725_v46 }
 0x16d   : > { %v8522_v51 = vsub.f32 %v741_v17, %v726_v48  ;;  %773 = vmin.xlane.f32.xlu1 %v772_v49  ;;  %v699_v52 = vpop.f32.mrb[10].mxu0 }
 0x16e   : > { %v727_v53 = vmul.f32 2.0, %v699_v52  ;;  %v701_v54 = vpop.f32.mrb[11].mxu0 }
 0x16f   : > { %v728_v55 = vmul.f32 2.0, %v701_v54  ;;  %v775_v56 = vmin.f32 %v8520_v50, %v8522_v51 }
 0x170   : > { %v8526_v57 = vsub.f32 %v737_v16, %v727_v53 }
 0x171   : > { %v8528_v58 = vsub.f32 %v741_v17, %v728_v55  ;;  %776 = vmin.xlane.f32.xlu0 %v775_v56  ;;  %v705_v59 = vpop.f32.mrb[12].mxu0 }
 0x172   : > { %v729_v60 = vmul.f32 2.0, %v705_v59  ;;  %v707_v61 = vpop.f32.mrb[13].mxu0 }
 0x173   : > { %v730_v62 = vmul.f32 2.0, %v707_v61  ;;  %v778_v63 = vmin.f32 %v8526_v57, %v8528_v58 }
 0x174   : > { %v8532_v0 = vsub.f32 %v737_v16, %v729_v60 }
 0x175   : > { %v8534_v1 = vsub.f32 %v741_v17, %v730_v62  ;;  %779 = vmin.xlane.f32.xlu1 %v778_v63  ;;  %v711_v2 = vpop.f32.mrb[14].mxu0 }
 0x176   : > { %v731_v3 = vmul.f32 2.0, %v711_v2  ;;  %v713_v4 = vpop.f32.mrb[15].mxu0 }
 0x177   : > { %v732_v5 = vmul.f32 2.0, %v713_v4  ;;  %v781_v6 = vmin.f32 %v8532_v0, %v8534_v1 }
 0x178   : > { %v8538_v7 = vsub.f32 %v737_v16, %v731_v3 }
 0x179   : > { %v8540_v8 = vsub.f32 %v741_v17, %v732_v5  ;;  %782 = vmin.xlane.f32.xlu0 %v781_v6 }
 0x17b   : > { %v784_v9 = vmin.f32 %v8538_v7, %v8540_v8 }
 0x17d   : > { %785 = vmin.xlane.f32.xlu1 %v784_v9 }
 0x1ee   : > { %v765_v14 = vpop.xlane.xlu0 %764 }
 0x1ef   : > { %vm787_vm1 = vcmp.le.f32.partialorder %v8496_v22, %v765_v14  ;;  %vm788_vm2 = vcmp.le.f32.partialorder %v8498_v23, %v765_v14 }
 0x1f0   : > { %v803_v15 = vsel %vm787_vm1, %v8545_v10, 256  ;;  %v804_v16 = vsel %vm788_vm2, %v8548_v13, 256 }
 0x1f1   : > { %vm819_vm3 = vcmp.lt.s32.totalorder %v803_v15, %v804_v16 }
 0x1f2   : > { %v768_v17 = vpop.xlane.xlu0 %767  ;;  %v8554_v18 = vsel %vm819_vm3, %v803_v15, %v804_v16 }
 0x1f3   : > { %vm789_vm4 = vcmp.le.f32.partialorder %v8502_v29, %v768_v17  ;;  %vm790_vm5 = vcmp.le.f32.partialorder %v8504_v30, %v768_v17  ;;  %v822_v11 = vshra.s32 %v8554_v18, 16  ;;  %v7698_v17 = vld [vmem:[%s8477_s20] sm:$0xff]  }
 0x1f4   : > { %v805_v19 = vsel %vm789_vm4, %v8545_v10, 256  ;;  %v806_v20 = vsel %vm790_vm5, %v8548_v13, 256 }
 0x1f5   : > { %v8561_v21 = vcvt.s32.f32 %v822_v11  ;;  %vm835_vm6 = vcmp.lt.s32.totalorder %v805_v19, %v806_v20  ;;  %v12429_v11 = vmov 0  }
 0x1f6   : > { %v771_v24 = vpop.xlane.xlu1 %770  ;;  %v8563_v25 = vsel %vm835_vm6, %v805_v19, %v806_v20  ;;  %3075 = vmatprep.subr.bf16.mxu1 %v12429_v11  ;;  %v7699_v19 = vld [vmem:[%s8477_s20 + $0x8] sm:$0xff]   ;;  %v7700_v20 = vld [vmem:[%s8477_s20 + $0x10] sm:$0xff]  }
 0x1f7   : > { %vm791_vm7 = vcmp.le.f32.partialorder %v8508_v36, %v771_v24  ;;  %vm792_vm8 = vcmp.le.f32.partialorder %v8510_v37, %v771_v24  ;;  %825 = vmin.xlane.f32.xlu0 %v8561_v21  ;;  %v838_v26 = vshra.s32 %v8563_v25, 16  ;;  %3076 = vmatpush1.bf16.msra.mxu1 %v7698_v17  ;;  %v7701_v24 = vld [vmem:[%s8477_s20 + $0x18] sm:$0xff]  }
 0x1f8   : > { %v807_v27 = vsel %vm791_vm7, %v8545_v10, 256  ;;  %v808_v28 = vsel %vm792_vm8, %v8548_v13, 256  ;;  %3077 = vmatprep.subr.bf16.mxu1 %v12429_v11 }
 0x1f9   : > { %v8571_v31 = vcvt.s32.f32 %v838_v26  ;;  %vm851_vm9 = vcmp.lt.s32.totalorder %v807_v27, %v808_v28  ;;  %v7702_v26 = vld [vmem:[%s8477_s20 + $0x20] sm:$0xff]  }
 0x1fa   : > { %v774_v32 = vpop.xlane.xlu1 %773  ;;  %v8573_v33 = vsel %vm851_vm9, %v807_v27, %v808_v28  ;;  %v7703_v27 = vld [vmem:[%s8477_s20 + $0x28] sm:$0xff]   ;;  %v7704_v28 = vld [vmem:[%s8477_s20 + $0x30] sm:$0xff]  }
 0x1fb   : > { %vm793_vm10 = vcmp.le.f32.partialorder %v8514_v43, %v774_v32  ;;  %vm794_vm11 = vcmp.le.f32.partialorder %v8516_v44, %v774_v32  ;;  %841 = vmin.xlane.f32.xlu1 %v8571_v31  ;;  %v854_v34 = vshra.s32 %v8573_v33, 16  ;;  %3078 = vmatpush1.bf16.msra.mxu1 %v7699_v19  ;;  %v7705_v32 = vld [vmem:[%s8477_s20 + $0x38] sm:$0xff]  }
 0x1fc   : > { %v809_v35 = vsel %vm793_vm10, %v8545_v10, 256  ;;  %v810_v38 = vsel %vm794_vm11, %v8548_v13, 256  ;;  %3079 = vmatprep.subr.bf16.mxu1 %v12429_v11 }
 0x1fd   : > { %v8581_v39 = vcvt.s32.f32 %v854_v34  ;;  %vm867_vm12 = vcmp.lt.s32.totalorder %v809_v35, %v810_v38  ;;  %v7706_v34 = vld [vmem:[%s8477_s20 + $0x40] sm:$0xff]  }
 0x1fe   : > { %v777_v40 = vpop.xlane.xlu0 %776  ;;  %v8583_v41 = vsel %vm867_vm12, %v809_v35, %v810_v38  ;;  %v7707_v35 = vld [vmem:[%s8477_s20 + $0x48] sm:$0xff]   ;;  %v7708_v38 = vld [vmem:[%s8477_s20 + $0x50] sm:$0xff]  }
 0x1ff   : > { %vm795_vm13 = vcmp.le.f32.partialorder %v8520_v50, %v777_v40  ;;  %vm796_vm14 = vcmp.le.f32.partialorder %v8522_v51, %v777_v40  ;;  %857 = vmin.xlane.f32.xlu0 %v8581_v39  ;;  %v870_v42 = vshra.s32 %v8583_v41, 16  ;;  %3080 = vmatpush1.bf16.msra.mxu1 %v7700_v20  ;;  %v7709_v40 = vld [vmem:[%s8477_s20 + $0x58] sm:$0xff]  }
 0x200   : > { %v811_v45 = vsel %vm795_vm13, %v8545_v10, 256  ;;  %v812_v46 = vsel %vm796_vm14, %v8548_v13, 256  ;;  %3081 = vmatprep.subr.bf16.mxu1 %v12429_v11 }
 0x201   : > { %v8591_v47 = vcvt.s32.f32 %v870_v42  ;;  %vm883_vm15 = vcmp.lt.s32.totalorder %v811_v45, %v812_v46  ;;  %v7710_v42 = vld [vmem:[%s8477_s20 + $0x60] sm:$0xff]  }
 0x202   : > { %v780_v48 = vpop.xlane.xlu1 %779  ;;  %v8593_v49 = vsel %vm883_vm15, %v811_v45, %v812_v46  ;;  %v821_v45 = vand.u32 65535, %v8554_v18  ;;  %v869_v18 = vand.u32 65535, %v8583_v41 }
 0x203   : > { %vm797_vm0 = vcmp.le.f32.partialorder %v8526_v57, %v780_v48  ;;  %vm798_vm1 = vcmp.le.f32.partialorder %v8528_v58, %v780_v48  ;;  %873 = vmin.xlane.f32.xlu1 %v8591_v47  ;;  %v886_v52 = vshra.s32 %v8593_v49, 16  ;;  %3082 = vmatpush1.bf16.msra.mxu1 %v7701_v24 }
 0x204   : > { %v813_v53 = vsel %vm797_vm0, %v8545_v10, 256  ;;  %v814_v54 = vsel %vm798_vm1, %v8548_v13, 256  ;;  %3083 = vmatprep.subr.bf16.mxu1 %v12429_v11  ;;  %v823_v48 = vcvt.s32.f32 %v821_v45 }
 0x205   : > { %v8601_v55 = vcvt.s32.f32 %v886_v52  ;;  %vm899_vm2 = vcmp.lt.s32.totalorder %v813_v53, %v814_v54  ;;  %v837_v52 = vand.u32 65535, %v8563_v25 }
 0x206   : > { %v783_v56 = vpop.xlane.xlu0 %782  ;;  %v8603_v59 = vsel %vm899_vm2, %v813_v53, %v814_v54 }
 0x207   : > { %vm799_vm3 = vcmp.le.f32.partialorder %v8532_v0, %v783_v56  ;;  %vm800_vm4 = vcmp.le.f32.partialorder %v8534_v1, %v783_v56  ;;  %889 = vmin.xlane.f32.xlu0 %v8601_v55  ;;  %v902_v60 = vshra.s32 %v8603_v59, 16  ;;  %3084 = vmatpush1.bf16.msra.mxu1 %v7702_v26  ;;  %v839_v56 = vcvt.s32.f32 %v837_v52 }
 0x208   : > { %v815_v61 = vsel %vm799_vm3, %v8545_v10, 256  ;;  %v816_v62 = vsel %vm800_vm4, %v8548_v13, 256  ;;  %3085 = vmatprep.subr.bf16.mxu1 %v12429_v11 }
 0x209   : > { %v8611_v63 = vcvt.s32.f32 %v902_v60  ;;  %vm915_vm5 = vcmp.lt.s32.totalorder %v815_v61, %v816_v62  ;;  %v853_v60 = vand.u32 65535, %v8573_v33  ;;  %v7711_v33 = vld [vmem:[%s8477_s20 + $0x68] sm:$0xff]  }
 0x20a   : > { %v786_v2 = vpop.xlane.xlu1 %785  ;;  %v8613_v3 = vsel %vm915_vm5, %v815_v61, %v816_v62 }
 0x20b   : > { %vm801_vm6 = vcmp.le.f32.partialorder %v8538_v7, %v786_v2  ;;  %vm802_vm7 = vcmp.le.f32.partialorder %v8540_v8, %v786_v2  ;;  %905 = vmin.xlane.f32.xlu1 %v8611_v63  ;;  %v918_v4 = vshra.s32 %v8613_v3, 16  ;;  %3086 = vmatpush1.bf16.msra.mxu1 %v7703_v27  ;;  %v855_v2 = vcvt.s32.f32 %v853_v60 }
 0x20c   : > { %v817_v5 = vsel %vm801_vm6, %v8545_v10, 256  ;;  %v818_v6 = vsel %vm802_vm7, %v8548_v13, 256  ;;  %3087 = vmatprep.subr.bf16.mxu1 %v12429_v11  ;;  %v917_v19 = vand.u32 65535, %v8613_v3 }
 0x20d   : > { %v8621_v9 = vcvt.s32.f32 %v918_v4  ;;  %vm931_vm8 = vcmp.lt.s32.totalorder %v817_v5, %v818_v6  ;;  %v871_v4 = vcvt.s32.f32 %v869_v18 }
 0x20e   : > { %v8623_v14 = vsel %vm931_vm8, %v817_v5, %v818_v6  ;;  %v885_v5 = vand.u32 65535, %v8593_v49  ;;  %v7712_v49 = vld [vmem:[%s8477_s20 + $0x70] sm:$0xff]   ;;  %v919_v24 = vcvt.s32.f32 %v917_v19 }
 0x20f   : > { %921 = vmin.xlane.f32.xlu0 %v8621_v9  ;;  %v934_v15 = vshra.s32 %v8623_v14, 16  ;;  %3088 = vmatpush1.bf16.msra.mxu1 %v7704_v28  ;;  %v933_v26 = vand.u32 65535, %v8623_v14 }
 0x210   : > { %3089 = vmatprep.subr.bf16.mxu1 %v12429_v11 }
 0x211   : > { %v8627_v16 = vcvt.s32.f32 %v934_v15  ;;  %v887_v15 = vcvt.s32.f32 %v885_v5 }
 0x213   : > { %937 = vmin.xlane.f32.xlu1 %v8627_v16  ;;  %3090 = vmatpush1.bf16.msra.mxu1 %v7705_v32 }
 0x214   : > { %3091 = vmatprep.subr.bf16.mxu1 %v12429_v11 }
 0x217   : > { %3092 = vmatpush1.bf16.msra.mxu1 %v7706_v34 }
 0x218   : > { %3093 = vmatprep.subr.bf16.mxu1 %v12429_v11 }
 0x21b   : > { %3094 = vmatpush1.bf16.msra.mxu1 %v7707_v35 }
 0x21c   : > { %3095 = vmatprep.subr.bf16.mxu1 %v12429_v11 }
 0x21f   : > { %3096 = vmatpush1.bf16.msra.mxu1 %v7708_v38 }
 0x220   : > { %3097 = vmatprep.subr.bf16.mxu1 %v12429_v11 }
 0x223   : > { %3098 = vmatpush1.bf16.msra.mxu1 %v7709_v40 }
 0x224   : > { %3099 = vmatprep.subr.bf16.mxu1 %v12429_v11 }
 0x227   : > { %3100 = vmatpush1.bf16.msra.mxu1 %v7710_v42 }
 0x228   : > { %3101 = vmatprep.subr.bf16.mxu1 %v12429_v11 }
 0x22b   : > { %3102 = vmatpush1.bf16.msra.mxu1 %v7711_v33 }
 0x22c   : > { %3103 = vmatprep.subr.bf16.mxu1 %v12429_v11 }
 0x22f   : > { %3104 = vmatpush1.bf16.msra.mxu1 %v7712_v49 }
 0x230   : > { %3105 = vmatprep.subr.bf16.mxu1 %v12429_v11 }
 0x284   : > { %v826_v46 = vpop.xlane.xlu0 %825 }
 0x285   : > { %vm827_vm9 = vcmp.eq.f32.partialorder %v8561_v21, %v826_v46  ;;  %v832_v32 = vcvt.f32.s32 %v826_v46 }
 0x286   : > { %v828_v53 = vsel %vm827_vm9, %v823_v48, inf }
 0x287   : > { %829 = vmin.xlane.f32.xlu0 %v828_v53  ;;  %v833_v35 = vshll.u32 %v832_v32, 16 }
 0x288   : > { %v842_v54 = vpop.xlane.xlu1 %841 }
 0x289   : > { %vm843_vm10 = vcmp.eq.f32.partialorder %v8571_v31, %v842_v54  ;;  %v848_v38 = vcvt.f32.s32 %v842_v54 }
 0x28a   : > { %v844_v61 = vsel %vm843_vm10, %v839_v56, inf }
 0x28b   : > { %845 = vmin.xlane.f32.xlu1 %v844_v61 }
 0x28c   : > { %v858_v62 = vpop.xlane.xlu0 %857 }
 0x28d   : > { %vm859_vm11 = vcmp.eq.f32.partialorder %v8581_v39, %v858_v62  ;;  %v901_v39 = vand.u32 65535, %v8603_v59  ;;  %v864_v42 = vcvt.f32.s32 %v858_v62 }
 0x28e   : > { %v860_v25 = vsel %vm859_vm11, %v855_v2, inf  ;;  %v12431_v2 = vmov 1.0|1.0  }
 0x28f   : > { %861 = vmin.xlane.f32.xlu0 %v860_v25  ;;  %v865_v54 = vshll.u32 %v864_v42, 16 }
 0x290   : > { %v8664_v21 = vpop.xlane.xlu1 %873 }
 0x291   : > { %vm875_vm12 = vcmp.eq.f32.partialorder %v8591_v47, %v8664_v21  ;;  %v903_v47 = vcvt.s32.f32 %v901_v39  ;;  %v880_v60 = vcvt.f32.s32 %v8664_v21 }
 0x292   : > { %v876_v31 = vsel %vm875_vm12, %v871_v4, inf }
 0x293   : > { %877 = vmin.xlane.f32.xlu1 %v876_v31  ;;  %v881_v21 = vshll.u32 %v880_v60, 16  ;;  %v7714_v60 = vld [vmem:[%s12418_s7] sm:$0xff]  }
 0x294   : > { %v8670_v6 = vpop.xlane.xlu0 %889  ;;  %7540 = vmatprep.subr.bf16.mxu0 %v7714_v60 }
 0x295   : > { %vm891_vm13 = vcmp.eq.f32.partialorder %v8601_v55, %v8670_v6  ;;  %v7713_v55 = vld [vmem:[%s8477_s20 + $0x78] sm:$0xff]   ;;  %v896_v25 = vcvt.f32.s32 %v8670_v6  ;;  %7541 = vmatpush3.bf16.msra.mxu0 %v7714_v60  ;;  %s566_s20 = scalar_lea.vmem %s12422_s11, %s565_s30 }
 0x296   : > { %v892_v41 = vsel %vm891_vm13, %v887_v15, inf  ;;  %3106 = vmatpush1.bf16.msra.mxu1 %v7713_v55 }
 0x297   : > { %893 = vmin.xlane.f32.xlu0 %v892_v41  ;;  %v897_v6 = vshll.u32 %v896_v25, 16 }
 0x298   : > { %v8677_v17 = vpop.xlane.xlu1 %905 }
 0x299   : > { %vm907_vm14 = vcmp.eq.f32.partialorder %v8611_v63, %v8677_v17  ;;  %v935_v63 = vcvt.s32.f32 %v933_v26  ;;  %v912_v39 = vcvt.f32.s32 %v8677_v17 }
 0x29a   : > { %v908_v20 = vsel %vm907_vm14, %v903_v47, inf }
 0x29b   : > { %909 = vmin.xlane.f32.xlu1 %v908_v20  ;;  %v913_v20 = vshll.u32 %v912_v39, 16 }
 0x29c   : > { %v8684_v59 = vpop.xlane.xlu0 %921 }
 0x29d   : > { %vm923_vm15 = vcmp.eq.f32.partialorder %v8621_v9, %v8684_v59  ;;  %v849_v9 = vshll.u32 %v848_v38, 16  ;;  %v928_v47 = vcvt.f32.s32 %v8684_v59 }
 0x29e   : > { %v924_v27 = vsel %vm923_vm15, %v919_v24, inf }
 0x29f   : > { %925 = vmin.xlane.f32.xlu0 %v924_v27  ;;  %v929_v26 = vshll.u32 %v928_v47, 16 }
 0x2a0   : > { %v8689_v3 = vpop.xlane.xlu1 %937 }
 0x2a1   : > { %vm939_vm0 = vcmp.eq.f32.partialorder %v8627_v16, %v8689_v3 }
 0x2a2   : > { %v940_v28 = vsel %vm939_vm0, %v935_v63, inf  ;;  %v944_v63 = vcvt.f32.s32 %v8689_v3 }
 0x2a3   : > { %941 = vmin.xlane.f32.xlu1 %v940_v28 }
 0x314   : > { %v830_v34 = vpop.xlane.xlu0 %829 }
 0x315   : > { %v831_v40 = vcvt.f32.s32 %v830_v34 }
 0x317   : > { %v834_v14 = vadd.s32 %v833_v35, %v831_v40  ;;  %v945_v35 = vshll.u32 %v944_v63, 16 }
 0x318   : > { %v846_v45 = vpop.xlane.xlu1 %845 }
 0x319   : > { %v847_v48 = vcvt.f32.s32 %v846_v45  ;;  %vm947_vm1 = vcmp.eq.s32.totalorder %v8545_v10, %v834_v14  ;;  %vm948_vm2 = vcmp.eq.s32.totalorder %v8548_v13, %v834_v14 }
 0x31a   : > { %v8698_v16 = vsel %vm947_vm1, inf, %v8496_v22  ;;  %v8701_v46 = vsel %vm948_vm2, inf, %v8498_v23 }
 0x31b   : > { %12623 = vst [vmem:[#allocation19_spill] sm:$0xff] %v8698_v16  ;;  %12624 = vst [vmem:[#allocation20_spill] sm:$0xff] %v8701_v46  ;;  %v1030_v52 = vmin.f32 %v8698_v16, %v8701_v46  ;;  %v850_v53 = vadd.s32 %v849_v9, %v847_v48 }
 0x31c   : > { %v862_v56 = vpop.xlane.xlu0 %861 }
 0x31d   : > { %v863_v61 = vcvt.f32.s32 %v862_v56  ;;  %1031 = vmin.xlane.f32.xlu0 %v1030_v52  ;;  %vm950_vm3 = vcmp.eq.s32.totalorder %v8548_v13, %v850_v53  ;;  %vm949_vm4 = vcmp.eq.s32.totalorder %v8545_v10, %v850_v53 }
 0x31e   : > { %v8709_v22 = vsel %vm950_vm3, inf, %v8504_v30  ;;  %vm7376_vm5 = vmpackc.low %vm950_vm3, %vm948_vm2  ;;  %v8712_v23 = vsel %vm949_vm4, inf, %v8502_v29 }
 0x31f   : > { %12625 = vst [vmem:[#allocation21_spill] sm:$0xff] %v8709_v22  ;;  %12626 = vst [vmem:[#allocation22_spill] sm:$0xff] %v8712_v23  ;;  %v866_v62 = vadd.s32 %v865_v54, %v863_v61  ;;  %7377 = vmatprep.mubr.msk.bf16.mxu1 %vm7376_vm5, %v12431_v2  ;;  %v1033_v18 = vmin.f32 %v8712_v23, %v8709_v22 }
 0x320   : > { %vm7378_vm6 = vmpackc.low %vm949_vm4, %vm947_vm1  ;;  %v878_v30 = vpop.xlane.xlu1 %877 }
 0x321   : > { %7379 = vmatmul.mubr.msk.bf16.vlgmr.msra.gmra.mrb[0].mxu1 %vm7378_vm6, %v12431_v2  ;;  %v879_v4 = vcvt.f32.s32 %v878_v30  ;;  %1034 = vmin.xlane.f32.xlu1 %v1033_v18  ;;  %vm951_vm7 = vcmp.eq.s32.totalorder %v8545_v10, %v866_v62  ;;  %vm952_vm8 = vcmp.eq.s32.totalorder %v8548_v13, %v866_v62 }
 0x322   : > { %v8726_v29 = vsel %vm951_vm7, inf, %v8508_v36  ;;  %v8729_v5 = vsel %vm952_vm8, inf, %v8510_v37 }
 0x323   : > { %12627 = vst [vmem:[#allocation23_spill] sm:$0xff] %v8726_v29  ;;  %12628 = vst [vmem:[#allocation24_spill] sm:$0xff] %v8729_v5  ;;  %v882_v31 = vadd.s32 %v881_v21, %v879_v4  ;;  %v1036_v33 = vmin.f32 %v8726_v29, %v8729_v5  ;;  %v7715_v4 = vld [vmem:[%s12418_s7 + $0x8] sm:$0xff]  }
 0x324   : > { %v894_v15 = vpop.xlane.xlu0 %893  ;;  %7542 = vmatprep.subr.bf16.mxu0 %v7715_v4 }
 0x325   : > { %v895_v41 = vcvt.f32.s32 %v894_v15  ;;  %1037 = vmin.xlane.f32.xlu0 %v1036_v33  ;;  %vm954_vm9 = vcmp.eq.s32.totalorder %v8548_v13, %v882_v31  ;;  %vm953_vm10 = vcmp.eq.s32.totalorder %v8545_v10, %v882_v31  ;;  %7543 = vmatpush3.bf16.msra.mxu0 %v7715_v4  ;;  %v3365_v4 = vld [vmem:[%s8895_s26 + $0x8] sm:$0xff] }
 0x326   : > { %vm7380_vm11 = vmpackc.low %vm954_vm9, %vm952_vm8  ;;  %v8737_v36 = vsel %vm953_vm10, inf, %v8514_v43  ;;  %v8740_v37 = vsel %vm954_vm9, inf, %v8516_v44 }
 0x327   : > { %12629 = vst [vmem:[#allocation25_spill] sm:$0xff] %v8737_v36  ;;  %12630 = vst [vmem:[#allocation26_spill] sm:$0xff] %v8740_v37  ;;  %v898_v49 = vadd.s32 %v897_v6, %v895_v41  ;;  %7381 = vmatprep.mubr.msk.bf16.mxu1 %vm7380_vm11, %v12431_v2  ;;  %v1039_v17 = vmin.f32 %v8737_v36, %v8740_v37 }
 0x328   : > { %vm7382_vm12 = vmpackc.low %vm953_vm10, %vm951_vm7  ;;  %v910_v19 = vpop.xlane.xlu1 %909 }
 0x329   : > { %7383 = vmatmul.mubr.msk.bf16.gmra.mrb[4].mxu1 %vm7382_vm12, %v12431_v2  ;;  %v911_v43 = vcvt.f32.s32 %v910_v19  ;;  %1040 = vmin.xlane.f32.xlu1 %v1039_v17  ;;  %vm955_vm13 = vcmp.eq.s32.totalorder %v8545_v10, %v898_v49  ;;  %vm956_vm14 = vcmp.eq.s32.totalorder %v8548_v13, %v898_v49  ;;  %v7716_v49 = vld [vmem:[%s12418_s7 + $0x10] sm:$0xff]  }
 0x32a   : > { %v8754_v44 = vsel %vm955_vm13, inf, %v8520_v50  ;;  %v8757_v55 = vsel %vm956_vm14, inf, %v8522_v51  ;;  %7544 = vmatprep.subr.bf16.mxu0 %v7716_v49 }
 0x32b   : > { %12631 = vst [vmem:[#allocation27_spill] sm:$0xff] %v8754_v44  ;;  %12632 = vst [vmem:[#allocation28_spill] sm:$0xff] %v8757_v55  ;;  %v914_v24 = vadd.s32 %v913_v20, %v911_v43  ;;  %v1042_v59 = vmin.f32 %v8754_v44, %v8757_v55  ;;  %7545 = vmatpush3.bf16.msra.mxu0 %v7716_v49 }
 0x32c   : > { %v926_v27 = vpop.xlane.xlu0 %925 }
 0x32d   : > { %v927_v28 = vcvt.f32.s32 %v926_v27  ;;  %1043 = vmin.xlane.f32.xlu0 %v1042_v59  ;;  %vm958_vm15 = vcmp.eq.s32.totalorder %v8548_v13, %v914_v24  ;;  %vm957_vm0 = vcmp.eq.s32.totalorder %v8545_v10, %v914_v24  ;;  %v7717_v59 = vld [vmem:[%s12418_s7 + $0x18] sm:$0xff]  }
 0x32e   : > { %vm7384_vm1 = vmpackc.low %vm958_vm15, %vm956_vm14  ;;  %v8765_v50 = vsel %vm957_vm0, inf, %v8526_v57  ;;  %v8768_v51 = vsel %vm958_vm15, inf, %v8528_v58  ;;  %7546 = vmatprep.subr.bf16.mxu0 %v7717_v59 }
 0x32f   : > { %12633 = vst [vmem:[#allocation29_spill] sm:$0xff] %v8765_v50  ;;  %12634 = vst [vmem:[#allocation30_spill] sm:$0xff] %v8768_v51  ;;  %v930_v32 = vadd.s32 %v929_v26, %v927_v28  ;;  %7385 = vmatprep.mubr.msk.bf16.mxu1 %vm7384_vm1, %v12431_v2  ;;  %v1045_v3 = vmin.f32 %v8765_v50, %v8768_v51  ;;  %7547 = vmatpush3.bf16.msra.mxu0 %v7717_v59 }
 0x330   : > { %vm7386_vm2 = vmpackc.low %vm957_vm0, %vm955_vm13  ;;  %v942_v34 = vpop.xlane.xlu1 %941 }
 0x331   : > { %7387 = vmatmul.mubr.msk.bf16.gmra.mrb[8].mxu1 %vm7386_vm2, %v12431_v2  ;;  %v943_v38 = vcvt.f32.s32 %v942_v34  ;;  %1046 = vmin.xlane.f32.xlu1 %v1045_v3  ;;  %vm959_vm3 = vcmp.eq.s32.totalorder %v8545_v10, %v930_v32  ;;  %vm960_vm4 = vcmp.eq.s32.totalorder %v8548_v13, %v930_v32 }
 0x332   : > { %v8779_v57 = vsel %vm959_vm3, inf, %v8532_v0  ;;  %v8782_v58 = vsel %vm960_vm4, inf, %v8534_v1 }
 0x333   : > { %12635 = vst [vmem:[#allocation31_spill] sm:$0xff] %v8779_v57  ;;  %12636 = vst [vmem:[#allocation32_spill] sm:$0xff] %v8782_v58  ;;  %v946_v40 = vadd.s32 %v945_v35, %v943_v38  ;;  %v1048_v14 = vmin.f32 %v8779_v57, %v8782_v58 }
 0x335   : > { %1049 = vmin.xlane.f32.xlu0 %v1048_v14  ;;  %vm962_vm5 = vcmp.eq.s32.totalorder %v8548_v13, %v946_v40  ;;  %vm961_vm6 = vcmp.eq.s32.totalorder %v8545_v10, %v946_v40 }
 0x336   : > { %vm7388_vm7 = vmpackc.low %vm962_vm5, %vm960_vm4  ;;  %v8789_v42 = vsel %vm961_vm6, inf, %v8538_v7  ;;  %v8792_v45 = vsel %vm962_vm5, inf, %v8540_v8 }
 0x337   : > { %12637 = vst [vmem:[#allocation33_spill] sm:$0xff] %v8789_v42  ;;  %12638 = vst [vmem:[#allocation34_spill] sm:$0xff] %v8792_v45  ;;  %7389 = vmatprep.mubr.msk.bf16.mxu1 %vm7388_vm7, %v12431_v2  ;;  %v1051_v0 = vmin.f32 %v8789_v42, %v8792_v45 }
 0x338   : > { %vm7390_vm8 = vmpackc.low %vm961_vm6, %vm959_vm3 }
 0x339   : > { %7391 = vmatmul.mubr.msk.bf16.gmra.mrb[12].mxu1 %vm7390_vm8, %v12431_v2  ;;  %1052 = vmin.xlane.f32.xlu1 %v1051_v0 }
 0x3aa   : > { %v1032_v1 = vpop.xlane.xlu0 %1031 }
 0x3ab   : > { %vm1054_vm9 = vcmp.le.f32.partialorder %v8698_v16, %v1032_v1  ;;  %vm1055_vm10 = vcmp.le.f32.partialorder %v8701_v46, %v1032_v1 }
 0x3ac   : > { %v1070_v7 = vsel %vm1054_vm9, %v8545_v10, 256  ;;  %v1071_v9 = vsel %vm1055_vm10, %v8548_v13, 256 }
 0x3ad   : > { %vm1086_vm11 = vcmp.lt.s32.totalorder %v1070_v7, %v1071_v9 }
 0x3ae   : > { %v1035_v8 = vpop.xlane.xlu1 %1034  ;;  %v8802_v48 = vsel %vm1086_vm11, %v1070_v7, %v1071_v9 }
 0x3af   : > { %vm1056_vm12 = vcmp.le.f32.partialorder %v8712_v23, %v1035_v8  ;;  %vm1057_vm13 = vcmp.le.f32.partialorder %v8709_v22, %v1035_v8  ;;  %v1089_v52 = vshra.s32 %v8802_v48, 16 }
 0x3b0   : > { %v1072_v53 = vsel %vm1056_vm12, %v8545_v10, 256  ;;  %v1073_v54 = vsel %vm1057_vm13, %v8548_v13, 256 }
 0x3b1   : > { %v8809_v56 = vcvt.s32.f32 %v1089_v52  ;;  %vm1102_vm14 = vcmp.lt.s32.totalorder %v1072_v53, %v1073_v54 }
 0x3b2   : > { %v1038_v61 = vpop.xlane.xlu0 %1037  ;;  %v8814_v62 = vsel %vm1102_vm14, %v1072_v53, %v1073_v54 }
 0x3b3   : > { %vm1058_vm15 = vcmp.le.f32.partialorder %v8726_v29, %v1038_v61  ;;  %vm1059_vm0 = vcmp.le.f32.partialorder %v8729_v5, %v1038_v61  ;;  %1092 = vmin.xlane.f32.xlu0 %v8809_v56  ;;  %v1105_v18 = vshra.s32 %v8814_v62, 16 }
 0x3b4   : > { %v1074_v25 = vsel %vm1058_vm15, %v8545_v10, 256  ;;  %v1075_v30 = vsel %vm1059_vm0, %v8548_v13, 256 }
 0x3b5   : > { %v8822_v21 = vcvt.s32.f32 %v1105_v18  ;;  %vm1118_vm1 = vcmp.lt.s32.totalorder %v1074_v25, %v1075_v30  ;;  %v3364_v18 = vld [vmem:[%s8895_s26] sm:$0xff] }
 0x3b6   : > { %v1041_v31 = vpop.xlane.xlu1 %1040  ;;  %v8827_v33 = vsel %vm1118_vm1, %v1074_v25, %v1075_v30  ;;  %v8898_v30 = vld [vmem:[#allocation3] ss:$0 sm:$0xff] }
 0x3b7   : > { %vm1060_vm2 = vcmp.le.f32.partialorder %v8737_v36, %v1041_v31  ;;  %vm1061_vm3 = vcmp.le.f32.partialorder %v8740_v37, %v1041_v31  ;;  %1108 = vmin.xlane.f32.xlu1 %v8822_v21  ;;  %v1121_v6 = vshra.s32 %v8827_v33, 16 }
 0x3b8   : > { %v1076_v15 = vsel %vm1060_vm2, %v8545_v10, 256  ;;  %v1077_v39 = vsel %vm1061_vm3, %v8548_v13, 256 }
 0x3b9   : > { %v8835_v41 = vcvt.s32.f32 %v1121_v6  ;;  %vm1134_vm4 = vcmp.lt.s32.totalorder %v1076_v15, %v1077_v39 }
 0x3ba   : > { %v1044_v17 = vpop.xlane.xlu0 %1043  ;;  %v8840_v47 = vsel %vm1134_vm4, %v1076_v15, %v1077_v39  ;;  %v8901_v15 = vld [vmem:[#allocation5] ss:$0 sm:$0xff] }
 0x3bb   : > { %vm1062_vm5 = vcmp.le.f32.partialorder %v8754_v44, %v1044_v17  ;;  %vm1063_vm6 = vcmp.le.f32.partialorder %v8757_v55, %v1044_v17  ;;  %1124 = vmin.xlane.f32.xlu0 %v8835_v41  ;;  %v1137_v19 = vshra.s32 %v8840_v47, 16 }
 0x3bc   : > { %v1078_v20 = vsel %vm1062_vm5, %v8545_v10, 256  ;;  %v1079_v43 = vsel %vm1063_vm6, %v8548_v13, 256  ;;  %vm5370_vm5 = vcmask 523264  }
 0x3bd   : > { %v8848_v24 = vcvt.s32.f32 %v1137_v19  ;;  %vm1150_vm7 = vcmp.lt.s32.totalorder %v1078_v20, %v1079_v43 }
 0x3be   : > { %v1047_v26 = vpop.xlane.xlu1 %1046  ;;  %v8853_v27 = vsel %vm1150_vm7, %v1078_v20, %v1079_v43 }
 0x3bf   : > { %vm1064_vm8 = vcmp.le.f32.partialorder %v8765_v50, %v1047_v26  ;;  %vm1065_vm9 = vcmp.le.f32.partialorder %v8768_v51, %v1047_v26  ;;  %1140 = vmin.xlane.f32.xlu1 %v8848_v24  ;;  %v1153_v63 = vshra.s32 %v8853_v27, 16 }
 0x3c0   : > { %v1080_v28 = vsel %vm1064_vm8, %v8545_v10, 256  ;;  %v1081_v32 = vsel %vm1065_vm9, %v8548_v13, 256 }
 0x3c1   : > { %v8861_v3 = vcvt.s32.f32 %v1153_v63  ;;  %vm1166_vm10 = vcmp.lt.s32.totalorder %v1080_v28, %v1081_v32  ;;  %v3366_v63 = vld [vmem:[%s8895_s26 + $0x10] sm:$0xff] }
 0x3c2   : > { %v1050_v34 = vpop.xlane.xlu0 %1049  ;;  %v8863_v35 = vsel %vm1166_vm10, %v1080_v28, %v1081_v32 }
 0x3c3   : > { %vm1066_vm11 = vcmp.le.f32.partialorder %v8779_v57, %v1050_v34  ;;  %vm1067_vm12 = vcmp.le.f32.partialorder %v8782_v58, %v1050_v34  ;;  %1156 = vmin.xlane.f32.xlu0 %v8861_v3  ;;  %v1169_v38 = vshra.s32 %v8863_v35, 16 }
 0x3c4   : > { %v1082_v40 = vsel %vm1066_vm11, %v8545_v10, 256  ;;  %v1083_v14 = vsel %vm1067_vm12, %v8548_v13, 256 }
 0x3c5   : > { %v8871_v0 = vcvt.s32.f32 %v1169_v38  ;;  %vm1182_vm13 = vcmp.lt.s32.totalorder %v1082_v40, %v1083_v14 }
 0x3c6   : > { %v1053_v1 = vpop.xlane.xlu1 %1052  ;;  %v8873_v7 = vsel %vm1182_vm13, %v1082_v40, %v1083_v14 }
 0x3c7   : > { %vm1068_vm14 = vcmp.le.f32.partialorder %v8789_v42, %v1053_v1  ;;  %vm1069_vm15 = vcmp.le.f32.partialorder %v8792_v45, %v1053_v1  ;;  %1172 = vmin.xlane.f32.xlu1 %v8871_v0  ;;  %v1185_v9 = vshra.s32 %v8873_v7, 16  ;;  %v3370_v42 = vld [vmem:[%s8895_s26 + $0x30] sm:$0xff] }
 0x3c8   : > { %v1084_v8 = vsel %vm1068_vm14, %v8545_v10, 256  ;;  %v1085_v52 = vsel %vm1069_vm15, %v8548_v13, 256 }
 0x3c9   : > { %v8881_v53 = vcvt.s32.f32 %v1185_v9  ;;  %vm1198_vm0 = vcmp.lt.s32.totalorder %v1084_v8, %v1085_v52  ;;  %v3367_v9 = vld [vmem:[%s8895_s26 + $0x18] sm:$0xff] }
 0x3ca   : > { %v8883_v54 = vsel %vm1198_vm0, %v1084_v8, %v1085_v52 }
 0x3cb   : > { %1188 = vmin.xlane.f32.xlu0 %v8881_v53  ;;  %v1201_v60 = vshra.s32 %v8883_v54, 16 }
 0x3cd   : > { %v8887_v61 = vcvt.s32.f32 %v1201_v60 }
 0x3cf   : > { %1204 = vmin.xlane.f32.xlu1 %v8887_v61 }
 0x3f4   : > { %v3109_v25 = vpop.f32.mrb[0].mxu1 }
 0x3f5   : > { %v3372_v31 = vadd.f32 %v3364_v18, %v3109_v25  ;;  %v3111_v6 = vpop.f32.mrb[1].mxu1 }
 0x3f6   : > { %v3112_v39 = vpop.f32.mrb[2].mxu1  ;;  %v3368_v6 = vld [vmem:[%s8895_s26 + $0x20] sm:$0xff] }
 0x3f7   : > { %v3443_v49 = vmul.f32 %v8898_v30, %v3372_v31  ;;  %v3373_v17 = vadd.f32 %v3365_v4, %v3112_v39  ;;  %v3114_v19 = vpop.f32.mrb[3].mxu1 }
 0x3f9   : > { %v8905_v20 = vadd.f32 %v8901_v15, %v3443_v49  ;;  %v3444_v43 = vmul.f32 %v8898_v30, %v3373_v17 }
 0x3fb   : > { %v8909_v59 = vmul.f32 0.70710677, %v8905_v20  ;;  %v8912_v26 = vadd.f32 %v8901_v15, %v3444_v43  ;;  %v3369_v43 = vld [vmem:[%s8895_s26 + $0x28] sm:$0xff] }
 0x3fc   : > { %v3117_v28 = vpop.f32.mrb[4].mxu1 }
 0x3fd   : > { %v3834_v32 = vand.u32 2147483647, %v8909_v59  ;;  %v8917_v34 = vmul.f32 0.70710677, %v8912_v26  ;;  %v3374_v38 = vadd.f32 %v3366_v63, %v3117_v28  ;;  %v3119_v40 = vpop.f32.mrb[5].mxu1  ;;  %vm3706_vm1 = vcmp.ge.f32.partialorder %v8909_v59, 0.0 }
 0x3fe   : > { %v3120_v52 = vpop.f32.mrb[6].mxu1 }
 0x3ff   : > { %v3898_v14 = vmul.f32 0.3275911, %v3834_v32  ;;  %v3835_v1 = vand.u32 2147483647, %v8917_v34  ;;  %v3445_v8 = vmul.f32 %v8898_v30, %v3374_v38  ;;  %v3122_v25 = vpop.f32.mrb[7].mxu1  ;;  %v3375_v31 = vadd.f32 %v3367_v9, %v3120_v52 }
 0x400   : > { %vm3707_vm2 = vcmp.ge.f32.partialorder %v8917_v34, 0.0 }
 0x401   : > { %v3962_v60 = vadd.f32 1.0, %v3898_v14  ;;  %v3899_v18 = vmul.f32 0.3275911, %v3835_v1  ;;  %v8923_v4 = vadd.f32 %v8901_v15, %v3445_v8  ;;  %v3446_v17 = vmul.f32 %v8898_v30, %v3375_v31 }
 0x403   : > { %7718 = vrcp.f32 %v3962_v60  ;;  %v3963_v39 = vadd.f32 1.0, %v3899_v18  ;;  %v8927_v49 = vmul.f32 0.70710677, %v8923_v4  ;;  %v8933_v40 = vadd.f32 %v8901_v15, %v3446_v17 }
 0x404   : > { %v3125_v19 = vpop.f32.mrb[8].mxu1  ;;  %v4730_v60 = vsub.f32 0.0, %v3834_v32  ;;  %v4731_v17 = vsub.f32 0.0, %v3835_v1 }
 0x405   : > { %v3376_v63 = vadd.f32 %v3368_v6, %v3125_v19  ;;  %v3127_v28 = vpop.f32.mrb[9].mxu1  ;;  %7720 = vrcp.f32 %v3963_v39  ;;  %v3836_v38 = vand.u32 2147483647, %v8927_v49  ;;  %v8937_v25 = vmul.f32 0.70710677, %v8933_v40 }
 0x406   : > { %v3128_v14 = vpop.f32.mrb[10].mxu1  ;;  %v4795_v45 = vmul.f32 %v4731_v17, %v3835_v1  ;;  %vm3708_vm3 = vcmp.ge.f32.partialorder %v8927_v49, 0.0 }
 0x407   : > { %v3447_v9 = vmul.f32 %v8898_v30, %v3376_v63  ;;  %v3377_v8 = vadd.f32 %v3369_v43, %v3128_v14  ;;  %v3130_v52 = vpop.f32.mrb[11].mxu1  ;;  %v3900_v18 = vmul.f32 0.3275911, %v3836_v38  ;;  %v3837_v19 = vand.u32 2147483647, %v8937_v25 }
 0x408   : > { %v4794_v63 = vmul.f32 %v4730_v60, %v3834_v32  ;;  %v3371_v60 = vld [vmem:[%s8895_s26 + $0x38] sm:$0xff]  ;;  %v4732_v51 = vsub.f32 0.0, %v3836_v38  ;;  %v4860_v29 = vmul.f32 1.442695, %v4795_v45  ;;  %vm3709_vm4 = vcmp.ge.f32.partialorder %v8937_v25, 0.0 }
 0x409   : > { %v8940_v31 = vadd.f32 %v8901_v15, %v3447_v9  ;;  %v3448_v6 = vmul.f32 %v8898_v30, %v3377_v8  ;;  %v3964_v39 = vadd.f32 1.0, %v3900_v18  ;;  %v3901_v14 = vmul.f32 0.3275911, %v3837_v19 }
 0x40a   : > { %v4858_v57 = vmul.f32 1.442695, %v4794_v63  ;;  %v4733_v44 = vsub.f32 0.0, %v3837_v19  ;;  %v3581_v25 = vmul.f32 0.5, %v8933_v40 }
 0x40b   : > { %v8945_v28 = vmul.f32 0.70710677, %v8940_v31  ;;  %v8948_v43 = vadd.f32 %v8901_v15, %v3448_v6  ;;  %7722 = vrcp.f32 %v3964_v39  ;;  %v3965_v2 = vadd.f32 1.0, %v3901_v14 }
 0x40c   : > { %v3133_v52 = vpop.f32.mrb[12].mxu1  ;;  %v4797_v23 = vmul.f32 %v4733_v44, %v3837_v19 }
 0x40d   : > { %v8950_v9 = vpop.eup %7718  ;;  %v8953_v8 = vand.u32 2147483647, %v8945_v28  ;;  %v8956_v18 = vmul.f32 0.70710677, %v8948_v43  ;;  %v3135_v12 = vpop.f32.mrb[13].mxu1  ;;  %7724 = vrcp.f32 %v3965_v2  ;;  %v3378_v17 = vadd.f32 %v3370_v42, %v3133_v52 }
 0x40e   : > { %v4154_v11 = vmul.f32 1.0614054, %v8950_v9  ;;  %v3136_v32 = vpop.f32.mrb[14].mxu1  ;;  %v8967_v12 = vmul.f32 0.5, %v8905_v20  ;;  %v4796_v2 = vmul.f32 %v4732_v51, %v3836_v38  ;;  %v12449_v52 = vmov -1.0  }
 0x40f   : > { %v3902_v6 = vmul.f32 0.3275911, %v8953_v8  ;;  %v8962_v39 = vpop.eup %7720  ;;  %v3138_v50 = vpop.f32.mrb[15].mxu1  ;;  %v3839_v14 = vand.u32 2147483647, %v8956_v18  ;;  %v3379_v36 = vadd.f32 %v3371_v60, %v3136_v32  ;;  %vm3710_vm6 = vcmp.ge.f32.partialorder %v8945_v28, 0.0 }
 0x410   : > { %v4218_v58 = vadd.f32 -1.4531521, %v4154_v11  ;;  %v4155_v55 = vmul.f32 1.0614054, %v8962_v39  ;;  %v3449_v50 = vmul.f32 %v8898_v30, %v3378_v17  ;;  %v4862_v44 = vmul.f32 1.442695, %v4796_v2 }
 0x411   : > { %v3966_v37 = vadd.f32 1.0, %v3902_v6  ;;  %v3903_v11 = vmul.f32 0.3275911, %v3839_v14  ;;  %v3450_v22 = vmul.f32 %v8898_v30, %v3379_v36  ;;  %v4864_v30 = vmul.f32 1.442695, %v4797_v23 }
 0x412   : > { %v4282_v1 = vmul.f32 %v8950_v9, %v4218_v58  ;;  %v4219_v5 = vadd.f32 -1.4531521, %v4155_v55  ;;  %v4735_v32 = vsub.f32 0.0, %v3839_v14  ;;  %vm3711_vm7 = vcmp.ge.f32.partialorder %v8956_v18, 0.0 }
 0x413   : > { %7726 = vrcp.f32 %v3966_v37  ;;  %v3967_v20 = vadd.f32 1.0, %v3903_v11  ;;  %v8979_v37 = vadd.f32 %v8901_v15, %v3449_v50  ;;  %v8983_v36 = vadd.f32 %v8901_v15, %v3450_v22 }
 0x414   : > { %v4346_v63 = vadd.f32 1.4214138, %v4282_v1  ;;  %7728 = vpow2.f32 %v4858_v57  ;;  %v4283_v6 = vmul.f32 %v8962_v39, %v4219_v5  ;;  %v4734_v57 = vsub.f32 0.0, %v8953_v8 }
 0x415   : > { %v8973_v46 = vpop.eup %7722  ;;  %7730 = vrcp.f32 %v3967_v20  ;;  %v8988_v38 = vmul.f32 0.70710677, %v8979_v37  ;;  %v3770_v22 = vsel %vm3706_vm1, 1.0, %v12449_v52  ;;  %v9002_v17 = vmul.f32 0.70710677, %v8983_v36 }
 0x416   : > { %v4410_v55 = vmul.f32 %v8950_v9, %v4346_v63  ;;  %v4347_v51 = vadd.f32 1.4214138, %v4283_v6  ;;  %v4156_v58 = vmul.f32 1.0614054, %v8973_v46  ;;  %7732 = vpow2.f32 %v4860_v29 }
 0x417   : > { %v8990_v19 = vpop.eup %7724  ;;  %v3771_v29 = vsel %vm3707_vm2, 1.0, %v12449_v52  ;;  %7734 = vpow2.f32 %v4862_v44  ;;  %v4798_v59 = vmul.f32 %v4734_v57, %v8953_v8  ;;  %v9006_v63 = vand.u32 2147483647, %v8988_v38 }
 0x418   : > { %v4474_v5 = vadd.f32 -0.28449672, %v4410_v55  ;;  %v4411_v42 = vmul.f32 %v8962_v39, %v4347_v51  ;;  %v4220_v45 = vadd.f32 -1.4531521, %v4156_v58  ;;  %v4157_v1 = vmul.f32 1.0614054, %v8990_v19 }
 0x419   : > { %7736 = vpow2.f32 %v4864_v30  ;;  %v4799_v51 = vmul.f32 %v4735_v32, %v3839_v14  ;;  %v3904_v58 = vmul.f32 0.3275911, %v9006_v63  ;;  %vm3712_vm8 = vcmp.ge.f32.partialorder %v8988_v38, 0.0 }
 0x41a   : > { %v4538_v15 = vmul.f32 %v8950_v9, %v4474_v5  ;;  %v4475_v60 = vadd.f32 -0.28449672, %v4411_v42  ;;  %v4284_v23 = vmul.f32 %v8973_v46, %v4220_v45  ;;  %v4221_v6 = vadd.f32 -1.4531521, %v4157_v1 }
 0x41b   : > { %v9017_v42 = vand.u32 2147483647, %v9002_v17  ;;  %v3968_v30 = vadd.f32 1.0, %v3904_v58  ;;  %vm3713_vm10 = vcmp.ge.f32.partialorder %v9002_v17, 0.0  ;;  %v3585_v17 = vmul.f32 0.5, %v8983_v36 }
 0x41c   : > { %v4602_v11 = vadd.f32 0.2548296, %v4538_v15  ;;  %v4539_v34 = vmul.f32 %v8962_v39, %v4475_v60  ;;  %v4348_v50 = vadd.f32 1.4214138, %v4284_v23  ;;  %v4285_v57 = vmul.f32 %v8990_v19, %v4221_v6 }
 0x41d   : > { %v9008_v2 = vpop.eup %7726  ;;  %v4866_v60 = vmul.f32 1.442695, %v4798_v59  ;;  %v3905_v1 = vmul.f32 0.3275911, %v9017_v42  ;;  %7738 = vrcp.f32 %v3968_v30  ;;  %v4737_v49 = vsub.f32 0.0, %v9017_v42 }
 0x41e   : > { %v4666_v20 = vmul.f32 %v8950_v9, %v4602_v11  ;;  %v4158_v55 = vmul.f32 1.0614054, %v9008_v2  ;;  %v7729_v5 = vpop.eup %7728  ;;  %v4603_v44 = vadd.f32 0.2548296, %v4539_v34  ;;  %v4412_v8 = vmul.f32 %v8973_v46, %v4348_v50 }
 0x41f   : > { %v9019_v23 = vpop.eup %7730  ;;  %v4349_v32 = vadd.f32 1.4214138, %v4285_v57  ;;  %7740 = vpow2.f32 %v4866_v60  ;;  %v1168_v36 = vand.u32 65535, %v8863_v35  ;;  %v1200_v35 = vand.u32 65535, %v8883_v54 }
 0x420   : > { %v4986_v45 = vmul.f32 %v7729_v5, %v4666_v20  ;;  %v4222_v15 = vadd.f32 -1.4531521, %v4158_v55  ;;  %v4667_v9 = vmul.f32 %v8962_v39, %v4603_v44  ;;  %v4476_v14 = vadd.f32 -0.28449672, %v4412_v8  ;;  %v7733_v11 = vpop.eup %7732 }
 0x421   : > { %v4159_v6 = vmul.f32 1.0614054, %v9019_v23  ;;  %v4413_v59 = vmul.f32 %v8990_v19, %v4349_v32  ;;  %v4868_v55 = vmul.f32 1.442695, %v4799_v51  ;;  %v3969_v44 = vadd.f32 1.0, %v3905_v1 }
 0x422   : > { %v5050_v34 = vsub.f32 1.0, %v4986_v45  ;;  %v4286_v50 = vmul.f32 %v9008_v2, %v4222_v15  ;;  %v4987_v52 = vmul.f32 %v7733_v11, %v4667_v9  ;;  %v4540_v20 = vmul.f32 %v8973_v46, %v4476_v14  ;;  %v7735_v45 = vpop.eup %7734 }
 0x423   : > { %v4223_v39 = vadd.f32 -1.4531521, %v4159_v6  ;;  %v4477_v16 = vadd.f32 -0.28449672, %v4413_v59  ;;  %7742 = vrcp.f32 %v3969_v44  ;;  %v7737_v9 = vpop.eup %7736  ;;  %v4736_v32 = vsub.f32 0.0, %v9006_v63 }
 0x424   : > { %v5114_v58 = vmul.f32 %v5050_v34, %v3770_v22  ;;  %v4350_v5 = vadd.f32 1.4214138, %v4286_v50  ;;  %v5051_v8 = vsub.f32 1.0, %v4987_v52  ;;  %v4604_v57 = vadd.f32 0.2548296, %v4540_v20 }
 0x425   : > { %v4287_v30 = vmul.f32 %v9019_v23, %v4223_v39  ;;  %v4541_v22 = vmul.f32 %v8990_v19, %v4477_v16  ;;  %v3579_v1 = vmul.f32 0.5, %v8912_v26  ;;  %7744 = vpow2.f32 %v4868_v55 }
 0x426   : > { %v4414_v15 = vmul.f32 %v9008_v2, %v4350_v5  ;;  %v5115_v14 = vmul.f32 %v5051_v8, %v3771_v29  ;;  %v4668_v51 = vmul.f32 %v8973_v46, %v4604_v57  ;;  %v5178_v52 = vadd.f32 1.0, %v5114_v58 }
 0x427   : > { %v4351_v11 = vadd.f32 1.4214138, %v4287_v30  ;;  %v4605_v6 = vadd.f32 0.2548296, %v4541_v22  ;;  %v12639_v20 = vmov -1.0   ;;  %v4800_v5 = vmul.f32 %v4736_v32, %v9006_v63  ;;  %v9042_v39 = vpop.eup %7738 }
 0x428   : > { %v4478_v60 = vadd.f32 -0.28449672, %v4414_v15  ;;  %v5179_v34 = vadd.f32 1.0, %v5115_v14  ;;  %v4988_v50 = vmul.f32 %v7735_v45, %v4668_v51  ;;  %v3772_v59 = vsel %vm3708_vm3, 1.0, %v12639_v20 }
 0x429   : > { %v4415_v16 = vmul.f32 %v9019_v23, %v4351_v11  ;;  %v4669_v26 = vmul.f32 %v8990_v19, %v4605_v6  ;;  %v5242_v55 = vmul.f32 %v5178_v52, %v8967_v12  ;;  %v4160_v15 = vmul.f32 1.0614054, %v9042_v39  ;;  %v7741_v51 = vpop.eup %7740 }
 0x42a   : > { %v4542_v46 = vmul.f32 %v9008_v2, %v4478_v60  ;;  %v5243_v29 = vmul.f32 %v5179_v34, %v3579_v1  ;;  %v5052_v58 = vsub.f32 1.0, %v4988_v50  ;;  %v3580_v30 = vmul.f32 0.5, %v8923_v4 }
 0x42b   : > { %v4479_v8 = vadd.f32 -0.28449672, %v4415_v16  ;;  %v4989_v45 = vmul.f32 %v7737_v9, %v4669_v26  ;;  %v3773_v12 = vsel %vm3709_vm4, 1.0, %v12639_v20  ;;  %v4224_v32 = vadd.f32 -1.4531521, %v4160_v15 }
 0x42c   : > { %v4606_v44 = vadd.f32 0.2548296, %v4542_v46  ;;  %v5116_v57 = vmul.f32 %v5052_v58, %v3772_v59  ;;  %v5306_v63 = vpack.c.bf16 %v5243_v29, %v5242_v55  ;;  %v4870_v60 = vmul.f32 1.442695, %v4800_v5 }
 0x42d   : > { %v4543_v19 = vmul.f32 %v9019_v23, %v4479_v8  ;;  %v5053_v22 = vsub.f32 1.0, %v4989_v45  ;;  %v7743_v9 = vpop.eup %7742  ;;  %v4801_v4 = vmul.f32 %v4737_v49, %v9017_v42  ;;  %v4288_v34 = vmul.f32 %v9042_v39, %v4224_v32 }
 0x42e   : > { %v4670_v14 = vmul.f32 %v9008_v2, %v4606_v44  ;;  %7548 = vmatprep.mubr.msk.bf16.mxu0 %vm5370_vm5, %v5306_v63  ;;  %v5180_v2 = vadd.f32 1.0, %v5116_v57  ;;  %v4161_v50 = vmul.f32 1.0614054, %v7743_v9  ;;  %v3774_v6 = vsel %vm3710_vm6, 1.0, %v12639_v20 }
 0x42f   : > { %v4607_v1 = vadd.f32 0.2548296, %v4543_v19  ;;  %v5117_v11 = vmul.f32 %v5053_v22, %v3773_v12  ;;  %v7745_v46 = vpop.eup %7744  ;;  %v4352_v29 = vadd.f32 1.4214138, %v4288_v34  ;;  %7746 = vpow2.f32 %v4870_v60 }
 0x430   : > { %v4990_v52 = vmul.f32 %v7741_v51, %v4670_v14  ;;  %v4225_v42 = vadd.f32 -1.4531521, %v4161_v50  ;;  %v4872_v5 = vmul.f32 1.442695, %v4801_v4  ;;  %v5244_v55 = vmul.f32 %v5180_v2, %v3580_v30 }
 0x431   : > { %v4671_v28 = vmul.f32 %v9019_v23, %v4607_v1  ;;  %v5181_v16 = vadd.f32 1.0, %v5117_v11  ;;  %v4416_v8 = vmul.f32 %v9042_v39, %v4352_v29  ;;  %v3775_v45 = vsel %vm3711_vm7, 1.0, %v12639_v20 }
 0x432   : > { %v5054_v59 = vsub.f32 1.0, %v4990_v52  ;;  %v4289_v40 = vmul.f32 %v7743_v9, %v4225_v42  ;;  %7748 = vpow2.f32 %v4872_v5  ;;  %v3582_v30 = vmul.f32 0.5, %v8940_v31 }
 0x433   : > { %v4991_v26 = vmul.f32 %v7745_v46, %v4671_v28  ;;  %v5245_v44 = vmul.f32 %v5181_v16, %v3581_v25  ;;  %v4480_v23 = vadd.f32 -0.28449672, %v4416_v8  ;;  %v3583_v51 = vmul.f32 0.5, %v8948_v43 }
 0x434   : > { %v5118_v58 = vmul.f32 %v5054_v59, %v3774_v6  ;;  %v4353_v15 = vadd.f32 1.4214138, %v4289_v40  ;;  %v1088_v2 = vand.u32 65535, %v8802_v48  ;;  %v1104_v28 = vand.u32 65535, %v8814_v62 }
 0x435   : > { %v5055_v49 = vsub.f32 1.0, %v4991_v26  ;;  %v5307_v57 = vpack.c.bf16 %v5245_v44, %v5244_v55  ;;  %v4544_v18 = vmul.f32 %v9042_v39, %v4480_v23  ;;  %v1120_v29 = vand.u32 65535, %v8827_v33 }
 0x436   : > { %v5182_v14 = vadd.f32 1.0, %v5118_v58  ;;  %v4417_v63 = vmul.f32 %v7743_v9, %v4353_v15  ;;  %v1090_v59 = vcvt.s32.f32 %v1088_v2  ;;  %v1106_v58 = vcvt.s32.f32 %v1104_v28 }
 0x437   : > { %v5119_v19 = vmul.f32 %v5055_v49, %v3775_v45  ;;  %7549 = vmatmul.mubr.msk.bf16.vlgmr.msra.gmra.mrb[16].mxu0 %vm5370_vm5, %v5307_v57  ;;  %v4608_v22 = vadd.f32 0.2548296, %v4544_v18  ;;  %v3777_v26 = vsel %vm3713_vm10, 1.0, %v12639_v20  ;;  %v3584_v44 = vmul.f32 0.5, %v8979_v37 }
 0x438   : > { %v4481_v32 = vadd.f32 -0.28449672, %v4417_v63  ;;  %v5246_v52 = vmul.f32 %v5182_v14, %v3582_v30  ;;  %v1136_v33 = vand.u32 65535, %v8840_v47  ;;  %v1152_v14 = vand.u32 65535, %v8853_v27 }
 0x439   : > { %v5183_v12 = vadd.f32 1.0, %v5119_v19  ;;  %v4672_v60 = vmul.f32 %v9042_v39, %v4608_v22  ;;  %v7747_v11 = vpop.eup %7746  ;;  %v3776_v39 = vsel %vm3712_vm8, 1.0, %v12639_v20  ;;  %v1170_v27 = vcvt.s32.f32 %v1168_v36 }
 0x43a   : > { %v4545_v4 = vmul.f32 %v7743_v9, %v4481_v32  ;;  %v1138_v15 = vcvt.s32.f32 %v1136_v33  ;;  %v1184_v63 = vand.u32 65535, %v8873_v7  ;;  %v1202_v22 = vcvt.s32.f32 %v1200_v35 }
 0x43b   : > { %v5247_v1 = vmul.f32 %v5183_v12, %v3583_v51  ;;  %v4992_v50 = vmul.f32 %v7747_v11, %v4672_v60 }
 0x43c   : > { %v4609_v25 = vadd.f32 0.2548296, %v4545_v4  ;;  %v7749_v46 = vpop.eup %7748  ;;  %v1186_v51 = vcvt.s32.f32 %v1184_v63 }
 0x43d   : > { %v5308_v34 = vpack.c.bf16 %v5247_v1, %v5246_v52  ;;  %v5056_v31 = vsub.f32 1.0, %v4992_v50  ;;  %v12642_v50 = vld [vmem:[#allocation20_spill] sm:$0xff] }
 0x43e   : > { %v4673_v43 = vmul.f32 %v7743_v9, %v4609_v25 }
 0x43f   : > { %7552 = vmatprep.mubr.msk.bf16.mxu0 %vm5370_vm5, %v5308_v34  ;;  %v5120_v48 = vmul.f32 %v5056_v31, %v3776_v39  ;;  %v12640_v34 = vld [vmem:[#allocation19_spill] sm:$0xff]  ;;  %v12644_v39 = vld [vmem:[#allocation22_spill] sm:$0xff] }
 0x440   : > { %v9071_v6 = vpop.xlane.xlu0 %1092  ;;  %v4993_v38 = vmul.f32 %v7749_v46, %v4673_v43 }
 0x441   : > { %vm1094_vm9 = vcmp.eq.f32.partialorder %v8809_v56, %v9071_v6  ;;  %v5184_v62 = vadd.f32 1.0, %v5120_v48  ;;  %v1122_v56 = vcvt.s32.f32 %v1120_v29 }
 0x442   : > { %v1095_v16 = vsel %vm1094_vm9, %v1090_v59, inf  ;;  %v5057_v9 = vsub.f32 1.0, %v4993_v38  ;;  %v12646_v38 = vld [vmem:[#allocation21_spill] sm:$0xff] }
 0x443   : > { %1096 = vmin.xlane.f32.xlu0 %v1095_v16  ;;  %v5248_v49 = vmul.f32 %v5184_v62, %v3584_v44  ;;  %v12651_v44 = vld [vmem:[#allocation24_spill] sm:$0xff] }
 0x444   : > { %v1109_v42 = vpop.xlane.xlu1 %1108  ;;  %v5121_v5 = vmul.f32 %v5057_v9, %v3777_v26  ;;  %v12648_v9 = vmov 1.0|1.0  }
 0x445   : > { %vm1110_vm11 = vcmp.eq.f32.partialorder %v8822_v21, %v1109_v42  ;;  %v1115_v1 = vcvt.f32.s32 %v1109_v42 }
 0x446   : > { %v1111_v55 = vsel %vm1110_vm11, %v1106_v58, inf  ;;  %v5185_v8 = vadd.f32 1.0, %v5121_v5 }
 0x447   : > { %1112 = vmin.xlane.f32.xlu1 %v1111_v55  ;;  %v12649_v55 = vld [vmem:[#allocation23_spill] sm:$0xff] }
 0x448   : > { %v1125_v40 = vpop.xlane.xlu0 %1124  ;;  %v5249_v57 = vmul.f32 %v5185_v8, %v3585_v17 }
 0x449   : > { %vm1126_vm12 = vcmp.eq.f32.partialorder %v8835_v41, %v1125_v40  ;;  %v1154_v41 = vcvt.s32.f32 %v1152_v14  ;;  %v1131_v4 = vcvt.f32.s32 %v1125_v40 }
 0x44a   : > { %v1127_v45 = vsel %vm1126_vm12, %v1122_v56, inf  ;;  %v5309_v21 = vpack.c.bf16 %v5249_v57, %v5248_v49 }
 0x44b   : > { %1128 = vmin.xlane.f32.xlu0 %v1127_v45 }
 0x44c   : > { %v9085_v23 = vpop.xlane.xlu1 %1140  ;;  %7553 = vmatmul.mubr.msk.bf16.gmra.mrb[20].mxu0 %vm5370_vm5, %v5309_v21  ;;  %v12653_v21 = vld [vmem:[#allocation25_spill] sm:$0xff] }
 0x44d   : > { %vm1142_vm13 = vcmp.eq.f32.partialorder %v8848_v24, %v9085_v23  ;;  %v1147_v28 = vcvt.f32.s32 %v9085_v23 }
 0x44e   : > { %v1143_v37 = vsel %vm1142_vm13, %v1138_v15, inf  ;;  %v12655_v15 = vld [vmem:[#allocation26_spill] sm:$0xff] }
 0x44f   : > { %1144 = vmin.xlane.f32.xlu1 %v1143_v37  ;;  %v1148_v62 = vshll.u32 %v1147_v28, 16 }
 0x450   : > { %v9091_v47 = vpop.xlane.xlu0 %1156 }
 0x451   : > { %vm1158_vm14 = vcmp.eq.f32.partialorder %v8861_v3, %v9091_v47  ;;  %v1163_v58 = vcvt.f32.s32 %v9091_v47 }
 0x452   : > { %v1159_v19 = vsel %vm1158_vm14, %v1154_v41, inf }
 0x453   : > { %1160 = vmin.xlane.f32.xlu0 %v1159_v19  ;;  %v1164_v33 = vshll.u32 %v1163_v58, 16 }
 0x454   : > { %v9096_v18 = vpop.xlane.xlu1 %1172 }
 0x455   : > { %vm1174_vm15 = vcmp.eq.f32.partialorder %v8871_v0, %v9096_v18  ;;  %v1099_v0 = vcvt.f32.s32 %v9071_v6  ;;  %v1132_v6 = vshll.u32 %v1131_v4, 16  ;;  %v1179_v57 = vcvt.f32.s32 %v9096_v18 }
 0x456   : > { %v1175_v24 = vsel %vm1174_vm15, %v1170_v27, inf  ;;  %v12657_v27 = vld [vmem:[#allocation27_spill] sm:$0xff] }
 0x457   : > { %1176 = vmin.xlane.f32.xlu1 %v1175_v24  ;;  %v1100_v52 = vshll.u32 %v1099_v0, 16  ;;  %v1180_v19 = vshll.u32 %v1179_v57, 16  ;;  %v12659_v24 = vld [vmem:[#allocation28_spill] sm:$0xff] }
 0x458   : > { %v9101_v30 = vpop.xlane.xlu0 %1188 }
 0x459   : > { %vm1190_vm0 = vcmp.eq.f32.partialorder %v8881_v53, %v9101_v30  ;;  %v1116_v53 = vshll.u32 %v1115_v1, 16  ;;  %v1195_v41 = vcvt.f32.s32 %v9101_v30  ;;  %v12663_v1 = vld [vmem:[#allocation30_spill] sm:$0xff] }
 0x45a   : > { %v1191_v3 = vsel %vm1190_vm0, %v1186_v51, inf }
 0x45b   : > { %1192 = vmin.xlane.f32.xlu0 %v1191_v3  ;;  %v1196_v3 = vshll.u32 %v1195_v41, 16 }
 0x45c   : > { %v9106_v12 = vpop.xlane.xlu1 %1204 }
 0x45d   : > { %vm1206_vm1 = vcmp.eq.f32.partialorder %v8887_v61, %v9106_v12 }
 0x45e   : > { %v1207_v7 = vsel %vm1206_vm1, %v1202_v22, inf }
 0x45f   : > { %1208 = vmin.xlane.f32.xlu1 %v1207_v7  ;;  %v1211_v7 = vcvt.f32.s32 %v9106_v12 }
 0x4d0   : > { %v1097_v32 = vpop.xlane.xlu0 %1096 }
 0x4d1   : > { %v1098_v60 = vcvt.f32.s32 %v1097_v32  ;;  %v12661_v32 = vld [vmem:[#allocation29_spill] sm:$0xff] }
 0x4d3   : > { %v1101_v54 = vadd.s32 %v1100_v52, %v1098_v60 }
 0x4d4   : > { %v1113_v2 = vpop.xlane.xlu1 %1112 }
 0x4d5   : > { %v1114_v11 = vcvt.f32.s32 %v1113_v2  ;;  %vm1214_vm2 = vcmp.eq.s32.totalorder %v8545_v10, %v1101_v54  ;;  %vm1215_vm3 = vcmp.eq.s32.totalorder %v8548_v13, %v1101_v54  ;;  %v1212_v2 = vshll.u32 %v1211_v7, 16 }
 0x4d6   : > { %v9116_v61 = vsel %vm1214_vm2, inf, %v12640_v34  ;;  %v9119_v25 = vsel %vm1215_vm3, inf, %v12642_v50  ;;  %v12667_v50 = vld [vmem:[#allocation32_spill] sm:$0xff] }
 0x4d7   : > { %12641 = vst [vmem:[#allocation19_spill] sm:$0xff] %v9116_v61  ;;  %12643 = vst [vmem:[#allocation20_spill] sm:$0xff] %v9119_v25  ;;  %v1117_v31 = vadd.s32 %v1116_v53, %v1114_v11  ;;  %v1297_v43 = vmin.f32 %v9116_v61, %v9119_v25  ;;  %v12665_v11 = vld [vmem:[#allocation31_spill] sm:$0xff] }
 0x4d8   : > { %v1129_v59 = vpop.xlane.xlu0 %1128 }
 0x4d9   : > { %v1130_v46 = vcvt.f32.s32 %v1129_v59  ;;  %1298 = vmin.xlane.f32.xlu0 %v1297_v43  ;;  %vm1217_vm4 = vcmp.eq.s32.totalorder %v8548_v13, %v1117_v31  ;;  %vm1216_vm6 = vcmp.eq.s32.totalorder %v8545_v10, %v1117_v31  ;;  %v12669_v59 = vld [vmem:[#allocation33_spill] sm:$0xff] }
 0x4da   : > { %vm7392_vm7 = vmpackc.low %vm1217_vm4, %vm1215_vm3  ;;  %v9127_v48 = vsel %vm1216_vm6, inf, %v12644_v39  ;;  %v9130_v16 = vsel %vm1217_vm4, inf, %v12646_v38 }
 0x4db   : > { %12645 = vst [vmem:[#allocation22_spill] sm:$0xff] %v9127_v48  ;;  %12647 = vst [vmem:[#allocation21_spill] sm:$0xff] %v9130_v16  ;;  %v1133_v29 = vadd.s32 %v1132_v6, %v1130_v46  ;;  %7393 = vmatprep.mubr.msk.bf16.mxu1 %vm7392_vm7, %v12648_v9  ;;  %v1300_v42 = vmin.f32 %v9127_v48, %v9130_v16  ;;  %v12671_v46 = vld [vmem:[#allocation34_spill] sm:$0xff] }
 0x4dc   : > { %vm7394_vm8 = vmpackc.low %vm1216_vm6, %vm1214_vm2  ;;  %v1145_v26 = vpop.xlane.xlu1 %1144 }
 0x4dd   : > { %7395 = vmatmul.mubr.msk.bf16.gmra.mrb[16].mxu1 %vm7394_vm8, %v12648_v9  ;;  %v1146_v5 = vcvt.f32.s32 %v1145_v26  ;;  %1301 = vmin.xlane.f32.xlu1 %v1300_v42  ;;  %vm1218_vm9 = vcmp.eq.s32.totalorder %v8545_v10, %v1133_v29  ;;  %vm1219_vm10 = vcmp.eq.s32.totalorder %v8548_v13, %v1133_v29 }
 0x4de   : > { %v9144_v56 = vsel %vm1218_vm9, inf, %v12649_v55  ;;  %v9147_v17 = vsel %vm1219_vm10, inf, %v12651_v44 }
 0x4df   : > { %12650 = vst [vmem:[#allocation23_spill] sm:$0xff] %v9144_v56  ;;  %12652 = vst [vmem:[#allocation24_spill] sm:$0xff] %v9147_v17  ;;  %v1149_v8 = vadd.s32 %v1148_v62, %v1146_v5  ;;  %v1303_v40 = vmin.f32 %v9144_v56, %v9147_v17 }
 0x4e0   : > { %v1161_v49 = vpop.xlane.xlu0 %1160 }
 0x4e1   : > { %v1162_v45 = vcvt.f32.s32 %v1161_v49  ;;  %1304 = vmin.xlane.f32.xlu0 %v1303_v40  ;;  %vm1221_vm11 = vcmp.eq.s32.totalorder %v8548_v13, %v1149_v8  ;;  %vm1220_vm12 = vcmp.eq.s32.totalorder %v8545_v10, %v1149_v8 }
 0x4e2   : > { %vm7396_vm13 = vmpackc.low %vm1221_vm11, %vm1219_vm10  ;;  %v9155_v23 = vsel %vm1220_vm12, inf, %v12653_v21  ;;  %v9158_v14 = vsel %vm1221_vm11, inf, %v12655_v15 }
 0x4e3   : > { %12654 = vst [vmem:[#allocation25_spill] sm:$0xff] %v9155_v23  ;;  %12656 = vst [vmem:[#allocation26_spill] sm:$0xff] %v9158_v14  ;;  %v1165_v37 = vadd.s32 %v1164_v33, %v1162_v45  ;;  %7397 = vmatprep.mubr.msk.bf16.mxu1 %vm7396_vm13, %v12648_v9  ;;  %v1306_v47 = vmin.f32 %v9155_v23, %v9158_v14 }
 0x4e4   : > { %vm7398_vm14 = vmpackc.low %vm1220_vm12, %vm1218_vm9  ;;  %v1177_v36 = vpop.xlane.xlu1 %1176 }
 0x4e5   : > { %7399 = vmatmul.mubr.msk.bf16.gmra.mrb[20].mxu1 %vm7398_vm14, %v12648_v9  ;;  %v1178_v18 = vcvt.f32.s32 %v1177_v36  ;;  %1307 = vmin.xlane.f32.xlu1 %v1306_v47  ;;  %vm1222_vm15 = vcmp.eq.s32.totalorder %v8545_v10, %v1165_v37  ;;  %vm1223_vm0 = vcmp.eq.s32.totalorder %v8548_v13, %v1165_v37 }
 0x4e6   : > { %v9172_v63 = vsel %vm1222_vm15, inf, %v12657_v27  ;;  %v9175_v51 = vsel %vm1223_vm0, inf, %v12659_v24 }
 0x4e7   : > { %12658 = vst [vmem:[#allocation27_spill] sm:$0xff] %v9172_v63  ;;  %12660 = vst [vmem:[#allocation28_spill] sm:$0xff] %v9175_v51  ;;  %v1181_v35 = vadd.s32 %v1180_v19, %v1178_v18  ;;  %v1309_v30 = vmin.f32 %v9172_v63, %v9175_v51 }
 0x4e8   : > { %v1193_v22 = vpop.xlane.xlu0 %1192 }
 0x4e9   : > { %v1194_v0 = vcvt.f32.s32 %v1193_v22  ;;  %1310 = vmin.xlane.f32.xlu0 %v1309_v30  ;;  %vm1225_vm1 = vcmp.eq.s32.totalorder %v8548_v13, %v1181_v35  ;;  %vm1224_vm2 = vcmp.eq.s32.totalorder %v8545_v10, %v1181_v35 }
 0x4ea   : > { %vm7400_vm3 = vmpackc.low %vm1225_vm1, %vm1223_vm0  ;;  %v9183_v52 = vsel %vm1224_vm2, inf, %v12661_v32  ;;  %v9186_v60 = vsel %vm1225_vm1, inf, %v12663_v1 }
 0x4eb   : > { %12662 = vst [vmem:[#allocation29_spill] sm:$0xff] %v9183_v52  ;;  %12664 = vst [vmem:[#allocation30_spill] sm:$0xff] %v9186_v60  ;;  %v1197_v54 = vadd.s32 %v1196_v3, %v1194_v0  ;;  %7401 = vmatprep.mubr.msk.bf16.mxu1 %vm7400_vm3, %v12648_v9  ;;  %v1312_v12 = vmin.f32 %v9183_v52, %v9186_v60 }
 0x4ec   : > { %vm7402_vm4 = vmpackc.low %vm1224_vm2, %vm1222_vm15  ;;  %v1209_v4 = vpop.xlane.xlu1 %1208 }
 0x4ed   : > { %7403 = vmatmul.mubr.msk.bf16.gmra.mrb[24].mxu1 %vm7402_vm4, %v12648_v9  ;;  %v1210_v53 = vcvt.f32.s32 %v1209_v4  ;;  %1313 = vmin.xlane.f32.xlu1 %v1312_v12  ;;  %vm1226_vm6 = vcmp.eq.s32.totalorder %v8545_v10, %v1197_v54  ;;  %vm1227_vm7 = vcmp.eq.s32.totalorder %v8548_v13, %v1197_v54 }
 0x4ee   : > { %v9197_v34 = vsel %vm1226_vm6, inf, %v12665_v11  ;;  %v9200_v31 = vsel %vm1227_vm7, inf, %v12667_v50 }
 0x4ef   : > { %12666 = vst [vmem:[#allocation31_spill] sm:$0xff] %v9197_v34  ;;  %12668 = vst [vmem:[#allocation32_spill] sm:$0xff] %v9200_v31  ;;  %v1213_v43 = vadd.s32 %v1212_v2, %v1210_v53  ;;  %v1315_v6 = vmin.f32 %v9197_v34, %v9200_v31 }
 0x4f1   : > { %1316 = vmin.xlane.f32.xlu0 %v1315_v6  ;;  %vm1229_vm8 = vcmp.eq.s32.totalorder %v8548_v13, %v1213_v43  ;;  %vm1228_vm9 = vcmp.eq.s32.totalorder %v8545_v10, %v1213_v43 }
 0x4f2   : > { %vm7404_vm10 = vmpackc.low %vm1229_vm8, %vm1227_vm7  ;;  %v9207_v28 = vsel %vm1228_vm9, inf, %v12669_v59  ;;  %v9210_v39 = vsel %vm1229_vm8, inf, %v12671_v46 }
 0x4f3   : > { %12670 = vst [vmem:[#allocation33_spill] sm:$0xff] %v9207_v28  ;;  %12672 = vst [vmem:[#allocation34_spill] sm:$0xff] %v9210_v39  ;;  %7405 = vmatprep.mubr.msk.bf16.mxu1 %vm7404_vm10, %v12648_v9  ;;  %v1318_v38 = vmin.f32 %v9207_v28, %v9210_v39 }
 0x4f4   : > { %vm7406_vm11 = vmpackc.low %vm1228_vm9, %vm1226_vm6 }
 0x4f5   : > { %7407 = vmatmul.mubr.msk.bf16.gmra.mrb[28].mxu1 %vm7406_vm11, %v12648_v9  ;;  %1319 = vmin.xlane.f32.xlu1 %v1318_v38 }
 0x50a   : > { %v9216_v29 = vpop.f32.mrb[16].mxu0 }
 0x50b   : > { %12673 = vst [vmem:[#allocation35_spill] sm:$0xff] %v9216_v29  ;;  %v9218_v42 = vpop.f32.mrb[17].mxu0 }
 0x50c   : > { %12674 = vst [vmem:[#allocation36_spill] sm:$0xff] %v9218_v42  ;;  %v9220_v58 = vpop.f32.mrb[18].mxu0 }
 0x50d   : > { %12675 = vst [vmem:[#allocation37_spill] sm:$0xff] %v9220_v58  ;;  %v9222_v26 = vpop.f32.mrb[19].mxu0 }
 0x50e   : > { %12676 = vst [vmem:[#allocation38_spill] sm:$0xff] %v9222_v26 }
 0x51f   : > { %v9224_v62 = vpop.f32.mrb[20].mxu0 }
 0x520   : > { %12677 = vst [vmem:[#allocation39_spill] sm:$0xff] %v9224_v62  ;;  %v9226_v5 = vpop.f32.mrb[21].mxu0 }
 0x521   : > { %12678 = vst [vmem:[#allocation40_spill] sm:$0xff] %v9226_v5  ;;  %v9228_v55 = vpop.f32.mrb[22].mxu0  ;;  %v8012_v5 = vld [vmem:[%s8895_s26 + $0x20] sm:$0xff] }
 0x522   : > { %12679 = vst [vmem:[#allocation41_spill] sm:$0xff] %v9228_v55  ;;  %v9230_v44 = vpop.f32.mrb[23].mxu0 }
 0x523   : > { %12680 = vst [vmem:[#allocation42_spill] sm:$0xff] %v9230_v44 }
 0x566   : > { %v1299_v8 = vpop.xlane.xlu0 %1298 }
 0x567   : > { %vm1321_vm12 = vcmp.le.f32.partialorder %v9116_v61, %v1299_v8  ;;  %vm1322_vm13 = vcmp.le.f32.partialorder %v9119_v25, %v1299_v8 }
 0x568   : > { %v1337_v40 = vsel %vm1321_vm12, %v8545_v10, 256  ;;  %v1338_v33 = vsel %vm1322_vm13, %v8548_v13, 256 }
 0x569   : > { %vm1353_vm14 = vcmp.lt.s32.totalorder %v1337_v40, %v1338_v33 }
 0x56a   : > { %v1302_v49 = vpop.xlane.xlu1 %1301  ;;  %v9236_v57 = vsel %vm1353_vm14, %v1337_v40, %v1338_v33 }
 0x56b   : > { %vm1323_vm15 = vcmp.le.f32.partialorder %v9127_v48, %v1302_v49  ;;  %vm1324_vm0 = vcmp.le.f32.partialorder %v9130_v16, %v1302_v49  ;;  %v1356_v45 = vshra.s32 %v9236_v57, 16 }
 0x56c   : > { %v1339_v21 = vsel %vm1323_vm15, %v8545_v10, 256  ;;  %v1340_v15 = vsel %vm1324_vm0, %v8548_v13, 256 }
 0x56d   : > { %v9243_v37 = vcvt.s32.f32 %v1356_v45  ;;  %vm1369_vm1 = vcmp.lt.s32.totalorder %v1339_v21, %v1340_v15 }
 0x56e   : > { %v1305_v47 = vpop.xlane.xlu0 %1304  ;;  %v9245_v41 = vsel %vm1369_vm1, %v1339_v21, %v1340_v15 }
 0x56f   : > { %vm1325_vm2 = vcmp.le.f32.partialorder %v9144_v56, %v1305_v47  ;;  %vm1326_vm3 = vcmp.le.f32.partialorder %v9147_v17, %v1305_v47  ;;  %1359 = vmin.xlane.f32.xlu0 %v9243_v37  ;;  %v1372_v36 = vshra.s32 %v9245_v41, 16  ;;  %v8015_v17 = vld [vmem:[%s8895_s26 + $0x38] sm:$0xff] }
 0x570   : > { %v1341_v19 = vsel %vm1325_vm2, %v8545_v10, 256  ;;  %v1342_v18 = vsel %vm1326_vm3, %v8548_v13, 256 }
 0x571   : > { %v9253_v27 = vcvt.s32.f32 %v1372_v36  ;;  %vm1385_vm4 = vcmp.lt.s32.totalorder %v1341_v19, %v1342_v18 }
 0x572   : > { %v1308_v24 = vpop.xlane.xlu1 %1307  ;;  %v9255_v35 = vsel %vm1385_vm4, %v1341_v19, %v1342_v18 }
 0x573   : > { %vm1327_vm6 = vcmp.le.f32.partialorder %v9155_v23, %v1308_v24  ;;  %vm1328_vm7 = vcmp.le.f32.partialorder %v9158_v14, %v1308_v24  ;;  %1375 = vmin.xlane.f32.xlu1 %v9253_v27  ;;  %v1388_v30 = vshra.s32 %v9255_v35, 16 }
 0x574   : > { %v1343_v3 = vsel %vm1327_vm6, %v8545_v10, 256  ;;  %v1344_v22 = vsel %vm1328_vm7, %v8548_v13, 256 }
 0x575   : > { %v9263_v7 = vcvt.s32.f32 %v1388_v30  ;;  %vm1401_vm8 = vcmp.lt.s32.totalorder %v1343_v3, %v1344_v22 }
 0x576   : > { %v1311_v0 = vpop.xlane.xlu0 %1310  ;;  %v9265_v32 = vsel %vm1401_vm8, %v1343_v3, %v1344_v22  ;;  %v8006_v3 = vld [vmem:[%s8895_s26] sm:$0xff] }
 0x577   : > { %vm1329_vm9 = vcmp.le.f32.partialorder %v9172_v63, %v1311_v0  ;;  %vm1330_vm10 = vcmp.le.f32.partialorder %v9175_v51, %v1311_v0  ;;  %1391 = vmin.xlane.f32.xlu0 %v9263_v7  ;;  %v1404_v1 = vshra.s32 %v9265_v32, 16 }
 0x578   : > { %v1345_v54 = vsel %vm1329_vm9, %v8545_v10, 256  ;;  %v1346_v12 = vsel %vm1330_vm10, %v8548_v13, 256 }
 0x579   : > { %v9273_v4 = vcvt.s32.f32 %v1404_v1  ;;  %vm1417_vm11 = vcmp.lt.s32.totalorder %v1345_v54, %v1346_v12 }
 0x57a   : > { %v1314_v2 = vpop.xlane.xlu1 %1313  ;;  %v9275_v53 = vsel %vm1417_vm11, %v1345_v54, %v1346_v12  ;;  %v9313_v54 = vld [vmem:[#allocation3] ss:$0 sm:$0xff] }
 0x57b   : > { %vm1331_vm12 = vcmp.le.f32.partialorder %v9183_v52, %v1314_v2  ;;  %vm1332_vm13 = vcmp.le.f32.partialorder %v9186_v60, %v1314_v2  ;;  %1407 = vmin.xlane.f32.xlu1 %v9273_v4  ;;  %v1420_v11 = vshra.s32 %v9275_v53, 16  ;;  %v8008_v2 = vld [vmem:[%s8895_s26 + $0x8] sm:$0xff] }
 0x57c   : > { %v1347_v50 = vsel %vm1331_vm12, %v8545_v10, 256  ;;  %v1348_v43 = vsel %vm1332_vm13, %v8548_v13, 256 }
 0x57d   : > { %v9283_v6 = vcvt.s32.f32 %v1420_v11  ;;  %vm1433_vm14 = vcmp.lt.s32.totalorder %v1347_v50, %v1348_v43 }
 0x57e   : > { %v1317_v59 = vpop.xlane.xlu0 %1316  ;;  %v9285_v46 = vsel %vm1433_vm14, %v1347_v50, %v1348_v43  ;;  %v9317_v43 = vld [vmem:[#allocation5] ss:$0 sm:$0xff] }
 0x57f   : > { %vm1333_vm15 = vcmp.le.f32.partialorder %v9197_v34, %v1317_v59  ;;  %vm1334_vm0 = vcmp.le.f32.partialorder %v9200_v31, %v1317_v59  ;;  %1423 = vmin.xlane.f32.xlu0 %v9283_v6  ;;  %v1436_v38 = vshra.s32 %v9285_v46, 16 }
 0x580   : > { %v1349_v8 = vsel %vm1333_vm15, %v8545_v10, 256  ;;  %v1350_v40 = vsel %vm1334_vm0, %v8548_v13, 256 }
 0x581   : > { %v9293_v33 = vcvt.s32.f32 %v1436_v38  ;;  %vm1449_vm1 = vcmp.lt.s32.totalorder %v1349_v8, %v1350_v40 }
 0x582   : > { %v1320_v49 = vpop.xlane.xlu1 %1319  ;;  %v9295_v45 = vsel %vm1449_vm1, %v1349_v8, %v1350_v40 }
 0x583   : > { %vm1335_vm2 = vcmp.le.f32.partialorder %v9207_v28, %v1320_v49  ;;  %vm1336_vm3 = vcmp.le.f32.partialorder %v9210_v39, %v1320_v49  ;;  %1439 = vmin.xlane.f32.xlu1 %v9293_v33  ;;  %v1452_v21 = vshra.s32 %v9295_v45, 16 }
 0x584   : > { %v1351_v15 = vsel %vm1335_vm2, %v8545_v10, 256  ;;  %v1352_v47 = vsel %vm1336_vm3, %v8548_v13, 256 }
 0x585   : > { %v9303_v36 = vcvt.s32.f32 %v1452_v21  ;;  %vm1465_vm4 = vcmp.lt.s32.totalorder %v1351_v15, %v1352_v47 }
 0x586   : > { %v9305_v19 = vsel %vm1465_vm4, %v1351_v15, %v1352_v47  ;;  %v8010_v47 = vld [vmem:[%s8895_s26 + $0x10] sm:$0xff] }
 0x587   : > { %1455 = vmin.xlane.f32.xlu0 %v9303_v36  ;;  %v1468_v18 = vshra.s32 %v9305_v19, 16 }
 0x589   : > { %v9309_v24 = vcvt.s32.f32 %v1468_v18 }
 0x58b   : > { %1471 = vmin.xlane.f32.xlu1 %v9309_v24 }
 0x5b0   : > { %v3141_v30 = vpop.f32.mrb[16].mxu1 }
 0x5b1   : > { %v3380_v22 = vadd.f32 %v8006_v3, %v3141_v30  ;;  %v3143_v0 = vpop.f32.mrb[17].mxu1 }
 0x5b2   : > { %v3144_v1 = vpop.f32.mrb[18].mxu1 }
 0x5b3   : > { %v3451_v12 = vmul.f32 %v9313_v54, %v3380_v22  ;;  %v3381_v11 = vadd.f32 %v8008_v2, %v3144_v1  ;;  %v3146_v50 = vpop.f32.mrb[19].mxu1 }
 0x5b5   : > { %v9320_v59 = vadd.f32 %v9317_v43, %v3451_v12  ;;  %v3452_v38 = vmul.f32 %v9313_v54, %v3381_v11 }
 0x5b7   : > { %v9324_v8 = vmul.f32 0.70710677, %v9320_v59  ;;  %v9327_v40 = vadd.f32 %v9317_v43, %v3452_v38  ;;  %v8011_v38 = vld [vmem:[%s8895_s26 + $0x18] sm:$0xff] }
 0x5b8   : > { %v3149_v49 = vpop.f32.mrb[20].mxu1 }
 0x5b9   : > { %v3842_v21 = vand.u32 2147483647, %v9324_v8  ;;  %v9331_v15 = vmul.f32 0.70710677, %v9327_v40  ;;  %v3382_v18 = vadd.f32 %v8010_v47, %v3149_v49  ;;  %v3151_v30 = vpop.f32.mrb[21].mxu1  ;;  %vm3714_vm6 = vcmp.ge.f32.partialorder %v9324_v8, 0.0 }
 0x5ba   : > { %v3152_v1 = vpop.f32.mrb[22].mxu1 }
 0x5bb   : > { %v3906_v3 = vmul.f32 0.3275911, %v3842_v21  ;;  %v3843_v22 = vand.u32 2147483647, %v9331_v15  ;;  %v3453_v0 = vmul.f32 %v9313_v54, %v3382_v18  ;;  %v3154_v11 = vpop.f32.mrb[23].mxu1  ;;  %v3383_v44 = vadd.f32 %v8011_v38, %v3152_v1 }
 0x5bc   : > { %v4738_v26 = vsub.f32 0.0, %v3842_v21  ;;  %vm3715_vm7 = vcmp.ge.f32.partialorder %v9331_v15, 0.0 }
 0x5bd   : > { %v3970_v12 = vadd.f32 1.0, %v3906_v3  ;;  %v3907_v2 = vmul.f32 0.3275911, %v3843_v22  ;;  %v9337_v50 = vadd.f32 %v9317_v43, %v3453_v0  ;;  %v3454_v47 = vmul.f32 %v9313_v54, %v3383_v44 }
 0x5bf   : > { %7750 = vrcp.f32 %v3970_v12  ;;  %v3971_v55 = vadd.f32 1.0, %v3907_v2  ;;  %v9341_v49 = vmul.f32 0.70710677, %v9337_v50  ;;  %v9347_v0 = vadd.f32 %v9317_v43, %v3454_v47  ;;  %v8013_v12 = vld [vmem:[%s8895_s26 + $0x28] sm:$0xff] }
 0x5c0   : > { %v3157_v30 = vpop.f32.mrb[24].mxu1 }
 0x5c1   : > { %v3384_v18 = vadd.f32 %v8012_v5, %v3157_v30  ;;  %v3159_v62 = vpop.f32.mrb[25].mxu1  ;;  %7752 = vrcp.f32 %v3971_v55  ;;  %v3844_v3 = vand.u32 2147483647, %v9341_v49  ;;  %v9352_v44 = vmul.f32 0.70710677, %v9347_v0 }
 0x5c2   : > { %v3160_v11 = vpop.f32.mrb[26].mxu1  ;;  %v4739_v30 = vsub.f32 0.0, %v3843_v22  ;;  %vm3716_vm8 = vcmp.ge.f32.partialorder %v9341_v49, 0.0 }
 0x5c3   : > { %v3455_v1 = vmul.f32 %v9313_v54, %v3384_v18  ;;  %v3385_v2 = vadd.f32 %v8013_v12, %v3160_v11  ;;  %v3162_v38 = vpop.f32.mrb[27].mxu1  ;;  %v3908_v58 = vmul.f32 0.3275911, %v3844_v3  ;;  %v3845_v47 = vand.u32 2147483647, %v9352_v44 }
 0x5c4   : > { %v4802_v11 = vmul.f32 %v4738_v26, %v3842_v21  ;;  %v4803_v31 = vmul.f32 %v4739_v30, %v3843_v22  ;;  %v4740_v60 = vsub.f32 0.0, %v3844_v3  ;;  %v8014_v30 = vld [vmem:[%s8895_s26 + $0x30] sm:$0xff]  ;;  %vm3717_vm9 = vcmp.ge.f32.partialorder %v9352_v44, 0.0 }
 0x5c5   : > { %v9355_v5 = vadd.f32 %v9317_v43, %v3455_v1  ;;  %v3456_v62 = vmul.f32 %v9313_v54, %v3385_v2  ;;  %v3972_v55 = vadd.f32 1.0, %v3908_v58  ;;  %v3909_v12 = vmul.f32 0.3275911, %v3845_v47 }
 0x5c6   : > { %v4874_v34 = vmul.f32 1.442695, %v4802_v11  ;;  %v4741_v63 = vsub.f32 0.0, %v3845_v47  ;;  %v4876_v11 = vmul.f32 1.442695, %v4803_v31  ;;  %v4804_v9 = vmul.f32 %v4740_v60, %v3844_v3 }
 0x5c7   : > { %v9360_v42 = vmul.f32 0.70710677, %v9355_v5  ;;  %v9363_v18 = vadd.f32 %v9317_v43, %v3456_v62  ;;  %7754 = vrcp.f32 %v3972_v55  ;;  %v3973_v39 = vadd.f32 1.0, %v3909_v12 }
 0x5c8   : > { %v3165_v38 = vpop.f32.mrb[28].mxu1  ;;  %v4805_v48 = vmul.f32 %v4741_v63, %v3845_v47  ;;  %v4878_v60 = vmul.f32 1.442695, %v4804_v9  ;;  %v3779_v9 = vsel %vm3715_vm7, 1.0, %v12639_v20 }
 0x5c9   : > { %v9365_v29 = vpop.eup %7750  ;;  %v9368_v1 = vand.u32 2147483647, %v9360_v42  ;;  %v9371_v58 = vmul.f32 0.70710677, %v9363_v18  ;;  %v3167_v28 = vpop.f32.mrb[29].mxu1  ;;  %7756 = vrcp.f32 %v3973_v39  ;;  %v3386_v23 = vadd.f32 %v8014_v30, %v3165_v38 }
 0x5ca   : > { %v4162_v2 = vmul.f32 1.0614054, %v9365_v29  ;;  %v3168_v26 = vpop.f32.mrb[30].mxu1  ;;  %v9380_v28 = vmul.f32 0.5, %v9320_v59  ;;  %v4880_v3 = vmul.f32 1.442695, %v4805_v48 }
 0x5cb   : > { %v3910_v62 = vmul.f32 0.3275911, %v9368_v1  ;;  %v9375_v21 = vpop.eup %7752  ;;  %v3170_v52 = vpop.f32.mrb[31].mxu1  ;;  %v3847_v12 = vand.u32 2147483647, %v9371_v58  ;;  %v3387_v56 = vadd.f32 %v8015_v17, %v3168_v26  ;;  %v3457_v16 = vmul.f32 %v9313_v54, %v3386_v23 }
 0x5cc   : > { %v4226_v55 = vadd.f32 -1.4531521, %v4162_v2  ;;  %v4163_v51 = vmul.f32 1.0614054, %v9375_v21  ;;  %vm3718_vm10 = vcmp.ge.f32.partialorder %v9360_v42, 0.0  ;;  %vm3719_vm11 = vcmp.ge.f32.partialorder %v9371_v58, 0.0 }
 0x5cd   : > { %v3974_v14 = vadd.f32 1.0, %v3910_v62  ;;  %v3911_v39 = vmul.f32 0.3275911, %v3847_v12  ;;  %v3458_v62 = vmul.f32 %v9313_v54, %v3387_v56  ;;  %v4743_v38 = vsub.f32 0.0, %v3847_v12 }
 0x5ce   : > { %v4290_v22 = vmul.f32 %v9365_v29, %v4226_v55  ;;  %v4227_v2 = vadd.f32 -1.4531521, %v4163_v51  ;;  %v3782_v44 = vsel %vm3718_vm10, 1.0, %v12639_v20 }
 0x5cf   : > { %7758 = vrcp.f32 %v3974_v14  ;;  %v3975_v25 = vadd.f32 1.0, %v3911_v39  ;;  %v9394_v14 = vadd.f32 %v9317_v43, %v3457_v16  ;;  %v9398_v56 = vadd.f32 %v9317_v43, %v3458_v62 }
 0x5d0   : > { %v4354_v52 = vadd.f32 1.4214138, %v4290_v22  ;;  %7760 = vpow2.f32 %v4874_v34  ;;  %v4291_v59 = vmul.f32 %v9375_v21, %v4227_v2  ;;  %v4742_v34 = vsub.f32 0.0, %v9368_v1 }
 0x5d1   : > { %v9388_v55 = vpop.eup %7754  ;;  %7762 = vrcp.f32 %v3975_v25  ;;  %v9403_v47 = vmul.f32 0.70710677, %v9394_v14  ;;  %v3778_v25 = vsel %vm3714_vm6, 1.0, %v12639_v20  ;;  %v9417_v30 = vmul.f32 0.70710677, %v9398_v56 }
 0x5d2   : > { %v4418_v17 = vmul.f32 %v9365_v29, %v4354_v52  ;;  %v4355_v51 = vadd.f32 1.4214138, %v4291_v59  ;;  %v4164_v23 = vmul.f32 1.0614054, %v9388_v55  ;;  %7764 = vpow2.f32 %v4876_v11 }
 0x5d3   : > { %v9405_v16 = vpop.eup %7756  ;;  %7766 = vpow2.f32 %v4878_v60  ;;  %v4806_v8 = vmul.f32 %v4742_v34, %v9368_v1  ;;  %v9421_v11 = vand.u32 2147483647, %v9403_v47  ;;  %vm3720_vm12 = vcmp.ge.f32.partialorder %v9403_v47, 0.0 }
 0x5d4   : > { %v4482_v63 = vadd.f32 -0.28449672, %v4418_v17  ;;  %v4419_v31 = vmul.f32 %v9375_v21, %v4355_v51  ;;  %v4228_v54 = vadd.f32 -1.4531521, %v4164_v23  ;;  %v4165_v48 = vmul.f32 1.0614054, %v9405_v16 }
 0x5d5   : > { %7768 = vpow2.f32 %v4880_v3  ;;  %v4807_v51 = vmul.f32 %v4743_v38, %v3847_v12  ;;  %v3912_v23 = vmul.f32 0.3275911, %v9421_v11  ;;  %vm3721_vm14 = vcmp.ge.f32.partialorder %v9417_v30, 0.0 }
 0x5d6   : > { %v4546_v43 = vmul.f32 %v9365_v29, %v4482_v63  ;;  %v4483_v26 = vadd.f32 -0.28449672, %v4419_v31  ;;  %v4292_v22 = vmul.f32 %v9388_v55, %v4228_v54  ;;  %v4229_v62 = vadd.f32 -1.4531521, %v4165_v48 }
 0x5d7   : > { %v9432_v31 = vand.u32 2147483647, %v9417_v30  ;;  %v3976_v3 = vadd.f32 1.0, %v3912_v23  ;;  %v3593_v30 = vmul.f32 0.5, %v9398_v56  ;;  %v1435_v56 = vand.u32 65535, %v9285_v46 }
 0x5d8   : > { %v4610_v2 = vadd.f32 0.2548296, %v4546_v43  ;;  %v4547_v15 = vmul.f32 %v9375_v21, %v4483_v26  ;;  %v4356_v52 = vadd.f32 1.4214138, %v4292_v22  ;;  %v4293_v34 = vmul.f32 %v9405_v16, %v4229_v62 }
 0x5d9   : > { %v9423_v39 = vpop.eup %7758  ;;  %v4882_v26 = vmul.f32 1.442695, %v4806_v8  ;;  %v3913_v48 = vmul.f32 0.3275911, %v9432_v31  ;;  %7770 = vrcp.f32 %v3976_v3  ;;  %v4745_v49 = vsub.f32 0.0, %v9432_v31 }
 0x5da   : > { %v4674_v59 = vmul.f32 %v9365_v29, %v4610_v2  ;;  %v4166_v17 = vmul.f32 1.0614054, %v9423_v39  ;;  %v7761_v63 = vpop.eup %7760  ;;  %v4611_v60 = vadd.f32 0.2548296, %v4547_v15  ;;  %v4420_v1 = vmul.f32 %v9388_v55, %v4356_v52 }
 0x5db   : > { %v9434_v22 = vpop.eup %7762  ;;  %v4357_v38 = vadd.f32 1.4214138, %v4293_v34  ;;  %7772 = vpow2.f32 %v4882_v26  ;;  %v1467_v46 = vand.u32 65535, %v9305_v19 }
 0x5dc   : > { %v4994_v54 = vmul.f32 %v7761_v63, %v4674_v59  ;;  %v4230_v43 = vadd.f32 -1.4531521, %v4166_v17  ;;  %v4675_v29 = vmul.f32 %v9375_v21, %v4611_v60  ;;  %v4484_v12 = vadd.f32 -0.28449672, %v4420_v1  ;;  %v7765_v2 = vpop.eup %7764 }
 0x5dd   : > { %v4167_v62 = vmul.f32 1.0614054, %v9434_v22  ;;  %v4421_v8 = vmul.f32 %v9405_v16, %v4357_v38  ;;  %v4884_v17 = vmul.f32 1.442695, %v4807_v51  ;;  %v3977_v60 = vadd.f32 1.0, %v3913_v48 }
 0x5de   : > { %v5058_v15 = vsub.f32 1.0, %v4994_v54  ;;  %v4294_v52 = vmul.f32 %v9423_v39, %v4230_v43  ;;  %v4995_v61 = vmul.f32 %v7765_v2, %v4675_v29  ;;  %v4548_v59 = vmul.f32 %v9388_v55, %v4484_v12  ;;  %v7767_v54 = vpop.eup %7766 }
 0x5df   : > { %v4231_v21 = vadd.f32 -1.4531521, %v4167_v62  ;;  %v4485_v13 = vadd.f32 -0.28449672, %v4421_v8  ;;  %7774 = vrcp.f32 %v3977_v60  ;;  %v7769_v29 = vpop.eup %7768  ;;  %v4744_v38 = vsub.f32 0.0, %v9421_v11 }
 0x5e0   : > { %v5122_v23 = vmul.f32 %v5058_v15, %v3778_v25  ;;  %v4358_v63 = vadd.f32 1.4214138, %v4294_v52  ;;  %v5059_v1 = vsub.f32 1.0, %v4995_v61  ;;  %v4612_v34 = vadd.f32 0.2548296, %v4548_v59 }
 0x5e1   : > { %v4295_v3 = vmul.f32 %v9434_v22, %v4231_v21  ;;  %v4549_v25 = vmul.f32 %v9405_v16, %v4485_v13  ;;  %v3587_v48 = vmul.f32 0.5, %v9327_v40  ;;  %7776 = vpow2.f32 %v4884_v17 }
 0x5e2   : > { %v4422_v43 = vmul.f32 %v9423_v39, %v4358_v63  ;;  %v5123_v12 = vmul.f32 %v5059_v1, %v3779_v9  ;;  %v4676_v51 = vmul.f32 %v9388_v55, %v4612_v34  ;;  %v5186_v61 = vadd.f32 1.0, %v5122_v23 }
 0x5e3   : > { %v4359_v2 = vadd.f32 1.4214138, %v4295_v3  ;;  %v4613_v62 = vadd.f32 0.2548296, %v4549_v25  ;;  %v3780_v59 = vsel %vm3716_vm8, 1.0, %v12639_v20  ;;  %v4808_v23 = vmul.f32 %v4744_v38, %v9421_v11  ;;  %v7771_v63 = vpop.eup %7770 }
 0x5e4   : > { %v4486_v26 = vadd.f32 -0.28449672, %v4422_v43  ;;  %v5187_v15 = vadd.f32 1.0, %v5123_v12  ;;  %v4996_v52 = vmul.f32 %v7767_v54, %v4676_v51  ;;  %v5250_v21 = vmul.f32 %v5186_v61, %v9380_v28 }
 0x5e5   : > { %v4423_v13 = vmul.f32 %v9434_v22, %v4359_v2  ;;  %v4677_v40 = vmul.f32 %v9405_v16, %v4613_v62  ;;  %v4168_v54 = vmul.f32 1.0614054, %v7771_v63  ;;  %v3588_v43 = vmul.f32 0.5, %v9337_v50  ;;  %v7773_v16 = vpop.eup %7772 }
 0x5e6   : > { %v4550_v55 = vmul.f32 %v9423_v39, %v4486_v26  ;;  %v5251_v9 = vmul.f32 %v5187_v15, %v3587_v48  ;;  %v5060_v8 = vsub.f32 1.0, %v4996_v52  ;;  %v3781_v11 = vsel %vm3717_vm9, 1.0, %v12639_v20 }
 0x5e7   : > { %v4487_v60 = vadd.f32 -0.28449672, %v4423_v13  ;;  %v4997_v34 = vmul.f32 %v7769_v29, %v4677_v40  ;;  %v4232_v25 = vadd.f32 -1.4531521, %v4168_v54  ;;  %v4886_v48 = vmul.f32 1.442695, %v4808_v23 }
 0x5e8   : > { %v4614_v17 = vadd.f32 0.2548296, %v4550_v55  ;;  %v5124_v1 = vmul.f32 %v5060_v8, %v3780_v59  ;;  %v5310_v51 = vpack.c.bf16 %v5251_v9, %v5250_v21  ;;  %v4809_v50 = vmul.f32 %v4745_v49, %v9432_v31 }
 0x5e9   : > { %v4551_v12 = vmul.f32 %v9434_v22, %v4487_v60  ;;  %v5061_v28 = vsub.f32 1.0, %v4997_v34  ;;  %v7775_v38 = vpop.eup %7774  ;;  %v4296_v2 = vmul.f32 %v7771_v63, %v4232_v25  ;;  %v3589_v52 = vmul.f32 0.5, %v9347_v0 }
 0x5ea   : > { %v4678_v3 = vmul.f32 %v9423_v39, %v4614_v17  ;;  %7556 = vmatprep.mubr.msk.bf16.mxu0 %vm5370_vm5, %v5310_v51  ;;  %v5188_v39 = vadd.f32 1.0, %v5124_v1  ;;  %v4169_v15 = vmul.f32 1.0614054, %v7775_v38  ;;  %7778 = vpow2.f32 %v4886_v48 }
 0x5eb   : > { %v4615_v29 = vadd.f32 0.2548296, %v4551_v12  ;;  %v5125_v26 = vmul.f32 %v5061_v28, %v3781_v11  ;;  %v7777_v59 = vpop.eup %7776  ;;  %v4360_v13 = vadd.f32 1.4214138, %v4296_v2  ;;  %v4888_v40 = vmul.f32 1.442695, %v4809_v50 }
 0x5ec   : > { %v4998_v61 = vmul.f32 %v7773_v16, %v4678_v3  ;;  %v4233_v9 = vadd.f32 -1.4531521, %v4169_v15  ;;  %v5252_v23 = vmul.f32 %v5188_v39, %v3588_v43  ;;  %v3783_v49 = vsel %vm3719_vm11, 1.0, %v12639_v20 }
 0x5ed   : > { %v4679_v42 = vmul.f32 %v9434_v22, %v4615_v29  ;;  %v5189_v55 = vadd.f32 1.0, %v5125_v26  ;;  %v4424_v17 = vmul.f32 %v7771_v63, %v4360_v13  ;;  %7780 = vpow2.f32 %v4888_v40 }
 0x5ee   : > { %v5062_v62 = vsub.f32 1.0, %v4998_v61  ;;  %v4297_v60 = vmul.f32 %v7775_v38, %v4233_v9  ;;  %v3590_v51 = vmul.f32 0.5, %v9355_v5  ;;  %v3591_v43 = vmul.f32 0.5, %v9363_v18 }
 0x5ef   : > { %v4999_v8 = vmul.f32 %v7777_v59, %v4679_v42  ;;  %v5253_v21 = vmul.f32 %v5189_v55, %v3589_v52  ;;  %v4488_v1 = vadd.f32 -0.28449672, %v4424_v17  ;;  %v1355_v50 = vand.u32 65535, %v9236_v57 }
 0x5f0   : > { %v5126_v31 = vmul.f32 %v5062_v62, %v3782_v44  ;;  %v4361_v34 = vadd.f32 1.4214138, %v4297_v60  ;;  %v1371_v62 = vand.u32 65535, %v9245_v41  ;;  %v1387_v55 = vand.u32 65535, %v9255_v35 }
 0x5f1   : > { %v5063_v0 = vsub.f32 1.0, %v4999_v8  ;;  %v5311_v22 = vpack.c.bf16 %v5253_v21, %v5252_v23  ;;  %v4552_v58 = vmul.f32 %v7771_v63, %v4488_v1  ;;  %v1357_v44 = vcvt.s32.f32 %v1355_v50 }
 0x5f2   : > { %v5190_v54 = vadd.f32 1.0, %v5126_v31  ;;  %v4425_v12 = vmul.f32 %v7775_v38, %v4361_v34  ;;  %v1373_v9 = vcvt.s32.f32 %v1371_v62  ;;  %v3785_v31 = vsel %vm3721_vm14, 1.0, %v12639_v20 }
 0x5f3   : > { %v5127_v3 = vmul.f32 %v5063_v0, %v3783_v49  ;;  %7557 = vmatmul.mubr.msk.bf16.gmra.mrb[24].mxu0 %vm5370_vm5, %v5311_v22  ;;  %v4616_v11 = vadd.f32 0.2548296, %v4552_v58  ;;  %v3592_v23 = vmul.f32 0.5, %v9394_v14  ;;  %v1403_v35 = vand.u32 65535, %v9265_v32 }
 0x5f4   : > { %v4489_v28 = vadd.f32 -0.28449672, %v4425_v12  ;;  %v5254_v25 = vmul.f32 %v5190_v54, %v3590_v51  ;;  %v7779_v39 = vpop.eup %7778  ;;  %v1419_v22 = vand.u32 65535, %v9275_v53  ;;  %v1437_v53 = vcvt.s32.f32 %v1435_v56 }
 0x5f5   : > { %v5191_v16 = vadd.f32 1.0, %v5127_v3  ;;  %v4680_v29 = vmul.f32 %v7771_v63, %v4616_v11  ;;  %v3784_v63 = vsel %vm3720_vm12, 1.0, %v12639_v20  ;;  %v1405_v34 = vcvt.s32.f32 %v1403_v35 }
 0x5f6   : > { %v4553_v48 = vmul.f32 %v7775_v38, %v4489_v28  ;;  %v1451_v58 = vand.u32 65535, %v9295_v45 }
 0x5f7   : > { %v5255_v61 = vmul.f32 %v5191_v16, %v3591_v43  ;;  %v5000_v2 = vmul.f32 %v7779_v39, %v4680_v29  ;;  %v7781_v42 = vpop.eup %7780  ;;  %v1469_v16 = vcvt.s32.f32 %v1467_v46  ;;  %v12681_v39 = vld [vmem:[#allocation18_spill] sm:$0xff] }
 0x5f8   : > { %v4617_v15 = vadd.f32 0.2548296, %v4553_v48  ;;  %v1453_v51 = vcvt.s32.f32 %v1451_v58 }
 0x5f9   : > { %v5312_v26 = vpack.c.bf16 %v5255_v61, %v5254_v25  ;;  %v5064_v5 = vsub.f32 1.0, %v5000_v2  ;;  %v12684_v2 = vld [vmem:[#allocation20_spill] sm:$0xff] }
 0x5fa   : > { %v4681_v52 = vmul.f32 %v7775_v38, %v4617_v15 }
 0x5fb   : > { %7560 = vmatprep.mubr.msk.bf16.mxu0 %vm5370_vm5, %v5312_v26  ;;  %v5128_v57 = vmul.f32 %v5064_v5, %v3784_v63  ;;  %v12682_v26 = vld [vmem:[#allocation19_spill] sm:$0xff]  ;;  %v12686_v63 = vld [vmem:[#allocation22_spill] sm:$0xff] }
 0x5fc   : > { %v9479_v18 = vpop.xlane.xlu0 %1359  ;;  %v5001_v47 = vmul.f32 %v7781_v42, %v4681_v52 }
 0x5fd   : > { %vm1361_vm13 = vcmp.eq.f32.partialorder %v9243_v37, %v9479_v18  ;;  %v5192_v41 = vadd.f32 1.0, %v5128_v57  ;;  %v1389_v37 = vcvt.s32.f32 %v1387_v55 }
 0x5fe   : > { %v1362_v59 = vsel %vm1361_vm13, %v1357_v44, inf  ;;  %v5065_v38 = vsub.f32 1.0, %v5001_v47  ;;  %v12688_v47 = vld [vmem:[#allocation21_spill] sm:$0xff] }
 0x5ff   : > { %1363 = vmin.xlane.f32.xlu0 %v1362_v59  ;;  %v5256_v60 = vmul.f32 %v5192_v41, %v3592_v23  ;;  %v12693_v23 = vld [vmem:[#allocation24_spill] sm:$0xff] }
 0x600   : > { %v1376_v13 = vpop.xlane.xlu1 %1375  ;;  %v5129_v8 = vmul.f32 %v5065_v38, %v3785_v31  ;;  %v12690_v38 = vmov 1.0|1.0  }
 0x601   : > { %vm1377_vm15 = vcmp.eq.f32.partialorder %v9253_v27, %v1376_v13  ;;  %v1382_v25 = vcvt.f32.s32 %v1376_v13 }
 0x602   : > { %v1378_v40 = vsel %vm1377_vm15, %v1373_v9, inf  ;;  %v5193_v21 = vadd.f32 1.0, %v5129_v8 }
 0x603   : > { %1379 = vmin.xlane.f32.xlu1 %v1378_v40  ;;  %v12691_v40 = vld [vmem:[#allocation23_spill] sm:$0xff] }
 0x604   : > { %v1392_v17 = vpop.xlane.xlu0 %1391  ;;  %v5257_v0 = vmul.f32 %v5193_v21, %v3593_v30 }
 0x605   : > { %vm1393_vm0 = vcmp.eq.f32.partialorder %v9263_v7, %v1392_v17  ;;  %v1421_v7 = vcvt.s32.f32 %v1419_v22  ;;  %v1398_v29 = vcvt.f32.s32 %v1392_v17 }
 0x606   : > { %v1394_v49 = vsel %vm1393_vm0, %v1389_v37, inf  ;;  %v5313_v27 = vpack.c.bf16 %v5257_v0, %v5256_v60 }
 0x607   : > { %1395 = vmin.xlane.f32.xlu0 %v1394_v49 }
 0x608   : > { %v9493_v1 = vpop.xlane.xlu1 %1407  ;;  %7561 = vmatmul.mubr.msk.bf16.gmra.mrb[28].mxu0 %vm5370_vm5, %v5313_v27  ;;  %v12695_v27 = vld [vmem:[#allocation25_spill] sm:$0xff] }
 0x609   : > { %vm1409_vm1 = vcmp.eq.f32.partialorder %v9273_v4, %v9493_v1  ;;  %v1414_v62 = vcvt.f32.s32 %v9493_v1 }
 0x60a   : > { %v1410_v14 = vsel %vm1409_vm1, %v1405_v34, inf  ;;  %v12697_v34 = vld [vmem:[#allocation26_spill] sm:$0xff] }
 0x60b   : > { %1411 = vmin.xlane.f32.xlu1 %v1410_v14  ;;  %v1415_v41 = vshll.u32 %v1414_v62, 16 }
 0x60c   : > { %v9499_v32 = vpop.xlane.xlu0 %1423 }
 0x60d   : > { %vm1425_vm2 = vcmp.eq.f32.partialorder %v9283_v6, %v9499_v32  ;;  %v1430_v9 = vcvt.f32.s32 %v9499_v32 }
 0x60e   : > { %v1426_v54 = vsel %vm1425_vm2, %v1421_v7, inf }
 0x60f   : > { %1427 = vmin.xlane.f32.xlu0 %v1426_v54  ;;  %v1431_v35 = vshll.u32 %v1430_v9, 16  ;;  %v9741_v9 = vld [vmem:[#allocation5] ss:$0 sm:$0xff] }
 0x610   : > { %v9504_v3 = vpop.xlane.xlu1 %1439 }
 0x611   : > { %vm1441_vm3 = vcmp.eq.f32.partialorder %v9293_v33, %v9504_v3  ;;  %v1366_v33 = vcvt.f32.s32 %v9479_v18  ;;  %v1399_v18 = vshll.u32 %v1398_v29, 16  ;;  %v1446_v0 = vcvt.f32.s32 %v9504_v3 }
 0x612   : > { %v1442_v4 = vsel %vm1441_vm3, %v1437_v53, inf  ;;  %v12699_v53 = vld [vmem:[#allocation27_spill] sm:$0xff] }
 0x613   : > { %1443 = vmin.xlane.f32.xlu1 %v1442_v4  ;;  %v1367_v28 = vshll.u32 %v1366_v33, 16  ;;  %v1447_v54 = vshll.u32 %v1446_v0, 16  ;;  %v12701_v4 = vld [vmem:[#allocation28_spill] sm:$0xff] }
 0x614   : > { %v9509_v12 = vpop.xlane.xlu0 %1455 }
 0x615   : > { %vm1457_vm4 = vcmp.eq.f32.partialorder %v9303_v36, %v9509_v12  ;;  %v1383_v36 = vshll.u32 %v1382_v25, 16  ;;  %v1462_v7 = vcvt.f32.s32 %v9509_v12  ;;  %v12705_v25 = vld [vmem:[#allocation30_spill] sm:$0xff] }
 0x616   : > { %v1458_v6 = vsel %vm1457_vm4, %v1453_v51, inf }
 0x617   : > { %1459 = vmin.xlane.f32.xlu0 %v1458_v6  ;;  %v1463_v6 = vshll.u32 %v1462_v7, 16 }
 0x618   : > { %v9514_v43 = vpop.xlane.xlu1 %1471 }
 0x619   : > { %vm1473_vm6 = vcmp.eq.f32.partialorder %v9309_v24, %v9514_v43 }
 0x61a   : > { %v1474_v45 = vsel %vm1473_vm6, %v1469_v16, inf }
 0x61b   : > { %1475 = vmin.xlane.f32.xlu1 %v1474_v45  ;;  %v1478_v45 = vcvt.f32.s32 %v9514_v43 }
 0x68c   : > { %v1364_v11 = vpop.xlane.xlu0 %1363 }
 0x68d   : > { %v1365_v61 = vcvt.f32.s32 %v1364_v11  ;;  %v12703_v11 = vld [vmem:[#allocation29_spill] sm:$0xff] }
 0x68f   : > { %v1368_v19 = vadd.s32 %v1367_v28, %v1365_v61 }
 0x690   : > { %v1380_v48 = vpop.xlane.xlu1 %1379 }
 0x691   : > { %v1381_v50 = vcvt.f32.s32 %v1380_v48  ;;  %vm1481_vm7 = vcmp.eq.s32.totalorder %v8545_v10, %v1368_v19  ;;  %vm1482_vm8 = vcmp.eq.s32.totalorder %v12681_v39, %v1368_v19  ;;  %v1479_v48 = vshll.u32 %v1478_v45, 16 }
 0x692   : > { %v9524_v24 = vsel %vm1481_vm7, inf, %v12682_v26  ;;  %v9527_v15 = vsel %vm1482_vm8, inf, %v12684_v2  ;;  %v12709_v2 = vld [vmem:[#allocation32_spill] sm:$0xff] }
 0x693   : > { %12683 = vst [vmem:[#allocation19_spill] sm:$0xff] %v9524_v24  ;;  %12685 = vst [vmem:[#allocation20_spill] sm:$0xff] %v9527_v15  ;;  %v1384_v5 = vadd.s32 %v1383_v36, %v1381_v50  ;;  %v1564_v52 = vmin.f32 %v9524_v24, %v9527_v15  ;;  %v12707_v50 = vld [vmem:[#allocation31_spill] sm:$0xff] }
 0x694   : > { %v1396_v44 = vpop.xlane.xlu0 %1395 }
 0x695   : > { %v1397_v42 = vcvt.f32.s32 %v1396_v44  ;;  %1565 = vmin.xlane.f32.xlu0 %v1564_v52  ;;  %vm1484_vm9 = vcmp.eq.s32.totalorder %v12681_v39, %v1384_v5  ;;  %vm1483_vm10 = vcmp.eq.s32.totalorder %v8545_v10, %v1384_v5  ;;  %v12711_v44 = vld [vmem:[#allocation33_spill] sm:$0xff] }
 0x696   : > { %vm7408_vm11 = vmpackc.low %vm1484_vm9, %vm1482_vm8  ;;  %v9535_v57 = vsel %vm1483_vm10, inf, %v12686_v63  ;;  %v9538_v59 = vsel %vm1484_vm9, inf, %v12688_v47 }
 0x697   : > { %12687 = vst [vmem:[#allocation22_spill] sm:$0xff] %v9535_v57  ;;  %12689 = vst [vmem:[#allocation21_spill] sm:$0xff] %v9538_v59  ;;  %v1400_v55 = vadd.s32 %v1399_v18, %v1397_v42  ;;  %7409 = vmatprep.mubr.msk.bf16.mxu1 %vm7408_vm11, %v12690_v38  ;;  %v1567_v13 = vmin.f32 %v9535_v57, %v9538_v59  ;;  %v12713_v42 = vld [vmem:[#allocation34_spill] sm:$0xff] }
 0x698   : > { %vm7410_vm12 = vmpackc.low %vm1483_vm10, %vm1481_vm7  ;;  %v1412_v31 = vpop.xlane.xlu1 %1411 }
 0x699   : > { %7411 = vmatmul.mubr.msk.bf16.gmra.mrb[32].mxu1 %vm7410_vm12, %v12690_v38  ;;  %v1413_v8 = vcvt.f32.s32 %v1412_v31  ;;  %1568 = vmin.xlane.f32.xlu1 %v1567_v13  ;;  %vm1485_vm13 = vcmp.eq.s32.totalorder %v8545_v10, %v1400_v55  ;;  %vm1486_vm14 = vcmp.eq.s32.totalorder %v12681_v39, %v1400_v55 }
 0x69a   : > { %v9552_v37 = vsel %vm1485_vm13, inf, %v12691_v40  ;;  %v9555_v30 = vsel %vm1486_vm14, inf, %v12693_v23 }
 0x69b   : > { %12692 = vst [vmem:[#allocation23_spill] sm:$0xff] %v9552_v37  ;;  %12694 = vst [vmem:[#allocation24_spill] sm:$0xff] %v9555_v30  ;;  %v1416_v21 = vadd.s32 %v1415_v41, %v1413_v8  ;;  %v1570_v17 = vmin.f32 %v9552_v37, %v9555_v30 }
 0x69c   : > { %v1428_v60 = vpop.xlane.xlu0 %1427 }
 0x69d   : > { %v1429_v49 = vcvt.f32.s32 %v1428_v60  ;;  %1571 = vmin.xlane.f32.xlu0 %v1570_v17  ;;  %vm1488_vm15 = vcmp.eq.s32.totalorder %v12681_v39, %v1416_v21  ;;  %vm1487_vm0 = vcmp.eq.s32.totalorder %v8545_v10, %v1416_v21  ;;  %v9737_v21 = vld [vmem:[#allocation3] ss:$0 sm:$0xff] }
 0x69e   : > { %vm7412_vm1 = vmpackc.low %vm1488_vm15, %vm1486_vm14  ;;  %v9563_v1 = vsel %vm1487_vm0, inf, %v12695_v27  ;;  %v9566_v22 = vsel %vm1488_vm15, inf, %v12697_v34 }
 0x69f   : > { %12696 = vst [vmem:[#allocation25_spill] sm:$0xff] %v9563_v1  ;;  %12698 = vst [vmem:[#allocation26_spill] sm:$0xff] %v9566_v22  ;;  %v1432_v14 = vadd.s32 %v1431_v35, %v1429_v49  ;;  %7413 = vmatprep.mubr.msk.bf16.mxu1 %vm7412_vm1, %v12690_v38  ;;  %v1573_v32 = vmin.f32 %v9563_v1, %v9566_v22  ;;  %v8021_v49 = vld [vmem:[%s8895_s26 + $0x18] sm:$0xff] }
 0x6a0   : > { %vm7414_vm2 = vmpackc.low %vm1487_vm0, %vm1485_vm13  ;;  %v1444_v56 = vpop.xlane.xlu1 %1443 }
 0x6a1   : > { %7415 = vmatmul.mubr.msk.bf16.gmra.mrb[36].mxu1 %vm7414_vm2, %v12690_v38  ;;  %v1445_v3 = vcvt.f32.s32 %v1444_v56  ;;  %1574 = vmin.xlane.f32.xlu1 %v1573_v32  ;;  %vm1489_vm3 = vcmp.eq.s32.totalorder %v8545_v10, %v1432_v14  ;;  %vm1490_vm4 = vcmp.eq.s32.totalorder %v12681_v39, %v1432_v14 }
 0x6a2   : > { %v9580_v58 = vsel %vm1489_vm3, inf, %v12699_v53  ;;  %v9583_v51 = vsel %vm1490_vm4, inf, %v12701_v4 }
 0x6a3   : > { %12700 = vst [vmem:[#allocation27_spill] sm:$0xff] %v9580_v58  ;;  %12702 = vst [vmem:[#allocation28_spill] sm:$0xff] %v9583_v51  ;;  %v1448_v46 = vadd.s32 %v1447_v54, %v1445_v3  ;;  %v1576_v12 = vmin.f32 %v9580_v58, %v9583_v51  ;;  %v8016_v54 = vld [vmem:[%s8895_s26] sm:$0xff] }
 0x6a4   : > { %v1460_v16 = vpop.xlane.xlu0 %1459 }
 0x6a5   : > { %v1461_v33 = vcvt.f32.s32 %v1460_v16  ;;  %1577 = vmin.xlane.f32.xlu0 %v1576_v12  ;;  %vm1492_vm6 = vcmp.eq.s32.totalorder %v12681_v39, %v1448_v46  ;;  %vm1491_vm7 = vcmp.eq.s32.totalorder %v8545_v10, %v1448_v46 }
 0x6a6   : > { %vm7416_vm8 = vmpackc.low %vm1492_vm6, %vm1490_vm4  ;;  %v9591_v28 = vsel %vm1491_vm7, inf, %v12703_v11  ;;  %v9594_v61 = vsel %vm1492_vm6, inf, %v12705_v25 }
 0x6a7   : > { %12704 = vst [vmem:[#allocation29_spill] sm:$0xff] %v9591_v28  ;;  %12706 = vst [vmem:[#allocation30_spill] sm:$0xff] %v9594_v61  ;;  %v1464_v19 = vadd.s32 %v1463_v6, %v1461_v33  ;;  %7417 = vmatprep.mubr.msk.bf16.mxu1 %vm7416_vm8, %v12690_v38  ;;  %v1579_v43 = vmin.f32 %v9591_v28, %v9594_v61 }
 0x6a8   : > { %vm7418_vm9 = vmpackc.low %vm1491_vm7, %vm1489_vm3  ;;  %v1476_v29 = vpop.xlane.xlu1 %1475 }
 0x6a9   : > { %7419 = vmatmul.mubr.msk.bf16.gmra.mrb[40].mxu1 %vm7418_vm9, %v12690_v38  ;;  %v1477_v36 = vcvt.f32.s32 %v1476_v29  ;;  %1580 = vmin.xlane.f32.xlu1 %v1579_v43  ;;  %vm1493_vm10 = vcmp.eq.s32.totalorder %v8545_v10, %v1464_v19  ;;  %vm1494_vm11 = vcmp.eq.s32.totalorder %v12681_v39, %v1464_v19 }
 0x6aa   : > { %v9605_v26 = vsel %vm1493_vm10, inf, %v12707_v50  ;;  %v9608_v5 = vsel %vm1494_vm11, inf, %v12709_v2 }
 0x6ab   : > { %12708 = vst [vmem:[#allocation31_spill] sm:$0xff] %v9605_v26  ;;  %12710 = vst [vmem:[#allocation32_spill] sm:$0xff] %v9608_v5  ;;  %v1480_v52 = vadd.s32 %v1479_v48, %v1477_v36  ;;  %v1582_v18 = vmin.f32 %v9605_v26, %v9608_v5 }
 0x6ad   : > { %1583 = vmin.xlane.f32.xlu0 %v1582_v18  ;;  %vm1496_vm12 = vcmp.eq.s32.totalorder %v12681_v39, %v1480_v52  ;;  %vm1495_vm13 = vcmp.eq.s32.totalorder %v8545_v10, %v1480_v52 }
 0x6ae   : > { %vm7420_vm14 = vmpackc.low %vm1496_vm12, %vm1494_vm11  ;;  %v9615_v62 = vsel %vm1495_vm13, inf, %v12711_v44  ;;  %v9618_v63 = vsel %vm1496_vm12, inf, %v12713_v42 }
 0x6af   : > { %12712 = vst [vmem:[#allocation33_spill] sm:$0xff] %v9615_v62  ;;  %12714 = vst [vmem:[#allocation34_spill] sm:$0xff] %v9618_v63  ;;  %7421 = vmatprep.mubr.msk.bf16.mxu1 %vm7420_vm14, %v12690_v38  ;;  %v1585_v47 = vmin.f32 %v9615_v62, %v9618_v63 }
 0x6b0   : > { %vm7422_vm15 = vmpackc.low %vm1495_vm13, %vm1493_vm10 }
 0x6b1   : > { %7423 = vmatmul.mubr.msk.bf16.gmra.mrb[44].mxu1 %vm7422_vm15, %v12690_v38  ;;  %1586 = vmin.xlane.f32.xlu1 %v1585_v47 }
 0x6c6   : > { %v9624_v55 = vpop.f32.mrb[24].mxu0 }
 0x6c7   : > { %12715 = vst [vmem:[#allocation43_spill] sm:$0xff] %v9624_v55  ;;  %v9628_v31 = vpop.f32.mrb[25].mxu0 }
 0x6c8   : > { %12717 = vst [vmem:[#allocation44_spill] sm:$0xff] %v9628_v31  ;;  %v9632_v40 = vpop.f32.mrb[26].mxu0 }
 0x6c9   : > { %12719 = vst [vmem:[#allocation45_spill] sm:$0xff] %v9632_v40  ;;  %v9636_v17 = vpop.f32.mrb[27].mxu0  ;;  %v8022_v40 = vld [vmem:[%s8895_s26 + $0x20] sm:$0xff] }
 0x6ca   : > { %12721 = vst [vmem:[#allocation46_spill] sm:$0xff] %v9636_v17 }
 0x6db   : > { %v9640_v0 = vpop.f32.mrb[28].mxu0 }
 0x6dc   : > { %12723 = vst [vmem:[#allocation47_spill] sm:$0xff] %v9640_v0  ;;  %v9644_v34 = vpop.f32.mrb[29].mxu0 }
 0x6dd   : > { %12725 = vst [vmem:[#allocation48_spill] sm:$0xff] %v9644_v34  ;;  %v9648_v7 = vpop.f32.mrb[30].mxu0 }
 0x6de   : > { %12727 = vst [vmem:[#allocation49_spill] sm:$0xff] %v9648_v7  ;;  %v9652_v3 = vpop.f32.mrb[31].mxu0 }
 0x6df   : > { %12729 = vst [vmem:[#allocation50_spill] sm:$0xff] %v9652_v3 }
 0x722   : > { %v1566_v46 = vpop.xlane.xlu0 %1565 }
 0x723   : > { %vm1588_vm0 = vcmp.le.f32.partialorder %v9524_v24, %v1566_v46  ;;  %vm1589_vm1 = vcmp.le.f32.partialorder %v9527_v15, %v1566_v46 }
 0x724   : > { %v1604_v12 = vsel %vm1588_vm0, %v8545_v10, 256  ;;  %v1605_v6 = vsel %vm1589_vm1, %v12681_v39, 256 }
 0x725   : > { %vm1620_vm2 = vcmp.lt.s32.totalorder %v1604_v12, %v1605_v6 }
 0x726   : > { %v1569_v16 = vpop.xlane.xlu1 %1568  ;;  %v9660_v45 = vsel %vm1620_vm2, %v1604_v12, %v1605_v6 }
 0x727   : > { %vm1590_vm3 = vcmp.le.f32.partialorder %v9535_v57, %v1569_v16  ;;  %vm1591_vm4 = vcmp.le.f32.partialorder %v9538_v59, %v1569_v16  ;;  %v1623_v33 = vshra.s32 %v9660_v45, 16 }
 0x728   : > { %v1606_v11 = vsel %vm1590_vm3, %v8545_v10, 256  ;;  %v1607_v25 = vsel %vm1591_vm4, %v12681_v39, 256 }
 0x729   : > { %v9667_v19 = vcvt.s32.f32 %v1623_v33  ;;  %vm1636_vm6 = vcmp.lt.s32.totalorder %v1606_v11, %v1607_v25 }
 0x72a   : > { %v1572_v43 = vpop.xlane.xlu0 %1571  ;;  %v9669_v29 = vsel %vm1636_vm6, %v1606_v11, %v1607_v25 }
 0x72b   : > { %vm1592_vm7 = vcmp.le.f32.partialorder %v9552_v37, %v1572_v43  ;;  %vm1593_vm8 = vcmp.le.f32.partialorder %v9555_v30, %v1572_v43  ;;  %1626 = vmin.xlane.f32.xlu0 %v9667_v19  ;;  %v1639_v48 = vshra.s32 %v9669_v29, 16  ;;  %v8025_v30 = vld [vmem:[%s8895_s26 + $0x38] sm:$0xff] }
 0x72c   : > { %v1608_v36 = vsel %vm1592_vm7, %v8545_v10, 256  ;;  %v1609_v50 = vsel %vm1593_vm8, %v12681_v39, 256 }
 0x72d   : > { %v9677_v2 = vcvt.s32.f32 %v1639_v48  ;;  %vm1652_vm9 = vcmp.lt.s32.totalorder %v1608_v36, %v1609_v50 }
 0x72e   : > { %v1575_v52 = vpop.xlane.xlu1 %1574  ;;  %v9679_v18 = vsel %vm1652_vm9, %v1608_v36, %v1609_v50 }
 0x72f   : > { %vm1594_vm10 = vcmp.le.f32.partialorder %v9563_v1, %v1575_v52  ;;  %vm1595_vm11 = vcmp.le.f32.partialorder %v9566_v22, %v1575_v52  ;;  %1642 = vmin.xlane.f32.xlu1 %v9677_v2  ;;  %v1655_v44 = vshra.s32 %v9679_v18, 16 }
 0x730   : > { %v1610_v42 = vsel %vm1594_vm10, %v8545_v10, 256  ;;  %v1611_v47 = vsel %vm1595_vm11, %v12681_v39, 256 }
 0x731   : > { %v9687_v46 = vcvt.s32.f32 %v1655_v44  ;;  %vm1668_vm12 = vcmp.lt.s32.totalorder %v1610_v42, %v1611_v47 }
 0x732   : > { %v1578_v12 = vpop.xlane.xlu0 %1577  ;;  %v9689_v6 = vsel %vm1668_vm12, %v1610_v42, %v1611_v47 }
 0x733   : > { %vm1596_vm13 = vcmp.le.f32.partialorder %v9580_v58, %v1578_v12  ;;  %vm1597_vm14 = vcmp.le.f32.partialorder %v9583_v51, %v1578_v12  ;;  %1658 = vmin.xlane.f32.xlu0 %v9687_v46  ;;  %v1671_v16 = vshra.s32 %v9689_v6, 16 }
 0x734   : > { %v1612_v33 = vsel %vm1596_vm13, %v8545_v10, 256  ;;  %v1613_v11 = vsel %vm1597_vm14, %v12681_v39, 256 }
 0x735   : > { %v9697_v25 = vcvt.s32.f32 %v1671_v16  ;;  %vm1684_vm15 = vcmp.lt.s32.totalorder %v1612_v33, %v1613_v11 }
 0x736   : > { %v1581_v43 = vpop.xlane.xlu1 %1580  ;;  %v9699_v48 = vsel %vm1684_vm15, %v1612_v33, %v1613_v11 }
 0x737   : > { %vm1598_vm0 = vcmp.le.f32.partialorder %v9591_v28, %v1581_v43  ;;  %vm1599_vm1 = vcmp.le.f32.partialorder %v9594_v61, %v1581_v43  ;;  %1674 = vmin.xlane.f32.xlu1 %v9697_v25  ;;  %v1687_v36 = vshra.s32 %v9699_v48, 16 }
 0x738   : > { %v1614_v50 = vsel %vm1598_vm0, %v8545_v10, 256  ;;  %v1615_v52 = vsel %vm1599_vm1, %v12681_v39, 256 }
 0x739   : > { %v9707_v44 = vcvt.s32.f32 %v1687_v36  ;;  %vm1700_vm2 = vcmp.lt.s32.totalorder %v1614_v50, %v1615_v52 }
 0x73a   : > { %v1584_v42 = vpop.xlane.xlu0 %1583  ;;  %v9709_v47 = vsel %vm1700_vm2, %v1614_v50, %v1615_v52 }
 0x73b   : > { %vm1600_vm3 = vcmp.le.f32.partialorder %v9605_v26, %v1584_v42  ;;  %vm1601_vm4 = vcmp.le.f32.partialorder %v9608_v5, %v1584_v42  ;;  %1690 = vmin.xlane.f32.xlu0 %v9707_v44  ;;  %v1703_v12 = vshra.s32 %v9709_v47, 16 }
 0x73c   : > { %v1616_v16 = vsel %vm1600_vm3, %v8545_v10, 256  ;;  %v1617_v33 = vsel %vm1601_vm4, %v12681_v39, 256 }
 0x73d   : > { %v9717_v11 = vcvt.s32.f32 %v1703_v12  ;;  %vm1716_vm6 = vcmp.lt.s32.totalorder %v1616_v16, %v1617_v33 }
 0x73e   : > { %v1587_v43 = vpop.xlane.xlu1 %1586  ;;  %v9719_v36 = vsel %vm1716_vm6, %v1616_v16, %v1617_v33 }
 0x73f   : > { %vm1602_vm7 = vcmp.le.f32.partialorder %v9615_v62, %v1587_v43  ;;  %vm1603_vm8 = vcmp.le.f32.partialorder %v9618_v63, %v1587_v43  ;;  %1706 = vmin.xlane.f32.xlu1 %v9717_v11  ;;  %v1719_v50 = vshra.s32 %v9719_v36, 16 }
 0x740   : > { %v1618_v52 = vsel %vm1602_vm7, %v8545_v10, 256  ;;  %v1619_v42 = vsel %vm1603_vm8, %v12681_v39, 256 }
 0x741   : > { %v9727_v12 = vcvt.s32.f32 %v1719_v50  ;;  %vm1732_vm9 = vcmp.lt.s32.totalorder %v1618_v52, %v1619_v42 }
 0x742   : > { %v9729_v4 = vsel %vm1732_vm9, %v1618_v52, %v1619_v42  ;;  %v8018_v52 = vld [vmem:[%s8895_s26 + $0x8] sm:$0xff] }
 0x743   : > { %1722 = vmin.xlane.f32.xlu0 %v9727_v12  ;;  %v1735_v16 = vshra.s32 %v9729_v4, 16 }
 0x745   : > { %v9733_v33 = vcvt.s32.f32 %v1735_v16 }
 0x747   : > { %1738 = vmin.xlane.f32.xlu1 %v9733_v33 }
 0x76c   : > { %v3173_v43 = vpop.f32.mrb[32].mxu1 }
 0x76d   : > { %v3388_v32 = vadd.f32 %v8016_v54, %v3173_v43  ;;  %v3175_v27 = vpop.f32.mrb[33].mxu1 }
 0x76e   : > { %v3176_v60 = vpop.f32.mrb[34].mxu1 }
 0x76f   : > { %v3459_v50 = vmul.f32 %v9737_v21, %v3388_v32  ;;  %v3389_v42 = vadd.f32 %v8018_v52, %v3176_v60  ;;  %v3178_v8 = vpop.f32.mrb[35].mxu1 }
 0x770   : > { %v8020_v8 = vld [vmem:[%s8895_s26 + $0x10] sm:$0xff] }
 0x771   : > { %v9744_v16 = vadd.f32 %v9741_v9, %v3459_v50  ;;  %v3460_v3 = vmul.f32 %v9737_v21, %v3389_v42 }
 0x773   : > { %v9748_v53 = vmul.f32 0.70710677, %v9744_v16  ;;  %v9751_v27 = vadd.f32 %v9741_v9, %v3460_v3 }
 0x774   : > { %v3181_v54 = vpop.f32.mrb[36].mxu1 }
 0x775   : > { %v3850_v32 = vand.u32 2147483647, %v9748_v53  ;;  %v9755_v60 = vmul.f32 0.70710677, %v9751_v27  ;;  %v3390_v43 = vadd.f32 %v8020_v8, %v3181_v54  ;;  %v3183_v52 = vpop.f32.mrb[37].mxu1  ;;  %vm3722_vm10 = vcmp.ge.f32.partialorder %v9748_v53, 0.0 }
 0x776   : > { %v3184_v56 = vpop.f32.mrb[38].mxu1 }
 0x777   : > { %v3914_v50 = vmul.f32 0.3275911, %v3850_v32  ;;  %v3851_v42 = vand.u32 2147483647, %v9755_v60  ;;  %v3461_v7 = vmul.f32 %v9737_v21, %v3390_v43  ;;  %v3186_v3 = vpop.f32.mrb[39].mxu1  ;;  %v3391_v17 = vadd.f32 %v8021_v49, %v3184_v56 }
 0x778   : > { %v4746_v31 = vsub.f32 0.0, %v3850_v32  ;;  %vm3723_vm11 = vcmp.ge.f32.partialorder %v9755_v60, 0.0 }
 0x779   : > { %v3978_v34 = vadd.f32 1.0, %v3914_v50  ;;  %v3915_v14 = vmul.f32 0.3275911, %v3851_v42  ;;  %v9761_v0 = vadd.f32 %v9741_v9, %v3461_v7  ;;  %v3462_v8 = vmul.f32 %v9737_v21, %v3391_v17 }
 0x77b   : > { %7782 = vrcp.f32 %v3978_v34  ;;  %v3979_v35 = vadd.f32 1.0, %v3915_v14  ;;  %v9765_v54 = vmul.f32 0.70710677, %v9761_v0  ;;  %v9771_v7 = vadd.f32 %v9741_v9, %v3462_v8  ;;  %v8023_v34 = vld [vmem:[%s8895_s26 + $0x28] sm:$0xff] }
 0x77c   : > { %v3189_v52 = vpop.f32.mrb[40].mxu1 }
 0x77d   : > { %v3392_v43 = vadd.f32 %v8022_v40, %v3189_v52  ;;  %v3191_v23 = vpop.f32.mrb[41].mxu1  ;;  %7784 = vrcp.f32 %v3979_v35  ;;  %v3852_v50 = vand.u32 2147483647, %v9765_v54  ;;  %v9776_v17 = vmul.f32 0.70710677, %v9771_v7 }
 0x77e   : > { %v3192_v3 = vpop.f32.mrb[42].mxu1  ;;  %v4747_v52 = vsub.f32 0.0, %v3851_v42  ;;  %vm3724_vm12 = vcmp.ge.f32.partialorder %v9765_v54, 0.0 }
 0x77f   : > { %v3463_v49 = vmul.f32 %v9737_v21, %v3392_v43  ;;  %v3393_v14 = vadd.f32 %v8023_v34, %v3192_v3  ;;  %v3194_v56 = vpop.f32.mrb[43].mxu1  ;;  %v3916_v41 = vmul.f32 0.3275911, %v3852_v50  ;;  %v3853_v8 = vand.u32 2147483647, %v9776_v17 }
 0x780   : > { %v4810_v3 = vmul.f32 %v4746_v31, %v3850_v32  ;;  %v4811_v5 = vmul.f32 %v4747_v52, %v3851_v42  ;;  %v4748_v28 = vsub.f32 0.0, %v3852_v50  ;;  %v8024_v52 = vld [vmem:[%s8895_s26 + $0x30] sm:$0xff]  ;;  %vm3725_vm13 = vcmp.ge.f32.partialorder %v9776_v17, 0.0 }
 0x781   : > { %v9779_v40 = vadd.f32 %v9741_v9, %v3463_v49  ;;  %v3464_v23 = vmul.f32 %v9737_v21, %v3393_v14  ;;  %v3980_v35 = vadd.f32 1.0, %v3916_v41  ;;  %v3917_v34 = vmul.f32 0.3275911, %v3853_v8 }
 0x782   : > { %v4890_v26 = vmul.f32 1.442695, %v4810_v3  ;;  %v4749_v58 = vsub.f32 0.0, %v3853_v8  ;;  %v4892_v3 = vmul.f32 1.442695, %v4811_v5  ;;  %v4812_v38 = vmul.f32 %v4748_v28, %v3852_v50 }
 0x783   : > { %v9784_v55 = vmul.f32 0.70710677, %v9779_v40  ;;  %v9787_v43 = vadd.f32 %v9741_v9, %v3464_v23  ;;  %7786 = vrcp.f32 %v3980_v35  ;;  %v3981_v62 = vadd.f32 1.0, %v3917_v34 }
 0x784   : > { %v3197_v56 = vpop.f32.mrb[44].mxu1  ;;  %v4813_v57 = vmul.f32 %v4749_v58, %v3853_v8  ;;  %v4894_v28 = vmul.f32 1.442695, %v4812_v38  ;;  %v3787_v38 = vsel %vm3723_vm11, 1.0, %v12639_v20 }
 0x785   : > { %v9789_v13 = vpop.eup %7782  ;;  %v9792_v49 = vand.u32 2147483647, %v9784_v55  ;;  %v9795_v41 = vmul.f32 0.70710677, %v9787_v43  ;;  %v3199_v63 = vpop.f32.mrb[45].mxu1  ;;  %7788 = vrcp.f32 %v3981_v62  ;;  %v3394_v22 = vadd.f32 %v8024_v52, %v3197_v56 }
 0x786   : > { %v4170_v14 = vmul.f32 1.0614054, %v9789_v13  ;;  %v3200_v31 = vpop.f32.mrb[46].mxu1  ;;  %v9804_v63 = vmul.f32 0.5, %v9744_v16  ;;  %v4896_v50 = vmul.f32 1.442695, %v4813_v57 }
 0x787   : > { %v3918_v23 = vmul.f32 0.3275911, %v9792_v49  ;;  %v9799_v32 = vpop.eup %7784  ;;  %v3202_v61 = vpop.f32.mrb[47].mxu1  ;;  %v3855_v34 = vand.u32 2147483647, %v9795_v41  ;;  %v3395_v37 = vadd.f32 %v8025_v30, %v3200_v31  ;;  %v3465_v59 = vmul.f32 %v9737_v21, %v3394_v22 }
 0x788   : > { %v4234_v35 = vadd.f32 -1.4531521, %v4170_v14  ;;  %v4171_v51 = vmul.f32 1.0614054, %v9799_v32  ;;  %vm3726_vm14 = vcmp.ge.f32.partialorder %v9784_v55, 0.0  ;;  %vm3727_vm15 = vcmp.ge.f32.partialorder %v9795_v41, 0.0 }
 0x789   : > { %v3982_v1 = vadd.f32 1.0, %v3918_v23  ;;  %v3919_v62 = vmul.f32 0.3275911, %v3855_v34  ;;  %v3466_v23 = vmul.f32 %v9737_v21, %v3395_v37  ;;  %v4751_v56 = vsub.f32 0.0, %v3855_v34 }
 0x78a   : > { %v4298_v42 = vmul.f32 %v9789_v13, %v4234_v35  ;;  %v4235_v14 = vadd.f32 -1.4531521, %v4171_v51  ;;  %v3790_v17 = vsel %vm3726_vm14, 1.0, %v12639_v20 }
 0x78b   : > { %7790 = vrcp.f32 %v3982_v1  ;;  %v3983_v15 = vadd.f32 1.0, %v3919_v62  ;;  %v9818_v1 = vadd.f32 %v9741_v9, %v3465_v59  ;;  %v9822_v37 = vadd.f32 %v9741_v9, %v3466_v23 }
 0x78c   : > { %v4362_v61 = vadd.f32 1.4214138, %v4298_v42  ;;  %7792 = vpow2.f32 %v4890_v26  ;;  %v4299_v16 = vmul.f32 %v9799_v32, %v4235_v14  ;;  %v4750_v26 = vsub.f32 0.0, %v9792_v49 }
 0x78d   : > { %v9812_v35 = vpop.eup %7786  ;;  %7794 = vrcp.f32 %v3983_v15  ;;  %v9827_v8 = vmul.f32 0.70710677, %v9818_v1  ;;  %v3786_v15 = vsel %vm3722_vm10, 1.0, %v12639_v20  ;;  %v9841_v52 = vmul.f32 0.70710677, %v9822_v37 }
 0x78e   : > { %v4426_v30 = vmul.f32 %v9789_v13, %v4362_v61  ;;  %v4363_v51 = vadd.f32 1.4214138, %v4299_v16  ;;  %v4172_v22 = vmul.f32 1.0614054, %v9812_v35  ;;  %7796 = vpow2.f32 %v4892_v3 }
 0x78f   : > { %v9829_v59 = vpop.eup %7788  ;;  %7798 = vpow2.f32 %v4894_v28  ;;  %v4814_v53 = vmul.f32 %v4750_v26, %v9792_v49  ;;  %v9845_v3 = vand.u32 2147483647, %v9827_v8  ;;  %vm3728_vm0 = vcmp.ge.f32.partialorder %v9827_v8, 0.0 }
 0x790   : > { %v4490_v58 = vadd.f32 -0.28449672, %v4426_v30  ;;  %v4427_v5 = vmul.f32 %v9799_v32, %v4363_v51  ;;  %v4236_v21 = vadd.f32 -1.4531521, %v4172_v22  ;;  %v4173_v57 = vmul.f32 1.0614054, %v9829_v59 }
 0x791   : > { %7800 = vpow2.f32 %v4896_v50  ;;  %v4815_v51 = vmul.f32 %v4751_v56, %v3855_v34  ;;  %v3920_v22 = vmul.f32 0.3275911, %v9845_v3  ;;  %vm3729_vm2 = vcmp.ge.f32.partialorder %v9841_v52, 0.0 }
 0x792   : > { %v4554_v9 = vmul.f32 %v9789_v13, %v4490_v58  ;;  %v4491_v31 = vadd.f32 -0.28449672, %v4427_v5  ;;  %v4300_v42 = vmul.f32 %v9812_v35, %v4236_v21  ;;  %v4237_v23 = vadd.f32 -1.4531521, %v4173_v57 }
 0x793   : > { %v9856_v5 = vand.u32 2147483647, %v9841_v52  ;;  %v3984_v50 = vadd.f32 1.0, %v3920_v22  ;;  %v3601_v52 = vmul.f32 0.5, %v9822_v37  ;;  %v1702_v37 = vand.u32 65535, %v9709_v47 }
 0x794   : > { %v4618_v14 = vadd.f32 0.2548296, %v4554_v9  ;;  %v4555_v60 = vmul.f32 %v9799_v32, %v4491_v31  ;;  %v4364_v61 = vadd.f32 1.4214138, %v4300_v42  ;;  %v4301_v26 = vmul.f32 %v9829_v59, %v4237_v23 }
 0x795   : > { %v9847_v62 = vpop.eup %7790  ;;  %v4898_v31 = vmul.f32 1.442695, %v4814_v53  ;;  %v3921_v57 = vmul.f32 0.3275911, %v9856_v5  ;;  %7802 = vrcp.f32 %v3984_v50  ;;  %v4753_v54 = vsub.f32 0.0, %v9856_v5 }
 0x796   : > { %v4682_v16 = vmul.f32 %v9789_v13, %v4618_v14  ;;  %v4174_v30 = vmul.f32 1.0614054, %v9847_v62  ;;  %v7793_v58 = vpop.eup %7792  ;;  %v4619_v28 = vadd.f32 0.2548296, %v4555_v60  ;;  %v4428_v49 = vmul.f32 %v9812_v35, %v4364_v61 }
 0x797   : > { %v9858_v42 = vpop.eup %7794  ;;  %v4365_v56 = vadd.f32 1.4214138, %v4301_v26  ;;  %7804 = vpow2.f32 %v4898_v31  ;;  %v1734_v47 = vand.u32 65535, %v9729_v4 }
 0x798   : > { %v5002_v21 = vmul.f32 %v7793_v58, %v4682_v16  ;;  %v4238_v9 = vadd.f32 -1.4531521, %v4174_v30  ;;  %v4683_v13 = vmul.f32 %v9799_v32, %v4619_v28  ;;  %v4492_v34 = vadd.f32 -0.28449672, %v4428_v49  ;;  %v7797_v14 = vpop.eup %7796 }
 0x799   : > { %v4175_v23 = vmul.f32 1.0614054, %v9858_v42  ;;  %v4429_v53 = vmul.f32 %v9829_v59, %v4365_v56  ;;  %v4900_v30 = vmul.f32 1.442695, %v4815_v51  ;;  %v3985_v28 = vadd.f32 1.0, %v3921_v57 }
 0x79a   : > { %v5066_v60 = vsub.f32 1.0, %v5002_v21  ;;  %v4302_v61 = vmul.f32 %v9847_v62, %v4238_v9  ;;  %v5003_v24 = vmul.f32 %v7797_v14, %v4683_v13  ;;  %v4556_v16 = vmul.f32 %v9812_v35, %v4492_v34  ;;  %v7799_v21 = vpop.eup %7798 }
 0x79b   : > { %v4239_v32 = vadd.f32 -1.4531521, %v4175_v23  ;;  %v4493_v39 = vadd.f32 -0.28449672, %v4429_v53  ;;  %7806 = vrcp.f32 %v3985_v28  ;;  %v7801_v13 = vpop.eup %7800  ;;  %v4752_v56 = vsub.f32 0.0, %v9845_v3 }
 0x79c   : > { %v5130_v22 = vmul.f32 %v5066_v60, %v3786_v15  ;;  %v4366_v58 = vadd.f32 1.4214138, %v4302_v61  ;;  %v5067_v49 = vsub.f32 1.0, %v5003_v24  ;;  %v4620_v26 = vadd.f32 0.2548296, %v4556_v16 }
 0x79d   : > { %v4303_v50 = vmul.f32 %v9858_v42, %v4239_v32  ;;  %v4557_v15 = vmul.f32 %v9829_v59, %v4493_v39  ;;  %v3595_v57 = vmul.f32 0.5, %v9751_v27  ;;  %7808 = vpow2.f32 %v4900_v30 }
 0x79e   : > { %v4430_v9 = vmul.f32 %v9847_v62, %v4366_v58  ;;  %v5131_v34 = vmul.f32 %v5067_v49, %v3787_v38  ;;  %v4684_v51 = vmul.f32 %v9812_v35, %v4620_v26  ;;  %v5194_v24 = vadd.f32 1.0, %v5130_v22 }
 0x79f   : > { %v4367_v14 = vadd.f32 1.4214138, %v4303_v50  ;;  %v4621_v23 = vadd.f32 0.2548296, %v4557_v15  ;;  %v3788_v16 = vsel %vm3724_vm12, 1.0, %v12639_v20  ;;  %v4816_v22 = vmul.f32 %v4752_v56, %v9845_v3  ;;  %v7803_v58 = vpop.eup %7802 }
 0x7a0   : > { %v4494_v31 = vadd.f32 -0.28449672, %v4430_v9  ;;  %v5195_v60 = vadd.f32 1.0, %v5131_v34  ;;  %v5004_v61 = vmul.f32 %v7799_v21, %v4684_v51  ;;  %v5258_v32 = vmul.f32 %v5194_v24, %v9804_v63 }
 0x7a1   : > { %v4431_v39 = vmul.f32 %v9858_v42, %v4367_v14  ;;  %v4685_v27 = vmul.f32 %v9829_v59, %v4621_v23  ;;  %v4176_v21 = vmul.f32 1.0614054, %v7803_v58  ;;  %v3596_v9 = vmul.f32 0.5, %v9761_v0  ;;  %v7805_v59 = vpop.eup %7804 }
 0x7a2   : > { %v4558_v35 = vmul.f32 %v9847_v62, %v4494_v31  ;;  %v5259_v38 = vmul.f32 %v5195_v60, %v3595_v57  ;;  %v5068_v53 = vsub.f32 1.0, %v5004_v61  ;;  %v3789_v3 = vsel %vm3725_vm13, 1.0, %v12639_v20 }
 0x7a3   : > { %v4495_v28 = vadd.f32 -0.28449672, %v4431_v39  ;;  %v5005_v26 = vmul.f32 %v7801_v13, %v4685_v27  ;;  %v4240_v15 = vadd.f32 -1.4531521, %v4176_v21  ;;  %v4902_v57 = vmul.f32 1.442695, %v4816_v22 }
 0x7a4   : > { %v4622_v30 = vadd.f32 0.2548296, %v4558_v35  ;;  %v5132_v49 = vmul.f32 %v5068_v53, %v3788_v16  ;;  %v5314_v51 = vpack.c.bf16 %v5259_v38, %v5258_v32  ;;  %v4817_v0 = vmul.f32 %v4753_v54, %v9856_v5 }
 0x7a5   : > { %v4559_v34 = vmul.f32 %v9858_v42, %v4495_v28  ;;  %v5069_v63 = vsub.f32 1.0, %v5005_v26  ;;  %v7807_v56 = vpop.eup %7806  ;;  %v4304_v14 = vmul.f32 %v7803_v58, %v4240_v15  ;;  %v3597_v61 = vmul.f32 0.5, %v9771_v7 }
 0x7a6   : > { %v4686_v50 = vmul.f32 %v9847_v62, %v4622_v30  ;;  %7564 = vmatprep.mubr.msk.bf16.mxu0 %vm5370_vm5, %v5314_v51  ;;  %v5196_v62 = vadd.f32 1.0, %v5132_v49  ;;  %v4177_v60 = vmul.f32 1.0614054, %v7807_v56  ;;  %7810 = vpow2.f32 %v4902_v57 }
 0x7a7   : > { %v4623_v13 = vadd.f32 0.2548296, %v4559_v34  ;;  %v5133_v31 = vmul.f32 %v5069_v63, %v3789_v3  ;;  %v7809_v16 = vpop.eup %7808  ;;  %v4368_v39 = vadd.f32 1.4214138, %v4304_v14  ;;  %v4904_v27 = vmul.f32 1.442695, %v4817_v0 }
 0x7a8   : > { %v5006_v24 = vmul.f32 %v7805_v59, %v4686_v50  ;;  %v4241_v38 = vadd.f32 -1.4531521, %v4177_v60  ;;  %v5260_v22 = vmul.f32 %v5196_v62, %v3596_v9  ;;  %v3791_v54 = vsel %vm3727_vm15, 1.0, %v12639_v20 }
 0x7a9   : > { %v4687_v55 = vmul.f32 %v9858_v42, %v4623_v13  ;;  %v5197_v35 = vadd.f32 1.0, %v5133_v31  ;;  %v4432_v30 = vmul.f32 %v7803_v58, %v4368_v39  ;;  %7812 = vpow2.f32 %v4904_v27 }
 0x7aa   : > { %v5070_v23 = vsub.f32 1.0, %v5006_v24  ;;  %v4305_v28 = vmul.f32 %v7807_v56, %v4241_v38  ;;  %v3598_v51 = vmul.f32 0.5, %v9779_v40  ;;  %v3599_v9 = vmul.f32 0.5, %v9787_v43 }
 0x7ab   : > { %v5007_v53 = vmul.f32 %v7809_v16, %v4687_v55  ;;  %v5261_v32 = vmul.f32 %v5197_v35, %v3597_v61  ;;  %v4496_v49 = vadd.f32 -0.28449672, %v4432_v30  ;;  %v1622_v0 = vand.u32 65535, %v9660_v45 }
 0x7ac   : > { %v5134_v5 = vmul.f32 %v5070_v23, %v3790_v17  ;;  %v4369_v26 = vadd.f32 1.4214138, %v4305_v28  ;;  %v1638_v23 = vand.u32 65535, %v9669_v29  ;;  %v1654_v35 = vand.u32 65535, %v9679_v18 }
 0x7ad   : > { %v5071_v7 = vsub.f32 1.0, %v5007_v53  ;;  %v5315_v42 = vpack.c.bf16 %v5261_v32, %v5260_v22  ;;  %v4560_v41 = vmul.f32 %v7803_v58, %v4496_v49  ;;  %v1624_v17 = vcvt.s32.f32 %v1622_v0 }
 0x7ae   : > { %v5198_v21 = vadd.f32 1.0, %v5134_v5  ;;  %v4433_v34 = vmul.f32 %v7807_v56, %v4369_v26  ;;  %v1640_v38 = vcvt.s32.f32 %v1638_v23  ;;  %v3793_v5 = vsel %vm3729_vm2, 1.0, %v12639_v20 }
 0x7af   : > { %v5135_v50 = vmul.f32 %v5071_v7, %v3791_v54  ;;  %7565 = vmatmul.mubr.msk.bf16.gmra.mrb[32].mxu0 %vm5370_vm5, %v5315_v42  ;;  %v4624_v3 = vadd.f32 0.2548296, %v4560_v41  ;;  %v3600_v22 = vmul.f32 0.5, %v9818_v1  ;;  %v1670_v18 = vand.u32 65535, %v9689_v6 }
 0x7b0   : > { %v4497_v63 = vadd.f32 -0.28449672, %v4433_v34  ;;  %v5262_v15 = vmul.f32 %v5198_v21, %v3598_v51  ;;  %v7811_v62 = vpop.eup %7810  ;;  %v1686_v42 = vand.u32 65535, %v9699_v48  ;;  %v1704_v48 = vcvt.s32.f32 %v1702_v37 }
 0x7b1   : > { %v5199_v59 = vadd.f32 1.0, %v5135_v50  ;;  %v4688_v13 = vmul.f32 %v7803_v58, %v4624_v3  ;;  %v3792_v58 = vsel %vm3728_vm0, 1.0, %v12639_v20  ;;  %v1672_v26 = vcvt.s32.f32 %v1670_v18 }
 0x7b2   : > { %v4561_v57 = vmul.f32 %v7807_v56, %v4497_v63  ;;  %v1718_v41 = vand.u32 65535, %v9719_v36 }
 0x7b3   : > { %v5263_v24 = vmul.f32 %v5199_v59, %v3599_v9  ;;  %v5008_v14 = vmul.f32 %v7811_v62, %v4688_v13  ;;  %v7813_v55 = vpop.eup %7812  ;;  %v1736_v59 = vcvt.s32.f32 %v1734_v47  ;;  %v12731_v62 = vld [vmem:[#allocation18_spill] sm:$0xff] }
 0x7b4   : > { %v4625_v60 = vadd.f32 0.2548296, %v4561_v57  ;;  %v1720_v51 = vcvt.s32.f32 %v1718_v41 }
 0x7b5   : > { %v5316_v31 = vpack.c.bf16 %v5263_v24, %v5262_v15  ;;  %v5072_v40 = vsub.f32 1.0, %v5008_v14  ;;  %v12734_v14 = vld [vmem:[#allocation20_spill] sm:$0xff] }
 0x7b6   : > { %v4689_v61 = vmul.f32 %v7807_v56, %v4625_v60 }
 0x7b7   : > { %7568 = vmatprep.mubr.msk.bf16.mxu0 %vm5370_vm5, %v5316_v31  ;;  %v5136_v45 = vmul.f32 %v5072_v40, %v3792_v58  ;;  %v12732_v31 = vld [vmem:[#allocation19_spill] sm:$0xff]  ;;  %v12736_v58 = vld [vmem:[#allocation22_spill] sm:$0xff] }
 0x7b8   : > { %v9903_v43 = vpop.xlane.xlu0 %1626  ;;  %v5009_v8 = vmul.f32 %v7813_v55, %v4689_v61 }
 0x7b9   : > { %vm1628_vm1 = vcmp.eq.f32.partialorder %v9667_v19, %v9903_v43  ;;  %v5200_v29 = vadd.f32 1.0, %v5136_v45  ;;  %v1656_v19 = vcvt.s32.f32 %v1654_v35 }
 0x7ba   : > { %v1629_v16 = vsel %vm1628_vm1, %v1624_v17, inf  ;;  %v5073_v56 = vsub.f32 1.0, %v5009_v8  ;;  %v12738_v8 = vld [vmem:[#allocation21_spill] sm:$0xff] }
 0x7bb   : > { %1630 = vmin.xlane.f32.xlu0 %v1629_v16  ;;  %v5264_v28 = vmul.f32 %v5200_v29, %v3600_v22  ;;  %v12743_v22 = vld [vmem:[#allocation24_spill] sm:$0xff] }
 0x7bc   : > { %v1643_v39 = vpop.xlane.xlu1 %1642  ;;  %v5137_v53 = vmul.f32 %v5073_v56, %v3793_v5  ;;  %v12740_v56 = vmov 1.0|1.0  }
 0x7bd   : > { %vm1644_vm3 = vcmp.eq.f32.partialorder %v9677_v2, %v1643_v39  ;;  %v1649_v15 = vcvt.f32.s32 %v1643_v39 }
 0x7be   : > { %v1645_v27 = vsel %vm1644_vm3, %v1640_v38, inf  ;;  %v5201_v32 = vadd.f32 1.0, %v5137_v53 }
 0x7bf   : > { %1646 = vmin.xlane.f32.xlu1 %v1645_v27  ;;  %v12741_v27 = vld [vmem:[#allocation23_spill] sm:$0xff] }
 0x7c0   : > { %v1659_v30 = vpop.xlane.xlu0 %1658  ;;  %v5265_v7 = vmul.f32 %v5201_v32, %v3601_v52 }
 0x7c1   : > { %vm1660_vm4 = vcmp.eq.f32.partialorder %v9687_v46, %v1659_v30  ;;  %v1688_v46 = vcvt.s32.f32 %v1686_v42  ;;  %v1665_v13 = vcvt.f32.s32 %v1659_v30 }
 0x7c2   : > { %v1661_v54 = vsel %vm1660_vm4, %v1656_v19, inf  ;;  %v5317_v2 = vpack.c.bf16 %v5265_v7, %v5264_v28 }
 0x7c3   : > { %1662 = vmin.xlane.f32.xlu0 %v1661_v54 }
 0x7c4   : > { %v9917_v49 = vpop.xlane.xlu1 %1674  ;;  %7569 = vmatmul.mubr.msk.bf16.gmra.mrb[36].mxu0 %vm5370_vm5, %v5317_v2  ;;  %v12745_v2 = vld [vmem:[#allocation26_spill] sm:$0xff] }
 0x7c5   : > { %vm1676_vm6 = vcmp.eq.f32.partialorder %v9697_v25, %v9917_v49  ;;  %v1681_v23 = vcvt.f32.s32 %v9917_v49 }
 0x7c6   : > { %v1677_v1 = vsel %vm1676_vm6, %v1672_v26, inf  ;;  %v12747_v26 = vld [vmem:[#allocation25_spill] sm:$0xff] }
 0x7c7   : > { %1678 = vmin.xlane.f32.xlu1 %v1677_v1  ;;  %v1682_v29 = vshll.u32 %v1681_v23, 16 }
 0x7c8   : > { %v9923_v6 = vpop.xlane.xlu0 %1690 }
 0x7c9   : > { %vm1692_vm7 = vcmp.eq.f32.partialorder %v9707_v44, %v9923_v6  ;;  %v1697_v38 = vcvt.f32.s32 %v9923_v6 }
 0x7ca   : > { %v1693_v21 = vsel %vm1692_vm7, %v1688_v46, inf }
 0x7cb   : > { %1694 = vmin.xlane.f32.xlu0 %v1693_v21  ;;  %v1698_v18 = vshll.u32 %v1697_v38, 16  ;;  %v12766_v38 = vld [vmem:[#allocation43_spill] sm:$0xff] }
 0x7cc   : > { %v9928_v50 = vpop.xlane.xlu1 %1706 }
 0x7cd   : > { %vm1708_vm8 = vcmp.eq.f32.partialorder %v9717_v11, %v9928_v50  ;;  %v1633_v11 = vcvt.f32.s32 %v9903_v43  ;;  %v1666_v43 = vshll.u32 %v1665_v13, 16  ;;  %v1713_v7 = vcvt.f32.s32 %v9928_v50 }
 0x7ce   : > { %v1709_v25 = vsel %vm1708_vm8, %v1704_v48, inf  ;;  %v12749_v48 = vld [vmem:[#allocation27_spill] sm:$0xff] }
 0x7cf   : > { %1710 = vmin.xlane.f32.xlu1 %v1709_v25  ;;  %v1634_v63 = vshll.u32 %v1633_v11, 16  ;;  %v1714_v21 = vshll.u32 %v1713_v7, 16  ;;  %v12751_v25 = vld [vmem:[#allocation28_spill] sm:$0xff]  ;;  %v12774_v7 = vld [vmem:[#allocation45_spill] sm:$0xff] }
 0x7d0   : > { %v9933_v34 = vpop.xlane.xlu0 %1722 }
 0x7d1   : > { %vm1724_vm9 = vcmp.eq.f32.partialorder %v9727_v12, %v9933_v34  ;;  %v1650_v12 = vshll.u32 %v1649_v15, 16  ;;  %v1729_v46 = vcvt.f32.s32 %v9933_v34  ;;  %v12755_v15 = vld [vmem:[#allocation29_spill] sm:$0xff] }
 0x7d2   : > { %v1725_v44 = vsel %vm1724_vm9, %v1720_v51, inf }
 0x7d3   : > { %1726 = vmin.xlane.f32.xlu0 %v1725_v44  ;;  %v1730_v44 = vshll.u32 %v1729_v46, 16 }
 0x7d4   : > { %v9938_v9 = vpop.xlane.xlu1 %1738 }
 0x7d5   : > { %vm1740_vm10 = vcmp.eq.f32.partialorder %v9733_v33, %v9938_v9 }
 0x7d6   : > { %v1741_v36 = vsel %vm1740_vm10, %v1736_v59, inf }
 0x7d7   : > { %1742 = vmin.xlane.f32.xlu1 %v1741_v36  ;;  %v1745_v36 = vcvt.f32.s32 %v9938_v9 }
 0x848   : > { %v1631_v3 = vpop.xlane.xlu0 %1630 }
 0x849   : > { %v1632_v24 = vcvt.f32.s32 %v1631_v3  ;;  %v12753_v3 = vld [vmem:[#allocation30_spill] sm:$0xff] }
 0x84b   : > { %v1635_v4 = vadd.s32 %v1634_v63, %v1632_v24 }
 0x84c   : > { %v1647_v57 = vpop.xlane.xlu1 %1646 }
 0x84d   : > { %v1648_v0 = vcvt.f32.s32 %v1647_v57  ;;  %vm1748_vm11 = vcmp.eq.s32.totalorder %v8545_v10, %v1635_v4  ;;  %vm1749_vm12 = vcmp.eq.s32.totalorder %v12731_v62, %v1635_v4  ;;  %v1746_v57 = vshll.u32 %v1745_v36, 16 }
 0x84e   : > { %v9948_v33 = vsel %vm1748_vm11, inf, %v12732_v31  ;;  %v9951_v60 = vsel %vm1749_vm12, inf, %v12734_v14  ;;  %v12759_v14 = vld [vmem:[#allocation32_spill] sm:$0xff] }
 0x84f   : > { %12733 = vst [vmem:[#allocation19_spill] sm:$0xff] %v9948_v33  ;;  %12735 = vst [vmem:[#allocation20_spill] sm:$0xff] %v9951_v60  ;;  %v1651_v40 = vadd.s32 %v1650_v12, %v1648_v0  ;;  %v1831_v61 = vmin.f32 %v9948_v33, %v9951_v60  ;;  %v12757_v0 = vld [vmem:[#allocation31_spill] sm:$0xff] }
 0x850   : > { %v1663_v17 = vpop.xlane.xlu0 %1662 }
 0x851   : > { %v1664_v55 = vcvt.f32.s32 %v1663_v17  ;;  %1832 = vmin.xlane.f32.xlu0 %v1831_v61  ;;  %vm1751_vm13 = vcmp.eq.s32.totalorder %v12731_v62, %v1651_v40  ;;  %vm1750_vm14 = vcmp.eq.s32.totalorder %v8545_v10, %v1651_v40  ;;  %v12761_v17 = vld [vmem:[#allocation34_spill] sm:$0xff] }
 0x852   : > { %vm7424_vm15 = vmpackc.low %vm1751_vm13, %vm1749_vm12  ;;  %v9959_v45 = vsel %vm1750_vm14, inf, %v12736_v58  ;;  %v9962_v16 = vsel %vm1751_vm13, inf, %v12738_v8 }
 0x853   : > { %12737 = vst [vmem:[#allocation22_spill] sm:$0xff] %v9959_v45  ;;  %12739 = vst [vmem:[#allocation21_spill] sm:$0xff] %v9962_v16  ;;  %v1667_v35 = vadd.s32 %v1666_v43, %v1664_v55  ;;  %7425 = vmatprep.mubr.msk.bf16.mxu1 %vm7424_vm15, %v12740_v56  ;;  %v1834_v39 = vmin.f32 %v9959_v45, %v9962_v16  ;;  %v12763_v55 = vld [vmem:[#allocation33_spill] sm:$0xff] }
 0x854   : > { %vm7426_vm0 = vmpackc.low %vm1750_vm14, %vm1748_vm11  ;;  %v1679_v5 = vpop.xlane.xlu1 %1678 }
 0x855   : > { %7427 = vmatmul.mubr.msk.bf16.gmra.mrb[48].mxu1 %vm7426_vm0, %v12740_v56  ;;  %vm1752_vm1 = vcmp.eq.s32.totalorder %v8545_v10, %v1667_v35  ;;  %vm1753_vm2 = vcmp.eq.s32.totalorder %v12731_v62, %v1667_v35  ;;  %v1680_v53 = vcvt.f32.s32 %v1679_v5  ;;  %1835 = vmin.xlane.f32.xlu1 %v1834_v39  ;;  %v12765_v39 = vld [vmem:[#allocation35_spill] sm:$0xff] }
 0x856   : > { %v9976_v19 = vsel %vm1752_vm1, inf, %v12741_v27  ;;  %v9981_v52 = vsel %vm1753_vm2, inf, %v12743_v22  ;;  %v12767_v5 = vmax.f32 %v12765_v39, %v12766_v38  ;;  %v12769_v27 = vld [vmem:[#allocation36_spill] sm:$0xff] }
 0x857   : > { %12742 = vst [vmem:[#allocation23_spill] sm:$0xff] %v9976_v19  ;;  %12744 = vst [vmem:[#allocation24_spill] sm:$0xff] %v9981_v52  ;;  %v1683_v32 = vadd.s32 %v1682_v29, %v1680_v53  ;;  %v1837_v30 = vmin.f32 %v9976_v19, %v9981_v52  ;;  %v12770_v22 = vld [vmem:[#allocation44_spill] sm:$0xff] }
 0x858   : > { %v1695_v28 = vpop.xlane.xlu0 %1694 }
 0x859   : > { %v1696_v54 = vcvt.f32.s32 %v1695_v28  ;;  %1838 = vmin.xlane.f32.xlu0 %v1837_v30  ;;  %vm1755_vm3 = vcmp.eq.s32.totalorder %v12731_v62, %v1683_v32  ;;  %vm1754_vm4 = vcmp.eq.s32.totalorder %v8545_v10, %v1683_v32  ;;  %v12771_v32 = vmax.f32 %v12769_v27, %v12770_v22  ;;  %v12773_v28 = vld [vmem:[#allocation37_spill] sm:$0xff] }
 0x85a   : > { %v9989_v49 = vsel %vm1755_vm3, inf, %v12745_v2  ;;  %vm7428_vm6 = vmpackc.low %vm1755_vm3, %vm1753_vm2  ;;  %v9994_v42 = vsel %vm1754_vm4, inf, %v12747_v26 }
 0x85b   : > { %12746 = vst [vmem:[#allocation26_spill] sm:$0xff] %v9989_v49  ;;  %12748 = vst [vmem:[#allocation25_spill] sm:$0xff] %v9994_v42  ;;  %v1699_v1 = vadd.s32 %v1698_v18, %v1696_v54  ;;  %7429 = vmatprep.mubr.msk.bf16.mxu1 %vm7428_vm6, %v12740_v56  ;;  %v1840_v6 = vmin.f32 %v9994_v42, %v9989_v49  ;;  %v12775_v54 = vmax.f32 %v12773_v28, %v12774_v7 }
 0x85c   : > { %vm7430_vm7 = vmpackc.low %vm1754_vm4, %vm1752_vm1  ;;  %v1711_v37 = vpop.xlane.xlu1 %1710 }
 0x85d   : > { %7431 = vmatmul.mubr.msk.bf16.gmra.mrb[52].mxu1 %vm7430_vm7, %v12740_v56  ;;  %vm1756_vm8 = vcmp.eq.s32.totalorder %v8545_v10, %v1699_v1  ;;  %vm1757_vm9 = vcmp.eq.s32.totalorder %v12731_v62, %v1699_v1  ;;  %v1712_v50 = vcvt.f32.s32 %v1711_v37  ;;  %1841 = vmin.xlane.f32.xlu1 %v1840_v6  ;;  %v12777_v1 = vld [vmem:[#allocation38_spill] sm:$0xff] }
 0x85e   : > { %v10008_v41 = vsel %vm1756_vm8, inf, %v12749_v48  ;;  %v10013_v51 = vsel %vm1757_vm9, inf, %v12751_v25  ;;  %v12778_v6 = vld [vmem:[#allocation46_spill] sm:$0xff]  ;;  %v12782_v48 = vld [vmem:[#allocation47_spill] sm:$0xff] }
 0x85f   : > { %12750 = vst [vmem:[#allocation27_spill] sm:$0xff] %v10008_v41  ;;  %12752 = vst [vmem:[#allocation28_spill] sm:$0xff] %v10013_v51  ;;  %v1715_v34 = vadd.s32 %v1714_v21, %v1712_v50  ;;  %v1843_v47 = vmin.f32 %v10008_v41, %v10013_v51  ;;  %v12779_v46 = vmax.f32 %v12777_v1, %v12778_v6  ;;  %v12781_v50 = vld [vmem:[#allocation39_spill] sm:$0xff] }
 0x860   : > { %v1727_v59 = vpop.xlane.xlu0 %1726  ;;  %v12783_v25 = vmax.f32 %v12781_v50, %v12782_v48 }
 0x861   : > { %v1728_v11 = vcvt.f32.s32 %v1727_v59  ;;  %1844 = vmin.xlane.f32.xlu0 %v1843_v47  ;;  %vm1759_vm10 = vcmp.eq.s32.totalorder %v12731_v62, %v1715_v34  ;;  %vm1758_vm11 = vcmp.eq.s32.totalorder %v8545_v10, %v1715_v34  ;;  %v12786_v59 = vld [vmem:[#allocation48_spill] sm:$0xff] }
 0x862   : > { %v10021_v63 = vsel %vm1759_vm10, inf, %v12753_v3  ;;  %vm7432_vm12 = vmpackc.low %vm1759_vm10, %vm1757_vm9  ;;  %v10026_v24 = vsel %vm1758_vm11, inf, %v12755_v15  ;;  %v12789_v15 = vld [vmem:[#allocation41_spill] sm:$0xff] }
 0x863   : > { %12754 = vst [vmem:[#allocation30_spill] sm:$0xff] %v10021_v63  ;;  %12756 = vst [vmem:[#allocation29_spill] sm:$0xff] %v10026_v24  ;;  %v1731_v4 = vadd.s32 %v1730_v44, %v1728_v11  ;;  %7433 = vmatprep.mubr.msk.bf16.mxu1 %vm7432_vm12, %v12740_v56  ;;  %v1846_v9 = vmin.f32 %v10026_v24, %v10021_v63  ;;  %v12785_v44 = vld [vmem:[#allocation40_spill] sm:$0xff] }
 0x864   : > { %vm7434_vm13 = vmpackc.low %vm1758_vm11, %vm1756_vm8  ;;  %v1743_v13 = vpop.xlane.xlu1 %1742  ;;  %v12787_v36 = vmax.f32 %v12785_v44, %v12786_v59 }
 0x865   : > { %7435 = vmatmul.mubr.msk.bf16.gmra.mrb[56].mxu1 %vm7434_vm13, %v12740_v56  ;;  %vm1760_vm14 = vcmp.eq.s32.totalorder %v8545_v10, %v1731_v4  ;;  %vm1761_vm15 = vcmp.eq.s32.totalorder %v12731_v62, %v1731_v4  ;;  %v1744_v12 = vcvt.f32.s32 %v1743_v13  ;;  %1847 = vmin.xlane.f32.xlu1 %v1846_v9  ;;  %v12790_v4 = vld [vmem:[#allocation49_spill] sm:$0xff] }
 0x866   : > { %v10039_v31 = vsel %vm1760_vm14, inf, %v12757_v0  ;;  %v10042_v40 = vsel %vm1761_vm15, inf, %v12759_v14  ;;  %v12791_v9 = vmax.f32 %v12789_v15, %v12790_v4  ;;  %v12794_v0 = vld [vmem:[#allocation50_spill] sm:$0xff] }
 0x867   : > { %12758 = vst [vmem:[#allocation31_spill] sm:$0xff] %v10039_v31  ;;  %12760 = vst [vmem:[#allocation32_spill] sm:$0xff] %v10042_v40  ;;  %v1747_v61 = vadd.s32 %v1746_v57, %v1744_v12  ;;  %v1849_v43 = vmin.f32 %v10039_v31, %v10042_v40  ;;  %v12793_v12 = vld [vmem:[#allocation42_spill] sm:$0xff] }
 0x868   : > { %v12795_v14 = vmax.f32 %v12793_v12, %v12794_v0 }
 0x869   : > { %1850 = vmin.xlane.f32.xlu0 %v1849_v43  ;;  %vm1763_vm0 = vcmp.eq.s32.totalorder %v12731_v62, %v1747_v61  ;;  %vm1762_vm1 = vcmp.eq.s32.totalorder %v8545_v10, %v1747_v61 }
 0x86a   : > { %v10049_v23 = vsel %vm1763_vm0, inf, %v12761_v17  ;;  %vm7436_vm2 = vmpackc.low %vm1763_vm0, %vm1761_vm15  ;;  %v10052_v58 = vsel %vm1762_vm1, inf, %v12763_v55 }
 0x86b   : > { %12762 = vst [vmem:[#allocation34_spill] sm:$0xff] %v10049_v23  ;;  %12764 = vst [vmem:[#allocation33_spill] sm:$0xff] %v10052_v58  ;;  %7437 = vmatprep.mubr.msk.bf16.mxu1 %vm7436_vm2, %v12740_v56  ;;  %v1852_v8 = vmin.f32 %v10052_v58, %v10049_v23 }
 0x86c   : > { %vm7438_vm3 = vmpackc.low %vm1762_vm1, %vm1760_vm14 }
 0x86d   : > { %7439 = vmatmul.mubr.msk.bf16.gmra.mrb[60].mxu1 %vm7438_vm3, %v12740_v56  ;;  %1853 = vmin.xlane.f32.xlu1 %v1852_v8 }
 0x882   : > { %v7566_v35 = vpop.f32.mrb[32].mxu0 }
 0x883   : > { %v10063_v29 = vmax.f32 %v12767_v5, %v7566_v35  ;;  %v5565_v53 = vpop.f32.mrb[33].mxu0 }
 0x884   : > { %v10068_v30 = vmax.f32 %v12771_v32, %v5565_v53  ;;  %v7567_v18 = vpop.f32.mrb[34].mxu0 }
 0x885   : > { %12768 = vst [vmem:[#allocation35_spill] sm:$0xff] %v10063_v29  ;;  %v10073_v2 = vmax.f32 %v12775_v54, %v7567_v18  ;;  %v5568_v26 = vpop.f32.mrb[35].mxu0 }
 0x886   : > { %12772 = vst [vmem:[#allocation43_spill] sm:$0xff] %v10068_v30  ;;  %v10078_v37 = vmax.f32 %v12779_v46, %v5568_v26 }
 0x887   : > { %12776 = vst [vmem:[#allocation36_spill] sm:$0xff] %v10073_v2 }
 0x888   : > { %12780 = vst [vmem:[#allocation44_spill] sm:$0xff] %v10078_v37 }
 0x897   : > { %v7570_v21 = vpop.f32.mrb[36].mxu0 }
 0x898   : > { %v10083_v34 = vmax.f32 %v12783_v25, %v7570_v21  ;;  %v5581_v47 = vpop.f32.mrb[37].mxu0 }
 0x899   : > { %v10088_v11 = vmax.f32 %v12787_v36, %v5581_v47  ;;  %v7571_v3 = vpop.f32.mrb[38].mxu0 }
 0x89a   : > { %12784 = vst [vmem:[#allocation37_spill] sm:$0xff] %v10083_v34  ;;  %v10093_v13 = vmax.f32 %v12791_v9, %v7571_v3  ;;  %v5584_v57 = vpop.f32.mrb[39].mxu0 }
 0x89b   : > { %12788 = vst [vmem:[#allocation45_spill] sm:$0xff] %v10088_v11  ;;  %v10098_v61 = vmax.f32 %v12795_v14, %v5584_v57  ;;  %v8032_v11 = vld [vmem:[%s8895_s26 + $0x20] sm:$0xff] }
 0x89c   : > { %12792 = vst [vmem:[#allocation38_spill] sm:$0xff] %v10093_v13 }
 0x89d   : > { %12796 = vst [vmem:[#allocation46_spill] sm:$0xff] %v10098_v61 }
 0x8de   : > { %v1833_v43 = vpop.xlane.xlu0 %1832 }
 0x8df   : > { %vm1855_vm4 = vcmp.le.f32.partialorder %v9948_v33, %v1833_v43  ;;  %vm1856_vm6 = vcmp.le.f32.partialorder %v9951_v60, %v1833_v43 }
 0x8e0   : > { %v1871_v17 = vsel %vm1855_vm4, %v8545_v10, 256  ;;  %v1872_v55 = vsel %vm1856_vm6, %v12731_v62, 256 }
 0x8e1   : > { %vm1887_vm7 = vcmp.lt.s32.totalorder %v1871_v17, %v1872_v55 }
 0x8e2   : > { %v10104_v8 = vsel %vm1887_vm7, %v1871_v17, %v1872_v55  ;;  %v1836_v35 = vpop.xlane.xlu1 %1835 }
 0x8e3   : > { %vm1857_vm8 = vcmp.le.f32.partialorder %v9959_v45, %v1836_v35  ;;  %vm1858_vm9 = vcmp.le.f32.partialorder %v9962_v16, %v1836_v35  ;;  %v1890_v39 = vshra.s32 %v10104_v8, 16 }
 0x8e4   : > { %v1873_v38 = vsel %vm1857_vm8, %v8545_v10, 256  ;;  %v1874_v5 = vsel %vm1858_vm9, %v12731_v62, 256 }
 0x8e5   : > { %vm1903_vm10 = vcmp.lt.s32.totalorder %v1873_v38, %v1874_v5  ;;  %v10111_v53 = vcvt.s32.f32 %v1890_v39 }
 0x8e6   : > { %v10113_v27 = vsel %vm1903_vm10, %v1873_v38, %v1874_v5  ;;  %v1839_v22 = vpop.xlane.xlu0 %1838 }
 0x8e7   : > { %vm1859_vm11 = vcmp.le.f32.partialorder %v9976_v19, %v1839_v22  ;;  %vm1860_vm12 = vcmp.le.f32.partialorder %v9981_v52, %v1839_v22  ;;  %1893 = vmin.xlane.f32.xlu0 %v10111_v53  ;;  %v1906_v32 = vshra.s32 %v10113_v27, 16  ;;  %v8035_v52 = vld [vmem:[%s8895_s26 + $0x38] sm:$0xff] }
 0x8e8   : > { %v1875_v18 = vsel %vm1859_vm11, %v8545_v10, 256  ;;  %v1876_v28 = vsel %vm1860_vm12, %v12731_v62, 256 }
 0x8e9   : > { %vm1919_vm13 = vcmp.lt.s32.totalorder %v1875_v18, %v1876_v28  ;;  %v10121_v7 = vcvt.s32.f32 %v1906_v32 }
 0x8ea   : > { %v10123_v54 = vsel %vm1919_vm13, %v1875_v18, %v1876_v28  ;;  %v1842_v26 = vpop.xlane.xlu1 %1841 }
 0x8eb   : > { %vm1861_vm14 = vcmp.le.f32.partialorder %v9994_v42, %v1842_v26  ;;  %vm1862_vm15 = vcmp.le.f32.partialorder %v9989_v49, %v1842_v26  ;;  %1909 = vmin.xlane.f32.xlu1 %v10121_v7  ;;  %v1922_v1 = vshra.s32 %v10123_v54, 16 }
 0x8ec   : > { %v1877_v6 = vsel %vm1861_vm14, %v8545_v10, 256  ;;  %v1878_v46 = vsel %vm1862_vm15, %v12731_v62, 256 }
 0x8ed   : > { %vm1935_vm0 = vcmp.lt.s32.totalorder %v1877_v6, %v1878_v46  ;;  %v10131_v21 = vcvt.s32.f32 %v1922_v1 }
 0x8ee   : > { %v10133_v50 = vsel %vm1935_vm0, %v1877_v6, %v1878_v46  ;;  %v1845_v48 = vpop.xlane.xlu0 %1844  ;;  %v8026_v6 = vld [vmem:[%s8895_s26] sm:$0xff] }
 0x8ef   : > { %vm1863_vm1 = vcmp.le.f32.partialorder %v10008_v41, %v1845_v48  ;;  %vm1864_vm2 = vcmp.le.f32.partialorder %v10013_v51, %v1845_v48  ;;  %1925 = vmin.xlane.f32.xlu0 %v10131_v21  ;;  %v1938_v25 = vshra.s32 %v10133_v50, 16 }
 0x8f0   : > { %v1879_v47 = vsel %vm1863_vm1, %v8545_v10, 256  ;;  %v1880_v44 = vsel %vm1864_vm2, %v12731_v62, 256 }
 0x8f1   : > { %vm1951_vm3 = vcmp.lt.s32.totalorder %v1879_v47, %v1880_v44  ;;  %v10141_v59 = vcvt.s32.f32 %v1938_v25 }
 0x8f2   : > { %v10143_v36 = vsel %vm1951_vm3, %v1879_v47, %v1880_v44  ;;  %v1848_v3 = vpop.xlane.xlu1 %1847  ;;  %v10181_v47 = vld [vmem:[#allocation3] ss:$0 sm:$0xff] }
 0x8f3   : > { %vm1865_vm4 = vcmp.le.f32.partialorder %v10026_v24, %v1848_v3  ;;  %vm1866_vm6 = vcmp.le.f32.partialorder %v10021_v63, %v1848_v3  ;;  %1941 = vmin.xlane.f32.xlu1 %v10141_v59  ;;  %v1954_v15 = vshra.s32 %v10143_v36, 16  ;;  %v8028_v3 = vld [vmem:[%s8895_s26 + $0x8] sm:$0xff] }
 0x8f4   : > { %v1881_v4 = vsel %vm1865_vm4, %v8545_v10, 256  ;;  %v1882_v9 = vsel %vm1866_vm6, %v12731_v62, 256 }
 0x8f5   : > { %vm1967_vm7 = vcmp.lt.s32.totalorder %v1881_v4, %v1882_v9  ;;  %v10151_v57 = vcvt.s32.f32 %v1954_v15 }
 0x8f6   : > { %v10153_v12 = vsel %vm1967_vm7, %v1881_v4, %v1882_v9  ;;  %v1851_v0 = vpop.xlane.xlu0 %1850  ;;  %v10185_v9 = vld [vmem:[#allocation5] ss:$0 sm:$0xff] }
 0x8f7   : > { %vm1867_vm8 = vcmp.le.f32.partialorder %v10039_v31, %v1851_v0  ;;  %vm1868_vm9 = vcmp.le.f32.partialorder %v10042_v40, %v1851_v0  ;;  %1957 = vmin.xlane.f32.xlu0 %v10151_v57  ;;  %v1970_v14 = vshra.s32 %v10153_v12, 16 }
 0x8f8   : > { %v1883_v43 = vsel %vm1867_vm8, %v8545_v10, 256  ;;  %v1884_v17 = vsel %vm1868_vm9, %v12731_v62, 256 }
 0x8f9   : > { %vm1983_vm10 = vcmp.lt.s32.totalorder %v1883_v43, %v1884_v17  ;;  %v10161_v55 = vcvt.s32.f32 %v1970_v14 }
 0x8fa   : > { %v10163_v35 = vsel %vm1983_vm10, %v1883_v43, %v1884_v17  ;;  %v1854_v39 = vpop.xlane.xlu1 %1853 }
 0x8fb   : > { %vm1869_vm11 = vcmp.le.f32.partialorder %v10052_v58, %v1854_v39  ;;  %vm1870_vm12 = vcmp.le.f32.partialorder %v10049_v23, %v1854_v39  ;;  %1973 = vmin.xlane.f32.xlu1 %v10161_v55  ;;  %v1986_v38 = vshra.s32 %v10163_v35, 16 }
 0x8fc   : > { %v1885_v5 = vsel %vm1869_vm11, %v8545_v10, 256  ;;  %v1886_v22 = vsel %vm1870_vm12, %v12731_v62, 256 }
 0x8fd   : > { %vm1999_vm13 = vcmp.lt.s32.totalorder %v1885_v5, %v1886_v22  ;;  %v10171_v32 = vcvt.s32.f32 %v1986_v38 }
 0x8fe   : > { %v10173_v18 = vsel %vm1999_vm13, %v1885_v5, %v1886_v22  ;;  %v8030_v22 = vld [vmem:[%s8895_s26 + $0x10] sm:$0xff] }
 0x8ff   : > { %1989 = vmin.xlane.f32.xlu0 %v10171_v32  ;;  %v2002_v28 = vshra.s32 %v10173_v18, 16 }
 0x901   : > { %v10177_v26 = vcvt.s32.f32 %v2002_v28 }
 0x903   : > { %2005 = vmin.xlane.f32.xlu1 %v10177_v26 }
 0x928   : > { %v3205_v1 = vpop.f32.mrb[48].mxu1 }
 0x929   : > { %v3396_v46 = vadd.f32 %v8026_v6, %v3205_v1  ;;  %v3207_v48 = vpop.f32.mrb[49].mxu1 }
 0x92a   : > { %v3208_v25 = vpop.f32.mrb[50].mxu1 }
 0x92b   : > { %v3467_v44 = vmul.f32 %v10181_v47, %v3396_v46  ;;  %v3397_v15 = vadd.f32 %v8028_v3, %v3208_v25  ;;  %v3210_v4 = vpop.f32.mrb[51].mxu1 }
 0x92d   : > { %v10188_v0 = vadd.f32 %v10185_v9, %v3467_v44  ;;  %v3468_v14 = vmul.f32 %v10181_v47, %v3397_v15 }
 0x92f   : > { %v10192_v43 = vmul.f32 0.70710677, %v10188_v0  ;;  %v10195_v17 = vadd.f32 %v10185_v9, %v3468_v14  ;;  %v8031_v14 = vld [vmem:[%s8895_s26 + $0x18] sm:$0xff] }
 0x930   : > { %v3213_v39 = vpop.f32.mrb[52].mxu1 }
 0x931   : > { %v3858_v38 = vand.u32 2147483647, %v10192_v43  ;;  %v10199_v5 = vmul.f32 0.70710677, %v10195_v17  ;;  %v3398_v28 = vadd.f32 %v8030_v22, %v3213_v39  ;;  %v3215_v1 = vpop.f32.mrb[53].mxu1  ;;  %vm3730_vm14 = vcmp.ge.f32.partialorder %v10192_v43, 0.0 }
 0x932   : > { %v3216_v25 = vpop.f32.mrb[54].mxu1 }
 0x933   : > { %v3922_v6 = vmul.f32 0.3275911, %v3858_v38  ;;  %v3859_v46 = vand.u32 2147483647, %v10199_v5  ;;  %v3469_v48 = vmul.f32 %v10181_v47, %v3398_v28  ;;  %v3218_v15 = vpop.f32.mrb[55].mxu1  ;;  %v3399_v61 = vadd.f32 %v8031_v14, %v3216_v25 }
 0x934   : > { %v4754_v37 = vsub.f32 0.0, %v3858_v38  ;;  %vm3731_vm15 = vcmp.ge.f32.partialorder %v10199_v5, 0.0 }
 0x935   : > { %v3986_v44 = vadd.f32 1.0, %v3922_v6  ;;  %v3923_v3 = vmul.f32 0.3275911, %v3859_v46  ;;  %v10205_v4 = vadd.f32 %v10185_v9, %v3469_v48  ;;  %v3470_v22 = vmul.f32 %v10181_v47, %v3399_v61 }
 0x937   : > { %7814 = vrcp.f32 %v3986_v44  ;;  %v3987_v13 = vadd.f32 1.0, %v3923_v3  ;;  %v10209_v39 = vmul.f32 0.70710677, %v10205_v4  ;;  %v10215_v48 = vadd.f32 %v10185_v9, %v3470_v22  ;;  %v8033_v44 = vld [vmem:[%s8895_s26 + $0x28] sm:$0xff] }
 0x938   : > { %v3221_v1 = vpop.f32.mrb[56].mxu1 }
 0x939   : > { %v3400_v28 = vadd.f32 %v8032_v11, %v3221_v1  ;;  %v3223_v34 = vpop.f32.mrb[57].mxu1  ;;  %7816 = vrcp.f32 %v3987_v13  ;;  %v3860_v6 = vand.u32 2147483647, %v10209_v39  ;;  %v10220_v61 = vmul.f32 0.70710677, %v10215_v48 }
 0x93a   : > { %v3224_v15 = vpop.f32.mrb[58].mxu1  ;;  %v4755_v1 = vsub.f32 0.0, %v3859_v46  ;;  %vm3732_vm0 = vcmp.ge.f32.partialorder %v10209_v39, 0.0 }
 0x93b   : > { %v3471_v25 = vmul.f32 %v10181_v47, %v3400_v28  ;;  %v3401_v3 = vadd.f32 %v8033_v44, %v3224_v15  ;;  %v3226_v14 = vpop.f32.mrb[59].mxu1  ;;  %v3924_v2 = vmul.f32 0.3275911, %v3860_v6  ;;  %v3861_v22 = vand.u32 2147483647, %v10220_v61 }
 0x93c   : > { %v4818_v15 = vmul.f32 %v4754_v37, %v3858_v38  ;;  %v4819_v40 = vmul.f32 %v4755_v1, %v3859_v46  ;;  %v4756_v24 = vsub.f32 0.0, %v3860_v6  ;;  %v8034_v1 = vld [vmem:[%s8895_s26 + $0x30] sm:$0xff]  ;;  %vm3733_vm1 = vcmp.ge.f32.partialorder %v10220_v61, 0.0 }
 0x93d   : > { %v10223_v11 = vadd.f32 %v10185_v9, %v3471_v25  ;;  %v3472_v34 = vmul.f32 %v10181_v47, %v3401_v3  ;;  %v3988_v13 = vadd.f32 1.0, %v3924_v2  ;;  %v3925_v44 = vmul.f32 0.3275911, %v3861_v22 }
 0x93e   : > { %v4906_v31 = vmul.f32 1.442695, %v4818_v15  ;;  %v4757_v41 = vsub.f32 0.0, %v3861_v22  ;;  %v4908_v15 = vmul.f32 1.442695, %v4819_v40  ;;  %v4820_v56 = vmul.f32 %v4756_v24, %v3860_v6 }
 0x93f   : > { %v10228_v30 = vmul.f32 0.70710677, %v10223_v11  ;;  %v10231_v28 = vadd.f32 %v10185_v9, %v3472_v34  ;;  %7818 = vrcp.f32 %v3988_v13  ;;  %v3989_v58 = vadd.f32 1.0, %v3925_v44 }
 0x940   : > { %v3229_v14 = vpop.f32.mrb[60].mxu1  ;;  %v4821_v16 = vmul.f32 %v4757_v41, %v3861_v22  ;;  %v4910_v24 = vmul.f32 1.442695, %v4820_v56  ;;  %v3795_v56 = vsel %vm3731_vm15, 1.0, %v12639_v20 }
 0x941   : > { %v10233_v29 = vpop.eup %7814  ;;  %v10236_v25 = vand.u32 2147483647, %v10228_v30  ;;  %v10239_v2 = vmul.f32 0.70710677, %v10231_v28  ;;  %v3231_v23 = vpop.f32.mrb[61].mxu1  ;;  %7820 = vrcp.f32 %v3989_v58  ;;  %v3402_v49 = vadd.f32 %v8034_v1, %v3229_v14 }
 0x942   : > { %v4178_v3 = vmul.f32 1.0614054, %v10233_v29  ;;  %v3232_v37 = vpop.f32.mrb[62].mxu1  ;;  %v10248_v23 = vmul.f32 0.5, %v10188_v0  ;;  %v4912_v6 = vmul.f32 1.442695, %v4821_v16 }
 0x943   : > { %v3926_v34 = vmul.f32 0.3275911, %v10236_v25  ;;  %v10243_v38 = vpop.eup %7816  ;;  %v3234_v63 = vpop.f32.mrb[63].mxu1  ;;  %v3863_v44 = vand.u32 2147483647, %v10239_v2  ;;  %v3403_v19 = vadd.f32 %v8035_v52, %v3232_v37  ;;  %v3473_v45 = vmul.f32 %v10181_v47, %v3402_v49 }
 0x944   : > { %v4242_v13 = vadd.f32 -1.4531521, %v4178_v3  ;;  %v4179_v51 = vmul.f32 1.0614054, %v10243_v38  ;;  %vm3734_vm2 = vcmp.ge.f32.partialorder %v10228_v30, 0.0  ;;  %vm3735_vm3 = vcmp.ge.f32.partialorder %v10239_v2, 0.0 }
 0x945   : > { %v3990_v42 = vadd.f32 1.0, %v3926_v34  ;;  %v3927_v58 = vmul.f32 0.3275911, %v3863_v44  ;;  %v3474_v34 = vmul.f32 %v10181_v47, %v3403_v19  ;;  %v4759_v14 = vsub.f32 0.0, %v3863_v44 }
 0x946   : > { %v4306_v46 = vmul.f32 %v10233_v29, %v4242_v13  ;;  %v4243_v3 = vadd.f32 -1.4531521, %v4179_v51  ;;  %v3798_v61 = vsel %vm3734_vm2, 1.0, %v12639_v20 }
 0x947   : > { %7822 = vrcp.f32 %v3990_v42  ;;  %v3991_v60 = vadd.f32 1.0, %v3927_v58  ;;  %v10262_v42 = vadd.f32 %v10185_v9, %v3473_v45  ;;  %v10266_v19 = vadd.f32 %v10185_v9, %v3474_v34 }
 0x948   : > { %v4370_v63 = vadd.f32 1.4214138, %v4306_v46  ;;  %7824 = vpow2.f32 %v4906_v31  ;;  %v4307_v0 = vmul.f32 %v10243_v38, %v4243_v3  ;;  %v4758_v31 = vsub.f32 0.0, %v10236_v25 }
 0x949   : > { %v10256_v13 = vpop.eup %7818  ;;  %7826 = vrcp.f32 %v3991_v60  ;;  %v10271_v22 = vmul.f32 0.70710677, %v10262_v42  ;;  %v3794_v60 = vsel %vm3730_vm14, 1.0, %v12639_v20  ;;  %v10285_v1 = vmul.f32 0.70710677, %v10266_v19 }
 0x94a   : > { %v4434_v52 = vmul.f32 %v10233_v29, %v4370_v63  ;;  %v4371_v51 = vadd.f32 1.4214138, %v4307_v0  ;;  %v4180_v49 = vmul.f32 1.0614054, %v10256_v13  ;;  %7828 = vpow2.f32 %v4908_v15 }
 0x94b   : > { %v10273_v45 = vpop.eup %7820  ;;  %7830 = vpow2.f32 %v4910_v24  ;;  %v4822_v43 = vmul.f32 %v4758_v31, %v10236_v25  ;;  %v10289_v15 = vand.u32 2147483647, %v10271_v22  ;;  %vm3736_vm4 = vcmp.ge.f32.partialorder %v10271_v22, 0.0 }
 0x94c   : > { %v4498_v41 = vadd.f32 -0.28449672, %v4434_v52  ;;  %v4435_v40 = vmul.f32 %v10243_v38, %v4371_v51  ;;  %v4244_v47 = vadd.f32 -1.4531521, %v4180_v49  ;;  %v4181_v16 = vmul.f32 1.0614054, %v10273_v45 }
 0x94d   : > { %7832 = vpow2.f32 %v4912_v6  ;;  %v4823_v51 = vmul.f32 %v4759_v14, %v3863_v44  ;;  %v3928_v49 = vmul.f32 0.3275911, %v10289_v15  ;;  %vm3737_vm7 = vcmp.ge.f32.partialorder %v10285_v1, 0.0 }
 0x94e   : > { %v4562_v9 = vmul.f32 %v10233_v29, %v4498_v41  ;;  %v4499_v37 = vadd.f32 -0.28449672, %v4435_v40  ;;  %v4308_v46 = vmul.f32 %v10256_v13, %v4244_v47  ;;  %v4245_v34 = vadd.f32 -1.4531521, %v4181_v16 }
 0x94f   : > { %v10300_v40 = vand.u32 2147483647, %v10285_v1  ;;  %v3992_v6 = vadd.f32 1.0, %v3928_v49  ;;  %v3609_v1 = vmul.f32 0.5, %v10266_v19  ;;  %v1969_v19 = vand.u32 65535, %v10153_v12 }
 0x950   : > { %v4626_v3 = vadd.f32 0.2548296, %v4562_v9  ;;  %v4563_v5 = vmul.f32 %v10243_v38, %v4499_v37  ;;  %v4372_v63 = vadd.f32 1.4214138, %v4308_v46  ;;  %v4309_v31 = vmul.f32 %v10273_v45, %v4245_v34 }
 0x951   : > { %v10291_v58 = vpop.eup %7822  ;;  %v4914_v37 = vmul.f32 1.442695, %v4822_v43  ;;  %v3929_v16 = vmul.f32 0.3275911, %v10300_v40  ;;  %7834 = vrcp.f32 %v3992_v6  ;;  %v4761_v39 = vsub.f32 0.0, %v10300_v40 }
 0x952   : > { %v4690_v0 = vmul.f32 %v10233_v29, %v4626_v3  ;;  %v4182_v52 = vmul.f32 1.0614054, %v10291_v58  ;;  %v7825_v41 = vpop.eup %7824  ;;  %v4627_v24 = vadd.f32 0.2548296, %v4563_v5  ;;  %v4436_v25 = vmul.f32 %v10256_v13, %v4372_v63 }
 0x953   : > { %v10302_v46 = vpop.eup %7826  ;;  %v4373_v14 = vadd.f32 1.4214138, %v4309_v31  ;;  %7836 = vpow2.f32 %v4914_v37  ;;  %v2001_v12 = vand.u32 65535, %v10173_v18 }
 0x954   : > { %v5010_v47 = vmul.f32 %v7825_v41, %v4690_v0  ;;  %v4246_v9 = vadd.f32 -1.4531521, %v4182_v52  ;;  %v4691_v29 = vmul.f32 %v10243_v38, %v4627_v24  ;;  %v4500_v44 = vadd.f32 -0.28449672, %v4436_v25  ;;  %v7829_v3 = vpop.eup %7828 }
 0x955   : > { %v4183_v34 = vmul.f32 1.0614054, %v10302_v46  ;;  %v4437_v43 = vmul.f32 %v10273_v45, %v4373_v14  ;;  %v4916_v52 = vmul.f32 1.442695, %v4823_v51  ;;  %v3993_v24 = vadd.f32 1.0, %v3929_v16 }
 0x956   : > { %v5074_v5 = vsub.f32 1.0, %v5010_v47  ;;  %v4310_v63 = vmul.f32 %v10291_v58, %v4246_v9  ;;  %v5011_v33 = vmul.f32 %v7829_v3, %v4691_v29  ;;  %v4564_v0 = vmul.f32 %v10256_v13, %v4500_v44  ;;  %v7831_v47 = vpop.eup %7830 }
 0x957   : > { %v4247_v38 = vadd.f32 -1.4531521, %v4183_v34  ;;  %v4501_v62 = vadd.f32 -0.28449672, %v4437_v43  ;;  %7838 = vrcp.f32 %v3993_v24  ;;  %v7833_v29 = vpop.eup %7832  ;;  %v4760_v14 = vsub.f32 0.0, %v10289_v15 }
 0x958   : > { %v5138_v49 = vmul.f32 %v5074_v5, %v3794_v60  ;;  %v4374_v41 = vadd.f32 1.4214138, %v4310_v63  ;;  %v5075_v25 = vsub.f32 1.0, %v5011_v33  ;;  %v4628_v31 = vadd.f32 0.2548296, %v4564_v0 }
 0x959   : > { %v4311_v6 = vmul.f32 %v10302_v46, %v4247_v38  ;;  %v4565_v60 = vmul.f32 %v10273_v45, %v4501_v62  ;;  %v3603_v16 = vmul.f32 0.5, %v10195_v17  ;;  %7840 = vpow2.f32 %v4916_v52 }
 0x95a   : > { %v4438_v9 = vmul.f32 %v10291_v58, %v4374_v41  ;;  %v5139_v44 = vmul.f32 %v5075_v25, %v3795_v56  ;;  %v4692_v51 = vmul.f32 %v10256_v13, %v4628_v31  ;;  %v5202_v33 = vadd.f32 1.0, %v5138_v49 }
 0x95b   : > { %v4375_v3 = vadd.f32 1.4214138, %v4311_v6  ;;  %v4629_v34 = vadd.f32 0.2548296, %v4565_v60  ;;  %v3796_v0 = vsel %vm3732_vm0, 1.0, %v12639_v20  ;;  %v4824_v49 = vmul.f32 %v4760_v14, %v10289_v15  ;;  %v7835_v41 = vpop.eup %7834 }
 0x95c   : > { %v4502_v37 = vadd.f32 -0.28449672, %v4438_v9  ;;  %v5203_v5 = vadd.f32 1.0, %v5139_v44  ;;  %v5012_v63 = vmul.f32 %v7831_v47, %v4692_v51  ;;  %v5266_v38 = vmul.f32 %v5202_v33, %v10248_v23 }
 0x95d   : > { %v4439_v62 = vmul.f32 %v10302_v46, %v4375_v3  ;;  %v4693_v17 = vmul.f32 %v10273_v45, %v4629_v34  ;;  %v4184_v47 = vmul.f32 1.0614054, %v7835_v41  ;;  %v3604_v9 = vmul.f32 0.5, %v10205_v4  ;;  %v7837_v45 = vpop.eup %7836 }
 0x95e   : > { %v4566_v13 = vmul.f32 %v10291_v58, %v4502_v37  ;;  %v5267_v56 = vmul.f32 %v5203_v5, %v3603_v16  ;;  %v5076_v43 = vsub.f32 1.0, %v5012_v63  ;;  %v3797_v15 = vsel %vm3733_vm1, 1.0, %v12639_v20 }
 0x95f   : > { %v4503_v24 = vadd.f32 -0.28449672, %v4439_v62  ;;  %v5013_v31 = vmul.f32 %v7833_v29, %v4693_v17  ;;  %v4248_v60 = vadd.f32 -1.4531521, %v4184_v47  ;;  %v4918_v16 = vmul.f32 1.442695, %v4824_v49 }
 0x960   : > { %v4630_v52 = vadd.f32 0.2548296, %v4566_v13  ;;  %v5140_v25 = vmul.f32 %v5076_v43, %v3796_v0  ;;  %v5318_v51 = vpack.c.bf16 %v5267_v56, %v5266_v38  ;;  %v4825_v4 = vmul.f32 %v4761_v39, %v10300_v40 }
 0x961   : > { %v4567_v44 = vmul.f32 %v10302_v46, %v4503_v24  ;;  %v5077_v23 = vsub.f32 1.0, %v5013_v31  ;;  %v7839_v14 = vpop.eup %7838  ;;  %v4312_v3 = vmul.f32 %v7835_v41, %v4248_v60  ;;  %v3605_v63 = vmul.f32 0.5, %v10215_v48 }
 0x962   : > { %v4694_v6 = vmul.f32 %v10291_v58, %v4630_v52  ;;  %7572 = vmatprep.mubr.msk.bf16.mxu0 %vm5370_vm5, %v5318_v51  ;;  %v5204_v58 = vadd.f32 1.0, %v5140_v25  ;;  %v4185_v5 = vmul.f32 1.0614054, %v7839_v14  ;;  %7842 = vpow2.f32 %v4918_v16 }
 0x963   : > { %v4631_v29 = vadd.f32 0.2548296, %v4567_v44  ;;  %v5141_v37 = vmul.f32 %v5077_v23, %v3797_v15  ;;  %v7841_v0 = vpop.eup %7840  ;;  %v4376_v62 = vadd.f32 1.4214138, %v4312_v3  ;;  %v4920_v17 = vmul.f32 1.442695, %v4825_v4 }
 0x964   : > { %v5014_v33 = vmul.f32 %v7837_v45, %v4694_v6  ;;  %v4249_v56 = vadd.f32 -1.4531521, %v4185_v5  ;;  %v5268_v49 = vmul.f32 %v5204_v58, %v3604_v9  ;;  %v3799_v39 = vsel %vm3735_vm3, 1.0, %v12639_v20 }
 0x965   : > { %v4695_v30 = vmul.f32 %v10302_v46, %v4631_v29  ;;  %v5205_v13 = vadd.f32 1.0, %v5141_v37  ;;  %v4440_v52 = vmul.f32 %v7835_v41, %v4376_v62  ;;  %7844 = vpow2.f32 %v4920_v17 }
 0x966   : > { %v5078_v34 = vsub.f32 1.0, %v5014_v33  ;;  %v4313_v24 = vmul.f32 %v7839_v14, %v4249_v56  ;;  %v3606_v51 = vmul.f32 0.5, %v10223_v11  ;;  %v3607_v9 = vmul.f32 0.5, %v10231_v28 }
 0x967   : > { %v5015_v43 = vmul.f32 %v7841_v0, %v4695_v30  ;;  %v5269_v38 = vmul.f32 %v5205_v13, %v3605_v63  ;;  %v4504_v25 = vadd.f32 -0.28449672, %v4440_v52  ;;  %v1889_v4 = vand.u32 65535, %v10104_v8 }
 0x968   : > { %v5142_v40 = vmul.f32 %v5078_v34, %v3798_v61  ;;  %v4377_v31 = vadd.f32 1.4214138, %v4313_v24  ;;  %v1905_v34 = vand.u32 65535, %v10113_v27  ;;  %v1921_v13 = vand.u32 65535, %v10123_v54 }
 0x969   : > { %v5079_v48 = vsub.f32 1.0, %v5015_v43  ;;  %v5319_v46 = vpack.c.bf16 %v5269_v38, %v5268_v49  ;;  %v4568_v2 = vmul.f32 %v7835_v41, %v4504_v25  ;;  %v1891_v61 = vcvt.s32.f32 %v1889_v4  ;;  %v12797_v4 = vld [vmem:[#allocation18_spill] sm:$0xff] }
 0x96a   : > { %v5206_v47 = vadd.f32 1.0, %v5142_v40  ;;  %v4441_v44 = vmul.f32 %v7839_v14, %v4377_v31  ;;  %v1907_v56 = vcvt.s32.f32 %v1905_v34  ;;  %v3801_v40 = vsel %vm3737_vm7, 1.0, %v12639_v20 }
 0x96b   : > { %v5143_v6 = vmul.f32 %v5079_v48, %v3799_v39  ;;  %7573 = vmatmul.mubr.msk.bf16.gmra.mrb[40].mxu0 %vm5370_vm5, %v5319_v46  ;;  %v4632_v15 = vadd.f32 0.2548296, %v4568_v2  ;;  %v3608_v49 = vmul.f32 0.5, %v10262_v42  ;;  %v1937_v54 = vand.u32 65535, %v10133_v50 }
 0x96c   : > { %v4505_v23 = vadd.f32 -0.28449672, %v4441_v44  ;;  %v5270_v60 = vmul.f32 %v5206_v47, %v3606_v51  ;;  %v7843_v58 = vpop.eup %7842  ;;  %v1953_v46 = vand.u32 65535, %v10143_v36  ;;  %v1971_v36 = vcvt.s32.f32 %v1969_v19 }
 0x96d   : > { %v5207_v45 = vadd.f32 1.0, %v5143_v6  ;;  %v4696_v29 = vmul.f32 %v7835_v41, %v4632_v15  ;;  %v3800_v41 = vsel %vm3736_vm4, 1.0, %v12639_v20  ;;  %v1939_v31 = vcvt.s32.f32 %v1937_v54 }
 0x96e   : > { %v4569_v16 = vmul.f32 %v7839_v14, %v4505_v23  ;;  %v1985_v2 = vand.u32 65535, %v10163_v35 }
 0x96f   : > { %v5271_v33 = vmul.f32 %v5207_v45, %v3607_v9  ;;  %v5016_v3 = vmul.f32 %v7843_v58, %v4696_v29  ;;  %v7845_v30 = vpop.eup %7844  ;;  %v2003_v45 = vcvt.s32.f32 %v2001_v12 }
 0x970   : > { %v4633_v5 = vadd.f32 0.2548296, %v4569_v16  ;;  %v1987_v51 = vcvt.s32.f32 %v1985_v2 }
 0x971   : > { %v5320_v37 = vpack.c.bf16 %v5271_v33, %v5270_v60  ;;  %v5080_v11 = vsub.f32 1.0, %v5016_v3  ;;  %v12800_v3 = vld [vmem:[#allocation20_spill] sm:$0xff] }
 0x972   : > { %v4697_v63 = vmul.f32 %v7839_v14, %v4633_v5 }
 0x973   : > { %7576 = vmatprep.mubr.msk.bf16.mxu0 %vm5370_vm5, %v5320_v37  ;;  %v5144_v8 = vmul.f32 %v5080_v11, %v3800_v41  ;;  %v12798_v37 = vld [vmem:[#allocation19_spill] sm:$0xff]  ;;  %v12802_v41 = vld [vmem:[#allocation21_spill] sm:$0xff] }
 0x974   : > { %v10347_v28 = vpop.xlane.xlu0 %1893  ;;  %v5017_v22 = vmul.f32 %v7845_v30, %v4697_v63 }
 0x975   : > { %vm1895_vm6 = vcmp.eq.f32.partialorder %v10111_v53, %v10347_v28  ;;  %v5208_v27 = vadd.f32 1.0, %v5144_v8  ;;  %v1923_v53 = vcvt.s32.f32 %v1921_v13 }
 0x976   : > { %v1896_v0 = vsel %vm1895_vm6, %v1891_v61, inf  ;;  %v5081_v14 = vsub.f32 1.0, %v5017_v22  ;;  %v12804_v22 = vld [vmem:[#allocation22_spill] sm:$0xff] }
 0x977   : > { %1897 = vmin.xlane.f32.xlu0 %v1896_v0  ;;  %v5272_v24 = vmul.f32 %v5208_v27, %v3608_v49  ;;  %v12809_v49 = vld [vmem:[#allocation24_spill] sm:$0xff] }
 0x978   : > { %v1910_v62 = vpop.xlane.xlu1 %1909  ;;  %v5145_v43 = vmul.f32 %v5081_v14, %v3801_v40  ;;  %v12806_v14 = vmov 1.0|1.0  }
 0x979   : > { %vm1911_vm8 = vcmp.eq.f32.partialorder %v10121_v7, %v1910_v62  ;;  %v1916_v60 = vcvt.f32.s32 %v1910_v62 }
 0x97a   : > { %v1912_v17 = vsel %vm1911_vm8, %v1907_v56, inf  ;;  %v5209_v38 = vadd.f32 1.0, %v5145_v43 }
 0x97b   : > { %1913 = vmin.xlane.f32.xlu1 %v1912_v17  ;;  %v12807_v17 = vld [vmem:[#allocation23_spill] sm:$0xff] }
 0x97c   : > { %v1926_v52 = vpop.xlane.xlu0 %1925  ;;  %v5273_v48 = vmul.f32 %v5209_v38, %v3609_v1 }
 0x97d   : > { %vm1927_vm9 = vcmp.eq.f32.partialorder %v10131_v21, %v1926_v52  ;;  %v1955_v21 = vcvt.s32.f32 %v1953_v46  ;;  %v1932_v29 = vcvt.f32.s32 %v1926_v52 }
 0x97e   : > { %v1928_v39 = vsel %vm1927_vm9, %v1923_v53, inf  ;;  %v5321_v7 = vpack.c.bf16 %v5273_v48, %v5272_v24 }
 0x97f   : > { %1929 = vmin.xlane.f32.xlu0 %v1928_v39 }
 0x980   : > { %v10361_v25 = vpop.xlane.xlu1 %1941  ;;  %7577 = vmatmul.mubr.msk.bf16.gmra.mrb[44].mxu0 %vm5370_vm5, %v5321_v7  ;;  %v12811_v7 = vld [vmem:[#allocation26_spill] sm:$0xff] }
 0x981   : > { %vm1943_vm10 = vcmp.eq.f32.partialorder %v10141_v59, %v10361_v25  ;;  %v1948_v34 = vcvt.f32.s32 %v10361_v25 }
 0x982   : > { %v1944_v42 = vsel %vm1943_vm10, %v1939_v31, inf  ;;  %v12813_v31 = vld [vmem:[#allocation25_spill] sm:$0xff] }
 0x983   : > { %1945 = vmin.xlane.f32.xlu1 %v1944_v42  ;;  %v1949_v27 = vshll.u32 %v1948_v34, 16 }
 0x984   : > { %v10367_v50 = vpop.xlane.xlu0 %1957 }
 0x985   : > { %vm1959_vm11 = vcmp.eq.f32.partialorder %v10151_v57, %v10367_v50  ;;  %v1964_v56 = vcvt.f32.s32 %v10367_v50 }
 0x986   : > { %v1960_v47 = vsel %vm1959_vm11, %v1955_v21, inf }
 0x987   : > { %1961 = vmin.xlane.f32.xlu0 %v1960_v47  ;;  %v1965_v54 = vshll.u32 %v1964_v56, 16  ;;  %v10621_v56 = vld [vmem:[#allocation5] ss:$0 sm:$0xff] }
 0x988   : > { %v10372_v6 = vpop.xlane.xlu1 %1973 }
 0x989   : > { %vm1975_vm12 = vcmp.eq.f32.partialorder %v10161_v55, %v10372_v6  ;;  %v1900_v55 = vcvt.f32.s32 %v10347_v28  ;;  %v1933_v28 = vshll.u32 %v1932_v29, 16  ;;  %v1980_v48 = vcvt.f32.s32 %v10372_v6 }
 0x98a   : > { %v1976_v59 = vsel %vm1975_vm12, %v1971_v36, inf  ;;  %v12815_v36 = vld [vmem:[#allocation27_spill] sm:$0xff] }
 0x98b   : > { %1977 = vmin.xlane.f32.xlu1 %v1976_v59  ;;  %v1901_v23 = vshll.u32 %v1900_v55, 16  ;;  %v1981_v47 = vshll.u32 %v1980_v48, 16  ;;  %v12817_v59 = vld [vmem:[#allocation28_spill] sm:$0xff] }
 0x98c   : > { %v10377_v44 = vpop.xlane.xlu0 %1989 }
 0x98d   : > { %vm1991_vm13 = vcmp.eq.f32.partialorder %v10171_v32, %v10377_v44  ;;  %v1917_v32 = vshll.u32 %v1916_v60, 16  ;;  %v1996_v21 = vcvt.f32.s32 %v10377_v44  ;;  %v12821_v60 = vld [vmem:[#allocation29_spill] sm:$0xff] }
 0x98e   : > { %v1992_v57 = vsel %vm1991_vm13, %v1987_v51, inf }
 0x98f   : > { %1993 = vmin.xlane.f32.xlu0 %v1992_v57  ;;  %v1997_v57 = vshll.u32 %v1996_v21, 16 }
 0x990   : > { %v10382_v9 = vpop.xlane.xlu1 %2005 }
 0x991   : > { %vm2007_vm14 = vcmp.eq.f32.partialorder %v10177_v26, %v10382_v9 }
 0x992   : > { %v2008_v35 = vsel %vm2007_vm14, %v2003_v45, inf }
 0x993   : > { %2009 = vmin.xlane.f32.xlu1 %v2008_v35  ;;  %v2012_v35 = vcvt.f32.s32 %v10382_v9 }
 0xa04   : > { %v1898_v15 = vpop.xlane.xlu0 %1897 }
 0xa05   : > { %v1899_v33 = vcvt.f32.s32 %v1898_v15  ;;  %v12819_v15 = vld [vmem:[#allocation30_spill] sm:$0xff] }
 0xa07   : > { %v1902_v18 = vadd.s32 %v1901_v23, %v1899_v33 }
 0xa08   : > { %v1914_v16 = vpop.xlane.xlu1 %1913 }
 0xa09   : > { %vm2015_vm15 = vcmp.eq.s32.totalorder %v8545_v10, %v1902_v18  ;;  %vm2016_vm0 = vcmp.eq.s32.totalorder %v12797_v4, %v1902_v18  ;;  %v1915_v58 = vcvt.f32.s32 %v1914_v16  ;;  %v2013_v16 = vshll.u32 %v2012_v35, 16 }
 0xa0a   : > { %v10392_v26 = vsel %vm2015_vm15, inf, %v12798_v37  ;;  %v10395_v5 = vsel %vm2016_vm0, inf, %v12800_v3  ;;  %v12825_v3 = vld [vmem:[#allocation32_spill] sm:$0xff] }
 0xa0b   : > { %12799 = vst [vmem:[#allocation39_spill] sm:$0xff] %v10392_v26  ;;  %12801 = vst [vmem:[#allocation47_spill] sm:$0xff] %v10395_v5  ;;  %v1918_v11 = vadd.s32 %v1917_v32, %v1915_v58  ;;  %v2098_v63 = vmin.f32 %v10392_v26, %v10395_v5  ;;  %v12823_v58 = vld [vmem:[#allocation31_spill] sm:$0xff] }
 0xa0c   : > { %v1930_v61 = vpop.xlane.xlu0 %1929 }
 0xa0d   : > { %v1931_v30 = vcvt.f32.s32 %v1930_v61  ;;  %2099 = vmin.xlane.f32.xlu0 %v2098_v63  ;;  %vm2018_vm1 = vcmp.eq.s32.totalorder %v12797_v4, %v1918_v11  ;;  %vm2017_vm2 = vcmp.eq.s32.totalorder %v8545_v10, %v1918_v11  ;;  %v12827_v61 = vld [vmem:[#allocation34_spill] sm:$0xff] }
 0xa0e   : > { %v10403_v8 = vsel %vm2018_vm1, inf, %v12802_v41  ;;  %vm7440_vm3 = vmpackc.low %vm2018_vm1, %vm2016_vm0  ;;  %v10406_v0 = vsel %vm2017_vm2, inf, %v12804_v22 }
 0xa0f   : > { %12803 = vst [vmem:[#allocation40_spill] sm:$0xff] %v10403_v8  ;;  %12805 = vst [vmem:[#allocation48_spill] sm:$0xff] %v10406_v0  ;;  %v1934_v13 = vadd.s32 %v1933_v28, %v1931_v30  ;;  %7441 = vmatprep.mubr.msk.bf16.mxu1 %vm7440_vm3, %v12806_v14  ;;  %v2101_v62 = vmin.f32 %v10406_v0, %v10403_v8  ;;  %v12829_v30 = vld [vmem:[#allocation33_spill] sm:$0xff] }
 0xa10   : > { %vm7442_vm4 = vmpackc.low %vm2017_vm2, %vm2015_vm15  ;;  %v1946_v40 = vpop.xlane.xlu1 %1945 }
 0xa11   : > { %7443 = vmatmul.mubr.msk.bf16.gmra.mrb[64].mxu1 %vm7442_vm4, %v12806_v14  ;;  %vm2019_vm6 = vcmp.eq.s32.totalorder %v8545_v10, %v1934_v13  ;;  %vm2020_vm7 = vcmp.eq.s32.totalorder %v12797_v4, %v1934_v13  ;;  %v1947_v43 = vcvt.f32.s32 %v1946_v40  ;;  %2102 = vmin.xlane.f32.xlu1 %v2101_v62 }
 0xa12   : > { %v10420_v53 = vsel %vm2019_vm6, inf, %v12807_v17  ;;  %v10425_v1 = vsel %vm2020_vm7, inf, %v12809_v49 }
 0xa13   : > { %12808 = vst [vmem:[#allocation41_spill] sm:$0xff] %v10420_v53  ;;  %12810 = vst [vmem:[#allocation49_spill] sm:$0xff] %v10425_v1  ;;  %v1950_v38 = vadd.s32 %v1949_v27, %v1947_v43  ;;  %v2104_v52 = vmin.f32 %v10420_v53, %v10425_v1 }
 0xa14   : > { %v1962_v24 = vpop.xlane.xlu0 %1961 }
 0xa15   : > { %v1963_v39 = vcvt.f32.s32 %v1962_v24  ;;  %2105 = vmin.xlane.f32.xlu0 %v2104_v52  ;;  %vm2022_vm8 = vcmp.eq.s32.totalorder %v12797_v4, %v1950_v38  ;;  %vm2021_vm9 = vcmp.eq.s32.totalorder %v8545_v10, %v1950_v38  ;;  %v10617_v38 = vld [vmem:[#allocation3] ss:$0 sm:$0xff] }
 0xa16   : > { %v10433_v25 = vsel %vm2022_vm8, inf, %v12811_v7  ;;  %vm7444_vm10 = vmpackc.low %vm2022_vm8, %vm2020_vm7  ;;  %v10438_v46 = vsel %vm2021_vm9, inf, %v12813_v31 }
 0xa17   : > { %12812 = vst [vmem:[#allocation42_spill] sm:$0xff] %v10433_v25  ;;  %12814 = vst [vmem:[#allocation50_spill] sm:$0xff] %v10438_v46  ;;  %v1966_v42 = vadd.s32 %v1965_v54, %v1963_v39  ;;  %7445 = vmatprep.mubr.msk.bf16.mxu1 %vm7444_vm10, %v12806_v14  ;;  %v2107_v50 = vmin.f32 %v10438_v46, %v10433_v25  ;;  %v8041_v39 = vld [vmem:[%s8895_s26 + $0x18] sm:$0xff] }
 0xa18   : > { %vm7446_vm11 = vmpackc.low %vm2021_vm9, %vm2019_vm6  ;;  %v1978_v19 = vpop.xlane.xlu1 %1977 }
 0xa19   : > { %7447 = vmatmul.mubr.msk.bf16.gmra.mrb[68].mxu1 %vm7446_vm11, %v12806_v14  ;;  %vm2023_vm12 = vcmp.eq.s32.totalorder %v8545_v10, %v1966_v42  ;;  %vm2024_vm13 = vcmp.eq.s32.totalorder %v12797_v4, %v1966_v42  ;;  %v1979_v6 = vcvt.f32.s32 %v1978_v19  ;;  %2108 = vmin.xlane.f32.xlu1 %v2107_v50 }
 0xa1a   : > { %v10452_v2 = vsel %vm2023_vm12, inf, %v12815_v36  ;;  %v10457_v51 = vsel %vm2024_vm13, inf, %v12817_v59 }
 0xa1b   : > { %12816 = vst [vmem:[#allocation19_spill] sm:$0xff] %v10452_v2  ;;  %12818 = vst [vmem:[#allocation20_spill] sm:$0xff] %v10457_v51  ;;  %v1982_v44 = vadd.s32 %v1981_v47, %v1979_v6  ;;  %v2110_v12 = vmin.f32 %v10452_v2, %v10457_v51  ;;  %v8036_v47 = vld [vmem:[%s8895_s26] sm:$0xff] }
 0xa1c   : > { %v1994_v45 = vpop.xlane.xlu0 %1993 }
 0xa1d   : > { %v1995_v55 = vcvt.f32.s32 %v1994_v45  ;;  %2111 = vmin.xlane.f32.xlu0 %v2110_v12  ;;  %vm2026_vm14 = vcmp.eq.s32.totalorder %v12797_v4, %v1982_v44  ;;  %vm2025_vm15 = vcmp.eq.s32.totalorder %v8545_v10, %v1982_v44 }
 0xa1e   : > { %v10465_v23 = vsel %vm2026_vm14, inf, %v12819_v15  ;;  %vm7448_vm0 = vmpackc.low %vm2026_vm14, %vm2024_vm13  ;;  %v10470_v33 = vsel %vm2025_vm15, inf, %v12821_v60 }
 0xa1f   : > { %12820 = vst [vmem:[#allocation21_spill] sm:$0xff] %v10465_v23  ;;  %12822 = vst [vmem:[#allocation22_spill] sm:$0xff] %v10470_v33  ;;  %v1998_v18 = vadd.s32 %v1997_v57, %v1995_v55  ;;  %7449 = vmatprep.mubr.msk.bf16.mxu1 %vm7448_vm0, %v12806_v14  ;;  %v2113_v9 = vmin.f32 %v10470_v33, %v10465_v23 }
 0xa20   : > { %vm7450_vm1 = vmpackc.low %vm2025_vm15, %vm2023_vm12  ;;  %v2010_v29 = vpop.xlane.xlu1 %2009 }
 0xa21   : > { %7451 = vmatmul.mubr.msk.bf16.gmra.mrb[72].mxu1 %vm7450_vm1, %v12806_v14  ;;  %vm2027_vm2 = vcmp.eq.s32.totalorder %v8545_v10, %v1998_v18  ;;  %vm2028_vm3 = vcmp.eq.s32.totalorder %v12797_v4, %v1998_v18  ;;  %v2011_v32 = vcvt.f32.s32 %v2010_v29  ;;  %2114 = vmin.xlane.f32.xlu1 %v2113_v9 }
 0xa22   : > { %v10483_v37 = vsel %vm2027_vm2, inf, %v12823_v58  ;;  %v10486_v11 = vsel %vm2028_vm3, inf, %v12825_v3 }
 0xa23   : > { %12824 = vst [vmem:[#allocation23_spill] sm:$0xff] %v10483_v37  ;;  %12826 = vst [vmem:[#allocation24_spill] sm:$0xff] %v10486_v11  ;;  %v2014_v63 = vadd.s32 %v2013_v16, %v2011_v32  ;;  %v2116_v28 = vmin.f32 %v10483_v37, %v10486_v11 }
 0xa25   : > { %2117 = vmin.xlane.f32.xlu0 %v2116_v28  ;;  %vm2030_vm4 = vcmp.eq.s32.totalorder %v12797_v4, %v2014_v63  ;;  %vm2029_vm6 = vcmp.eq.s32.totalorder %v8545_v10, %v2014_v63 }
 0xa26   : > { %v10493_v34 = vsel %vm2030_vm4, inf, %v12827_v61  ;;  %vm7452_vm7 = vmpackc.low %vm2030_vm4, %vm2028_vm3  ;;  %v10496_v41 = vsel %vm2029_vm6, inf, %v12829_v30 }
 0xa27   : > { %12828 = vst [vmem:[#allocation26_spill] sm:$0xff] %v10493_v34  ;;  %12830 = vst [vmem:[#allocation25_spill] sm:$0xff] %v10496_v41  ;;  %7453 = vmatprep.mubr.msk.bf16.mxu1 %vm7452_vm7, %v12806_v14  ;;  %v2119_v22 = vmin.f32 %v10496_v41, %v10493_v34 }
 0xa28   : > { %vm7454_vm8 = vmpackc.low %vm2029_vm6, %vm2027_vm2 }
 0xa29   : > { %7455 = vmatmul.mubr.msk.bf16.gmra.mrb[76].mxu1 %vm7454_vm8, %v12806_v14  ;;  %2120 = vmin.xlane.f32.xlu1 %v2119_v22 }
 0xa3e   : > { %v10504_v13 = vpop.f32.mrb[40].mxu0 }
 0xa3f   : > { %12831 = vst [vmem:[#allocation27_spill] sm:$0xff] %v10504_v13  ;;  %v10508_v40 = vpop.f32.mrb[41].mxu0 }
 0xa40   : > { %12833 = vst [vmem:[#allocation28_spill] sm:$0xff] %v10508_v40  ;;  %v10512_v17 = vpop.f32.mrb[42].mxu0 }
 0xa41   : > { %12835 = vst [vmem:[#allocation30_spill] sm:$0xff] %v10512_v17  ;;  %v10516_v52 = vpop.f32.mrb[43].mxu0  ;;  %v8042_v17 = vld [vmem:[%s8895_s26 + $0x20] sm:$0xff] }
 0xa42   : > { %12837 = vst [vmem:[#allocation29_spill] sm:$0xff] %v10516_v52 }
 0xa53   : > { %v10520_v48 = vpop.f32.mrb[44].mxu0 }
 0xa54   : > { %12839 = vst [vmem:[#allocation31_spill] sm:$0xff] %v10520_v48  ;;  %v10524_v31 = vpop.f32.mrb[45].mxu0 }
 0xa55   : > { %12841 = vst [vmem:[#allocation32_spill] sm:$0xff] %v10524_v31  ;;  %v10528_v21 = vpop.f32.mrb[46].mxu0 }
 0xa56   : > { %12843 = vst [vmem:[#allocation34_spill] sm:$0xff] %v10528_v21  ;;  %v10532_v6 = vpop.f32.mrb[47].mxu0 }
 0xa57   : > { %12845 = vst [vmem:[#allocation33_spill] sm:$0xff] %v10532_v6 }
 0xa9a   : > { %v2100_v44 = vpop.xlane.xlu0 %2099 }
 0xa9b   : > { %vm2122_vm9 = vcmp.le.f32.partialorder %v10392_v26, %v2100_v44  ;;  %vm2123_vm10 = vcmp.le.f32.partialorder %v10395_v5, %v2100_v44 }
 0xa9c   : > { %v2138_v12 = vsel %vm2122_vm9, %v8545_v10, 256  ;;  %v2139_v57 = vsel %vm2123_vm10, %v12797_v4, 256 }
 0xa9d   : > { %vm2154_vm11 = vcmp.lt.s32.totalorder %v2138_v12, %v2139_v57 }
 0xa9e   : > { %v10540_v45 = vsel %vm2154_vm11, %v2138_v12, %v2139_v57  ;;  %v2103_v35 = vpop.xlane.xlu1 %2102 }
 0xa9f   : > { %vm2124_vm12 = vcmp.le.f32.partialorder %v10406_v0, %v2103_v35  ;;  %vm2125_vm13 = vcmp.le.f32.partialorder %v10403_v8, %v2103_v35  ;;  %v2157_v55 = vshra.s32 %v10540_v45, 16 }
 0xaa0   : > { %v2140_v15 = vsel %vm2124_vm12, %v8545_v10, 256  ;;  %v2141_v60 = vsel %vm2125_vm13, %v12797_v4, 256 }
 0xaa1   : > { %vm2170_vm14 = vcmp.lt.s32.totalorder %v2140_v15, %v2141_v60  ;;  %v10547_v18 = vcvt.s32.f32 %v2157_v55 }
 0xaa2   : > { %v10549_v9 = vsel %vm2170_vm14, %v2140_v15, %v2141_v60  ;;  %v2106_v29 = vpop.xlane.xlu0 %2105 }
 0xaa3   : > { %vm2126_vm15 = vcmp.le.f32.partialorder %v10420_v53, %v2106_v29  ;;  %vm2127_vm0 = vcmp.le.f32.partialorder %v10425_v1, %v2106_v29  ;;  %2160 = vmin.xlane.f32.xlu0 %v10547_v18  ;;  %v2173_v16 = vshra.s32 %v10549_v9, 16  ;;  %v8045_v1 = vld [vmem:[%s8895_s26 + $0x38] sm:$0xff] }
 0xaa4   : > { %v2142_v32 = vsel %vm2126_vm15, %v8545_v10, 256  ;;  %v2143_v58 = vsel %vm2127_vm0, %v12797_v4, 256 }
 0xaa5   : > { %vm2186_vm1 = vcmp.lt.s32.totalorder %v2142_v32, %v2143_v58  ;;  %v10557_v3 = vcvt.s32.f32 %v2173_v16 }
 0xaa6   : > { %v10559_v63 = vsel %vm2186_vm1, %v2142_v32, %v2143_v58  ;;  %v2109_v28 = vpop.xlane.xlu1 %2108 }
 0xaa7   : > { %vm2128_vm2 = vcmp.le.f32.partialorder %v10438_v46, %v2109_v28  ;;  %vm2129_vm3 = vcmp.le.f32.partialorder %v10433_v25, %v2109_v28  ;;  %2176 = vmin.xlane.f32.xlu1 %v10557_v3  ;;  %v2189_v61 = vshra.s32 %v10559_v63, 16 }
 0xaa8   : > { %v2144_v30 = vsel %vm2128_vm2, %v8545_v10, 256  ;;  %v2145_v22 = vsel %vm2129_vm3, %v12797_v4, 256 }
 0xaa9   : > { %vm2202_vm4 = vcmp.lt.s32.totalorder %v2144_v30, %v2145_v22  ;;  %v10567_v44 = vcvt.s32.f32 %v2189_v61 }
 0xaaa   : > { %v10569_v12 = vsel %vm2202_vm4, %v2144_v30, %v2145_v22  ;;  %v2112_v57 = vpop.xlane.xlu0 %2111 }
 0xaab   : > { %vm2130_vm6 = vcmp.le.f32.partialorder %v10452_v2, %v2112_v57  ;;  %vm2131_vm7 = vcmp.le.f32.partialorder %v10457_v51, %v2112_v57  ;;  %2192 = vmin.xlane.f32.xlu0 %v10567_v44  ;;  %v2205_v35 = vshra.s32 %v10569_v12, 16 }
 0xaac   : > { %v2146_v55 = vsel %vm2130_vm6, %v8545_v10, 256  ;;  %v2147_v15 = vsel %vm2131_vm7, %v12797_v4, 256 }
 0xaad   : > { %vm2218_vm8 = vcmp.lt.s32.totalorder %v2146_v55, %v2147_v15  ;;  %v10577_v60 = vcvt.s32.f32 %v2205_v35 }
 0xaae   : > { %v10579_v29 = vsel %vm2218_vm8, %v2146_v55, %v2147_v15  ;;  %v2115_v16 = vpop.xlane.xlu1 %2114 }
 0xaaf   : > { %vm2132_vm9 = vcmp.le.f32.partialorder %v10470_v33, %v2115_v16  ;;  %vm2133_vm10 = vcmp.le.f32.partialorder %v10465_v23, %v2115_v16  ;;  %2208 = vmin.xlane.f32.xlu1 %v10577_v60  ;;  %v2221_v32 = vshra.s32 %v10579_v29, 16 }
 0xab0   : > { %v2148_v58 = vsel %vm2132_vm9, %v8545_v10, 256  ;;  %v2149_v28 = vsel %vm2133_vm10, %v12797_v4, 256 }
 0xab1   : > { %vm2234_vm11 = vcmp.lt.s32.totalorder %v2148_v58, %v2149_v28  ;;  %v10587_v61 = vcvt.s32.f32 %v2221_v32 }
 0xab2   : > { %v10589_v30 = vsel %vm2234_vm11, %v2148_v58, %v2149_v28  ;;  %v2118_v22 = vpop.xlane.xlu0 %2117 }
 0xab3   : > { %vm2134_vm12 = vcmp.le.f32.partialorder %v10483_v37, %v2118_v22  ;;  %vm2135_vm13 = vcmp.le.f32.partialorder %v10486_v11, %v2118_v22  ;;  %2224 = vmin.xlane.f32.xlu0 %v10587_v61  ;;  %v2237_v57 = vshra.s32 %v10589_v30, 16 }
 0xab4   : > { %v2150_v35 = vsel %vm2134_vm12, %v8545_v10, 256  ;;  %v2151_v55 = vsel %vm2135_vm13, %v12797_v4, 256 }
 0xab5   : > { %vm2250_vm14 = vcmp.lt.s32.totalorder %v2150_v35, %v2151_v55  ;;  %v10597_v15 = vcvt.s32.f32 %v2237_v57 }
 0xab6   : > { %v10599_v16 = vsel %vm2250_vm14, %v2150_v35, %v2151_v55  ;;  %v2121_v32 = vpop.xlane.xlu1 %2120 }
 0xab7   : > { %vm2136_vm15 = vcmp.le.f32.partialorder %v10496_v41, %v2121_v32  ;;  %vm2137_vm0 = vcmp.le.f32.partialorder %v10493_v34, %v2121_v32  ;;  %2240 = vmin.xlane.f32.xlu1 %v10597_v15  ;;  %v2253_v58 = vshra.s32 %v10599_v16, 16 }
 0xab8   : > { %v2152_v28 = vsel %vm2136_vm15, %v8545_v10, 256  ;;  %v2153_v22 = vsel %vm2137_vm0, %v12797_v4, 256 }
 0xab9   : > { %vm2266_vm1 = vcmp.lt.s32.totalorder %v2152_v28, %v2153_v22  ;;  %v10607_v57 = vcvt.s32.f32 %v2253_v58 }
 0xaba   : > { %v10609_v35 = vsel %vm2266_vm1, %v2152_v28, %v2153_v22  ;;  %v8038_v28 = vld [vmem:[%s8895_s26 + $0x8] sm:$0xff] }
 0xabb   : > { %2256 = vmin.xlane.f32.xlu0 %v10607_v57  ;;  %v2269_v55 = vshra.s32 %v10609_v35, 16 }
 0xabd   : > { %v10613_v59 = vcvt.s32.f32 %v2269_v55 }
 0xabf   : > { %2272 = vmin.xlane.f32.xlu1 %v10613_v59 }
 0xae4   : > { %v3237_v32 = vpop.f32.mrb[64].mxu1 }
 0xae5   : > { %v3404_v50 = vadd.f32 %v8036_v47, %v3237_v32  ;;  %v3239_v7 = vpop.f32.mrb[65].mxu1 }
 0xae6   : > { %v3240_v24 = vpop.f32.mrb[66].mxu1 }
 0xae7   : > { %v3475_v58 = vmul.f32 %v10617_v38, %v3404_v50  ;;  %v3405_v22 = vadd.f32 %v8038_v28, %v3240_v24  ;;  %v3242_v43 = vpop.f32.mrb[67].mxu1 }
 0xae8   : > { %v8040_v43 = vld [vmem:[%s8895_s26 + $0x10] sm:$0xff] }
 0xae9   : > { %v10624_v55 = vadd.f32 %v10621_v56, %v3475_v58  ;;  %v3476_v6 = vmul.f32 %v10617_v38, %v3405_v22 }
 0xaeb   : > { %v10628_v36 = vmul.f32 0.70710677, %v10624_v55  ;;  %v10631_v7 = vadd.f32 %v10621_v56, %v3476_v6 }
 0xaec   : > { %v3245_v47 = vpop.f32.mrb[68].mxu1 }
 0xaed   : > { %v3866_v50 = vand.u32 2147483647, %v10628_v36  ;;  %v10635_v24 = vmul.f32 0.70710677, %v10631_v7  ;;  %v3406_v32 = vadd.f32 %v8040_v43, %v3245_v47  ;;  %v3247_v28 = vpop.f32.mrb[69].mxu1  ;;  %vm3738_vm2 = vcmp.ge.f32.partialorder %v10628_v36, 0.0 }
 0xaee   : > { %v3248_v19 = vpop.f32.mrb[70].mxu1 }
 0xaef   : > { %v3930_v58 = vmul.f32 0.3275911, %v3866_v50  ;;  %v3867_v22 = vand.u32 2147483647, %v10635_v24  ;;  %v3477_v21 = vmul.f32 %v10617_v38, %v3406_v32  ;;  %v3250_v6 = vpop.f32.mrb[71].mxu1  ;;  %v3407_v52 = vadd.f32 %v8041_v39, %v3248_v19 }
 0xaf0   : > { %v4762_v40 = vsub.f32 0.0, %v3866_v50  ;;  %vm3739_vm3 = vcmp.ge.f32.partialorder %v10635_v24, 0.0 }
 0xaf1   : > { %v3994_v31 = vadd.f32 1.0, %v3930_v58  ;;  %v3931_v42 = vmul.f32 0.3275911, %v3867_v22  ;;  %v10641_v48 = vadd.f32 %v10621_v56, %v3477_v21  ;;  %v3478_v43 = vmul.f32 %v10617_v38, %v3407_v52 }
 0xaf3   : > { %7846 = vrcp.f32 %v3994_v31  ;;  %v3995_v54 = vadd.f32 1.0, %v3931_v42  ;;  %v10645_v47 = vmul.f32 0.70710677, %v10641_v48  ;;  %v10651_v21 = vadd.f32 %v10621_v56, %v3478_v43  ;;  %v8043_v31 = vld [vmem:[%s8895_s26 + $0x28] sm:$0xff] }
 0xaf4   : > { %v3253_v28 = vpop.f32.mrb[72].mxu1 }
 0xaf5   : > { %v3408_v32 = vadd.f32 %v8042_v17, %v3253_v28  ;;  %v3255_v49 = vpop.f32.mrb[73].mxu1  ;;  %7848 = vrcp.f32 %v3995_v54  ;;  %v3868_v58 = vand.u32 2147483647, %v10645_v47  ;;  %v10656_v52 = vmul.f32 0.70710677, %v10651_v21 }
 0xaf6   : > { %v3256_v6 = vpop.f32.mrb[74].mxu1  ;;  %v4763_v28 = vsub.f32 0.0, %v3867_v22  ;;  %vm3740_vm4 = vcmp.ge.f32.partialorder %v10645_v47, 0.0 }
 0xaf7   : > { %v3479_v39 = vmul.f32 %v10617_v38, %v3408_v32  ;;  %v3409_v42 = vadd.f32 %v8043_v31, %v3256_v6  ;;  %v3258_v19 = vpop.f32.mrb[75].mxu1  ;;  %v3932_v27 = vmul.f32 0.3275911, %v3868_v58  ;;  %v3869_v43 = vand.u32 2147483647, %v10656_v52 }
 0xaf8   : > { %v4826_v6 = vmul.f32 %v4762_v40, %v3866_v50  ;;  %v4827_v11 = vmul.f32 %v4763_v28, %v3867_v22  ;;  %v4764_v33 = vsub.f32 0.0, %v3868_v58  ;;  %v8044_v28 = vld [vmem:[%s8895_s26 + $0x30] sm:$0xff]  ;;  %vm3741_vm6 = vcmp.ge.f32.partialorder %v10656_v52, 0.0 }
 0xaf9   : > { %v10659_v17 = vadd.f32 %v10621_v56, %v3479_v39  ;;  %v3480_v49 = vmul.f32 %v10617_v38, %v3409_v42  ;;  %v3996_v54 = vadd.f32 1.0, %v3932_v27  ;;  %v3933_v31 = vmul.f32 0.3275911, %v3869_v43 }
 0xafa   : > { %v4922_v37 = vmul.f32 1.442695, %v4826_v6  ;;  %v4765_v2 = vsub.f32 0.0, %v3869_v43  ;;  %v4924_v6 = vmul.f32 1.442695, %v4827_v11  ;;  %v4828_v14 = vmul.f32 %v4764_v33, %v3868_v58 }
 0xafb   : > { %v10664_v13 = vmul.f32 0.70710677, %v10659_v17  ;;  %v10667_v32 = vadd.f32 %v10621_v56, %v3480_v49  ;;  %7850 = vrcp.f32 %v3996_v54  ;;  %v3997_v41 = vadd.f32 1.0, %v3933_v31 }
 0xafc   : > { %v3261_v19 = vpop.f32.mrb[76].mxu1  ;;  %v4829_v8 = vmul.f32 %v4765_v2, %v3869_v43  ;;  %v4926_v33 = vmul.f32 1.442695, %v4828_v14  ;;  %v3803_v14 = vsel %vm3739_vm3, 1.0, %v12639_v20 }
 0xafd   : > { %v10669_v62 = vpop.eup %7846  ;;  %v10672_v39 = vand.u32 2147483647, %v10664_v13  ;;  %v10675_v27 = vmul.f32 0.70710677, %v10667_v32  ;;  %v3263_v34 = vpop.f32.mrb[77].mxu1  ;;  %7852 = vrcp.f32 %v3997_v41  ;;  %v3410_v25 = vadd.f32 %v8044_v28, %v3261_v19 }
 0xafe   : > { %v4186_v42 = vmul.f32 1.0614054, %v10669_v62  ;;  %v3264_v40 = vpop.f32.mrb[78].mxu1  ;;  %v10684_v34 = vmul.f32 0.5, %v10624_v55  ;;  %v4928_v58 = vmul.f32 1.442695, %v4829_v8 }
 0xaff   : > { %v3934_v49 = vmul.f32 0.3275911, %v10672_v39  ;;  %v10679_v50 = vpop.eup %7848  ;;  %v3266_v23 = vpop.f32.mrb[79].mxu1  ;;  %v3871_v31 = vand.u32 2147483647, %v10675_v27  ;;  %v3411_v53 = vadd.f32 %v8045_v1, %v3264_v40  ;;  %v3481_v0 = vmul.f32 %v10617_v38, %v3410_v25 }
 0xb00   : > { %v4250_v54 = vadd.f32 -1.4531521, %v4186_v42  ;;  %v4187_v51 = vmul.f32 1.0614054, %v10679_v50  ;;  %vm3742_vm7 = vcmp.ge.f32.partialorder %v10664_v13, 0.0  ;;  %vm3743_vm8 = vcmp.ge.f32.partialorder %v10675_v27, 0.0 }
 0xb01   : > { %v3998_v46 = vadd.f32 1.0, %v3934_v49  ;;  %v3935_v41 = vmul.f32 0.3275911, %v3871_v31  ;;  %v3482_v49 = vmul.f32 %v10617_v38, %v3411_v53  ;;  %v4767_v19 = vsub.f32 0.0, %v3871_v31 }
 0xb02   : > { %v4314_v22 = vmul.f32 %v10669_v62, %v4250_v54  ;;  %v4251_v42 = vadd.f32 -1.4531521, %v4187_v51  ;;  %v3806_v52 = vsel %vm3742_vm7, 1.0, %v12639_v20 }
 0xb03   : > { %7854 = vrcp.f32 %v3998_v46  ;;  %v3999_v5 = vadd.f32 1.0, %v3935_v41  ;;  %v10698_v46 = vadd.f32 %v10621_v56, %v3481_v0  ;;  %v10702_v53 = vadd.f32 %v10621_v56, %v3482_v49 }
 0xb04   : > { %v4378_v23 = vadd.f32 1.4214138, %v4314_v22  ;;  %7856 = vpow2.f32 %v4922_v37  ;;  %v4315_v55 = vmul.f32 %v10679_v50, %v4251_v42  ;;  %v4766_v37 = vsub.f32 0.0, %v10672_v39 }
 0xb05   : > { %v10692_v54 = vpop.eup %7850  ;;  %7858 = vrcp.f32 %v3999_v5  ;;  %v10707_v43 = vmul.f32 0.70710677, %v10698_v46  ;;  %v3802_v5 = vsel %vm3738_vm2, 1.0, %v12639_v20  ;;  %v10721_v28 = vmul.f32 0.70710677, %v10702_v53 }
 0xb06   : > { %v4442_v1 = vmul.f32 %v10669_v62, %v4378_v23  ;;  %v4379_v51 = vadd.f32 1.4214138, %v4315_v55  ;;  %v4188_v25 = vmul.f32 1.0614054, %v10692_v54  ;;  %7860 = vpow2.f32 %v4924_v6 }
 0xb07   : > { %v10709_v0 = vpop.eup %7852  ;;  %7862 = vpow2.f32 %v4926_v33  ;;  %v4830_v36 = vmul.f32 %v4766_v37, %v10672_v39  ;;  %v10725_v6 = vand.u32 2147483647, %v10707_v43  ;;  %vm3744_vm9 = vcmp.ge.f32.partialorder %v10707_v43, 0.0 }
 0xb08   : > { %v4506_v2 = vadd.f32 -0.28449672, %v4442_v1  ;;  %v4443_v11 = vmul.f32 %v10679_v50, %v4379_v51  ;;  %v4252_v38 = vadd.f32 -1.4531521, %v4188_v25  ;;  %v4189_v8 = vmul.f32 1.0614054, %v10709_v0 }
 0xb09   : > { %7864 = vpow2.f32 %v4928_v58  ;;  %v4831_v51 = vmul.f32 %v4767_v19, %v3871_v31  ;;  %v3936_v25 = vmul.f32 0.3275911, %v10725_v6  ;;  %vm3745_vm11 = vcmp.ge.f32.partialorder %v10721_v28, 0.0 }
 0xb0a   : > { %v4570_v56 = vmul.f32 %v10669_v62, %v4506_v2  ;;  %v4507_v40 = vadd.f32 -0.28449672, %v4443_v11  ;;  %v4316_v22 = vmul.f32 %v10692_v54, %v4252_v38  ;;  %v4253_v49 = vadd.f32 -1.4531521, %v4189_v8 }
 0xb0b   : > { %v10736_v11 = vand.u32 2147483647, %v10721_v28  ;;  %v4000_v58 = vadd.f32 1.0, %v3936_v25  ;;  %v3617_v28 = vmul.f32 0.5, %v10702_v53  ;;  %v2236_v53 = vand.u32 65535, %v10589_v30 }
 0xb0c   : > { %v4634_v42 = vadd.f32 0.2548296, %v4570_v56  ;;  %v4571_v24 = vmul.f32 %v10679_v50, %v4507_v40  ;;  %v4380_v23 = vadd.f32 1.4214138, %v4316_v22  ;;  %v4317_v37 = vmul.f32 %v10709_v0, %v4253_v49 }
 0xb0d   : > { %v10727_v41 = vpop.eup %7854  ;;  %v4930_v40 = vmul.f32 1.442695, %v4830_v36  ;;  %v3937_v8 = vmul.f32 0.3275911, %v10736_v11  ;;  %7866 = vrcp.f32 %v4000_v58  ;;  %v4769_v47 = vsub.f32 0.0, %v10736_v11 }
 0xb0e   : > { %v4698_v55 = vmul.f32 %v10669_v62, %v4634_v42  ;;  %v4190_v1 = vmul.f32 1.0614054, %v10727_v41  ;;  %v7857_v2 = vpop.eup %7856  ;;  %v4635_v33 = vadd.f32 0.2548296, %v4571_v24  ;;  %v4444_v39 = vmul.f32 %v10692_v54, %v4380_v23 }
 0xb0f   : > { %v10738_v22 = vpop.eup %7858  ;;  %v4381_v19 = vadd.f32 1.4214138, %v4317_v37  ;;  %7868 = vpow2.f32 %v4930_v40  ;;  %v2268_v30 = vand.u32 65535, %v10609_v35 }
 0xb10   : > { %v5018_v38 = vmul.f32 %v7857_v2, %v4698_v55  ;;  %v4254_v56 = vadd.f32 -1.4531521, %v4190_v1  ;;  %v4699_v62 = vmul.f32 %v10679_v50, %v4635_v33  ;;  %v4508_v31 = vadd.f32 -0.28449672, %v4444_v39  ;;  %v7861_v42 = vpop.eup %7860 }
 0xb11   : > { %v4191_v49 = vmul.f32 1.0614054, %v10738_v22  ;;  %v4445_v36 = vmul.f32 %v10709_v0, %v4381_v19  ;;  %v4932_v1 = vmul.f32 1.442695, %v4831_v51  ;;  %v4001_v33 = vadd.f32 1.0, %v3937_v8 }
 0xb12   : > { %v5082_v24 = vsub.f32 1.0, %v5018_v38  ;;  %v4318_v23 = vmul.f32 %v10727_v41, %v4254_v56  ;;  %v5019_v26 = vmul.f32 %v7861_v42, %v4699_v62  ;;  %v4572_v55 = vmul.f32 %v10692_v54, %v4508_v31  ;;  %v7863_v38 = vpop.eup %7862 }
 0xb13   : > { %v4255_v50 = vadd.f32 -1.4531521, %v4191_v49  ;;  %v4509_v4 = vadd.f32 -0.28449672, %v4445_v36  ;;  %7870 = vrcp.f32 %v4001_v33  ;;  %v7865_v62 = vpop.eup %7864  ;;  %v4768_v19 = vsub.f32 0.0, %v10725_v6 }
 0xb14   : > { %v5146_v25 = vmul.f32 %v5082_v24, %v3802_v5  ;;  %v4382_v2 = vadd.f32 1.4214138, %v4318_v23  ;;  %v5083_v39 = vsub.f32 1.0, %v5019_v26  ;;  %v4636_v37 = vadd.f32 0.2548296, %v4572_v55 }
 0xb15   : > { %v4319_v58 = vmul.f32 %v10738_v22, %v4255_v50  ;;  %v4573_v5 = vmul.f32 %v10709_v0, %v4509_v4  ;;  %v3611_v8 = vmul.f32 0.5, %v10631_v7  ;;  %7872 = vpow2.f32 %v4932_v1 }
 0xb16   : > { %v4446_v56 = vmul.f32 %v10727_v41, %v4382_v2  ;;  %v5147_v31 = vmul.f32 %v5083_v39, %v3803_v14  ;;  %v4700_v51 = vmul.f32 %v10692_v54, %v4636_v37  ;;  %v5210_v26 = vadd.f32 1.0, %v5146_v25 }
 0xb17   : > { %v4383_v42 = vadd.f32 1.4214138, %v4319_v58  ;;  %v4637_v49 = vadd.f32 0.2548296, %v4573_v5  ;;  %v3804_v55 = vsel %vm3740_vm4, 1.0, %v12639_v20  ;;  %v4832_v25 = vmul.f32 %v4768_v19, %v10725_v6  ;;  %v7867_v2 = vpop.eup %7866 }
 0xb18   : > { %v4510_v40 = vadd.f32 -0.28449672, %v4446_v56  ;;  %v5211_v24 = vadd.f32 1.0, %v5147_v31  ;;  %v5020_v23 = vmul.f32 %v7863_v38, %v4700_v51  ;;  %v5274_v50 = vmul.f32 %v5210_v26, %v10684_v34 }
 0xb19   : > { %v4447_v4 = vmul.f32 %v10738_v22, %v4383_v42  ;;  %v4701_v7 = vmul.f32 %v10709_v0, %v4637_v49  ;;  %v4192_v38 = vmul.f32 1.0614054, %v7867_v2  ;;  %v3612_v56 = vmul.f32 0.5, %v10641_v48  ;;  %v7869_v0 = vpop.eup %7868 }
 0xb1a   : > { %v4574_v54 = vmul.f32 %v10727_v41, %v4510_v40  ;;  %v5275_v14 = vmul.f32 %v5211_v24, %v3611_v8  ;;  %v5084_v36 = vsub.f32 1.0, %v5020_v23  ;;  %v3805_v6 = vsel %vm3741_vm6, 1.0, %v12639_v20 }
 0xb1b   : > { %v4511_v33 = vadd.f32 -0.28449672, %v4447_v4  ;;  %v5021_v37 = vmul.f32 %v7865_v62, %v4701_v7  ;;  %v4256_v5 = vadd.f32 -1.4531521, %v4192_v38  ;;  %v4934_v8 = vmul.f32 1.442695, %v4832_v25 }
 0xb1c   : > { %v4638_v1 = vadd.f32 0.2548296, %v4574_v54  ;;  %v5148_v39 = vmul.f32 %v5084_v36, %v3804_v55  ;;  %v5322_v51 = vpack.c.bf16 %v5275_v14, %v5274_v50  ;;  %v4833_v48 = vmul.f32 %v4769_v47, %v10736_v11 }
 0xb1d   : > { %v4575_v31 = vmul.f32 %v10738_v22, %v4511_v33  ;;  %v5085_v34 = vsub.f32 1.0, %v5021_v37  ;;  %v7871_v19 = vpop.eup %7870  ;;  %v4320_v42 = vmul.f32 %v7867_v2, %v4256_v5  ;;  %v3613_v23 = vmul.f32 0.5, %v10651_v21 }
 0xb1e   : > { %v4702_v58 = vmul.f32 %v10727_v41, %v4638_v1  ;;  %7580 = vmatprep.mubr.msk.bf16.mxu0 %vm5370_vm5, %v5322_v51  ;;  %v5212_v41 = vadd.f32 1.0, %v5148_v39  ;;  %v4193_v24 = vmul.f32 1.0614054, %v7871_v19  ;;  %7874 = vpow2.f32 %v4934_v8 }
 0xb1f   : > { %v4639_v62 = vadd.f32 0.2548296, %v4575_v31  ;;  %v5149_v40 = vmul.f32 %v5085_v34, %v3805_v6  ;;  %v7873_v55 = vpop.eup %7872  ;;  %v4384_v4 = vadd.f32 1.4214138, %v4320_v42  ;;  %v4936_v7 = vmul.f32 1.442695, %v4833_v48 }
 0xb20   : > { %v5022_v26 = vmul.f32 %v7869_v0, %v4702_v58  ;;  %v4257_v14 = vadd.f32 -1.4531521, %v4193_v24  ;;  %v5276_v25 = vmul.f32 %v5212_v41, %v3612_v56  ;;  %v3807_v47 = vsel %vm3743_vm8, 1.0, %v12639_v20 }
 0xb21   : > { %v4703_v13 = vmul.f32 %v10738_v22, %v4639_v62  ;;  %v5213_v54 = vadd.f32 1.0, %v5149_v40  ;;  %v4448_v1 = vmul.f32 %v7867_v2, %v4384_v4  ;;  %7876 = vpow2.f32 %v4936_v7 }
 0xb22   : > { %v5086_v49 = vsub.f32 1.0, %v5022_v26  ;;  %v4321_v33 = vmul.f32 %v7871_v19, %v4257_v14  ;;  %v3614_v51 = vmul.f32 0.5, %v10659_v17  ;;  %v3615_v56 = vmul.f32 0.5, %v10667_v32 }
 0xb23   : > { %v5023_v36 = vmul.f32 %v7873_v55, %v4703_v13  ;;  %v5277_v50 = vmul.f32 %v5213_v54, %v3613_v23  ;;  %v4512_v39 = vadd.f32 -0.28449672, %v4448_v1  ;;  %v2156_v48 = vand.u32 65535, %v10540_v45 }
 0xb24   : > { %v5150_v11 = vmul.f32 %v5086_v49, %v3806_v52  ;;  %v4385_v37 = vadd.f32 1.4214138, %v4321_v33  ;;  %v2172_v49 = vand.u32 65535, %v10549_v9  ;;  %v2188_v54 = vand.u32 65535, %v10559_v63 }
 0xb25   : > { %v5087_v21 = vsub.f32 1.0, %v5023_v36  ;;  %v5323_v22 = vpack.c.bf16 %v5277_v50, %v5276_v25  ;;  %v4576_v27 = vmul.f32 %v7867_v2, %v4512_v39  ;;  %v2158_v52 = vcvt.s32.f32 %v2156_v48  ;;  %v12847_v48 = vld [vmem:[#allocation18_spill] sm:$0xff] }
 0xb26   : > { %v5214_v38 = vadd.f32 1.0, %v5150_v11  ;;  %v4449_v31 = vmul.f32 %v7871_v19, %v4385_v37  ;;  %v2174_v14 = vcvt.s32.f32 %v2172_v49  ;;  %v3809_v11 = vsel %vm3745_vm11, 1.0, %v12639_v20 }
 0xb27   : > { %v5151_v58 = vmul.f32 %v5087_v21, %v3807_v47  ;;  %7581 = vmatmul.mubr.msk.bf16.gmra.mrb[48].mxu0 %vm5370_vm5, %v5323_v22  ;;  %v4640_v6 = vadd.f32 0.2548296, %v4576_v27  ;;  %v3616_v25 = vmul.f32 0.5, %v10698_v46  ;;  %v2204_v63 = vand.u32 65535, %v10569_v12 }
 0xb28   : > { %v4513_v34 = vadd.f32 -0.28449672, %v4449_v31  ;;  %v5278_v5 = vmul.f32 %v5214_v38, %v3614_v51  ;;  %v7875_v41 = vpop.eup %7874  ;;  %v2220_v22 = vand.u32 65535, %v10579_v29  ;;  %v2238_v29 = vcvt.s32.f32 %v2236_v53 }
 0xb29   : > { %v5215_v0 = vadd.f32 1.0, %v5151_v58  ;;  %v4704_v62 = vmul.f32 %v7867_v2, %v4640_v6  ;;  %v3808_v2 = vsel %vm3744_vm9, 1.0, %v12639_v20  ;;  %v2206_v37 = vcvt.s32.f32 %v2204_v63 }
 0xb2a   : > { %v4577_v8 = vmul.f32 %v7871_v19, %v4513_v34  ;;  %v2252_v27 = vand.u32 65535, %v10599_v16 }
 0xb2b   : > { %v5279_v26 = vmul.f32 %v5215_v0, %v3615_v56  ;;  %v5024_v42 = vmul.f32 %v7875_v41, %v4704_v62  ;;  %v7877_v13 = vpop.eup %7876  ;;  %v2270_v0 = vcvt.s32.f32 %v2268_v30 }
 0xb2c   : > { %v4641_v24 = vadd.f32 0.2548296, %v4577_v8  ;;  %v2254_v51 = vcvt.s32.f32 %v2252_v27 }
 0xb2d   : > { %v5324_v40 = vpack.c.bf16 %v5279_v26, %v5278_v5  ;;  %v5088_v17 = vsub.f32 1.0, %v5024_v42  ;;  %v12850_v42 = vld [vmem:[#allocation47_spill] sm:$0xff] }
 0xb2e   : > { %v4705_v23 = vmul.f32 %v7871_v19, %v4641_v24 }
 0xb2f   : > { %7584 = vmatprep.mubr.msk.bf16.mxu0 %vm5370_vm5, %v5324_v40  ;;  %v5152_v45 = vmul.f32 %v5088_v17, %v3808_v2  ;;  %v12848_v40 = vld [vmem:[#allocation39_spill] sm:$0xff]  ;;  %v12852_v2 = vld [vmem:[#allocation40_spill] sm:$0xff] }
 0xb30   : > { %v10783_v32 = vpop.xlane.xlu0 %2160  ;;  %v5025_v43 = vmul.f32 %v7877_v13, %v4705_v23 }
 0xb31   : > { %vm2162_vm10 = vcmp.eq.f32.partialorder %v10547_v18, %v10783_v32  ;;  %v5216_v9 = vadd.f32 1.0, %v5152_v45  ;;  %v2190_v18 = vcvt.s32.f32 %v2188_v54 }
 0xb32   : > { %v2163_v55 = vsel %vm2162_vm10, %v2158_v52, inf  ;;  %v5089_v19 = vsub.f32 1.0, %v5025_v43  ;;  %v12854_v43 = vld [vmem:[#allocation48_spill] sm:$0xff] }
 0xb33   : > { %2164 = vmin.xlane.f32.xlu0 %v2163_v55  ;;  %v5280_v33 = vmul.f32 %v5216_v9, %v3616_v25  ;;  %v12859_v25 = vld [vmem:[#allocation49_spill] sm:$0xff] }
 0xb34   : > { %v2177_v4 = vpop.xlane.xlu1 %2176  ;;  %v5153_v36 = vmul.f32 %v5089_v19, %v3809_v11  ;;  %v12856_v19 = vmov 1.0|1.0  }
 0xb35   : > { %vm2178_vm12 = vcmp.eq.f32.partialorder %v10557_v3, %v2177_v4  ;;  %v2183_v5 = vcvt.f32.s32 %v2177_v4 }
 0xb36   : > { %v2179_v7 = vsel %vm2178_vm12, %v2174_v14, inf  ;;  %v5217_v50 = vadd.f32 1.0, %v5153_v36 }
 0xb37   : > { %2180 = vmin.xlane.f32.xlu1 %v2179_v7  ;;  %v12857_v7 = vld [vmem:[#allocation41_spill] sm:$0xff] }
 0xb38   : > { %v2193_v1 = vpop.xlane.xlu0 %2192  ;;  %v5281_v21 = vmul.f32 %v5217_v50, %v3617_v28 }
 0xb39   : > { %vm2194_vm13 = vcmp.eq.f32.partialorder %v10567_v44, %v2193_v1  ;;  %v2222_v44 = vcvt.s32.f32 %v2220_v22  ;;  %v2199_v62 = vcvt.f32.s32 %v2193_v1 }
 0xb3a   : > { %v2195_v47 = vsel %vm2194_vm13, %v2190_v18, inf  ;;  %v5325_v3 = vpack.c.bf16 %v5281_v21, %v5280_v33 }
 0xb3b   : > { %2196 = vmin.xlane.f32.xlu0 %v2195_v47 }
 0xb3c   : > { %v10797_v39 = vpop.xlane.xlu1 %2208  ;;  %7585 = vmatmul.mubr.msk.bf16.gmra.mrb[52].mxu0 %vm5370_vm5, %v5325_v3  ;;  %v12861_v3 = vld [vmem:[#allocation42_spill] sm:$0xff] }
 0xb3d   : > { %vm2210_vm14 = vcmp.eq.f32.partialorder %v10577_v60, %v10797_v39  ;;  %v2215_v49 = vcvt.f32.s32 %v10797_v39 }
 0xb3e   : > { %v2211_v46 = vsel %vm2210_vm14, %v2206_v37, inf  ;;  %v12863_v37 = vld [vmem:[#allocation50_spill] sm:$0xff] }
 0xb3f   : > { %2212 = vmin.xlane.f32.xlu1 %v2211_v46  ;;  %v2216_v9 = vshll.u32 %v2215_v49, 16 }
 0xb40   : > { %v10803_v12 = vpop.xlane.xlu0 %2224 }
 0xb41   : > { %vm2226_vm15 = vcmp.eq.f32.partialorder %v10587_v61, %v10803_v12  ;;  %v2231_v14 = vcvt.f32.s32 %v10803_v12 }
 0xb42   : > { %v2227_v38 = vsel %vm2226_vm15, %v2222_v44, inf }
 0xb43   : > { %2228 = vmin.xlane.f32.xlu0 %v2227_v38  ;;  %v2232_v63 = vshll.u32 %v2231_v14, 16  ;;  %v12882_v14 = vld [vmem:[#allocation27_spill] sm:$0xff] }
 0xb44   : > { %v10808_v58 = vpop.xlane.xlu1 %2240 }
 0xb45   : > { %vm2242_vm0 = vcmp.eq.f32.partialorder %v10597_v15, %v10808_v58  ;;  %v2167_v15 = vcvt.f32.s32 %v10783_v32  ;;  %v2200_v32 = vshll.u32 %v2199_v62, 16  ;;  %v2247_v21 = vcvt.f32.s32 %v10808_v58 }
 0xb46   : > { %v2243_v60 = vsel %vm2242_vm0, %v2238_v29, inf  ;;  %v12865_v29 = vld [vmem:[#allocation19_spill] sm:$0xff] }
 0xb47   : > { %2244 = vmin.xlane.f32.xlu1 %v2243_v60  ;;  %v2168_v34 = vshll.u32 %v2167_v15, 16  ;;  %v2248_v38 = vshll.u32 %v2247_v21, 16  ;;  %v12867_v60 = vld [vmem:[#allocation20_spill] sm:$0xff]  ;;  %v12890_v21 = vld [vmem:[#allocation30_spill] sm:$0xff] }
 0xb48   : > { %v10813_v31 = vpop.xlane.xlu0 %2256 }
 0xb49   : > { %vm2258_vm1 = vcmp.eq.f32.partialorder %v10607_v57, %v10813_v31  ;;  %v2184_v57 = vshll.u32 %v2183_v5, 16  ;;  %v2263_v44 = vcvt.f32.s32 %v10813_v31  ;;  %v12871_v5 = vld [vmem:[#allocation22_spill] sm:$0xff] }
 0xb4a   : > { %v2259_v61 = vsel %vm2258_vm1, %v2254_v51, inf }
 0xb4b   : > { %2260 = vmin.xlane.f32.xlu0 %v2259_v61  ;;  %v2264_v61 = vshll.u32 %v2263_v44, 16 }
 0xb4c   : > { %v10818_v56 = vpop.xlane.xlu1 %2272 }
 0xb4d   : > { %vm2274_vm2 = vcmp.eq.f32.partialorder %v10613_v59, %v10818_v56 }
 0xb4e   : > { %v2275_v16 = vsel %vm2274_vm2, %v2270_v0, inf }
 0xb4f   : > { %2276 = vmin.xlane.f32.xlu1 %v2275_v16  ;;  %v2279_v16 = vcvt.f32.s32 %v10818_v56 }
 0xbc0   : > { %v2165_v6 = vpop.xlane.xlu0 %2164 }
 0xbc1   : > { %v2166_v26 = vcvt.f32.s32 %v2165_v6  ;;  %v12869_v6 = vld [vmem:[#allocation21_spill] sm:$0xff] }
 0xbc3   : > { %v2169_v35 = vadd.s32 %v2168_v34, %v2166_v26 }
 0xbc4   : > { %v2181_v8 = vpop.xlane.xlu1 %2180 }
 0xbc5   : > { %vm2282_vm3 = vcmp.eq.s32.totalorder %v8545_v10, %v2169_v35  ;;  %vm2283_vm4 = vcmp.eq.s32.totalorder %v12847_v48, %v2169_v35  ;;  %v2182_v41 = vcvt.f32.s32 %v2181_v8  ;;  %v2280_v8 = vshll.u32 %v2279_v16, 16 }
 0xbc6   : > { %v10828_v59 = vsel %vm2282_vm3, inf, %v12848_v40  ;;  %v10831_v24 = vsel %vm2283_vm4, inf, %v12850_v42  ;;  %v12875_v42 = vld [vmem:[#allocation24_spill] sm:$0xff] }
 0xbc7   : > { %12849 = vst [vmem:[#allocation39_spill] sm:$0xff] %v10828_v59  ;;  %12851 = vst [vmem:[#allocation47_spill] sm:$0xff] %v10831_v24  ;;  %v2185_v17 = vadd.s32 %v2184_v57, %v2182_v41  ;;  %v2365_v23 = vmin.f32 %v10828_v59, %v10831_v24  ;;  %v12873_v41 = vld [vmem:[#allocation23_spill] sm:$0xff] }
 0xbc8   : > { %v2197_v52 = vpop.xlane.xlu0 %2196 }
 0xbc9   : > { %v2198_v13 = vcvt.f32.s32 %v2197_v52  ;;  %2366 = vmin.xlane.f32.xlu0 %v2365_v23  ;;  %vm2285_vm6 = vcmp.eq.s32.totalorder %v12847_v48, %v2185_v17  ;;  %vm2284_vm7 = vcmp.eq.s32.totalorder %v8545_v10, %v2185_v17  ;;  %v12877_v52 = vld [vmem:[#allocation26_spill] sm:$0xff] }
 0xbca   : > { %v10839_v45 = vsel %vm2285_vm6, inf, %v12852_v2  ;;  %vm7456_vm8 = vmpackc.low %vm2285_vm6, %vm2283_vm4  ;;  %v10842_v55 = vsel %vm2284_vm7, inf, %v12854_v43 }
 0xbcb   : > { %12853 = vst [vmem:[#allocation40_spill] sm:$0xff] %v10839_v45  ;;  %12855 = vst [vmem:[#allocation48_spill] sm:$0xff] %v10842_v55  ;;  %v2201_v54 = vadd.s32 %v2200_v32, %v2198_v13  ;;  %7457 = vmatprep.mubr.msk.bf16.mxu1 %vm7456_vm8, %v12856_v19  ;;  %v2368_v4 = vmin.f32 %v10842_v55, %v10839_v45  ;;  %v12879_v13 = vld [vmem:[#allocation25_spill] sm:$0xff] }
 0xbcc   : > { %vm7458_vm9 = vmpackc.low %vm2284_vm7, %vm2282_vm3  ;;  %v2213_v11 = vpop.xlane.xlu1 %2212 }
 0xbcd   : > { %7459 = vmatmul.mubr.msk.bf16.gmra.mrb[80].mxu1 %vm7458_vm9, %v12856_v19  ;;  %vm2286_vm10 = vcmp.eq.s32.totalorder %v8545_v10, %v2201_v54  ;;  %vm2287_vm11 = vcmp.eq.s32.totalorder %v12847_v48, %v2201_v54  ;;  %v2214_v36 = vcvt.f32.s32 %v2213_v11  ;;  %2369 = vmin.xlane.f32.xlu1 %v2368_v4  ;;  %v12881_v4 = vld [vmem:[#allocation35_spill] sm:$0xff] }
 0xbce   : > { %v10856_v18 = vsel %vm2286_vm10, inf, %v12857_v7  ;;  %v10861_v28 = vsel %vm2287_vm11, inf, %v12859_v25  ;;  %v12883_v11 = vmax.f32 %v12881_v4, %v12882_v14  ;;  %v12885_v7 = vld [vmem:[#allocation43_spill] sm:$0xff]  ;;  %v12886_v25 = vld [vmem:[#allocation28_spill] sm:$0xff] }
 0xbcf   : > { %12858 = vst [vmem:[#allocation41_spill] sm:$0xff] %v10856_v18  ;;  %12860 = vst [vmem:[#allocation49_spill] sm:$0xff] %v10861_v28  ;;  %v2217_v50 = vadd.s32 %v2216_v9, %v2214_v36  ;;  %v2371_v1 = vmin.f32 %v10856_v18, %v10861_v28 }
 0xbd0   : > { %v2229_v33 = vpop.xlane.xlu0 %2228 }
 0xbd1   : > { %v2230_v47 = vcvt.f32.s32 %v2229_v33  ;;  %2372 = vmin.xlane.f32.xlu0 %v2371_v1  ;;  %vm2289_vm12 = vcmp.eq.s32.totalorder %v12847_v48, %v2217_v50  ;;  %vm2288_vm13 = vcmp.eq.s32.totalorder %v8545_v10, %v2217_v50  ;;  %v12887_v50 = vmax.f32 %v12885_v7, %v12886_v25  ;;  %v12889_v33 = vld [vmem:[#allocation36_spill] sm:$0xff] }
 0xbd2   : > { %v10869_v39 = vsel %vm2289_vm12, inf, %v12861_v3  ;;  %vm7460_vm14 = vmpackc.low %vm2289_vm12, %vm2287_vm11  ;;  %v10874_v22 = vsel %vm2288_vm13, inf, %v12863_v37 }
 0xbd3   : > { %12862 = vst [vmem:[#allocation42_spill] sm:$0xff] %v10869_v39  ;;  %12864 = vst [vmem:[#allocation50_spill] sm:$0xff] %v10874_v22  ;;  %v2233_v46 = vadd.s32 %v2232_v63, %v2230_v47  ;;  %7461 = vmatprep.mubr.msk.bf16.mxu1 %vm7460_vm14, %v12856_v19  ;;  %v2374_v12 = vmin.f32 %v10874_v22, %v10869_v39  ;;  %v12891_v47 = vmax.f32 %v12889_v33, %v12890_v21 }
 0xbd4   : > { %vm7462_vm15 = vmpackc.low %vm2288_vm13, %vm2286_vm10  ;;  %v2245_v53 = vpop.xlane.xlu1 %2244 }
 0xbd5   : > { %7463 = vmatmul.mubr.msk.bf16.gmra.mrb[84].mxu1 %vm7462_vm15, %v12856_v19  ;;  %vm2290_vm0 = vcmp.eq.s32.totalorder %v8545_v10, %v2233_v46  ;;  %vm2291_vm1 = vcmp.eq.s32.totalorder %v12847_v48, %v2233_v46  ;;  %v2246_v58 = vcvt.f32.s32 %v2245_v53  ;;  %2375 = vmin.xlane.f32.xlu1 %v2374_v12  ;;  %v12893_v46 = vld [vmem:[#allocation44_spill] sm:$0xff]  ;;  %v12894_v12 = vld [vmem:[#allocation29_spill] sm:$0xff] }
 0xbd6   : > { %v10888_v27 = vsel %vm2290_vm0, inf, %v12865_v29  ;;  %v10893_v51 = vsel %vm2291_vm1, inf, %v12867_v60  ;;  %v12895_v44 = vmax.f32 %v12893_v46, %v12894_v12  ;;  %v12898_v29 = vld [vmem:[#allocation31_spill] sm:$0xff] }
 0xbd7   : > { %12866 = vst [vmem:[#allocation19_spill] sm:$0xff] %v10888_v27  ;;  %12868 = vst [vmem:[#allocation20_spill] sm:$0xff] %v10893_v51  ;;  %v2249_v31 = vadd.s32 %v2248_v38, %v2246_v58  ;;  %v2377_v30 = vmin.f32 %v10888_v27, %v10893_v51  ;;  %v12897_v58 = vld [vmem:[#allocation37_spill] sm:$0xff] }
 0xbd8   : > { %v2261_v0 = vpop.xlane.xlu0 %2260  ;;  %v12899_v60 = vmax.f32 %v12897_v58, %v12898_v29 }
 0xbd9   : > { %v2262_v15 = vcvt.f32.s32 %v2261_v0  ;;  %2378 = vmin.xlane.f32.xlu0 %v2377_v30  ;;  %vm2293_vm2 = vcmp.eq.s32.totalorder %v12847_v48, %v2249_v31  ;;  %vm2292_vm3 = vcmp.eq.s32.totalorder %v8545_v10, %v2249_v31  ;;  %v12902_v0 = vld [vmem:[#allocation32_spill] sm:$0xff] }
 0xbda   : > { %v10901_v34 = vsel %vm2293_vm2, inf, %v12869_v6  ;;  %vm7464_vm4 = vmpackc.low %vm2293_vm2, %vm2291_vm1  ;;  %v10906_v26 = vsel %vm2292_vm3, inf, %v12871_v5  ;;  %v12905_v5 = vld [vmem:[#allocation38_spill] sm:$0xff] }
 0xbdb   : > { %12870 = vst [vmem:[#allocation21_spill] sm:$0xff] %v10901_v34  ;;  %12872 = vst [vmem:[#allocation22_spill] sm:$0xff] %v10906_v26  ;;  %v2265_v35 = vadd.s32 %v2264_v61, %v2262_v15  ;;  %7465 = vmatprep.mubr.msk.bf16.mxu1 %vm7464_vm4, %v12856_v19  ;;  %v2380_v56 = vmin.f32 %v10906_v26, %v10901_v34  ;;  %v12901_v61 = vld [vmem:[#allocation45_spill] sm:$0xff] }
 0xbdc   : > { %vm7466_vm6 = vmpackc.low %vm2292_vm3, %vm2290_vm0  ;;  %v2277_v62 = vpop.xlane.xlu1 %2276  ;;  %v12903_v16 = vmax.f32 %v12901_v61, %v12902_v0 }
 0xbdd   : > { %7467 = vmatmul.mubr.msk.bf16.gmra.mrb[88].mxu1 %vm7466_vm6, %v12856_v19  ;;  %vm2294_vm7 = vcmp.eq.s32.totalorder %v8545_v10, %v2265_v35  ;;  %vm2295_vm8 = vcmp.eq.s32.totalorder %v12847_v48, %v2265_v35  ;;  %v2278_v57 = vcvt.f32.s32 %v2277_v62  ;;  %2381 = vmin.xlane.f32.xlu1 %v2380_v56  ;;  %v12906_v35 = vld [vmem:[#allocation34_spill] sm:$0xff] }
 0xbde   : > { %v10919_v40 = vsel %vm2294_vm7, inf, %v12873_v41  ;;  %v10922_v17 = vsel %vm2295_vm8, inf, %v12875_v42  ;;  %v12907_v56 = vmax.f32 %v12905_v5, %v12906_v35  ;;  %v12910_v41 = vld [vmem:[#allocation33_spill] sm:$0xff] }
 0xbdf   : > { %12874 = vst [vmem:[#allocation23_spill] sm:$0xff] %v10919_v40  ;;  %12876 = vst [vmem:[#allocation24_spill] sm:$0xff] %v10922_v17  ;;  %v2281_v23 = vadd.s32 %v2280_v8, %v2278_v57  ;;  %v2383_v32 = vmin.f32 %v10919_v40, %v10922_v17  ;;  %v12909_v57 = vld [vmem:[#allocation46_spill] sm:$0xff] }
 0xbe0   : > { %v12911_v42 = vmax.f32 %v12909_v57, %v12910_v41 }
 0xbe1   : > { %2384 = vmin.xlane.f32.xlu0 %v2383_v32  ;;  %vm2297_vm9 = vcmp.eq.s32.totalorder %v12847_v48, %v2281_v23  ;;  %vm2296_vm10 = vcmp.eq.s32.totalorder %v8545_v10, %v2281_v23 }
 0xbe2   : > { %v10929_v49 = vsel %vm2297_vm9, inf, %v12877_v52  ;;  %vm7468_vm11 = vmpackc.low %vm2297_vm9, %vm2295_vm8  ;;  %v10932_v2 = vsel %vm2296_vm10, inf, %v12879_v13 }
 0xbe3   : > { %12878 = vst [vmem:[#allocation26_spill] sm:$0xff] %v10929_v49  ;;  %12880 = vst [vmem:[#allocation25_spill] sm:$0xff] %v10932_v2  ;;  %7469 = vmatprep.mubr.msk.bf16.mxu1 %vm7468_vm11, %v12856_v19  ;;  %v2386_v43 = vmin.f32 %v10932_v2, %v10929_v49 }
 0xbe4   : > { %vm7470_vm12 = vmpackc.low %vm2296_vm10, %vm2294_vm7 }
 0xbe5   : > { %7471 = vmatmul.mubr.msk.bf16.gmra.mrb[92].mxu1 %vm7470_vm12, %v12856_v19  ;;  %2387 = vmin.xlane.f32.xlu1 %v2386_v43 }
 0xbfa   : > { %v7582_v54 = vpop.f32.mrb[48].mxu0 }
 0xbfb   : > { %v10943_v9 = vmax.f32 %v12883_v11, %v7582_v54  ;;  %v5629_v36 = vpop.f32.mrb[49].mxu0 }
 0xbfc   : > { %v10948_v1 = vmax.f32 %v12887_v50, %v5629_v36  ;;  %v7583_v63 = vpop.f32.mrb[50].mxu0 }
 0xbfd   : > { %12884 = vst [vmem:[#allocation35_spill] sm:$0xff] %v10943_v9  ;;  %v10953_v3 = vmax.f32 %v12891_v47, %v7583_v63  ;;  %v5632_v37 = vpop.f32.mrb[51].mxu0 }
 0xbfe   : > { %12888 = vst [vmem:[#allocation27_spill] sm:$0xff] %v10948_v1  ;;  %v10958_v53 = vmax.f32 %v12895_v44, %v5632_v37 }
 0xbff   : > { %12892 = vst [vmem:[#allocation43_spill] sm:$0xff] %v10953_v3 }
 0xc00   : > { %12896 = vst [vmem:[#allocation28_spill] sm:$0xff] %v10958_v53 }
 0xc0f   : > { %v7586_v38 = vpop.f32.mrb[52].mxu0 }
 0xc10   : > { %v10963_v31 = vmax.f32 %v12899_v60, %v7586_v38  ;;  %v5645_v30 = vpop.f32.mrb[53].mxu0 }
 0xc11   : > { %v10968_v15 = vmax.f32 %v12903_v16, %v5645_v30  ;;  %v7587_v6 = vpop.f32.mrb[54].mxu0 }
 0xc12   : > { %12900 = vst [vmem:[#allocation36_spill] sm:$0xff] %v10963_v31  ;;  %v10973_v62 = vmax.f32 %v12907_v56, %v7587_v6  ;;  %v5648_v8 = vpop.f32.mrb[55].mxu0 }
 0xc13   : > { %12904 = vst [vmem:[#allocation30_spill] sm:$0xff] %v10968_v15  ;;  %v10978_v23 = vmax.f32 %v12911_v42, %v5648_v8  ;;  %v8052_v15 = vld [vmem:[%s8895_s26 + $0x20] sm:$0xff] }
 0xc14   : > { %12908 = vst [vmem:[#allocation44_spill] sm:$0xff] %v10973_v62 }
 0xc15   : > { %12912 = vst [vmem:[#allocation29_spill] sm:$0xff] %v10978_v23 }
 0xc56   : > { %v2367_v32 = vpop.xlane.xlu0 %2366 }
 0xc57   : > { %vm2389_vm13 = vcmp.le.f32.partialorder %v10828_v59, %v2367_v32  ;;  %vm2390_vm14 = vcmp.le.f32.partialorder %v10831_v24, %v2367_v32 }
 0xc58   : > { %v2405_v52 = vsel %vm2389_vm13, %v8545_v10, 256  ;;  %v2406_v13 = vsel %vm2390_vm14, %v12847_v48, 256 }
 0xc59   : > { %vm2421_vm15 = vcmp.lt.s32.totalorder %v2405_v52, %v2406_v13 }
 0xc5a   : > { %v10984_v43 = vsel %vm2421_vm15, %v2405_v52, %v2406_v13  ;;  %v2370_v54 = vpop.xlane.xlu1 %2369 }
 0xc5b   : > { %vm2391_vm0 = vcmp.le.f32.partialorder %v10842_v55, %v2370_v54  ;;  %vm2392_vm1 = vcmp.le.f32.partialorder %v10839_v45, %v2370_v54  ;;  %v2424_v4 = vshra.s32 %v10984_v43, 16 }
 0xc5c   : > { %v2407_v14 = vsel %vm2391_vm0, %v8545_v10, 256  ;;  %v2408_v11 = vsel %vm2392_vm1, %v12847_v48, 256 }
 0xc5d   : > { %vm2437_vm2 = vcmp.lt.s32.totalorder %v2407_v14, %v2408_v11  ;;  %v10991_v36 = vcvt.s32.f32 %v2424_v4 }
 0xc5e   : > { %v10993_v7 = vsel %vm2437_vm2, %v2407_v14, %v2408_v11  ;;  %v2373_v25 = vpop.xlane.xlu0 %2372 }
 0xc5f   : > { %vm2393_vm3 = vcmp.le.f32.partialorder %v10856_v18, %v2373_v25  ;;  %vm2394_vm4 = vcmp.le.f32.partialorder %v10861_v28, %v2373_v25  ;;  %2427 = vmin.xlane.f32.xlu0 %v10991_v36  ;;  %v2440_v50 = vshra.s32 %v10993_v7, 16  ;;  %v8055_v28 = vld [vmem:[%s8895_s26 + $0x38] sm:$0xff] }
 0xc60   : > { %v2409_v63 = vsel %vm2393_vm3, %v8545_v10, 256  ;;  %v2410_v33 = vsel %vm2394_vm4, %v12847_v48, 256 }
 0xc61   : > { %vm2453_vm6 = vcmp.lt.s32.totalorder %v2409_v63, %v2410_v33  ;;  %v11001_v21 = vcvt.s32.f32 %v2440_v50 }
 0xc62   : > { %v11003_v47 = vsel %vm2453_vm6, %v2409_v63, %v2410_v33  ;;  %v2376_v37 = vpop.xlane.xlu1 %2375 }
 0xc63   : > { %vm2395_vm7 = vcmp.le.f32.partialorder %v10874_v22, %v2376_v37  ;;  %vm2396_vm8 = vcmp.le.f32.partialorder %v10869_v39, %v2376_v37  ;;  %2443 = vmin.xlane.f32.xlu1 %v11001_v21  ;;  %v2456_v46 = vshra.s32 %v11003_v47, 16 }
 0xc64   : > { %v2411_v12 = vsel %vm2395_vm7, %v8545_v10, 256  ;;  %v2412_v44 = vsel %vm2396_vm8, %v12847_v48, 256 }
 0xc65   : > { %vm2469_vm9 = vcmp.lt.s32.totalorder %v2411_v12, %v2412_v44  ;;  %v11011_v38 = vcvt.s32.f32 %v2456_v46 }
 0xc66   : > { %v11013_v58 = vsel %vm2469_vm9, %v2411_v12, %v2412_v44  ;;  %v2379_v29 = vpop.xlane.xlu0 %2378  ;;  %v8046_v12 = vld [vmem:[%s8895_s26] sm:$0xff] }
 0xc67   : > { %vm2397_vm10 = vcmp.le.f32.partialorder %v10888_v27, %v2379_v29  ;;  %vm2398_vm11 = vcmp.le.f32.partialorder %v10893_v51, %v2379_v29  ;;  %2459 = vmin.xlane.f32.xlu0 %v11011_v38  ;;  %v2472_v60 = vshra.s32 %v11013_v58, 16 }
 0xc68   : > { %v2413_v30 = vsel %vm2397_vm10, %v8545_v10, 256  ;;  %v2414_v61 = vsel %vm2398_vm11, %v12847_v48, 256 }
 0xc69   : > { %vm2485_vm12 = vcmp.lt.s32.totalorder %v2413_v30, %v2414_v61  ;;  %v11021_v0 = vcvt.s32.f32 %v2472_v60 }
 0xc6a   : > { %v11023_v16 = vsel %vm2485_vm12, %v2413_v30, %v2414_v61  ;;  %v2382_v6 = vpop.xlane.xlu1 %2381  ;;  %v11061_v30 = vld [vmem:[#allocation3] ss:$0 sm:$0xff] }
 0xc6b   : > { %vm2399_vm13 = vcmp.le.f32.partialorder %v10906_v26, %v2382_v6  ;;  %vm2400_vm14 = vcmp.le.f32.partialorder %v10901_v34, %v2382_v6  ;;  %2475 = vmin.xlane.f32.xlu1 %v11021_v0  ;;  %v2488_v5 = vshra.s32 %v11023_v16, 16  ;;  %v8048_v6 = vld [vmem:[%s8895_s26 + $0x8] sm:$0xff] }
 0xc6c   : > { %v2415_v35 = vsel %vm2399_vm13, %v8545_v10, 256  ;;  %v2416_v56 = vsel %vm2400_vm14, %v12847_v48, 256 }
 0xc6d   : > { %vm2501_vm15 = vcmp.lt.s32.totalorder %v2415_v35, %v2416_v56  ;;  %v11031_v8 = vcvt.s32.f32 %v2488_v5 }
 0xc6e   : > { %v11033_v57 = vsel %vm2501_vm15, %v2415_v35, %v2416_v56  ;;  %v2385_v41 = vpop.xlane.xlu0 %2384  ;;  %v11065_v56 = vld [vmem:[#allocation5] ss:$0 sm:$0xff] }
 0xc6f   : > { %vm2401_vm0 = vcmp.le.f32.partialorder %v10919_v40, %v2385_v41  ;;  %vm2402_vm1 = vcmp.le.f32.partialorder %v10922_v17, %v2385_v41  ;;  %2491 = vmin.xlane.f32.xlu0 %v11031_v8  ;;  %v2504_v42 = vshra.s32 %v11033_v57, 16 }
 0xc70   : > { %v2417_v32 = vsel %vm2401_vm0, %v8545_v10, 256  ;;  %v2418_v52 = vsel %vm2402_vm1, %v12847_v48, 256 }
 0xc71   : > { %vm2517_vm2 = vcmp.lt.s32.totalorder %v2417_v32, %v2418_v52  ;;  %v11041_v13 = vcvt.s32.f32 %v2504_v42 }
 0xc72   : > { %v11043_v54 = vsel %vm2517_vm2, %v2417_v32, %v2418_v52  ;;  %v2388_v4 = vpop.xlane.xlu1 %2387 }
 0xc73   : > { %vm2403_vm3 = vcmp.le.f32.partialorder %v10932_v2, %v2388_v4  ;;  %vm2404_vm4 = vcmp.le.f32.partialorder %v10929_v49, %v2388_v4  ;;  %2507 = vmin.xlane.f32.xlu1 %v11041_v13  ;;  %v2520_v14 = vshra.s32 %v11043_v54, 16 }
 0xc74   : > { %v2419_v11 = vsel %vm2403_vm3, %v8545_v10, 256  ;;  %v2420_v25 = vsel %vm2404_vm4, %v12847_v48, 256 }
 0xc75   : > { %vm2533_vm6 = vcmp.lt.s32.totalorder %v2419_v11, %v2420_v25  ;;  %v11051_v50 = vcvt.s32.f32 %v2520_v14 }
 0xc76   : > { %v11053_v63 = vsel %vm2533_vm6, %v2419_v11, %v2420_v25  ;;  %v8050_v25 = vld [vmem:[%s8895_s26 + $0x10] sm:$0xff] }
 0xc77   : > { %2523 = vmin.xlane.f32.xlu0 %v11051_v50  ;;  %v2536_v33 = vshra.s32 %v11053_v63, 16 }
 0xc79   : > { %v11057_v37 = vcvt.s32.f32 %v2536_v33 }
 0xc7b   : > { %2539 = vmin.xlane.f32.xlu1 %v11057_v37 }
 0xca0   : > { %v3269_v46 = vpop.f32.mrb[80].mxu1 }
 0xca1   : > { %v3412_v44 = vadd.f32 %v8046_v12, %v3269_v46  ;;  %v3271_v29 = vpop.f32.mrb[81].mxu1 }
 0xca2   : > { %v3272_v60 = vpop.f32.mrb[82].mxu1 }
 0xca3   : > { %v3483_v61 = vmul.f32 %v11061_v30, %v3412_v44  ;;  %v3413_v5 = vadd.f32 %v8048_v6, %v3272_v60  ;;  %v3274_v35 = vpop.f32.mrb[83].mxu1 }
 0xca5   : > { %v11068_v41 = vadd.f32 %v11065_v56, %v3483_v61  ;;  %v3484_v42 = vmul.f32 %v11061_v30, %v3413_v5 }
 0xca7   : > { %v11072_v32 = vmul.f32 0.70710677, %v11068_v41  ;;  %v11075_v52 = vadd.f32 %v11065_v56, %v3484_v42  ;;  %v8051_v42 = vld [vmem:[%s8895_s26 + $0x18] sm:$0xff] }
 0xca8   : > { %v3277_v4 = vpop.f32.mrb[84].mxu1 }
 0xca9   : > { %v3874_v14 = vand.u32 2147483647, %v11072_v32  ;;  %v11079_v11 = vmul.f32 0.70710677, %v11075_v52  ;;  %v3414_v33 = vadd.f32 %v8050_v25, %v3277_v4  ;;  %v3279_v46 = vpop.f32.mrb[85].mxu1  ;;  %vm3746_vm7 = vcmp.ge.f32.partialorder %v11072_v32, 0.0 }
 0xcaa   : > { %v3280_v60 = vpop.f32.mrb[86].mxu1 }
 0xcab   : > { %v3938_v12 = vmul.f32 0.3275911, %v3874_v14  ;;  %v3875_v44 = vand.u32 2147483647, %v11079_v11  ;;  %v3485_v29 = vmul.f32 %v11061_v30, %v3414_v33  ;;  %v3282_v5 = vpop.f32.mrb[87].mxu1  ;;  %v3415_v23 = vadd.f32 %v8051_v42, %v3280_v60 }
 0xcac   : > { %v4770_v53 = vsub.f32 0.0, %v3874_v14  ;;  %vm3747_vm8 = vcmp.ge.f32.partialorder %v11079_v11, 0.0 }
 0xcad   : > { %v4002_v61 = vadd.f32 1.0, %v3938_v12  ;;  %v3939_v6 = vmul.f32 0.3275911, %v3875_v44  ;;  %v11085_v35 = vadd.f32 %v11065_v56, %v3485_v29  ;;  %v3486_v25 = vmul.f32 %v11061_v30, %v3415_v23 }
 0xcaf   : > { %7878 = vrcp.f32 %v4002_v61  ;;  %v4003_v62 = vadd.f32 1.0, %v3939_v6  ;;  %v11089_v4 = vmul.f32 0.70710677, %v11085_v35  ;;  %v11095_v29 = vadd.f32 %v11065_v56, %v3486_v25  ;;  %v8053_v61 = vld [vmem:[%s8895_s26 + $0x28] sm:$0xff] }
 0xcb0   : > { %v3285_v46 = vpop.f32.mrb[88].mxu1 }
 0xcb1   : > { %v3416_v33 = vadd.f32 %v8052_v15, %v3285_v46  ;;  %v3287_v31 = vpop.f32.mrb[89].mxu1  ;;  %7880 = vrcp.f32 %v4003_v62  ;;  %v3876_v12 = vand.u32 2147483647, %v11089_v4  ;;  %v11100_v23 = vmul.f32 0.70710677, %v11095_v29 }
 0xcb2   : > { %v3288_v5 = vpop.f32.mrb[90].mxu1  ;;  %v4771_v46 = vsub.f32 0.0, %v3875_v44  ;;  %vm3748_vm9 = vcmp.ge.f32.partialorder %v11089_v4, 0.0 }
 0xcb3   : > { %v3487_v60 = vmul.f32 %v11061_v30, %v3416_v33  ;;  %v3417_v6 = vadd.f32 %v8053_v61, %v3288_v5  ;;  %v3290_v42 = vpop.f32.mrb[91].mxu1  ;;  %v3940_v3 = vmul.f32 0.3275911, %v3876_v12  ;;  %v3877_v25 = vand.u32 2147483647, %v11100_v23 }
 0xcb4   : > { %v4834_v5 = vmul.f32 %v4770_v53, %v3874_v14  ;;  %v4835_v17 = vmul.f32 %v4771_v46, %v3875_v44  ;;  %v4772_v34 = vsub.f32 0.0, %v3876_v12  ;;  %v8054_v46 = vld [vmem:[%s8895_s26 + $0x30] sm:$0xff]  ;;  %vm3749_vm10 = vcmp.ge.f32.partialorder %v11100_v23, 0.0 }
 0xcb5   : > { %v11103_v15 = vadd.f32 %v11065_v56, %v3487_v60  ;;  %v3488_v31 = vmul.f32 %v11061_v30, %v3417_v6  ;;  %v4004_v62 = vadd.f32 1.0, %v3940_v3  ;;  %v3941_v61 = vmul.f32 0.3275911, %v3877_v25 }
 0xcb6   : > { %v4938_v40 = vmul.f32 1.442695, %v4834_v5  ;;  %v4773_v27 = vsub.f32 0.0, %v3877_v25  ;;  %v4940_v5 = vmul.f32 1.442695, %v4835_v17  ;;  %v4836_v19 = vmul.f32 %v4772_v34, %v3876_v12 }
 0xcb7   : > { %v11108_v1 = vmul.f32 0.70710677, %v11103_v15  ;;  %v11111_v33 = vadd.f32 %v11065_v56, %v3488_v31  ;;  %7882 = vrcp.f32 %v4004_v62  ;;  %v4005_v49 = vadd.f32 1.0, %v3941_v61 }
 0xcb8   : > { %v3293_v42 = vpop.f32.mrb[92].mxu1  ;;  %v4837_v55 = vmul.f32 %v4773_v27, %v3877_v25  ;;  %v4942_v34 = vmul.f32 1.442695, %v4836_v19  ;;  %v3811_v19 = vsel %vm3747_vm8, 1.0, %v12639_v20 }
 0xcb9   : > { %v11113_v9 = vpop.eup %7878  ;;  %v11116_v60 = vand.u32 2147483647, %v11108_v1  ;;  %v11119_v3 = vmul.f32 0.70710677, %v11111_v33  ;;  %v3295_v2 = vpop.f32.mrb[93].mxu1  ;;  %7884 = vrcp.f32 %v4005_v49  ;;  %v3418_v22 = vadd.f32 %v8054_v46, %v3293_v42 }
 0xcba   : > { %v4194_v6 = vmul.f32 1.0614054, %v11113_v9  ;;  %v3296_v53 = vpop.f32.mrb[94].mxu1  ;;  %v11128_v2 = vmul.f32 0.5, %v11068_v41  ;;  %v4944_v12 = vmul.f32 1.442695, %v4837_v55 }
 0xcbb   : > { %v3942_v31 = vmul.f32 0.3275911, %v11116_v60  ;;  %v11123_v14 = vpop.eup %7880  ;;  %v3298_v26 = vpop.f32.mrb[95].mxu1  ;;  %v3879_v61 = vand.u32 2147483647, %v11119_v3  ;;  %v3419_v18 = vadd.f32 %v8055_v28, %v3296_v53  ;;  %v3489_v45 = vmul.f32 %v11061_v30, %v3418_v22 }
 0xcbc   : > { %v4258_v62 = vadd.f32 -1.4531521, %v4194_v6  ;;  %v4195_v51 = vmul.f32 1.0614054, %v11123_v14  ;;  %vm3750_vm11 = vcmp.ge.f32.partialorder %v11108_v1, 0.0  ;;  %vm3751_vm12 = vcmp.ge.f32.partialorder %v11119_v3, 0.0 }
 0xcbd   : > { %v4006_v39 = vadd.f32 1.0, %v3942_v31  ;;  %v3943_v49 = vmul.f32 0.3275911, %v3879_v61  ;;  %v3490_v31 = vmul.f32 %v11061_v30, %v3419_v18  ;;  %v4775_v42 = vsub.f32 0.0, %v3879_v61 }
 0xcbe   : > { %v4322_v44 = vmul.f32 %v11113_v9, %v4258_v62  ;;  %v4259_v6 = vadd.f32 -1.4531521, %v4195_v51  ;;  %v3814_v23 = vsel %vm3750_vm11, 1.0, %v12639_v20 }
 0xcbf   : > { %7886 = vrcp.f32 %v4006_v39  ;;  %v4007_v24 = vadd.f32 1.0, %v3943_v49  ;;  %v11142_v39 = vadd.f32 %v11065_v56, %v3489_v45  ;;  %v11146_v18 = vadd.f32 %v11065_v56, %v3490_v31 }
 0xcc0   : > { %v4386_v26 = vadd.f32 1.4214138, %v4322_v44  ;;  %7888 = vpow2.f32 %v4938_v40  ;;  %v4323_v41 = vmul.f32 %v11123_v14, %v4259_v6  ;;  %v4774_v40 = vsub.f32 0.0, %v11116_v60 }
 0xcc1   : > { %v11136_v62 = vpop.eup %7882  ;;  %7890 = vrcp.f32 %v4007_v24  ;;  %v11151_v25 = vmul.f32 0.70710677, %v11142_v39  ;;  %v3810_v24 = vsel %vm3746_vm7, 1.0, %v12639_v20  ;;  %v11165_v46 = vmul.f32 0.70710677, %v11146_v18 }
 0xcc2   : > { %v4450_v28 = vmul.f32 %v11113_v9, %v4386_v26  ;;  %v4387_v51 = vadd.f32 1.4214138, %v4323_v41  ;;  %v4196_v22 = vmul.f32 1.0614054, %v11136_v62  ;;  %7892 = vpow2.f32 %v4940_v5 }
 0xcc3   : > { %v11153_v45 = vpop.eup %7884  ;;  %7894 = vpow2.f32 %v4942_v34  ;;  %v4838_v32 = vmul.f32 %v4774_v40, %v11116_v60  ;;  %v11169_v5 = vand.u32 2147483647, %v11151_v25  ;;  %vm3752_vm13 = vcmp.ge.f32.partialorder %v11151_v25, 0.0 }
 0xcc4   : > { %v4514_v27 = vadd.f32 -0.28449672, %v4450_v28  ;;  %v4451_v17 = vmul.f32 %v11123_v14, %v4387_v51  ;;  %v4260_v30 = vadd.f32 -1.4531521, %v4196_v22  ;;  %v4197_v55 = vmul.f32 1.0614054, %v11153_v45 }
 0xcc5   : > { %7896 = vpow2.f32 %v4944_v12  ;;  %v4839_v51 = vmul.f32 %v4775_v42, %v3879_v61  ;;  %v3944_v22 = vmul.f32 0.3275911, %v11169_v5  ;;  %vm3753_vm15 = vcmp.ge.f32.partialorder %v11165_v46, 0.0 }
 0xcc6   : > { %v4578_v56 = vmul.f32 %v11113_v9, %v4514_v27  ;;  %v4515_v53 = vadd.f32 -0.28449672, %v4451_v17  ;;  %v4324_v44 = vmul.f32 %v11136_v62, %v4260_v30  ;;  %v4261_v31 = vadd.f32 -1.4531521, %v4197_v55 }
 0xcc7   : > { %v11180_v17 = vand.u32 2147483647, %v11165_v46  ;;  %v4008_v12 = vadd.f32 1.0, %v3944_v22  ;;  %v3625_v46 = vmul.f32 0.5, %v11146_v18  ;;  %v2503_v18 = vand.u32 65535, %v11033_v57 }
 0xcc8   : > { %v4642_v6 = vadd.f32 0.2548296, %v4578_v56  ;;  %v4579_v11 = vmul.f32 %v11123_v14, %v4515_v53  ;;  %v4388_v26 = vadd.f32 1.4214138, %v4324_v44  ;;  %v4325_v40 = vmul.f32 %v11153_v45, %v4261_v31 }
 0xcc9   : > { %v11171_v49 = vpop.eup %7886  ;;  %v4946_v53 = vmul.f32 1.442695, %v4838_v32  ;;  %v3945_v55 = vmul.f32 0.3275911, %v11180_v17  ;;  %7898 = vrcp.f32 %v4008_v12  ;;  %v4777_v4 = vsub.f32 0.0, %v11180_v17 }
 0xcca   : > { %v4706_v41 = vmul.f32 %v11113_v9, %v4642_v6  ;;  %v4198_v28 = vmul.f32 1.0614054, %v11171_v49  ;;  %v7889_v27 = vpop.eup %7888  ;;  %v4643_v34 = vadd.f32 0.2548296, %v4579_v11  ;;  %v4452_v60 = vmul.f32 %v11136_v62, %v4388_v26 }
 0xccb   : > { %v11182_v44 = vpop.eup %7890  ;;  %v4389_v42 = vadd.f32 1.4214138, %v4325_v40  ;;  %7900 = vpow2.f32 %v4946_v53  ;;  %v2535_v57 = vand.u32 65535, %v11053_v63 }
 0xccc   : > { %v5026_v30 = vmul.f32 %v7889_v27, %v4706_v41  ;;  %v4262_v56 = vadd.f32 -1.4531521, %v4198_v28  ;;  %v4707_v9 = vmul.f32 %v11123_v14, %v4643_v34  ;;  %v4516_v61 = vadd.f32 -0.28449672, %v4452_v60  ;;  %v7893_v6 = vpop.eup %7892 }
 0xccd   : > { %v4199_v31 = vmul.f32 1.0614054, %v11182_v44  ;;  %v4453_v32 = vmul.f32 %v11153_v45, %v4389_v42  ;;  %v4948_v28 = vmul.f32 1.442695, %v4839_v51  ;;  %v4009_v34 = vadd.f32 1.0, %v3945_v55 }
 0xcce   : > { %v5090_v11 = vsub.f32 1.0, %v5026_v30  ;;  %v4326_v26 = vmul.f32 %v11171_v49, %v4262_v56  ;;  %v5027_v59 = vmul.f32 %v7893_v6, %v4707_v9  ;;  %v4580_v41 = vmul.f32 %v11136_v62, %v4516_v61  ;;  %v7895_v30 = vpop.eup %7894 }
 0xccf   : > { %v4263_v14 = vadd.f32 -1.4531521, %v4199_v31  ;;  %v4517_v48 = vadd.f32 -0.28449672, %v4453_v32  ;;  %7902 = vrcp.f32 %v4009_v34  ;;  %v7897_v9 = vpop.eup %7896  ;;  %v4776_v42 = vsub.f32 0.0, %v11169_v5 }
 0xcd0   : > { %v5154_v22 = vmul.f32 %v5090_v11, %v3810_v24  ;;  %v4390_v27 = vadd.f32 1.4214138, %v4326_v26  ;;  %v5091_v60 = vsub.f32 1.0, %v5027_v59  ;;  %v4644_v40 = vadd.f32 0.2548296, %v4580_v41 }
 0xcd1   : > { %v4327_v12 = vmul.f32 %v11182_v44, %v4263_v14  ;;  %v4581_v24 = vmul.f32 %v11153_v45, %v4517_v48  ;;  %v3619_v55 = vmul.f32 0.5, %v11075_v52  ;;  %7904 = vpow2.f32 %v4948_v28 }
 0xcd2   : > { %v4454_v56 = vmul.f32 %v11171_v49, %v4390_v27  ;;  %v5155_v61 = vmul.f32 %v5091_v60, %v3811_v19  ;;  %v4708_v51 = vmul.f32 %v11136_v62, %v4644_v40  ;;  %v5218_v59 = vadd.f32 1.0, %v5154_v22 }
 0xcd3   : > { %v4391_v6 = vadd.f32 1.4214138, %v4327_v12  ;;  %v4645_v31 = vadd.f32 0.2548296, %v4581_v24  ;;  %v3812_v41 = vsel %vm3748_vm9, 1.0, %v12639_v20  ;;  %v4840_v22 = vmul.f32 %v4776_v42, %v11169_v5  ;;  %v7899_v27 = vpop.eup %7898 }
 0xcd4   : > { %v4518_v53 = vadd.f32 -0.28449672, %v4454_v56  ;;  %v5219_v11 = vadd.f32 1.0, %v5155_v61  ;;  %v5028_v26 = vmul.f32 %v7895_v30, %v4708_v51  ;;  %v5282_v14 = vmul.f32 %v5218_v59, %v11128_v2 }
 0xcd5   : > { %v4455_v48 = vmul.f32 %v11182_v44, %v4391_v6  ;;  %v4709_v52 = vmul.f32 %v11153_v45, %v4645_v31  ;;  %v4200_v30 = vmul.f32 1.0614054, %v7899_v27  ;;  %v3620_v56 = vmul.f32 0.5, %v11085_v35  ;;  %v7901_v45 = vpop.eup %7900 }
 0xcd6   : > { %v4582_v62 = vmul.f32 %v11171_v49, %v4518_v53  ;;  %v5283_v19 = vmul.f32 %v5219_v11, %v3619_v55  ;;  %v5092_v32 = vsub.f32 1.0, %v5028_v26  ;;  %v3813_v5 = vsel %vm3749_vm10, 1.0, %v12639_v20 }
 0xcd7   : > { %v4519_v34 = vadd.f32 -0.28449672, %v4455_v48  ;;  %v5029_v40 = vmul.f32 %v7897_v9, %v4709_v52  ;;  %v4264_v24 = vadd.f32 -1.4531521, %v4200_v30  ;;  %v4950_v55 = vmul.f32 1.442695, %v4840_v22 }
 0xcd8   : > { %v4646_v28 = vadd.f32 0.2548296, %v4582_v62  ;;  %v5156_v60 = vmul.f32 %v5092_v32, %v3812_v41  ;;  %v5326_v51 = vpack.c.bf16 %v5283_v19, %v5282_v14  ;;  %v4841_v35 = vmul.f32 %v4777_v4, %v11180_v17 }
 0xcd9   : > { %v4583_v61 = vmul.f32 %v11182_v44, %v4519_v34  ;;  %v5093_v2 = vsub.f32 1.0, %v5029_v40  ;;  %v7903_v42 = vpop.eup %7902  ;;  %v4328_v6 = vmul.f32 %v7899_v27, %v4264_v24  ;;  %v3621_v26 = vmul.f32 0.5, %v11095_v29 }
 0xcda   : > { %v4710_v12 = vmul.f32 %v11171_v49, %v4646_v28  ;;  %7588 = vmatprep.mubr.msk.bf16.mxu0 %vm5370_vm5, %v5326_v51  ;;  %v5220_v49 = vadd.f32 1.0, %v5156_v60  ;;  %v4201_v11 = vmul.f32 1.0614054, %v7903_v42  ;;  %7906 = vpow2.f32 %v4950_v55 }
 0xcdb   : > { %v4647_v9 = vadd.f32 0.2548296, %v4583_v61  ;;  %v5157_v53 = vmul.f32 %v5093_v2, %v3813_v5  ;;  %v7905_v41 = vpop.eup %7904  ;;  %v4392_v48 = vadd.f32 1.4214138, %v4328_v6  ;;  %v4952_v52 = vmul.f32 1.442695, %v4841_v35 }
 0xcdc   : > { %v5030_v59 = vmul.f32 %v7901_v45, %v4710_v12  ;;  %v4265_v19 = vadd.f32 -1.4531521, %v4201_v11  ;;  %v5284_v22 = vmul.f32 %v5220_v49, %v3620_v56  ;;  %v3815_v4 = vsel %vm3751_vm12, 1.0, %v12639_v20 }
 0xcdd   : > { %v4711_v1 = vmul.f32 %v11182_v44, %v4647_v9  ;;  %v5221_v62 = vadd.f32 1.0, %v5157_v53  ;;  %v4456_v28 = vmul.f32 %v7899_v27, %v4392_v48  ;;  %7908 = vpow2.f32 %v4952_v52 }
 0xcde   : > { %v5094_v31 = vsub.f32 1.0, %v5030_v59  ;;  %v4329_v34 = vmul.f32 %v7903_v42, %v4265_v19  ;;  %v3622_v51 = vmul.f32 0.5, %v11103_v15  ;;  %v3623_v56 = vmul.f32 0.5, %v11111_v33 }
 0xcdf   : > { %v5031_v32 = vmul.f32 %v7905_v41, %v4711_v1  ;;  %v5285_v14 = vmul.f32 %v5221_v62, %v3621_v26  ;;  %v4520_v60 = vadd.f32 -0.28449672, %v4456_v28  ;;  %v2423_v35 = vand.u32 65535, %v10984_v43 }
 0xce0   : > { %v5158_v17 = vmul.f32 %v5094_v31, %v3814_v23  ;;  %v4393_v40 = vadd.f32 1.4214138, %v4329_v34  ;;  %v2439_v31 = vand.u32 65535, %v10993_v7  ;;  %v2455_v62 = vand.u32 65535, %v11003_v47 }
 0xce1   : > { %v5095_v29 = vsub.f32 1.0, %v5031_v32  ;;  %v5327_v44 = vpack.c.bf16 %v5285_v14, %v5284_v22  ;;  %v4584_v3 = vmul.f32 %v7899_v27, %v4520_v60  ;;  %v2425_v23 = vcvt.s32.f32 %v2423_v35  ;;  %v12913_v35 = vld [vmem:[#allocation18_spill] sm:$0xff] }
 0xce2   : > { %v5222_v30 = vadd.f32 1.0, %v5158_v17  ;;  %v4457_v61 = vmul.f32 %v7903_v42, %v4393_v40  ;;  %v2441_v19 = vcvt.s32.f32 %v2439_v31  ;;  %v3817_v17 = vsel %vm3753_vm15, 1.0, %v12639_v20 }
 0xce3   : > { %v5159_v12 = vmul.f32 %v5095_v29, %v3815_v4  ;;  %7589 = vmatmul.mubr.msk.bf16.gmra.mrb[56].mxu0 %vm5370_vm5, %v5327_v44  ;;  %v4648_v5 = vadd.f32 0.2548296, %v4584_v3  ;;  %v3624_v22 = vmul.f32 0.5, %v11142_v39  ;;  %v2471_v47 = vand.u32 65535, %v11013_v58 }
 0xce4   : > { %v4521_v2 = vadd.f32 -0.28449672, %v4457_v61  ;;  %v5286_v24 = vmul.f32 %v5222_v30, %v3622_v51  ;;  %v7907_v49 = vpop.eup %7906  ;;  %v2487_v44 = vand.u32 65535, %v11023_v16  ;;  %v2505_v16 = vcvt.s32.f32 %v2503_v18 }
 0xce5   : > { %v5223_v45 = vadd.f32 1.0, %v5159_v12  ;;  %v4712_v9 = vmul.f32 %v7899_v27, %v4648_v5  ;;  %v3816_v27 = vsel %vm3752_vm13, 1.0, %v12639_v20  ;;  %v2473_v40 = vcvt.s32.f32 %v2471_v47 }
 0xce6   : > { %v4585_v55 = vmul.f32 %v7903_v42, %v4521_v2  ;;  %v2519_v3 = vand.u32 65535, %v11043_v54 }
 0xce7   : > { %v5287_v59 = vmul.f32 %v5223_v45, %v3623_v56  ;;  %v5032_v6 = vmul.f32 %v7907_v49, %v4712_v9  ;;  %v7909_v1 = vpop.eup %7908  ;;  %v2537_v45 = vcvt.s32.f32 %v2535_v57 }
 0xce8   : > { %v4649_v11 = vadd.f32 0.2548296, %v4585_v55  ;;  %v2521_v51 = vcvt.s32.f32 %v2519_v3 }
 0xce9   : > { %v5328_v53 = vpack.c.bf16 %v5287_v59, %v5286_v24  ;;  %v5096_v15 = vsub.f32 1.0, %v5032_v6  ;;  %v12915_v6 = vld [vmem:[#allocation47_spill] sm:$0xff] }
 0xcea   : > { %v4713_v26 = vmul.f32 %v7903_v42, %v4649_v11 }
 0xceb   : > { %7592 = vmatprep.mubr.msk.bf16.mxu0 %vm5370_vm5, %v5328_v53  ;;  %v5160_v43 = vmul.f32 %v5096_v15, %v3816_v27  ;;  %v12914_v53 = vld [vmem:[#allocation39_spill] sm:$0xff]  ;;  %v12916_v27 = vld [vmem:[#allocation48_spill] sm:$0xff] }
 0xcec   : > { %v11227_v33 = vpop.xlane.xlu0 %2427  ;;  %v5033_v25 = vmul.f32 %v7909_v1, %v4713_v26 }
 0xced   : > { %vm2429_vm14 = vcmp.eq.f32.partialorder %v10991_v36, %v11227_v33  ;;  %v5224_v7 = vadd.f32 1.0, %v5160_v43  ;;  %v2457_v36 = vcvt.s32.f32 %v2455_v62 }
 0xcee   : > { %v2430_v41 = vsel %vm2429_vm14, %v2425_v23, inf  ;;  %v5097_v42 = vsub.f32 1.0, %v5033_v25  ;;  %v12917_v25 = vld [vmem:[#allocation40_spill] sm:$0xff] }
 0xcef   : > { %2431 = vmin.xlane.f32.xlu0 %v2430_v41  ;;  %v5288_v34 = vmul.f32 %v5224_v7, %v3624_v22  ;;  %v12920_v22 = vld [vmem:[#allocation49_spill] sm:$0xff] }
 0xcf0   : > { %v2444_v48 = vpop.xlane.xlu1 %2443  ;;  %v5161_v32 = vmul.f32 %v5097_v42, %v3817_v17  ;;  %v12918_v42 = vmov 1.0|1.0  }
 0xcf1   : > { %vm2445_vm0 = vcmp.eq.f32.partialorder %v11001_v21, %v2444_v48  ;;  %v2450_v24 = vcvt.f32.s32 %v2444_v48 }
 0xcf2   : > { %v2446_v52 = vsel %vm2445_vm0, %v2441_v19, inf  ;;  %v5225_v14 = vadd.f32 1.0, %v5161_v32 }
 0xcf3   : > { %2447 = vmin.xlane.f32.xlu1 %v2446_v52  ;;  %v12919_v52 = vld [vmem:[#allocation41_spill] sm:$0xff] }
 0xcf4   : > { %v2460_v28 = vpop.xlane.xlu0 %2459  ;;  %v5289_v29 = vmul.f32 %v5225_v14, %v3625_v46 }
 0xcf5   : > { %vm2461_vm1 = vcmp.eq.f32.partialorder %v11011_v38, %v2460_v28  ;;  %v2489_v38 = vcvt.s32.f32 %v2487_v44  ;;  %v2466_v9 = vcvt.f32.s32 %v2460_v28 }
 0xcf6   : > { %v2462_v4 = vsel %vm2461_vm1, %v2457_v36, inf  ;;  %v5329_v21 = vpack.c.bf16 %v5289_v29, %v5288_v34 }
 0xcf7   : > { %2463 = vmin.xlane.f32.xlu0 %v2462_v4 }
 0xcf8   : > { %v11241_v60 = vpop.xlane.xlu1 %2475  ;;  %7593 = vmatmul.mubr.msk.bf16.gmra.mrb[60].mxu0 %vm5370_vm5, %v5329_v21  ;;  %v12921_v21 = vld [vmem:[#allocation50_spill] sm:$0xff] }
 0xcf9   : > { %vm2477_vm2 = vcmp.eq.f32.partialorder %v11021_v0, %v11241_v60  ;;  %v2482_v31 = vcvt.f32.s32 %v11241_v60 }
 0xcfa   : > { %v2478_v39 = vsel %vm2477_vm2, %v2473_v40, inf  ;;  %v12922_v40 = vld [vmem:[#allocation42_spill] sm:$0xff] }
 0xcfb   : > { %2479 = vmin.xlane.f32.xlu1 %v2478_v39  ;;  %v2483_v7 = vshll.u32 %v2482_v31, 16 }
 0xcfc   : > { %v11247_v58 = vpop.xlane.xlu0 %2491 }
 0xcfd   : > { %vm2493_vm3 = vcmp.eq.f32.partialorder %v11031_v8, %v11247_v58  ;;  %v2498_v19 = vcvt.f32.s32 %v11247_v58 }
 0xcfe   : > { %v2494_v30 = vsel %vm2493_vm3, %v2489_v38, inf }
 0xcff   : > { %2495 = vmin.xlane.f32.xlu0 %v2494_v30  ;;  %v2499_v47 = vshll.u32 %v2498_v19, 16 }
 0xd00   : > { %v11252_v12 = vpop.xlane.xlu1 %2507 }
 0xd01   : > { %vm2509_vm4 = vcmp.eq.f32.partialorder %v11041_v13, %v11252_v12  ;;  %v2434_v13 = vcvt.f32.s32 %v11227_v33  ;;  %v2467_v33 = vshll.u32 %v2466_v9, 16  ;;  %v2514_v29 = vcvt.f32.s32 %v11252_v12 }
 0xd02   : > { %v2510_v0 = vsel %vm2509_vm4, %v2505_v16, inf  ;;  %v12923_v16 = vld [vmem:[#allocation19_spill] sm:$0xff] }
 0xd03   : > { %2511 = vmin.xlane.f32.xlu1 %v2510_v0  ;;  %v2435_v2 = vshll.u32 %v2434_v13, 16  ;;  %v2515_v30 = vshll.u32 %v2514_v29, 16  ;;  %v12924_v0 = vld [vmem:[#allocation20_spill] sm:$0xff] }
 0xd04   : > { %v11257_v61 = vpop.xlane.xlu0 %2523 }
 0xd05   : > { %vm2525_vm6 = vcmp.eq.f32.partialorder %v11051_v50, %v11257_v61  ;;  %v2451_v50 = vshll.u32 %v2450_v24, 16  ;;  %v2530_v38 = vcvt.f32.s32 %v11257_v61  ;;  %v12926_v24 = vld [vmem:[#allocation21_spill] sm:$0xff] }
 0xd06   : > { %v2526_v8 = vsel %vm2525_vm6, %v2521_v51, inf }
 0xd07   : > { %2527 = vmin.xlane.f32.xlu0 %v2526_v8  ;;  %v2531_v8 = vshll.u32 %v2530_v38, 16 }
 0xd08   : > { %v11262_v56 = vpop.xlane.xlu1 %2539 }
 0xd09   : > { %vm2541_vm7 = vcmp.eq.f32.partialorder %v11057_v37, %v11262_v56 }
 0xd0a   : > { %v2542_v54 = vsel %vm2541_vm7, %v2537_v45, inf }
 0xd0b   : > { %2543 = vmin.xlane.f32.xlu1 %v2542_v54  ;;  %v2546_v54 = vcvt.f32.s32 %v11262_v56 }
 0xd7c   : > { %v2432_v5 = vpop.xlane.xlu0 %2431 }
 0xd7d   : > { %v2433_v59 = vcvt.f32.s32 %v2432_v5  ;;  %v12925_v5 = vld [vmem:[#allocation22_spill] sm:$0xff] }
 0xd7f   : > { %v2436_v63 = vadd.s32 %v2435_v2, %v2433_v59 }
 0xd80   : > { %v2448_v55 = vpop.xlane.xlu1 %2447 }
 0xd81   : > { %vm2549_vm8 = vcmp.eq.s32.totalorder %v8545_v10, %v2436_v63  ;;  %vm2550_vm9 = vcmp.eq.s32.totalorder %v12913_v35, %v2436_v63  ;;  %v2449_v49 = vcvt.f32.s32 %v2448_v55  ;;  %v2547_v55 = vshll.u32 %v2546_v54, 16 }
 0xd82   : > { %v11272_v37 = vsel %vm2549_vm8, inf, %v12914_v53  ;;  %v11275_v11 = vsel %vm2550_vm9, inf, %v12915_v6  ;;  %v12928_v6 = vld [vmem:[#allocation24_spill] sm:$0xff] }
 0xd83   : > { %v2452_v15 = vadd.s32 %v2451_v50, %v2449_v49  ;;  %v2632_v26 = vmin.f32 %v11272_v37, %v11275_v11  ;;  %v12927_v49 = vld [vmem:[#allocation23_spill] sm:$0xff] }
 0xd84   : > { %v2464_v23 = vpop.xlane.xlu0 %2463 }
 0xd85   : > { %v2465_v1 = vcvt.f32.s32 %v2464_v23  ;;  %2633 = vmin.xlane.f32.xlu0 %v2632_v26  ;;  %vm2552_vm10 = vcmp.eq.s32.totalorder %v12913_v35, %v2452_v15  ;;  %vm2551_vm11 = vcmp.eq.s32.totalorder %v8545_v10, %v2452_v15  ;;  %v12929_v23 = vld [vmem:[#allocation25_spill] sm:$0xff] }
 0xd86   : > { %vm7472_vm12 = vmpackc.low %vm2552_vm10, %vm2550_vm9  ;;  %v11283_v43 = vsel %vm2551_vm11, inf, %v12916_v27  ;;  %v11286_v41 = vsel %vm2552_vm10, inf, %v12917_v25 }
 0xd87   : > { %v2468_v62 = vadd.s32 %v2467_v33, %v2465_v1  ;;  %7473 = vmatprep.mubr.msk.bf16.mxu1 %vm7472_vm12, %v12918_v42  ;;  %vm7474_vm13 = vmpackc.low %vm2551_vm11, %vm2549_vm8  ;;  %v2635_v48 = vmin.f32 %v11283_v43, %v11286_v41  ;;  %v12930_v1 = vld [vmem:[#allocation26_spill] sm:$0xff] }
 0xd88   : > { %7475 = vmatmul.mubr.msk.bf16.gmra.mrb[96].mxu1 %vm7474_vm13, %v12918_v42  ;;  %v2480_v17 = vpop.xlane.xlu1 %2479 }
 0xd89   : > { %vm2553_vm14 = vcmp.eq.s32.totalorder %v8545_v10, %v2468_v62  ;;  %vm2554_vm15 = vcmp.eq.s32.totalorder %v12913_v35, %v2468_v62  ;;  %v2481_v32 = vcvt.f32.s32 %v2480_v17  ;;  %2636 = vmin.xlane.f32.xlu1 %v2635_v48 }
 0xd8a   : > { %v11300_v36 = vsel %vm2553_vm14, inf, %v12919_v52  ;;  %v11303_v46 = vsel %vm2554_vm15, inf, %v12920_v22 }
 0xd8b   : > { %v2484_v14 = vadd.s32 %v2483_v7, %v2481_v32  ;;  %v2638_v28 = vmin.f32 %v11300_v36, %v11303_v46 }
 0xd8c   : > { %v2496_v34 = vpop.xlane.xlu0 %2495 }
 0xd8d   : > { %v2497_v4 = vcvt.f32.s32 %v2496_v34  ;;  %2639 = vmin.xlane.f32.xlu0 %v2638_v28  ;;  %vm2556_vm0 = vcmp.eq.s32.totalorder %v12913_v35, %v2484_v14  ;;  %vm2555_vm1 = vcmp.eq.s32.totalorder %v8545_v10, %v2484_v14  ;;  %v11533_v34 = vld [vmem:[%s8895_s26 + $0x20] sm:$0xff] }
 0xd8e   : > { %vm7476_vm2 = vmpackc.low %vm2556_vm0, %vm2554_vm15  ;;  %v11311_v60 = vsel %vm2555_vm1, inf, %v12921_v21  ;;  %v11314_v44 = vsel %vm2556_vm0, inf, %v12922_v40  ;;  %12953 = vst [vmem:[#allocation49_spill] sm:$0xff] %v11533_v34 }
 0xd8f   : > { %v2500_v39 = vadd.s32 %v2499_v47, %v2497_v4  ;;  %7477 = vmatprep.mubr.msk.bf16.mxu1 %vm7476_vm2, %v12918_v42  ;;  %vm7478_vm3 = vmpackc.low %vm2555_vm1, %vm2553_vm14  ;;  %v2641_v58 = vmin.f32 %v11311_v60, %v11314_v44 }
 0xd90   : > { %7479 = vmatmul.mubr.msk.bf16.gmra.mrb[100].mxu1 %vm7478_vm3, %v12918_v42  ;;  %v2512_v18 = vpop.xlane.xlu1 %2511 }
 0xd91   : > { %vm2557_vm4 = vcmp.eq.s32.totalorder %v8545_v10, %v2500_v39  ;;  %vm2558_vm6 = vcmp.eq.s32.totalorder %v12913_v35, %v2500_v39  ;;  %v2513_v12 = vcvt.f32.s32 %v2512_v18  ;;  %2642 = vmin.xlane.f32.xlu1 %v2641_v58 }
 0xd92   : > { %v11328_v3 = vsel %vm2557_vm4, inf, %v12923_v16  ;;  %v11331_v51 = vsel %vm2558_vm6, inf, %v12924_v0 }
 0xd93   : > { %v2516_v57 = vadd.s32 %v2515_v30, %v2513_v12  ;;  %v2644_v61 = vmin.f32 %v11328_v3, %v11331_v51  ;;  %v11525_v30 = vld [vmem:[%s8895_s26 + $0x18] sm:$0xff] }
 0xd94   : > { %v2528_v45 = vpop.xlane.xlu0 %2527  ;;  %12952 = vst [vmem:[#allocation41_spill] sm:$0xff] %v11525_v30 }
 0xd95   : > { %v2529_v13 = vcvt.f32.s32 %v2528_v45  ;;  %2645 = vmin.xlane.f32.xlu0 %v2644_v61  ;;  %vm2560_vm7 = vcmp.eq.s32.totalorder %v12913_v35, %v2516_v57  ;;  %vm2559_vm8 = vcmp.eq.s32.totalorder %v8545_v10, %v2516_v57 }
 0xd96   : > { %vm7480_vm9 = vmpackc.low %vm2560_vm7, %vm2558_vm6  ;;  %v11339_v2 = vsel %vm2559_vm8, inf, %v12925_v5  ;;  %v11342_v59 = vsel %vm2560_vm7, inf, %v12926_v24 }
 0xd97   : > { %v2532_v63 = vadd.s32 %v2531_v8, %v2529_v13  ;;  %7481 = vmatprep.mubr.msk.bf16.mxu1 %vm7480_vm9, %v12918_v42  ;;  %vm7482_vm10 = vmpackc.low %vm2559_vm8, %vm2557_vm4  ;;  %v2647_v56 = vmin.f32 %v11339_v2, %v11342_v59 }
 0xd98   : > { %7483 = vmatmul.mubr.msk.bf16.gmra.mrb[104].mxu1 %vm7482_vm10, %v12918_v42  ;;  %v2544_v9 = vpop.xlane.xlu1 %2543 }
 0xd99   : > { %vm2561_vm11 = vcmp.eq.s32.totalorder %v8545_v10, %v2532_v63  ;;  %vm2562_vm12 = vcmp.eq.s32.totalorder %v12913_v35, %v2532_v63  ;;  %v2545_v50 = vcvt.f32.s32 %v2544_v9  ;;  %2648 = vmin.xlane.f32.xlu1 %v2647_v56 }
 0xd9a   : > { %v11355_v53 = vsel %vm2561_vm11, inf, %v12927_v49  ;;  %v11358_v15 = vsel %vm2562_vm12, inf, %v12928_v6 }
 0xd9b   : > { %v2548_v26 = vadd.s32 %v2547_v55, %v2545_v50  ;;  %v2650_v33 = vmin.f32 %v11355_v53, %v11358_v15 }
 0xd9d   : > { %2651 = vmin.xlane.f32.xlu0 %v2650_v33  ;;  %vm2564_vm13 = vcmp.eq.s32.totalorder %v12913_v35, %v2548_v26  ;;  %vm2563_vm14 = vcmp.eq.s32.totalorder %v8545_v10, %v2548_v26 }
 0xd9e   : > { %vm7484_vm15 = vmpackc.low %vm2564_vm13, %vm2562_vm12  ;;  %v11365_v31 = vsel %vm2563_vm14, inf, %v12929_v23  ;;  %v11368_v27 = vsel %vm2564_vm13, inf, %v12930_v1 }
 0xd9f   : > { %7485 = vmatprep.mubr.msk.bf16.mxu1 %vm7484_vm15, %v12918_v42  ;;  %vm7486_vm0 = vmpackc.low %vm2563_vm14, %vm2561_vm11  ;;  %v2653_v25 = vmin.f32 %v11365_v31, %v11368_v27 }
 0xda0   : > { %7487 = vmatmul.mubr.msk.bf16.gmra.mrb[108].mxu1 %vm7486_vm0, %v12918_v42 }
 0xda1   : > { %2654 = vmin.xlane.f32.xlu1 %v2653_v25 }
 0xdb6   : > { %v11376_v62 = vpop.f32.mrb[56].mxu0 }
 0xdb7   : > { %12931 = vst [vmem:[#allocation37_spill] sm:$0xff] %v11376_v62  ;;  %v11380_v17 = vpop.f32.mrb[57].mxu0 }
 0xdb8   : > { %12933 = vst [vmem:[#allocation31_spill] sm:$0xff] %v11380_v17  ;;  %v11384_v52 = vpop.f32.mrb[58].mxu0 }
 0xdb9   : > { %12935 = vst [vmem:[#allocation45_spill] sm:$0xff] %v11384_v52  ;;  %v11388_v28 = vpop.f32.mrb[59].mxu0 }
 0xdba   : > { %12937 = vst [vmem:[#allocation32_spill] sm:$0xff] %v11388_v28 }
 0xdcb   : > { %v11392_v29 = vpop.f32.mrb[60].mxu0 }
 0xdcc   : > { %12939 = vst [vmem:[#allocation38_spill] sm:$0xff] %v11392_v29  ;;  %v11396_v40 = vpop.f32.mrb[61].mxu0 }
 0xdcd   : > { %12941 = vst [vmem:[#allocation34_spill] sm:$0xff] %v11396_v40  ;;  %v11400_v38 = vpop.f32.mrb[62].mxu0 }
 0xdce   : > { %12943 = vst [vmem:[#allocation46_spill] sm:$0xff] %v11400_v38  ;;  %v11404_v12 = vpop.f32.mrb[63].mxu0 }
 0xdcf   : > { %12945 = vst [vmem:[#allocation33_spill] sm:$0xff] %v11404_v12 }
 0xe12   : > { %v2634_v57 = vpop.xlane.xlu0 %2633 }
 0xe13   : > { %vm2656_vm1 = vcmp.le.f32.partialorder %v11272_v37, %v2634_v57  ;;  %vm2657_vm2 = vcmp.le.f32.partialorder %v11275_v11, %v2634_v57 }
 0xe14   : > { %v2672_v61 = vsel %vm2656_vm1, %v8545_v10, 256  ;;  %v2673_v8 = vsel %vm2657_vm2, %v12913_v35, 256 }
 0xe15   : > { %vm2688_vm3 = vcmp.lt.s32.totalorder %v2672_v61, %v2673_v8 }
 0xe16   : > { %v11412_v45 = vsel %vm2688_vm3, %v2672_v61, %v2673_v8  ;;  %v2637_v54 = vpop.xlane.xlu1 %2636 }
 0xe17   : > { %vm2658_vm4 = vcmp.le.f32.partialorder %v11283_v43, %v2637_v54  ;;  %vm2659_vm6 = vcmp.le.f32.partialorder %v11286_v41, %v2637_v54  ;;  %v2691_v13 = vshra.s32 %v11412_v45, 16 }
 0xe18   : > { %v2674_v5 = vsel %vm2658_vm4, %v8545_v10, 256  ;;  %v2675_v37 = vsel %vm2659_vm6, %v12913_v35, 256 }
 0xe19   : > { %vm2704_vm7 = vcmp.lt.s32.totalorder %v2674_v5, %v2675_v37  ;;  %v11419_v11 = vcvt.s32.f32 %v2691_v13 }
 0xe1a   : > { %v11421_v24 = vsel %vm2704_vm7, %v2674_v5, %v2675_v37  ;;  %v2640_v63 = vpop.xlane.xlu0 %2639 }
 0xe1b   : > { %vm2660_vm8 = vcmp.le.f32.partialorder %v11300_v36, %v2640_v63  ;;  %vm2661_vm9 = vcmp.le.f32.partialorder %v11303_v46, %v2640_v63  ;;  %2694 = vmin.xlane.f32.xlu0 %v11419_v11  ;;  %v2707_v43 = vshra.s32 %v11421_v24, 16 }
 0xe1c   : > { %v2676_v41 = vsel %vm2660_vm8, %v8545_v10, 256  ;;  %v2677_v56 = vsel %vm2661_vm9, %v12913_v35, 256 }
 0xe1d   : > { %vm2720_vm10 = vcmp.lt.s32.totalorder %v2676_v41, %v2677_v56  ;;  %v11429_v9 = vcvt.s32.f32 %v2707_v43 }
 0xe1e   : > { %v11431_v55 = vsel %vm2720_vm10, %v2676_v41, %v2677_v56  ;;  %v2643_v50 = vpop.xlane.xlu1 %2642 }
 0xe1f   : > { %vm2662_vm11 = vcmp.le.f32.partialorder %v11311_v60, %v2643_v50  ;;  %vm2663_vm12 = vcmp.le.f32.partialorder %v11314_v44, %v2643_v50  ;;  %2710 = vmin.xlane.f32.xlu1 %v11429_v9  ;;  %v2723_v36 = vshra.s32 %v11431_v55, 16 }
 0xe20   : > { %v2678_v46 = vsel %vm2662_vm11, %v8545_v10, 256  ;;  %v2679_v49 = vsel %vm2663_vm12, %v12913_v35, 256 }
 0xe21   : > { %vm2736_vm13 = vcmp.lt.s32.totalorder %v2678_v46, %v2679_v49  ;;  %v11439_v6 = vcvt.s32.f32 %v2723_v36 }
 0xe22   : > { %v11441_v26 = vsel %vm2736_vm13, %v2678_v46, %v2679_v49  ;;  %v2646_v33 = vpop.xlane.xlu0 %2645  ;;  %v11489_v46 = vld [vmem:[%s8895_s26] sm:$0xff] }
 0xe23   : > { %vm2664_vm14 = vcmp.le.f32.partialorder %v11328_v3, %v2646_v33  ;;  %vm2665_vm15 = vcmp.le.f32.partialorder %v11331_v51, %v2646_v33  ;;  %2726 = vmin.xlane.f32.xlu0 %v11439_v6  ;;  %v2739_v60 = vshra.s32 %v11441_v26, 16  ;;  %12947 = vst [vmem:[#allocation18_spill] sm:$0xff] %v11489_v46 }
 0xe24   : > { %v2680_v44 = vsel %vm2664_vm14, %v8545_v10, 256  ;;  %v2681_v23 = vsel %vm2665_vm15, %v12913_v35, 256 }
 0xe25   : > { %vm2752_vm0 = vcmp.lt.s32.totalorder %v2680_v44, %v2681_v23  ;;  %v11449_v1 = vcvt.s32.f32 %v2739_v60 }
 0xe26   : > { %v11451_v25 = vsel %vm2752_vm0, %v2680_v44, %v2681_v23  ;;  %v2649_v57 = vpop.xlane.xlu1 %2648  ;;  %v11492_v44 = vld [vmem:[#allocation3] ss:$0 sm:$0xff] }
 0xe27   : > { %vm2666_vm1 = vcmp.le.f32.partialorder %v11339_v2, %v2649_v57  ;;  %vm2667_vm2 = vcmp.le.f32.partialorder %v11342_v59, %v2649_v57  ;;  %2742 = vmin.xlane.f32.xlu1 %v11449_v1  ;;  %v2755_v3 = vshra.s32 %v11451_v25, 16  ;;  %12948 = vst [vmem:[#allocation39_spill] sm:$0xff] %v11492_v44  ;;  %v11496_v57 = vld [vmem:[%s8895_s26 + $0x8] sm:$0xff] }
 0xe28   : > { %v2682_v51 = vsel %vm2666_vm1, %v8545_v10, 256  ;;  %v2683_v61 = vsel %vm2667_vm2, %v12913_v35, 256  ;;  %12949 = vst [vmem:[#allocation47_spill] sm:$0xff] %v11496_v57 }
 0xe29   : > { %vm2768_vm3 = vcmp.lt.s32.totalorder %v2682_v51, %v2683_v61  ;;  %v11459_v8 = vcvt.s32.f32 %v2755_v3 }
 0xe2a   : > { %v11461_v54 = vsel %vm2768_vm3, %v2682_v51, %v2683_v61  ;;  %v2652_v13 = vpop.xlane.xlu0 %2651  ;;  %v11499_v61 = vld [vmem:[#allocation5] ss:$0 sm:$0xff] }
 0xe2b   : > { %vm2668_vm4 = vcmp.le.f32.partialorder %v11355_v53, %v2652_v13  ;;  %vm2669_vm6 = vcmp.le.f32.partialorder %v11358_v15, %v2652_v13  ;;  %2758 = vmin.xlane.f32.xlu0 %v11459_v8  ;;  %v2771_v2 = vshra.s32 %v11461_v54, 16  ;;  %12950 = vst [vmem:[#allocation48_spill] sm:$0xff] %v11499_v61 }
 0xe2c   : > { %v2684_v59 = vsel %vm2668_vm4, %v8545_v10, 256  ;;  %v2685_v5 = vsel %vm2669_vm6, %v12913_v35, 256 }
 0xe2d   : > { %vm2784_vm7 = vcmp.lt.s32.totalorder %v2684_v59, %v2685_v5  ;;  %v11469_v37 = vcvt.s32.f32 %v2771_v2 }
 0xe2e   : > { %v11471_v63 = vsel %vm2784_vm7, %v2684_v59, %v2685_v5  ;;  %v2655_v43 = vpop.xlane.xlu1 %2654 }
 0xe2f   : > { %vm2670_vm8 = vcmp.le.f32.partialorder %v11365_v31, %v2655_v43  ;;  %vm2671_vm9 = vcmp.le.f32.partialorder %v11368_v27, %v2655_v43  ;;  %2774 = vmin.xlane.f32.xlu1 %v11469_v37  ;;  %v2787_v53 = vshra.s32 %v11471_v63, 16 }
 0xe30   : > { %v2686_v15 = vsel %vm2670_vm8, %v8545_v10, 256  ;;  %v2687_v41 = vsel %vm2671_vm9, %v12913_v35, 256 }
 0xe31   : > { %vm2800_vm10 = vcmp.lt.s32.totalorder %v2686_v15, %v2687_v41  ;;  %v11479_v56 = vcvt.s32.f32 %v2787_v53 }
 0xe32   : > { %v11481_v50 = vsel %vm2800_vm10, %v2686_v15, %v2687_v41  ;;  %v11516_v41 = vld [vmem:[%s8895_s26 + $0x10] sm:$0xff] }
 0xe33   : > { %2790 = vmin.xlane.f32.xlu0 %v11479_v56  ;;  %v2803_v31 = vshra.s32 %v11481_v50, 16  ;;  %12951 = vst [vmem:[#allocation40_spill] sm:$0xff] %v11516_v41 }
 0xe35   : > { %v11485_v36 = vcvt.s32.f32 %v2803_v31 }
 0xe37   : > { %2806 = vmin.xlane.f32.xlu1 %v11485_v36 }
 0xe5b   : > { %v3301_v27 = vpop.f32.mrb[96].mxu1 }
 0xe5c   : > { %v3420_v49 = vadd.f32 %v11489_v46, %v3301_v27  ;;  %v3303_v33 = vpop.f32.mrb[97].mxu1 }
 0xe5d   : > { %v3304_v60 = vpop.f32.mrb[98].mxu1 }
 0xe5e   : > { %v3491_v23 = vmul.f32 %v11492_v44, %v3420_v49  ;;  %v3421_v3 = vadd.f32 %v11496_v57, %v3304_v60  ;;  %v3306_v51 = vpop.f32.mrb[99].mxu1 }
 0xe60   : > { %v11502_v13 = vadd.f32 %v11499_v61, %v3491_v23  ;;  %v3492_v2 = vmul.f32 %v11492_v44, %v3421_v3 }
 0xe62   : > { %v11506_v59 = vmul.f32 0.70710677, %v11502_v13  ;;  %v11509_v5 = vadd.f32 %v11499_v61, %v3492_v2 }
 0xe63   : > { %v3309_v43 = vpop.f32.mrb[100].mxu1 }
 0xe64   : > { %v3882_v53 = vand.u32 2147483647, %v11506_v59  ;;  %v11513_v15 = vmul.f32 0.70710677, %v11509_v5  ;;  %v3422_v31 = vadd.f32 %v11516_v41, %v3309_v43  ;;  %v3311_v27 = vpop.f32.mrb[101].mxu1  ;;  %vm3754_vm11 = vcmp.ge.f32.partialorder %v11506_v59, 0.0 }
 0xe65   : > { %v3312_v23 = vpop.f32.mrb[102].mxu1 }
 0xe66   : > { %v3946_v49 = vmul.f32 0.3275911, %v3882_v53  ;;  %v3883_v33 = vand.u32 2147483647, %v11513_v15  ;;  %v3493_v60 = vmul.f32 %v11492_v44, %v3422_v31  ;;  %v3314_v2 = vpop.f32.mrb[103].mxu1  ;;  %v3423_v58 = vadd.f32 %v11525_v30, %v3312_v23 }
 0xe67   : > { %v4778_v19 = vsub.f32 0.0, %v3882_v53  ;;  %vm3755_vm12 = vcmp.ge.f32.partialorder %v11513_v15, 0.0 }
 0xe68   : > { %v4010_v3 = vadd.f32 1.0, %v3946_v49  ;;  %v3947_v51 = vmul.f32 0.3275911, %v3883_v33  ;;  %v11522_v0 = vadd.f32 %v11499_v61, %v3493_v60  ;;  %v3494_v21 = vmul.f32 %v11492_v44, %v3423_v58 }
 0xe6a   : > { %7910 = vrcp.f32 %v4010_v3  ;;  %v4011_v43 = vadd.f32 1.0, %v3947_v51  ;;  %v11529_v27 = vmul.f32 0.70710677, %v11522_v0  ;;  %v11538_v14 = vadd.f32 %v11499_v61, %v3494_v21  ;;  %v11542_v51 = vld [vmem:[%s8895_s26 + $0x28] sm:$0xff] }
 0xe6b   : > { %v3317_v31 = vpop.f32.mrb[104].mxu1  ;;  %12954 = vst [vmem:[#allocation50_spill] sm:$0xff] %v11542_v51 }
 0xe6c   : > { %v3424_v49 = vadd.f32 %v11533_v34, %v3317_v31  ;;  %v3319_v2 = vpop.f32.mrb[105].mxu1  ;;  %7912 = vrcp.f32 %v4011_v43  ;;  %v3884_v60 = vand.u32 2147483647, %v11529_v27  ;;  %v11546_v41 = vmul.f32 0.70710677, %v11538_v14 }
 0xe6d   : > { %v3320_v23 = vpop.f32.mrb[106].mxu1  ;;  %v4779_v34 = vsub.f32 0.0, %v3883_v33  ;;  %vm3756_vm13 = vcmp.ge.f32.partialorder %v11529_v27, 0.0 }
 0xe6e   : > { %v3495_v3 = vmul.f32 %v11492_v44, %v3424_v49  ;;  %v3425_v32 = vadd.f32 %v11542_v51, %v3320_v23  ;;  %v3322_v58 = vpop.f32.mrb[107].mxu1  ;;  %v3948_v30 = vmul.f32 0.3275911, %v3884_v60  ;;  %v3885_v2 = vand.u32 2147483647, %v11546_v41 }
 0xe6f   : > { %v4842_v58 = vmul.f32 %v4778_v19, %v3882_v53  ;;  %v4843_v38 = vmul.f32 %v4779_v34, %v3883_v33  ;;  %v4780_v40 = vsub.f32 0.0, %v3884_v60  ;;  %v11578_v33 = vld [vmem:[%s8895_s26 + $0x30] sm:$0xff]  ;;  %vm3757_vm14 = vcmp.ge.f32.partialorder %v11546_v41, 0.0 }
 0xe70   : > { %v11549_v43 = vadd.f32 %v11499_v61, %v3495_v3  ;;  %v3496_v31 = vmul.f32 %v11492_v44, %v3425_v32  ;;  %v4012_v21 = vadd.f32 1.0, %v3948_v30  ;;  %v3949_v51 = vmul.f32 0.3275911, %v3885_v2  ;;  %12955 = vst [vmem:[#allocation42_spill] sm:$0xff] %v11578_v33 }
 0xe71   : > { %v4954_v18 = vmul.f32 1.442695, %v4842_v58  ;;  %v4781_v4 = vsub.f32 0.0, %v3885_v2  ;;  %v4956_v58 = vmul.f32 1.442695, %v4843_v38  ;;  %v4844_v22 = vmul.f32 %v4780_v40, %v3884_v60 }
 0xe72   : > { %v11554_v49 = vmul.f32 0.70710677, %v11549_v43  ;;  %v11557_v23 = vadd.f32 %v11499_v61, %v3496_v31  ;;  %7914 = vrcp.f32 %v4012_v21  ;;  %v4013_v12 = vadd.f32 1.0, %v3949_v51 }
 0xe73   : > { %v3325_v57 = vpop.f32.mrb[108].mxu1  ;;  %v4845_v7 = vmul.f32 %v4781_v4, %v3885_v2 }
 0xe74   : > { %v11559_v46 = vpop.eup %7910  ;;  %v11562_v3 = vand.u32 2147483647, %v11554_v49  ;;  %v11565_v32 = vmul.f32 0.70710677, %v11557_v23  ;;  %v3327_v16 = vpop.f32.mrb[109].mxu1  ;;  %7916 = vrcp.f32 %v4013_v12  ;;  %v3426_v47 = vadd.f32 %v11578_v33, %v3325_v57 }
 0xe75   : > { %v4202_v30 = vmul.f32 1.0614054, %v11559_v46  ;;  %v3328_v19 = vpop.f32.mrb[110].mxu1  ;;  %v11574_v16 = vmul.f32 0.5, %v11502_v13  ;;  %vm3758_vm15 = vcmp.ge.f32.partialorder %v11554_v49, 0.0 }
 0xe76   : > { %v3950_v31 = vmul.f32 0.3275911, %v11562_v3  ;;  %v11569_v53 = vpop.eup %7912  ;;  %v3330_v39 = vpop.f32.mrb[111].mxu1  ;;  %v3887_v51 = vand.u32 2147483647, %v11565_v32  ;;  %v3497_v17 = vmul.f32 %v11492_v44, %v3426_v47  ;;  %v3822_v41 = vsel %vm3758_vm15, 1.0, %v12639_v20 }
 0xe77   : > { %v4266_v21 = vadd.f32 -1.4531521, %v4202_v30  ;;  %v4203_v29 = vmul.f32 1.0614054, %v11569_v53  ;;  %v11582_v30 = vld [vmem:[%s8895_s26 + $0x38] sm:$0xff]  ;;  %vm3759_vm0 = vcmp.ge.f32.partialorder %v11565_v32, 0.0 }
 0xe78   : > { %v4014_v28 = vadd.f32 1.0, %v3950_v31  ;;  %12956 = vst [vmem:[#allocation19_spill] sm:$0xff] %v11582_v30  ;;  %v3427_v12 = vadd.f32 %v11582_v30, %v3328_v19  ;;  %v3951_v52 = vmul.f32 0.3275911, %v3887_v51  ;;  %v4960_v19 = vmul.f32 1.442695, %v4845_v7 }
 0xe79   : > { %v4330_v34 = vmul.f32 %v11559_v46, %v4266_v21  ;;  %v4267_v39 = vadd.f32 -1.4531521, %v4203_v29 }
 0xe7a   : > { %7918 = vrcp.f32 %v4014_v28  ;;  %v3498_v13 = vmul.f32 %v11492_v44, %v3427_v12  ;;  %v4015_v62 = vadd.f32 1.0, %v3951_v52  ;;  %v11594_v28 = vadd.f32 %v11499_v61, %v3497_v17 }
 0xe7b   : > { %v4394_v31 = vadd.f32 1.4214138, %v4330_v34  ;;  %7920 = vpow2.f32 %v4954_v18  ;;  %v4331_v21 = vmul.f32 %v11569_v53, %v4267_v39  ;;  %v4958_v52 = vmul.f32 1.442695, %v4844_v22 }
 0xe7c   : > { %v11588_v57 = vpop.eup %7914  ;;  %7922 = vrcp.f32 %v4015_v62  ;;  %v11598_v38 = vadd.f32 %v11499_v61, %v3498_v13  ;;  %v4782_v18 = vsub.f32 0.0, %v11562_v3  ;;  %v11603_v34 = vmul.f32 0.70710677, %v11594_v28 }
 0xe7d   : > { %v4458_v29 = vmul.f32 %v11559_v46, %v4394_v31  ;;  %v4395_v40 = vadd.f32 1.4214138, %v4331_v21  ;;  %v4204_v47 = vmul.f32 1.0614054, %v11588_v57  ;;  %7924 = vpow2.f32 %v4956_v58 }
 0xe7e   : > { %v11605_v17 = vpop.eup %7916  ;;  %v3818_v62 = vsel %vm3754_vm11, 1.0, %v12639_v20  ;;  %v3819_v22 = vsel %vm3755_vm12, 1.0, %v12639_v20  ;;  %v4783_v39 = vsub.f32 0.0, %v3887_v51  ;;  %v11617_v13 = vmul.f32 0.70710677, %v11598_v38 }
 0xe7f   : > { %v4522_v4 = vadd.f32 -0.28449672, %v4458_v29  ;;  %v4459_v60 = vmul.f32 %v11569_v53, %v4395_v40  ;;  %v4268_v2 = vadd.f32 -1.4531521, %v4204_v47  ;;  %v4205_v7 = vmul.f32 1.0614054, %v11605_v17 }
 0xe80   : > { %7926 = vpow2.f32 %v4958_v52  ;;  %v4846_v59 = vmul.f32 %v4782_v18, %v11562_v3  ;;  %v11621_v29 = vand.u32 2147483647, %v11603_v34  ;;  %v4847_v30 = vmul.f32 %v4783_v39, %v3887_v51 }
 0xe81   : > { %v4586_v12 = vmul.f32 %v11559_v46, %v4522_v4  ;;  %v4523_v58 = vadd.f32 -0.28449672, %v4459_v60  ;;  %v4332_v31 = vmul.f32 %v11588_v57, %v4268_v2  ;;  %v4269_v4 = vadd.f32 -1.4531521, %v4205_v7 }
 0xe82   : > { %7928 = vpow2.f32 %v4960_v19  ;;  %v11632_v61 = vand.u32 2147483647, %v11617_v13  ;;  %v4962_v7 = vmul.f32 1.442695, %v4846_v59  ;;  %vm3760_vm1 = vcmp.ge.f32.partialorder %v11603_v34, 0.0 }
 0xe83   : > { %v4650_v21 = vadd.f32 0.2548296, %v4586_v12  ;;  %v4587_v15 = vmul.f32 %v11569_v53, %v4523_v58  ;;  %v4396_v47 = vadd.f32 1.4214138, %v4332_v31  ;;  %v3952_v12 = vmul.f32 0.3275911, %v11621_v29 }
 0xe84   : > { %v11623_v40 = vpop.eup %7918  ;;  %v4333_v18 = vmul.f32 %v11605_v17, %v4269_v4  ;;  %v4785_v27 = vsub.f32 0.0, %v11632_v61  ;;  %vm3761_vm3 = vcmp.ge.f32.partialorder %v11617_v13, 0.0  ;;  %v3633_v13 = vmul.f32 0.5, %v11598_v38 }
 0xe85   : > { %v4714_v60 = vmul.f32 %v11559_v46, %v4650_v21  ;;  %v4206_v2 = vmul.f32 1.0614054, %v11623_v40  ;;  %v7921_v52 = vpop.eup %7920  ;;  %v4651_v33 = vadd.f32 0.2548296, %v4587_v15  ;;  %v4460_v3 = vmul.f32 %v11588_v57, %v4396_v47 }
 0xe86   : > { %v4016_v19 = vadd.f32 1.0, %v3952_v12  ;;  %v11634_v44 = vpop.eup %7922  ;;  %v4397_v39 = vadd.f32 1.4214138, %v4333_v18  ;;  %v3953_v21 = vmul.f32 0.3275911, %v11632_v61 }
 0xe87   : > { %v5034_v58 = vmul.f32 %v7921_v52, %v4714_v60  ;;  %v4270_v31 = vadd.f32 -1.4531521, %v4206_v2  ;;  %v4715_v46 = vmul.f32 %v11569_v53, %v4651_v33  ;;  %v4524_v51 = vadd.f32 -0.28449672, %v4460_v3  ;;  %v7925_v15 = vpop.eup %7924 }
 0xe88   : > { %v4207_v4 = vmul.f32 1.0614054, %v11634_v44  ;;  %7930 = vrcp.f32 %v4016_v19  ;;  %v4461_v59 = vmul.f32 %v11605_v17, %v4397_v39  ;;  %v4964_v2 = vmul.f32 1.442695, %v4847_v30 }
 0xe89   : > { %v5098_v48 = vsub.f32 1.0, %v5034_v58  ;;  %v4334_v47 = vmul.f32 %v11623_v40, %v4270_v31  ;;  %v5035_v42 = vmul.f32 %v7925_v15, %v4715_v46  ;;  %v4588_v60 = vmul.f32 %v11588_v57, %v4524_v51 }
 0xe8a   : > { %v4271_v53 = vadd.f32 -1.4531521, %v4207_v4  ;;  %v4017_v33 = vadd.f32 1.0, %v3953_v21  ;;  %v4525_v10 = vadd.f32 -0.28449672, %v4461_v59  ;;  %7932 = vpow2.f32 %v4962_v7  ;;  %v7927_v58 = vpop.eup %7926 }
 0xe8b   : > { %v5162_v12 = vmul.f32 %v5098_v48, %v3818_v62  ;;  %v4398_v52 = vadd.f32 1.4214138, %v4334_v47  ;;  %v5099_v3 = vsub.f32 1.0, %v5035_v42  ;;  %v4652_v18 = vadd.f32 0.2548296, %v4588_v60 }
 0xe8c   : > { %v4335_v19 = vmul.f32 %v11634_v44, %v4271_v53  ;;  %7934 = vrcp.f32 %v4017_v33  ;;  %v7929_v46 = vpop.eup %7928  ;;  %v4589_v48 = vmul.f32 %v11605_v17, %v4525_v10  ;;  %v4784_v62 = vsub.f32 0.0, %v11621_v29 }
 0xe8d   : > { %v4462_v31 = vmul.f32 %v11623_v40, %v4398_v52  ;;  %v5163_v51 = vmul.f32 %v5099_v3, %v3819_v22  ;;  %v4716_v30 = vmul.f32 %v11588_v57, %v4652_v18  ;;  %v5226_v42 = vadd.f32 1.0, %v5162_v12 }
 0xe8e   : > { %v3627_v39 = vmul.f32 0.5, %v11509_v5  ;;  %v4399_v21 = vadd.f32 1.4214138, %v4335_v19  ;;  %v4653_v4 = vadd.f32 0.2548296, %v4589_v48  ;;  %7936 = vpow2.f32 %v4964_v2 }
 0xe8f   : > { %v4526_v7 = vadd.f32 -0.28449672, %v4462_v31  ;;  %v5227_v15 = vadd.f32 1.0, %v5163_v51  ;;  %v5036_v47 = vmul.f32 %v7927_v58, %v4716_v30  ;;  %v3820_v60 = vsel %vm3756_vm13, 1.0, %v12639_v20 }
 0xe90   : > { %v4463_v10 = vmul.f32 %v11634_v44, %v4399_v21  ;;  %v4717_v5 = vmul.f32 %v11605_v17, %v4653_v4  ;;  %v4848_v12 = vmul.f32 %v4784_v62, %v11621_v29  ;;  %v5290_v53 = vmul.f32 %v5226_v42, %v11574_v16 }
 0xe91   : > { %v4590_v57 = vmul.f32 %v11623_v40, %v4526_v7  ;;  %v5291_v22 = vmul.f32 %v5227_v15, %v3627_v39  ;;  %v5100_v59 = vsub.f32 1.0, %v5036_v47  ;;  %v3628_v31 = vmul.f32 0.5, %v11522_v0 }
 0xe92   : > { %v7931_v52 = vpop.eup %7930  ;;  %v4527_v33 = vadd.f32 -0.28449672, %v4463_v10  ;;  %v5037_v18 = vmul.f32 %v7929_v46, %v4717_v5  ;;  %v3821_v29 = vsel %vm3757_vm14, 1.0, %v12639_v20  ;;  %v4966_v39 = vmul.f32 1.442695, %v4848_v12 }
 0xe93   : > { %v4654_v2 = vadd.f32 0.2548296, %v4590_v57  ;;  %v5164_v3 = vmul.f32 %v5100_v59, %v3820_v60  ;;  %v4208_v58 = vmul.f32 1.0614054, %v7931_v52  ;;  %v5330_v30 = vpack.c.bf16 %v5291_v22, %v5290_v53 }
 0xe94   : > { %v4591_v51 = vmul.f32 %v11634_v44, %v4527_v33  ;;  %v7933_v17 = vpop.eup %7932  ;;  %v5101_v16 = vsub.f32 1.0, %v5037_v18  ;;  %v4849_v0 = vmul.f32 %v4785_v27, %v11632_v61  ;;  %v3629_v47 = vmul.f32 0.5, %v11538_v14 }
 0xe95   : > { %v4718_v19 = vmul.f32 %v11623_v40, %v4654_v2  ;;  %v4272_v48 = vadd.f32 -1.4531521, %v4208_v58  ;;  %7596 = vmatprep.mubr.msk.bf16.mxu0 %vm5370_vm5, %v5330_v30  ;;  %v5228_v40 = vadd.f32 1.0, %v5164_v3  ;;  %7938 = vpow2.f32 %v4966_v39 }
 0xe96   : > { %v7935_v62 = vpop.eup %7934  ;;  %v4655_v46 = vadd.f32 0.2548296, %v4591_v51  ;;  %v5165_v7 = vmul.f32 %v5101_v16, %v3821_v29  ;;  %v4968_v5 = vmul.f32 1.442695, %v4849_v0  ;;  %v3823_v27 = vsel %vm3759_vm0, 1.0, %v12639_v20 }
 0xe97   : > { %v5038_v42 = vmul.f32 %v7933_v17, %v4718_v19  ;;  %v4336_v21 = vmul.f32 %v7931_v52, %v4272_v48  ;;  %v4209_v15 = vmul.f32 1.0614054, %v7935_v62  ;;  %v5292_v12 = vmul.f32 %v5228_v40, %v3628_v31 }
 0xe98   : > { %v4719_v49 = vmul.f32 %v11634_v44, %v4655_v46  ;;  %v7937_v60 = vpop.eup %7936  ;;  %v5229_v57 = vadd.f32 1.0, %v5165_v7  ;;  %7940 = vpow2.f32 %v4968_v5  ;;  %v3630_v30 = vmul.f32 0.5, %v11549_v43 }
 0xe99   : > { %v5102_v4 = vsub.f32 1.0, %v5038_v42  ;;  %v4400_v10 = vadd.f32 1.4214138, %v4336_v21  ;;  %v4273_v22 = vadd.f32 -1.4531521, %v4209_v15  ;;  %v3631_v31 = vmul.f32 0.5, %v11557_v23 }
 0xe9a   : > { %v5039_v59 = vmul.f32 %v7937_v60, %v4719_v49  ;;  %v5293_v53 = vmul.f32 %v5229_v57, %v3629_v47  ;;  %v2690_v0 = vand.u32 65535, %v11412_v45  ;;  %v2722_v57 = vand.u32 65535, %v11431_v55 }
 0xe9b   : > { %v5166_v61 = vmul.f32 %v5102_v4, %v3822_v41  ;;  %v4464_v2 = vmul.f32 %v7931_v52, %v4400_v10  ;;  %v4337_v33 = vmul.f32 %v7935_v62, %v4273_v22  ;;  %v2706_v4 = vand.u32 65535, %v11421_v24 }
 0xe9c   : > { %v5103_v14 = vsub.f32 1.0, %v5039_v59  ;;  %v5331_v44 = vpack.c.bf16 %v5293_v53, %v5292_v12  ;;  %v2692_v41 = vcvt.s32.f32 %v2690_v0  ;;  %v3632_v12 = vmul.f32 0.5, %v11594_v28 }
 0xe9d   : > { %v4528_v3 = vadd.f32 -0.28449672, %v4464_v2  ;;  %v4401_v18 = vadd.f32 1.4214138, %v4337_v33  ;;  %v5230_v58 = vadd.f32 1.0, %v5166_v61  ;;  %v2708_v22 = vcvt.s32.f32 %v2706_v4 }
 0xe9e   : > { %v5167_v19 = vmul.f32 %v5103_v14, %v3823_v27  ;;  %7597 = vmatmul.mubr.msk.bf16.gmra.mrb[64].mxu0 %vm5370_vm5, %v5331_v44  ;;  %v3825_v61 = vsel %vm3761_vm3, 1.0, %v12639_v20  ;;  %v2738_v55 = vand.u32 65535, %v11441_v26  ;;  %v2754_v44 = vand.u32 65535, %v11451_v25 }
 0xe9f   : > { %v4592_v32 = vmul.f32 %v7931_v52, %v4528_v3  ;;  %v4465_v51 = vmul.f32 %v7935_v62, %v4401_v18  ;;  %v5294_v48 = vmul.f32 %v5230_v58, %v3630_v30  ;;  %v7939_v40 = vpop.eup %7938  ;;  %v2770_v26 = vand.u32 65535, %v11461_v54 }
 0xea0   : > { %v5231_v17 = vadd.f32 1.0, %v5167_v19  ;;  %v2740_v18 = vcvt.s32.f32 %v2738_v55  ;;  %v2756_v58 = vcvt.s32.f32 %v2754_v44 }
 0xea1   : > { %v4656_v29 = vadd.f32 0.2548296, %v4592_v32  ;;  %v4529_v16 = vadd.f32 -0.28449672, %v4465_v51  ;;  %v2772_v32 = vcvt.s32.f32 %v2770_v26  ;;  %v2786_v51 = vand.u32 65535, %v11471_v63  ;;  %v12963_v26 = vld [vmem:[#allocation31_spill] sm:$0xff] }
 0xea2   : > { %v5295_v42 = vmul.f32 %v5231_v17, %v3631_v31  ;;  %v7941_v49 = vpop.eup %7940  ;;  %v2802_v31 = vand.u32 65535, %v11481_v50 }
 0xea3   : > { %v4720_v46 = vmul.f32 %v7931_v52, %v4656_v29  ;;  %v4593_v39 = vmul.f32 %v7935_v62, %v4529_v16  ;;  %v3824_v52 = vsel %vm3760_vm1, 1.0, %v12639_v20  ;;  %v2788_v30 = vcvt.s32.f32 %v2786_v51  ;;  %v12966_v51 = vld [vmem:[#allocation45_spill] sm:$0xff] }
 0xea4   : > { %v5332_v7 = vpack.c.bf16 %v5295_v42, %v5294_v48  ;;  %v2804_v17 = vcvt.s32.f32 %v2802_v31  ;;  %v12968_v31 = vld [vmem:[#allocation28_spill] sm:$0xff] }
 0xea5   : > { %v5040_v21 = vmul.f32 %v7939_v40, %v4720_v46  ;;  %v4657_v15 = vadd.f32 0.2548296, %v4593_v39 }
 0xea6   : > { %7600 = vmatprep.mubr.msk.bf16.mxu0 %vm5370_vm5, %v5332_v7 }
 0xea7   : > { %v5104_v43 = vsub.f32 1.0, %v5040_v21  ;;  %v4721_v47 = vmul.f32 %v7935_v62, %v4657_v15 }
 0xea8   : > { %v11679_v23 = vpop.xlane.xlu0 %2694 }
 0xea9   : > { %vm2696_vm2 = vcmp.eq.f32.partialorder %v11419_v11, %v11679_v23  ;;  %v5168_v45 = vmul.f32 %v5104_v43, %v3824_v52  ;;  %v5041_v34 = vmul.f32 %v7941_v49, %v4721_v47  ;;  %v2724_v11 = vcvt.s32.f32 %v2722_v57 }
 0xeaa   : > { %v2697_v60 = vsel %vm2696_vm2, %v2692_v41, inf  ;;  %v12958_v47 = vmov 1.0|1.0  }
 0xeab   : > { %2698 = vmin.xlane.f32.xlu0 %v2697_v60  ;;  %v5105_v62 = vsub.f32 1.0, %v5041_v34  ;;  %v5232_v24 = vadd.f32 1.0, %v5168_v45 }
 0xeac   : > { %v2711_v10 = vpop.xlane.xlu1 %2710 }
 0xead   : > { %vm2712_vm4 = vcmp.eq.f32.partialorder %v11429_v9, %v2711_v10  ;;  %v5169_v59 = vmul.f32 %v5105_v62, %v3825_v61  ;;  %v5296_v33 = vmul.f32 %v5232_v24, %v3632_v12  ;;  %v2717_v16 = vcvt.f32.s32 %v2711_v10 }
 0xeae   : > { %v2713_v5 = vsel %vm2712_vm4, %v2708_v22, inf }
 0xeaf   : > { %2714 = vmin.xlane.f32.xlu1 %v2713_v5  ;;  %v5233_v53 = vadd.f32 1.0, %v5169_v59  ;;  %v2718_v46 = vshll.u32 %v2717_v16, 16 }
 0xeb0   : > { %v2727_v2 = vpop.xlane.xlu0 %2726 }
 0xeb1   : > { %vm2728_vm6 = vcmp.eq.f32.partialorder %v11439_v6, %v2727_v2  ;;  %v5297_v14 = vmul.f32 %v5233_v53, %v3633_v13  ;;  %v2733_v0 = vcvt.f32.s32 %v2727_v2 }
 0xeb2   : > { %v2729_v27 = vsel %vm2728_vm6, %v2724_v11, inf }
 0xeb3   : > { %2730 = vmin.xlane.f32.xlu0 %v2729_v27  ;;  %v5333_v9 = vpack.c.bf16 %v5297_v14, %v5296_v33  ;;  %v2734_v43 = vshll.u32 %v2733_v0, 16 }
 0xeb4   : > { %v2743_v3 = vpop.xlane.xlu1 %2742 }
 0xeb5   : > { %vm2744_vm7 = vcmp.eq.f32.partialorder %v11449_v1, %v2743_v3  ;;  %7601 = vmatmul.mubr.msk.bf16.gmra.mrb[68].mxu0 %vm5370_vm5, %v5333_v9  ;;  %v2749_v7 = vcvt.f32.s32 %v2743_v3  ;;  %v12959_v3 = vld [vmem:[#allocation35_spill] sm:$0xff] }
 0xeb6   : > { %v2745_v28 = vsel %vm2744_vm7, %v2740_v18, inf  ;;  %v12960_v18 = vld [vmem:[#allocation37_spill] sm:$0xff] }
 0xeb7   : > { %2746 = vmin.xlane.f32.xlu1 %v2745_v28  ;;  %v2750_v41 = vshll.u32 %v2749_v7, 16  ;;  %v12961_v44 = vmax.f32 %v12959_v3, %v12960_v18  ;;  %v12978_v7 = vld [vmem:[#allocation46_spill] sm:$0xff]  ;;  %v12984_v18 = vld [vmem:[#allocation39_spill] sm:$0xff] }
 0xeb8   : > { %v2759_v38 = vpop.xlane.xlu0 %2758 }
 0xeb9   : > { %vm2760_vm8 = vcmp.eq.f32.partialorder %v11459_v8, %v2759_v38  ;;  %v2765_v52 = vcvt.f32.s32 %v2759_v38 }
 0xeba   : > { %v2761_v6 = vsel %vm2760_vm8, %v2756_v58, inf  ;;  %v12962_v58 = vld [vmem:[#allocation27_spill] sm:$0xff] }
 0xebb   : > { %2762 = vmin.xlane.f32.xlu0 %v2761_v6  ;;  %v2766_v62 = vshll.u32 %v2765_v52, 16  ;;  %v12964_v6 = vmax.f32 %v12962_v58, %v12963_v26  ;;  %v6070_v52 = vld [vmem:[%s12421_s10 + $0x40] sm:$0xff] }
 0xebc   : > { %v2775_v19 = vpop.xlane.xlu1 %2774 }
 0xebd   : > { %vm2776_vm9 = vcmp.eq.f32.partialorder %v11469_v37, %v2775_v19  ;;  %v2701_v37 = vcvt.f32.s32 %v11679_v23  ;;  %v2781_v34 = vcvt.f32.s32 %v2775_v19 }
 0xebe   : > { %v2777_v25 = vsel %vm2776_vm9, %v2772_v32, inf  ;;  %v12965_v32 = vld [vmem:[#allocation43_spill] sm:$0xff] }
 0xebf   : > { %2778 = vmin.xlane.f32.xlu1 %v2777_v25  ;;  %v2702_v42 = vshll.u32 %v2701_v37, 16  ;;  %v2782_v22 = vshll.u32 %v2781_v34, 16  ;;  %v12967_v25 = vmax.f32 %v12965_v32, %v12966_v51  ;;  %v12971_v37 = vld [vmem:[#allocation36_spill] sm:$0xff] }
 0xec0   : > { %v11700_v1 = vpop.xlane.xlu0 %2790 }
 0xec1   : > { %vm2792_vm10 = vcmp.eq.f32.partialorder %v11479_v56, %v11700_v1  ;;  %v2797_v59 = vcvt.f32.s32 %v11700_v1 }
 0xec2   : > { %v2793_v54 = vsel %vm2792_vm10, %v2788_v30, inf }
 0xec3   : > { %2794 = vmin.xlane.f32.xlu0 %v2793_v54  ;;  %v2798_v53 = vshll.u32 %v2797_v59, 16  ;;  %v12969_v54 = vld [vmem:[#allocation32_spill] sm:$0xff]  ;;  %v6090_v59 = vld [vmem:[%s12421_s10 + $0xe0] sm:$0xff] }
 0xec4   : > { %v11705_v8 = vpop.xlane.xlu1 %2806 }
 0xec5   : > { %vm2808_vm11 = vcmp.eq.f32.partialorder %v11485_v36, %v11705_v8  ;;  %v12957_v36 = vld [vmem:[#allocation17_spill] sm:$0xff]  ;;  %v2813_v11 = vcvt.f32.s32 %v11705_v8  ;;  %v12970_v8 = vmax.f32 %v12968_v31, %v12969_v54 }
 0xec6   : > { %v2809_v63 = vsel %vm2808_vm11, %v2804_v17, inf }
 0xec7   : > { %2810 = vmin.xlane.f32.xlu1 %v2809_v63  ;;  %v2814_v55 = vshll.u32 %v2813_v11, 16 }
 0xf38   : > { %v2699_v29 = vpop.xlane.xlu0 %2698 }
 0xf39   : > { %v2700_v48 = vcvt.f32.s32 %v2699_v29  ;;  %v12972_v29 = vld [vmem:[#allocation38_spill] sm:$0xff] }
 0xf3a   : > { %v12973_v16 = vmax.f32 %v12971_v37, %v12972_v29 }
 0xf3b   : > { %v2703_v39 = vadd.s32 %v2702_v42, %v2700_v48 }
 0xf3c   : > { %v2715_v50 = vpop.xlane.xlu1 %2714 }
 0xf3d   : > { %v2716_v56 = vcvt.f32.s32 %v2715_v50  ;;  %vm2817_vm12 = vcmp.eq.s32.totalorder %v12913_v35, %v2703_v39  ;;  %vm2816_vm0 = vcmp.eq.s32.totalorder %v12957_v36, %v2703_v39  ;;  %v12974_v50 = vld [vmem:[#allocation30_spill] sm:$0xff] }
 0xf3f   : > { %v2719_v40 = vadd.s32 %v2718_v46, %v2716_v56  ;;  %v12975_v46 = vld [vmem:[#allocation34_spill] sm:$0xff] }
 0xf40   : > { %v2731_v21 = vpop.xlane.xlu0 %2730  ;;  %v12976_v39 = vmax.f32 %v12974_v50, %v12975_v46 }
 0xf41   : > { %v2732_v15 = vcvt.f32.s32 %v2731_v21  ;;  %vm2819_vm13 = vcmp.eq.s32.totalorder %v12913_v35, %v2719_v40  ;;  %vm2818_vm14 = vcmp.eq.s32.totalorder %v12957_v36, %v2719_v40  ;;  %v12977_v40 = vld [vmem:[#allocation44_spill] sm:$0xff] }
 0xf42   : > { %vm7488_vm15 = vmpackc.low %vm2819_vm13, %vm2817_vm12  ;;  %v12979_v21 = vmax.f32 %v12977_v40, %v12978_v7  ;;  %v12988_v7 = vld [vmem:[#allocation41_spill] sm:$0xff] }
 0xf43   : > { %7489 = vmatprep.mubr.msk.bf16.mxu1 %vm7488_vm15, %v12958_v47  ;;  %vm7490_vm1 = vmpackc.low %vm2818_vm14, %vm2816_vm0  ;;  %v2735_v4 = vadd.s32 %v2734_v43, %v2732_v15  ;;  %v12980_v43 = vld [vmem:[#allocation29_spill] sm:$0xff] }
 0xf44   : > { %7491 = vmatmul.mubr.msk.bf16.gmra.mrb[112].mxu1 %vm7490_vm1, %v12958_v47  ;;  %v2747_v23 = vpop.xlane.xlu1 %2746 }
 0xf45   : > { %v2748_v49 = vcvt.f32.s32 %v2747_v23  ;;  %vm2821_vm2 = vcmp.eq.s32.totalorder %v12913_v35, %v2735_v4  ;;  %vm2820_vm7 = vcmp.eq.s32.totalorder %v12957_v36, %v2735_v4  ;;  %v6062_v4 = vld [vmem:[%s12421_s10] sm:$0xff] }
 0xf47   : > { %v2751_v45 = vadd.s32 %v2750_v41, %v2748_v49  ;;  %v6066_v49 = vld [vmem:[%s12421_s10 + $0x20] sm:$0xff] }
 0xf48   : > { %v2763_v60 = vpop.xlane.xlu0 %2762  ;;  %v7309_v34 = vcombine.high %v6062_v4, %v6066_v49 }
 0xf49   : > { %v2764_v57 = vcvt.f32.s32 %v2763_v60  ;;  %vm2823_vm3 = vcmp.eq.s32.totalorder %v12913_v35, %v2751_v45  ;;  %vm2822_vm4 = vcmp.eq.s32.totalorder %v12957_v36, %v2751_v45  ;;  %v7308_v45 = vcombine.low %v6062_v4, %v6066_v49  ;;  %v6074_v60 = vld [vmem:[%s12421_s10 + $0x60] sm:$0xff]  ;;  %v12989_v4 = vld [vmem:[#allocation49_spill] sm:$0xff] }
 0xf4a   : > { %vm7492_vm6 = vmpackc.low %vm2823_vm3, %vm2821_vm2  ;;  %6446 = vmatprep.subr.bf16.mxu0 %v7309_v34 }
 0xf4b   : > { %7493 = vmatprep.mubr.msk.bf16.mxu1 %vm7492_vm6, %v12958_v47  ;;  %vm7494_vm8 = vmpackc.low %vm2822_vm4, %vm2820_vm7  ;;  %v2767_v61 = vadd.s32 %v2766_v62, %v2764_v57  ;;  %v7317_v57 = vcombine.high %v6070_v52, %v6074_v60  ;;  %v6078_v62 = vld [vmem:[%s12421_s10 + $0x80] sm:$0xff]  ;;  %6447 = vmatpush1.bf16.msra.mxu0 %v7308_v45 }
 0xf4c   : > { %7495 = vmatmul.mubr.msk.bf16.gmra.mrb[116].mxu1 %vm7494_vm8, %v12958_v47  ;;  %v2779_v10 = vpop.xlane.xlu1 %2778 }
 0xf4d   : > { %v2780_v24 = vcvt.f32.s32 %v2779_v10  ;;  %vm2825_vm9 = vcmp.eq.s32.totalorder %v12913_v35, %v2767_v61  ;;  %vm2824_vm13 = vcmp.eq.s32.totalorder %v12957_v36, %v2767_v61  ;;  %v6082_v10 = vld [vmem:[%s12421_s10 + $0xa0] sm:$0xff]  ;;  %6448 = vmatprep.subr.bf16.mxu0 %v7317_v57 }
 0xf4e   : > { %v7325_v61 = vcombine.high %v6078_v62, %v6082_v10 }
 0xf4f   : > { %v2783_v5 = vadd.s32 %v2782_v22, %v2780_v24  ;;  %v7316_v22 = vcombine.low %v6070_v52, %v6074_v60  ;;  %v6086_v24 = vld [vmem:[%s12421_s10 + $0xc0] sm:$0xff] }
 0xf50   : > { %v2795_v12 = vpop.xlane.xlu0 %2794  ;;  %v7333_v11 = vcombine.high %v6086_v24, %v6090_v59 }
 0xf51   : > { %v2796_v13 = vcvt.f32.s32 %v2795_v12  ;;  %vm2827_vm10 = vcmp.eq.s32.totalorder %v12913_v35, %v2783_v5  ;;  %vm2826_vm11 = vcmp.eq.s32.totalorder %v12957_v36, %v2783_v5  ;;  %6449 = vmatpush1.bf16.msra.mxu0 %v7316_v22  ;;  %v7324_v5 = vcombine.low %v6078_v62, %v6082_v10  ;;  %v6094_v12 = vld [vmem:[%s12421_s10 + $0x100] sm:$0xff]  ;;  %v12990_v62 = vld [vmem:[#allocation50_spill] sm:$0xff] }
 0xf52   : > { %vm7496_vm12 = vmpackc.low %vm2827_vm10, %vm2825_vm9  ;;  %6450 = vmatprep.subr.bf16.mxu0 %v7325_v61 }
 0xf53   : > { %7497 = vmatprep.mubr.msk.bf16.mxu1 %vm7496_vm12, %v12958_v47  ;;  %vm7498_vm14 = vmpackc.low %vm2826_vm11, %vm2824_vm13  ;;  %v2799_v33 = vadd.s32 %v2798_v53, %v2796_v13  ;;  %v6098_v13 = vld [vmem:[%s12421_s10 + $0x120] sm:$0xff]  ;;  %v7332_v53 = vcombine.low %v6086_v24, %v6090_v59 }
 0xf54   : > { %7499 = vmatmul.mubr.msk.bf16.gmra.mrb[120].mxu1 %vm7498_vm14, %v12958_v47  ;;  %v2811_v2 = vpop.xlane.xlu1 %2810 }
 0xf55   : > { %v2812_v14 = vcvt.f32.s32 %v2811_v2  ;;  %vm2829_vm15 = vcmp.eq.s32.totalorder %v12913_v35, %v2799_v33  ;;  %vm2828_vm2 = vcmp.eq.s32.totalorder %v12957_v36, %v2799_v33  ;;  %6451 = vmatpush1.bf16.msra.mxu0 %v7324_v5  ;;  %v7341_v2 = vcombine.high %v6094_v12, %v6098_v13 }
 0xf56   : > { %6452 = vmatprep.subr.bf16.mxu0 %v7333_v11 }
 0xf57   : > { %v2815_v27 = vadd.s32 %v2814_v55, %v2812_v14  ;;  %v7340_v55 = vcombine.low %v6094_v12, %v6098_v13  ;;  %v12983_v14 = vld [vmem:[#allocation18_spill] sm:$0xff] }
 0xf59   : > { %vm2830_vm0 = vcmp.eq.s32.totalorder %v12957_v36, %v2815_v27  ;;  %vm2831_vm1 = vcmp.eq.s32.totalorder %v12913_v35, %v2815_v27  ;;  %6453 = vmatpush1.bf16.msra.mxu0 %v7332_v53 }
 0xf5a   : > { %vm7500_vm3 = vmpackc.low %vm2831_vm1, %vm2829_vm15  ;;  %6454 = vmatprep.subr.bf16.mxu0 %v7341_v2 }
 0xf5b   : > { %7501 = vmatprep.mubr.msk.bf16.mxu1 %vm7500_vm3, %v12958_v47  ;;  %vm7502_vm4 = vmpackc.low %vm2830_vm0, %vm2828_vm2 }
 0xf5c   : > { %7503 = vmatmul.mubr.msk.bf16.gmra.mrb[124].mxu1 %vm7502_vm4, %v12958_v47  ;;  %v12981_v47 = vld [vmem:[#allocation33_spill] sm:$0xff] }
 0xf5d   : > { %v12982_v23 = vmax.f32 %v12980_v43, %v12981_v47  ;;  %6455 = vmatpush1.bf16.msra.mxu0 %v7340_v55 }
 0xf71   : > { %v7598_v9 = vpop.f32.mrb[64].mxu0 }
 0xf72   : > { %v11739_v28 = vmax.f32 %v12961_v44, %v7598_v9  ;;  %v5693_v38 = vpop.f32.mrb[65].mxu0 }
 0xf73   : > { %v11744_v19 = vmax.f32 %v12964_v6, %v5693_v38  ;;  %v7599_v35 = vpop.f32.mrb[66].mxu0  ;;  %v12985_v38 = vld [vmem:[#allocation47_spill] sm:$0xff]  ;;  %v12986_v6 = vld [vmem:[#allocation48_spill] sm:$0xff] }
 0xf74   : > { %v11749_v1 = vmax.f32 %v12967_v25, %v7599_v35  ;;  %v5696_v30 = vpop.f32.mrb[67].mxu0 }
 0xf75   : > { %v11754_v17 = vmax.f32 %v12970_v8, %v5696_v30  ;;  %v12987_v8 = vld [vmem:[#allocation40_spill] sm:$0xff] }
 0xf88   : > { %v7602_v63 = vpop.f32.mrb[68].mxu0 }
 0xf89   : > { %v11759_v48 = vmax.f32 %v12973_v16, %v7602_v63  ;;  %v5709_v42 = vpop.f32.mrb[69].mxu0 }
 0xf8a   : > { %v11764_v56 = vmax.f32 %v12976_v39, %v5709_v42  ;;  %v7603_v0 = vpop.f32.mrb[70].mxu0 }
 0xf8b   : > { %v11769_v15 = vmax.f32 %v12979_v21, %v7603_v0  ;;  %v5712_v36 = vpop.f32.mrb[71].mxu0 }
 0xf8c   : > { %v11774_v41 = vmax.f32 %v12982_v23, %v5712_v36 }
0x1017   : > { %v3333_v33 = vpop.f32.mrb[112].mxu1 }
0x1018   : > { %v3428_v27 = vadd.f32 %v12983_v14, %v3333_v33  ;;  %v3335_v9 = vpop.f32.mrb[113].mxu1 }
0x1019   : > { %v3336_v3 = vpop.f32.mrb[114].mxu1 }
0x101a   : > { %v3499_v44 = vmul.f32 %v12984_v18, %v3428_v27  ;;  %v3429_v58 = vadd.f32 %v12985_v38, %v3336_v3  ;;  %v3338_v26 = vpop.f32.mrb[115].mxu1 }
0x101c   : > { %v11810_v35 = vadd.f32 %v12986_v6, %v3499_v44  ;;  %v3500_v32 = vmul.f32 %v12984_v18, %v3429_v58 }
0x101e   : > { %v11814_v51 = vmul.f32 0.70710677, %v11810_v35  ;;  %v11817_v25 = vadd.f32 %v12986_v6, %v3500_v32 }
0x101f   : > { %v3341_v30 = vpop.f32.mrb[116].mxu1 }
0x1020   : > { %v3890_v31 = vand.u32 2147483647, %v11814_v51  ;;  %v11821_v54 = vmul.f32 0.70710677, %v11817_v25  ;;  %v3430_v63 = vadd.f32 %v12987_v8, %v3341_v30  ;;  %v3343_v37 = vpop.f32.mrb[117].mxu1  ;;  %vm3762_vm6 = vcmp.ge.f32.partialorder %v11814_v51, 0.0 }
0x1021   : > { %v3344_v50 = vpop.f32.mrb[118].mxu1 }
0x1022   : > { %v3954_v29 = vmul.f32 0.3275911, %v3890_v31  ;;  %v3891_v16 = vand.u32 2147483647, %v11821_v54  ;;  %v3501_v42 = vmul.f32 %v12984_v18, %v3430_v63  ;;  %v3346_v0 = vpop.f32.mrb[119].mxu1  ;;  %v3431_v21 = vadd.f32 %v12988_v7, %v3344_v50 }
0x1023   : > { %v4786_v61 = vsub.f32 0.0, %v3890_v31  ;;  %v12991_v0 = vld [vmem:[#allocation42_spill] sm:$0xff]  ;;  %vm3763_vm7 = vcmp.ge.f32.partialorder %v11821_v54, 0.0 }
0x1024   : > { %v4018_v46 = vadd.f32 1.0, %v3954_v29  ;;  %v3955_v39 = vmul.f32 0.3275911, %v3891_v16  ;;  %v11827_v40 = vadd.f32 %v12986_v6, %v3501_v42  ;;  %v3502_v47 = vmul.f32 %v12984_v18, %v3431_v21  ;;  %v12992_v21 = vld [vmem:[#allocation19_spill] sm:$0xff] }
0x1025   : > { %v4787_v53 = vsub.f32 0.0, %v3891_v16  ;;  %v4850_v33 = vmul.f32 %v4786_v61, %v3890_v31 }
0x1026   : > { %7942 = vrcp.f32 %v4018_v46  ;;  %v4019_v36 = vadd.f32 1.0, %v3955_v39  ;;  %v11831_v43 = vmul.f32 0.70710677, %v11827_v40  ;;  %v11837_v34 = vadd.f32 %v12986_v6, %v3502_v47 }
0x1027   : > { %v3349_v23 = vpop.f32.mrb[120].mxu1  ;;  %v4851_v26 = vmul.f32 %v4787_v53, %v3891_v16  ;;  %v4970_v8 = vmul.f32 1.442695, %v4850_v33  ;;  %v11870_v39 = vmul.f32 0.5, %v11810_v35 }
0x1028   : > { %v3432_v49 = vadd.f32 %v12989_v4, %v3349_v23  ;;  %v3351_v52 = vpop.f32.mrb[121].mxu1  ;;  %7944 = vrcp.f32 %v4019_v36  ;;  %v3892_v45 = vand.u32 2147483647, %v11831_v43  ;;  %v11842_v59 = vmul.f32 0.70710677, %v11837_v34 }
0x1029   : > { %v3352_v60 = vpop.f32.mrb[122].mxu1  ;;  %v4972_v23 = vmul.f32 1.442695, %v4851_v26  ;;  %vm3764_vm8 = vcmp.ge.f32.partialorder %v11831_v43, 0.0 }
0x102a   : > { %v3503_v57 = vmul.f32 %v12984_v18, %v3432_v49  ;;  %v3433_v10 = vadd.f32 %v12990_v62, %v3352_v60  ;;  %v3354_v22 = vpop.f32.mrb[123].mxu1  ;;  %v3956_v24 = vmul.f32 0.3275911, %v3892_v45  ;;  %v3893_v13 = vand.u32 2147483647, %v11842_v59 }
0x102b   : > { %v4788_v63 = vsub.f32 0.0, %v3892_v45  ;;  %v8066_v60 = vld [vmem:[#allocation3] ss:$0 sm:$0xff]  ;;  %vm3765_vm9 = vcmp.ge.f32.partialorder %v11842_v59, 0.0 }
0x102c   : > { %v11845_v5 = vadd.f32 %v12986_v6, %v3503_v57  ;;  %v3504_v11 = vmul.f32 %v12984_v18, %v3433_v10  ;;  %v4020_v12 = vadd.f32 1.0, %v3956_v24  ;;  %v3957_v14 = vmul.f32 0.3275911, %v3893_v13 }
0x102d   : > { %v4789_v42 = vsub.f32 0.0, %v3893_v13  ;;  %v4852_v52 = vmul.f32 %v4788_v63, %v3892_v45 }
0x102e   : > { %v11850_v2 = vmul.f32 0.70710677, %v11845_v5  ;;  %v11853_v55 = vadd.f32 %v12986_v6, %v3504_v11  ;;  %7946 = vrcp.f32 %v4020_v12  ;;  %v4021_v38 = vadd.f32 1.0, %v3957_v14  ;;  %v8067_v11 = vld [vmem:[#allocation5] ss:$0 sm:$0xff] }
0x102f   : > { %v3357_v27 = vpop.f32.mrb[124].mxu1  ;;  %v4853_v35 = vmul.f32 %v4789_v42, %v3893_v13  ;;  %v4974_v13 = vmul.f32 1.442695, %v4852_v52 }
0x1030   : > { %v11855_v9 = vpop.eup %7942  ;;  %v11858_v3 = vand.u32 2147483647, %v11850_v2  ;;  %v11861_v18 = vmul.f32 0.70710677, %v11853_v55  ;;  %v3359_v58 = vpop.f32.mrb[125].mxu1  ;;  %7948 = vrcp.f32 %v4021_v38  ;;  %v3434_v7 = vadd.f32 %v12991_v0, %v3357_v27 }
0x1031   : > { %v4210_v44 = vmul.f32 1.0614054, %v11855_v9  ;;  %v3360_v32 = vpop.f32.mrb[126].mxu1  ;;  %v4976_v58 = vmul.f32 1.442695, %v4853_v35  ;;  %vm3766_vm10 = vcmp.ge.f32.partialorder %v11850_v2, 0.0 }
0x1032   : > { %v3958_v6 = vmul.f32 0.3275911, %v11858_v3  ;;  %v11865_v30 = vpop.eup %7944  ;;  %v3362_v37 = vpop.f32.mrb[127].mxu1  ;;  %v3895_v46 = vand.u32 2147483647, %v11861_v18  ;;  %v3435_v36 = vadd.f32 %v12992_v21, %v3360_v32  ;;  %v3505_v57 = vmul.f32 %v8066_v60, %v3434_v7 }
0x1033   : > { %v4274_v31 = vadd.f32 -1.4531521, %v4210_v44  ;;  %v4211_v29 = vmul.f32 1.0614054, %v11865_v30  ;;  %v4790_v27 = vsub.f32 0.0, %v11858_v3  ;;  %v3826_v32 = vsel %vm3762_vm6, 1.0, %v12639_v20 }
0x1034   : > { %v4022_v50 = vadd.f32 1.0, %v3958_v6  ;;  %v3959_v4 = vmul.f32 0.3275911, %v3895_v46  ;;  %v3506_v62 = vmul.f32 %v8066_v60, %v3435_v36  ;;  %v11881_v12 = vadd.f32 %v8067_v11, %v3505_v57 }
0x1035   : > { %v4338_v16 = vmul.f32 %v11855_v9, %v4274_v31  ;;  %v4275_v47 = vadd.f32 -1.4531521, %v4211_v29  ;;  %v4791_v63 = vsub.f32 0.0, %v3895_v46  ;;  %v4854_v51 = vmul.f32 %v4790_v27, %v11858_v3 }
0x1036   : > { %7950 = vrcp.f32 %v4022_v50  ;;  %v4023_v22 = vadd.f32 1.0, %v3959_v4  ;;  %v11884_v33 = vadd.f32 %v8067_v11, %v3506_v62  ;;  %v11889_v26 = vmul.f32 0.70710677, %v11881_v12 }
0x1037   : > { %v4402_v49 = vadd.f32 1.4214138, %v4338_v16  ;;  %7952 = vpow2.f32 %v4970_v8  ;;  %v4339_v10 = vmul.f32 %v11865_v30, %v4275_v47  ;;  %v3827_v8 = vsel %vm3763_vm7, 1.0, %v12639_v20 }
0x1038   : > { %v11876_v61 = vpop.eup %7946  ;;  %7954 = vrcp.f32 %v4023_v22  ;;  %v11903_v50 = vmul.f32 0.70710677, %v11884_v33  ;;  %v11907_v0 = vand.u32 2147483647, %v11889_v26  ;;  %v4855_v4 = vmul.f32 %v4791_v63, %v3895_v46 }
0x1039   : > { %v4466_v24 = vmul.f32 %v11855_v9, %v4402_v49  ;;  %v4403_v45 = vadd.f32 1.4214138, %v4339_v10  ;;  %v4212_v53 = vmul.f32 1.0614054, %v11876_v61  ;;  %7956 = vpow2.f32 %v4972_v23 }
0x103a   : > { %v11891_v6 = vpop.eup %7948  ;;  %7958 = vpow2.f32 %v4974_v13  ;;  %v3960_v49 = vmul.f32 0.3275911, %v11907_v0  ;;  %v11918_v62 = vand.u32 2147483647, %v11903_v50  ;;  %v4978_v22 = vmul.f32 1.442695, %v4854_v51 }
0x103b   : > { %v4530_v14 = vadd.f32 -0.28449672, %v4466_v24  ;;  %v4467_v44 = vmul.f32 %v11865_v30, %v4403_v45  ;;  %v4276_v38 = vadd.f32 -1.4531521, %v4212_v53  ;;  %v4213_v42 = vmul.f32 1.0614054, %v11891_v6 }
0x103c   : > { %7960 = vpow2.f32 %v4976_v58  ;;  %v4024_v24 = vadd.f32 1.0, %v3960_v49  ;;  %v3961_v53 = vmul.f32 0.3275911, %v11918_v62  ;;  %v4980_v63 = vmul.f32 1.442695, %v4855_v4 }
0x103d   : > { %v4594_v31 = vmul.f32 %v11855_v9, %v4530_v14  ;;  %v4531_v37 = vadd.f32 -0.28449672, %v4467_v44  ;;  %v4340_v29 = vmul.f32 %v11876_v61, %v4276_v38  ;;  %v4277_v36 = vadd.f32 -1.4531521, %v4213_v42 }
0x103e   : > { %7962 = vrcp.f32 %v4024_v24  ;;  %v4025_v42 = vadd.f32 1.0, %v3961_v53  ;;  %v4793_v43 = vsub.f32 0.0, %v11918_v62  ;;  %v3830_v59 = vsel %vm3766_vm10, 1.0, %v12639_v20 }
0x103f   : > { %v4658_v16 = vadd.f32 0.2548296, %v4594_v31  ;;  %v4595_v54 = vmul.f32 %v11865_v30, %v4531_v37  ;;  %v4404_v21 = vadd.f32 1.4214138, %v4340_v29  ;;  %v4341_v57 = vmul.f32 %v11891_v6, %v4277_v36 }
0x1040   : > { %v11909_v7 = vpop.eup %7950  ;;  %7964 = vpow2.f32 %v4978_v22  ;;  %vm3767_vm11 = vcmp.ge.f32.partialorder %v11861_v18, 0.0  ;;  %vm3768_vm12 = vcmp.ge.f32.partialorder %v11889_v26, 0.0  ;;  %vm3769_vm13 = vcmp.ge.f32.partialorder %v11903_v50, 0.0  ;;  %v6102_v50 = vld [vmem:[%s12421_s10 + $0x140] sm:$0xff] }
0x1041   : > { %v4722_v47 = vmul.f32 %v11855_v9, %v4658_v16  ;;  %v4214_v23 = vmul.f32 1.0614054, %v11909_v7  ;;  %v7953_v52 = vpop.eup %7952  ;;  %v4659_v60 = vadd.f32 0.2548296, %v4595_v54  ;;  %v4468_v3 = vmul.f32 %v11876_v61, %v4404_v21 }
0x1042   : > { %v11920_v11 = vpop.eup %7954  ;;  %v4405_v45 = vadd.f32 1.4214138, %v4341_v57  ;;  %7966 = vrcp.f32 %v4025_v42  ;;  %v3640_v26 = vmul.f32 0.5, %v11881_v12 }
0x1043   : > { %v5042_v10 = vmul.f32 %v7953_v52, %v4722_v47  ;;  %v4278_v35 = vadd.f32 -1.4531521, %v4214_v23  ;;  %v4723_v9 = vmul.f32 %v11865_v30, %v4659_v60  ;;  %v4532_v46 = vadd.f32 -0.28449672, %v4468_v3  ;;  %v7957_v14 = vpop.eup %7956 }
0x1044   : > { %v4215_v44 = vmul.f32 1.0614054, %v11920_v11  ;;  %v4469_v31 = vmul.f32 %v11891_v6, %v4405_v45  ;;  %v7959_v21 = vpop.eup %7958  ;;  %v4792_v52 = vsub.f32 0.0, %v11907_v0  ;;  %v3635_v3 = vmul.f32 0.5, %v11817_v25 }
0x1045   : > { %v5106_v13 = vsub.f32 1.0, %v5042_v10  ;;  %v4342_v27 = vmul.f32 %v11909_v7, %v4278_v35  ;;  %v5043_v38 = vmul.f32 %v7957_v14, %v4723_v9  ;;  %v4596_v58 = vmul.f32 %v11876_v61, %v4532_v46 }
0x1046   : > { %v4279_v30 = vadd.f32 -1.4531521, %v4215_v44  ;;  %v4533_v54 = vadd.f32 -0.28449672, %v4469_v31  ;;  %v7961_v23 = vpop.eup %7960  ;;  %7968 = vpow2.f32 %v4980_v63  ;;  %v3828_v9 = vsel %vm3764_vm8, 1.0, %v12639_v20 }
0x1047   : > { %v5170_v37 = vmul.f32 %v5106_v13, %v3826_v32  ;;  %v4406_v29 = vadd.f32 1.4214138, %v4342_v27  ;;  %v5107_v16 = vsub.f32 1.0, %v5043_v38  ;;  %v4660_v51 = vadd.f32 0.2548296, %v4596_v58 }
0x1048   : > { %v4343_v47 = vmul.f32 %v11920_v11, %v4279_v30  ;;  %v4597_v32 = vmul.f32 %v11891_v6, %v4533_v54  ;;  %v4856_v53 = vmul.f32 %v4792_v52, %v11907_v0  ;;  %v7963_v14 = vpop.eup %7962  ;;  %v3636_v63 = vmul.f32 0.5, %v11827_v40 }
0x1049   : > { %v4470_v36 = vmul.f32 %v11909_v7, %v4406_v29  ;;  %v5171_v49 = vmul.f32 %v5107_v16, %v3827_v8  ;;  %v4724_v4 = vmul.f32 %v11876_v61, %v4660_v51  ;;  %v5234_v60 = vadd.f32 1.0, %v5170_v37 }
0x104a   : > { %v4407_v10 = vadd.f32 1.4214138, %v4343_v47  ;;  %v4661_v24 = vadd.f32 0.2548296, %v4597_v32  ;;  %v4216_v31 = vmul.f32 1.0614054, %v7963_v14  ;;  %v4857_v40 = vmul.f32 %v4793_v43, %v11918_v62 }
0x104b   : > { %v4534_v57 = vadd.f32 -0.28449672, %v4470_v36  ;;  %v5235_v35 = vadd.f32 1.0, %v5171_v49  ;;  %v5044_v22 = vmul.f32 %v7959_v21, %v4724_v4  ;;  %v5298_v13 = vmul.f32 %v5234_v60, %v11870_v39 }
0x104c   : > { %v4471_v8 = vmul.f32 %v11920_v11, %v4407_v10  ;;  %v4725_v25 = vmul.f32 %v11891_v6, %v4661_v24  ;;  %v7965_v6 = vpop.eup %7964  ;;  %v3829_v0 = vsel %vm3765_vm9, 1.0, %v12639_v20  ;;  %v4280_v42 = vadd.f32 -1.4531521, %v4216_v31 }
0x104d   : > { %v4598_v61 = vmul.f32 %v11909_v7, %v4534_v57  ;;  %v5299_v46 = vmul.f32 %v5235_v35, %v3635_v3  ;;  %v5108_v45 = vsub.f32 1.0, %v5044_v22  ;;  %v7967_v16 = vpop.eup %7966  ;;  %v4982_v21 = vmul.f32 1.442695, %v4856_v53 }
0x104e   : > { %v4535_v44 = vadd.f32 -0.28449672, %v4471_v8  ;;  %v5045_v58 = vmul.f32 %v7961_v23, %v4725_v25  ;;  %v4344_v47 = vmul.f32 %v7963_v14, %v4280_v42  ;;  %v4217_v23 = vmul.f32 1.0614054, %v7967_v16 }
0x104f   : > { %v4662_v27 = vadd.f32 0.2548296, %v4598_v61  ;;  %v5172_v38 = vmul.f32 %v5108_v45, %v3828_v9  ;;  %v5334_v30 = vpack.c.bf16 %v5299_v46, %v5298_v13  ;;  %v3637_v49 = vmul.f32 0.5, %v11837_v34 }
0x1050   : > { %v4599_v29 = vmul.f32 %v11920_v11, %v4535_v44  ;;  %v5109_v39 = vsub.f32 1.0, %v5045_v58  ;;  %v7969_v32 = vpop.eup %7968  ;;  %v4408_v60 = vadd.f32 1.4214138, %v4344_v47  ;;  %v4281_v3 = vadd.f32 -1.4531521, %v4217_v23 }
0x1051   : > { %v4726_v37 = vmul.f32 %v11909_v7, %v4662_v27  ;;  %7604 = vmatprep.mubr.msk.bf16.mxu0 %vm5370_vm5, %v5334_v30  ;;  %v5236_v7 = vadd.f32 1.0, %v5172_v38  ;;  %7970 = vpow2.f32 %v4982_v21  ;;  %v4984_v10 = vmul.f32 1.442695, %v4857_v40 }
0x1052   : > { %v4663_v54 = vadd.f32 0.2548296, %v4599_v29  ;;  %v5173_v36 = vmul.f32 %v5109_v39, %v3829_v0  ;;  %v4472_v24 = vmul.f32 %v7963_v14, %v4408_v60  ;;  %v4345_v9 = vmul.f32 %v7967_v16, %v4281_v3  ;;  %v6118_v3 = vld [vmem:[%s12421_s10 + $0x1c0] sm:$0xff] }
0x1053   : > { %v5046_v51 = vmul.f32 %v7965_v6, %v4726_v37  ;;  %v5300_v35 = vmul.f32 %v5236_v7, %v3636_v63  ;;  %v3831_v61 = vsel %vm3767_vm11, 1.0, %v12639_v20  ;;  %7972 = vpow2.f32 %v4984_v10 }
0x1054   : > { %v4727_v2 = vmul.f32 %v11920_v11, %v4663_v54  ;;  %v5237_v52 = vadd.f32 1.0, %v5173_v36  ;;  %v4536_v8 = vadd.f32 -0.28449672, %v4472_v24  ;;  %v4409_v46 = vadd.f32 1.4214138, %v4345_v9 }
0x1055   : > { %v5110_v4 = vsub.f32 1.0, %v5046_v51  ;;  %v3638_v13 = vmul.f32 0.5, %v11845_v5  ;;  %v3639_v27 = vmul.f32 0.5, %v11853_v55  ;;  %v3832_v55 = vsel %vm3768_vm12, 1.0, %v12639_v20 }
0x1056   : > { %v5047_v57 = vmul.f32 %v7969_v32, %v4727_v2  ;;  %v5301_v22 = vmul.f32 %v5237_v52, %v3637_v49  ;;  %v4600_v18 = vmul.f32 %v7963_v14, %v4536_v8  ;;  %v4473_v53 = vmul.f32 %v7967_v16, %v4409_v46  ;;  %v6114_v32 = vld [vmem:[%s12421_s10 + $0x1a0] sm:$0xff] }
0x1057   : > { %v5174_v62 = vmul.f32 %v5110_v4, %v3830_v59  ;;  %v3641_v36 = vmul.f32 0.5, %v11884_v33  ;;  %v12993_v59 = vmov 0   ;;  %v6106_v4 = vld [vmem:[%s12421_s10 + $0x160] sm:$0xff] }
0x1058   : > { %v5111_v34 = vsub.f32 1.0, %v5047_v57  ;;  %v5335_v11 = vpack.c.bf16 %v5301_v22, %v5300_v35  ;;  %v4664_v43 = vadd.f32 0.2548296, %v4600_v18  ;;  %v4537_v38 = vadd.f32 -0.28449672, %v4473_v53  ;;  %v6110_v33 = vld [vmem:[%s12421_s10 + $0x180] sm:$0xff] }
0x1059   : > { %v5238_v45 = vadd.f32 1.0, %v5174_v62  ;;  %v7349_v2 = vcombine.high %v6102_v50, %v6106_v4  ;;  %v7348_v12 = vcombine.low %v6102_v50, %v6106_v4  ;;  %v7357_v52 = vcombine.high %v6110_v33, %v6114_v32  ;;  %v6122_v62 = vld [vmem:[%s12421_s10 + $0x1e0] sm:$0xff]  ;;  %v11992_v35 = vld [vmem:[%s12421_s10 + $0x8] sm:$0xff] }
0x105a   : > { %v5175_v25 = vmul.f32 %v5111_v34, %v3831_v61  ;;  %7605 = vmatmul.mubr.msk.bf16.gmra.mrb[72].mxu0 %vm5370_vm5, %v5335_v11  ;;  %v4728_v63 = vmul.f32 %v7963_v14, %v4664_v43  ;;  %v4601_v37 = vmul.f32 %v7967_v16, %v4537_v38  ;;  %v3833_v14 = vsel %vm3769_vm13, 1.0, %v12639_v20  ;;  %v11997_v22 = vld [vmem:[%s12421_s10 + $0x28] sm:$0xff]  ;;  %v12003_v61 = vld [vmem:[#allocation7] ss:$0 sm:$0xff]  ;;  %v12006_v11 = vld [vmem:[#allocation8] ss:$0 sm:$0xff] }
0x105b   : > { %v5302_v58 = vmul.f32 %v5238_v45, %v3638_v13  ;;  %v7971_v29 = vpop.eup %7970  ;;  %6456 = vmatprep.subr.bf16.mxu0 %v7349_v2  ;;  %v7356_v60 = vcombine.low %v6110_v33, %v6114_v32  ;;  %v7365_v57 = vcombine.high %v6118_v3, %v6122_v62  ;;  %v7364_v10 = vcombine.low %v6118_v3, %v6122_v62 }
0x105c   : > { %v5239_v44 = vadd.f32 1.0, %v5175_v25  ;;  %v5048_v6 = vmul.f32 %v7971_v29, %v4728_v63  ;;  %v4665_v0 = vadd.f32 0.2548296, %v4601_v37  ;;  %6457 = vmatpush1.bf16.msra.mxu0 %v7348_v12  ;;  %v7311_v24 = vcombine.high %v11992_v35, %v11997_v22 }
0x105d   : > { %v7973_v5 = vpop.eup %7972  ;;  %6458 = vmatprep.subr.bf16.mxu0 %v7357_v52  ;;  %v7310_v9 = vcombine.low %v11992_v35, %v11997_v22 }
0x105e   : > { %v5303_v31 = vmul.f32 %v5239_v44, %v3639_v27  ;;  %v5112_v39 = vsub.f32 1.0, %v5048_v6  ;;  %v4729_v42 = vmul.f32 %v7967_v16, %v4665_v0 }
0x1060   : > { %v5336_v30 = vpack.c.bf16 %v5303_v31, %v5302_v58  ;;  %v5176_v51 = vmul.f32 %v5112_v39, %v3832_v55  ;;  %v5049_v54 = vmul.f32 %v7973_v5, %v4729_v42  ;;  %6459 = vmatpush1.bf16.msra.mxu0 %v7356_v60 }
0x1061   : > { %6460 = vmatprep.subr.bf16.mxu0 %v7365_v57 }
0x1062   : > { %7608 = vmatprep.mubr.msk.bf16.mxu0 %vm5370_vm5, %v5336_v30  ;;  %v5113_v21 = vsub.f32 1.0, %v5049_v54  ;;  %v5240_v40 = vadd.f32 1.0, %v5176_v51 }
0x1064   : > { %v5177_v7 = vmul.f32 %v5113_v21, %v3833_v14  ;;  %v5304_v23 = vmul.f32 %v5240_v40, %v3640_v26  ;;  %6461 = vmatpush1.bf16.msra.mxu0 %v7364_v10 }
0x1065   : > { %6519 = vmatprep.subr.bf16.mxu0 %v7311_v24 }
0x1066   : > { %v5241_v47 = vadd.f32 1.0, %v5177_v7 }
0x1068   : > { %v5305_v49 = vmul.f32 %v5241_v47, %v3641_v36 }
0x106a   : > { %v5337_v16 = vpack.c.bf16 %v5305_v49, %v5304_v23 }
0x106c   : > { %7609 = vmatmul.mubr.msk.bf16.gmra.mrb[76].mxu0 %vm5370_vm5, %v5337_v16 }
0x106d   : > { %6478 = vmatprep.mubr.bf16.mxu0 %v12993_v59 }
0x112d   : > { %v7606_v34 = vpop.f32.mrb[72].mxu0 }
0x112e   : > { %v5776_v8 = vmax.f32 %v11739_v28, %v7606_v34  ;;  %v5725_v46 = vpop.f32.mrb[73].mxu0 }
0x112f   : > { %v5762_v45 = vmax.f32 %v11744_v19, %v5725_v46  ;;  %v7607_v25 = vpop.f32.mrb[74].mxu0 }
0x1130   : > { %v5821_v18 = vmul.f32 %v12003_v61, %v5776_v8  ;;  %v5783_v53 = vmax.f32 %v11749_v1, %v7607_v25  ;;  %v5728_v13 = vpop.f32.mrb[75].mxu0 }
0x1131   : > { %v5819_v27 = vmul.f32 %v12003_v61, %v5762_v45  ;;  %v5769_v44 = vmax.f32 %v11754_v17, %v5728_v13 }
0x1132   : > { %v12014_v43 = vadd.f32 %v12006_v11, %v5821_v18  ;;  %v5822_v28 = vmul.f32 %v12003_v61, %v5783_v53 }
0x1133   : > { %v12018_v38 = vadd.f32 %v12006_v11, %v5819_v27  ;;  %v5820_v19 = vmul.f32 %v12003_v61, %v5769_v44 }
0x1134   : > { %v12022_v58 = vmul.f32 0.70710677, %v12014_v43  ;;  %v12025_v1 = vadd.f32 %v12006_v11, %v5822_v28 }
0x1135   : > { %v12028_v31 = vmul.f32 0.70710677, %v12018_v38  ;;  %v12035_v37 = vadd.f32 %v12006_v11, %v5820_v19 }
0x1136   : > { %v5876_v17 = vand.u32 2147483647, %v12022_v58  ;;  %v12032_v63 = vmul.f32 0.70710677, %v12025_v1  ;;  %vm5860_vm5 = vcmp.ge.f32.partialorder %v12022_v58, 0.0 }
0x1137   : > { %v5874_v29 = vand.u32 2147483647, %v12028_v31  ;;  %v12040_v42 = vmul.f32 0.70710677, %v12035_v37  ;;  %vm5858_vm14 = vcmp.ge.f32.partialorder %v12028_v31, 0.0 }
0x1138   : > { %v5884_v30 = vmul.f32 0.3275911, %v5876_v17  ;;  %v5877_v0 = vand.u32 2147483647, %v12032_v63  ;;  %v5988_v40 = vsub.f32 0.0, %v5876_v17  ;;  %vm5861_vm15 = vcmp.ge.f32.partialorder %v12032_v63, 0.0 }
0x1139   : > { %v5882_v6 = vmul.f32 0.3275911, %v5874_v29  ;;  %v5875_v51 = vand.u32 2147483647, %v12040_v42  ;;  %v5986_v7 = vsub.f32 0.0, %v5874_v29  ;;  %vm5859_vm0 = vcmp.ge.f32.partialorder %v12040_v42, 0.0 }
0x113a   : > { %v5892_v39 = vadd.f32 1.0, %v5884_v30  ;;  %v5885_v55 = vmul.f32 0.3275911, %v5877_v0  ;;  %v5989_v26 = vsub.f32 0.0, %v5877_v0  ;;  %v5996_v4 = vmul.f32 %v5988_v40, %v5876_v17 }
0x113b   : > { %v5890_v5 = vadd.f32 1.0, %v5882_v6  ;;  %v5883_v21 = vmul.f32 0.3275911, %v5875_v51  ;;  %v5994_v2 = vmul.f32 %v5986_v7, %v5874_v29  ;;  %v5987_v57 = vsub.f32 0.0, %v5875_v51 }
0x113c   : > { %7974 = vrcp.f32 %v5892_v39  ;;  %v5893_v54 = vadd.f32 1.0, %v5885_v55  ;;  %v5997_v3 = vmul.f32 %v5989_v26, %v5877_v0  ;;  %v6006_v8 = vmul.f32 1.442695, %v5996_v4 }
0x113d   : > { %7976 = vrcp.f32 %v5890_v5  ;;  %v5891_v14 = vadd.f32 1.0, %v5883_v21  ;;  %v6002_v18 = vmul.f32 1.442695, %v5994_v2  ;;  %v5995_v28 = vmul.f32 %v5987_v57, %v5875_v51 }
0x113e   : > { %7978 = vrcp.f32 %v5893_v54  ;;  %v6008_v13 = vmul.f32 1.442695, %v5997_v3  ;;  %v5845_v42 = vmul.f32 0.5, %v12025_v1  ;;  %v6075_v1 = vld [vmem:[%s12421_s10 + $0x68] sm:$0xff] }
0x113f   : > { %7980 = vrcp.f32 %v5891_v14  ;;  %v7610_v36 = vpop.f32.mrb[76].mxu0  ;;  %v6004_v14 = vmul.f32 1.442695, %v5995_v28 }
0x1140   : > { %v5804_v47 = vmax.f32 %v11759_v48, %v7610_v36  ;;  %v5741_v23 = vpop.f32.mrb[77].mxu0  ;;  %7982 = vpow2.f32 %v6006_v8 }
0x1141   : > { %v5790_v49 = vmax.f32 %v11764_v56, %v5741_v23  ;;  %v7611_v16 = vpop.f32.mrb[78].mxu0  ;;  %7984 = vpow2.f32 %v6002_v18 }
0x1142   : > { %v5825_v12 = vmul.f32 %v12003_v61, %v5804_v47  ;;  %v5811_v33 = vmax.f32 %v11769_v15, %v7611_v16  ;;  %v5744_v32 = vpop.f32.mrb[79].mxu0  ;;  %7986 = vpow2.f32 %v6008_v13 }
0x1143   : > { %v5823_v48 = vmul.f32 %v12003_v61, %v5790_v49  ;;  %v5797_v62 = vmax.f32 %v11774_v41, %v5744_v32 }
0x1144   : > { %v12056_v10 = vadd.f32 %v12006_v11, %v5825_v12  ;;  %v5826_v25 = vmul.f32 %v12003_v61, %v5811_v33 }
0x1145   : > { %v12059_v34 = vadd.f32 %v12006_v11, %v5823_v48  ;;  %v5824_v16 = vmul.f32 %v12003_v61, %v5797_v62 }
0x1146   : > { %v12045_v50 = vpop.eup %7974  ;;  %v12064_v45 = vmul.f32 0.70710677, %v12056_v10  ;;  %v12081_v5 = vadd.f32 %v12006_v11, %v5826_v25 }
0x1147   : > { %v12049_v52 = vpop.eup %7976  ;;  %v5916_v60 = vmul.f32 1.0614054, %v12045_v50  ;;  %v12076_v17 = vmul.f32 0.70710677, %v12059_v34  ;;  %v12105_v57 = vadd.f32 %v12006_v11, %v5824_v16 }
0x1148   : > { %v5914_v56 = vmul.f32 1.0614054, %v12049_v52  ;;  %v12061_v15 = vpop.eup %7978  ;;  %v12073_v19 = vand.u32 2147483647, %v12064_v45  ;;  %v12091_v49 = vmul.f32 0.70710677, %v12081_v5 }
0x1149   : > { %v5924_v24 = vadd.f32 -1.4531521, %v5916_v60  ;;  %v5917_v53 = vmul.f32 1.0614054, %v12061_v15  ;;  %v12069_v27 = vpop.eup %7980  ;;  %v12088_v47 = vand.u32 2147483647, %v12076_v17 }
0x114a   : > { %v5922_v46 = vadd.f32 -1.4531521, %v5914_v56  ;;  %v5915_v6 = vmul.f32 1.0614054, %v12069_v27  ;;  %v5888_v39 = vmul.f32 0.3275911, %v12073_v19  ;;  %v7983_v25 = vpop.eup %7982 }
0x114b   : > { %v5932_v41 = vmul.f32 %v12045_v50, %v5924_v24  ;;  %v5925_v30 = vadd.f32 -1.4531521, %v5917_v53  ;;  %v5886_v33 = vmul.f32 0.3275911, %v12088_v47  ;;  %v12102_v62 = vand.u32 2147483647, %v12091_v49  ;;  %v7985_v13 = vpop.eup %7984 }
0x114c   : > { %v5930_v44 = vmul.f32 %v12049_v52, %v5922_v46  ;;  %v5923_v54 = vadd.f32 -1.4531521, %v5915_v6  ;;  %v5896_v40 = vadd.f32 1.0, %v5888_v39  ;;  %v5992_v18 = vsub.f32 0.0, %v12073_v19 }
0x114d   : > { %v5940_v29 = vadd.f32 1.4214138, %v5932_v41  ;;  %v5933_v51 = vmul.f32 %v12061_v15, %v5925_v30  ;;  %v5894_v56 = vadd.f32 1.0, %v5886_v33  ;;  %v5889_v53 = vmul.f32 0.3275911, %v12102_v62 }
0x114e   : > { %v5938_v0 = vadd.f32 1.4214138, %v5930_v44  ;;  %v5931_v36 = vmul.f32 %v12069_v27, %v5923_v54  ;;  %7988 = vrcp.f32 %v5896_v40  ;;  %v5868_v44 = vsel %vm5860_vm5, 1.0, %v12639_v20 }
0x114f   : > { %v5948_v55 = vmul.f32 %v12045_v50, %v5940_v29  ;;  %v5941_v26 = vadd.f32 1.4214138, %v5933_v51  ;;  %7990 = vpow2.f32 %v6004_v14  ;;  %v7987_v29 = vpop.eup %7986  ;;  %v5866_v30 = vsel %vm5858_vm14, 1.0, %v12639_v20 }
0x1150   : > { %v5946_v21 = vmul.f32 %v12049_v52, %v5938_v0  ;;  %v5939_v12 = vadd.f32 1.4214138, %v5931_v36  ;;  %7992 = vrcp.f32 %v5894_v56  ;;  %v12122_v58 = vmul.f32 0.70710677, %v12105_v57 }
0x1151   : > { %v5956_v7 = vadd.f32 -0.28449672, %v5948_v55  ;;  %v5949_v2 = vmul.f32 %v12061_v15, %v5941_v26  ;;  %v5842_v36 = vmul.f32 0.5, %v12018_v38  ;;  %vm5864_vm1 = vcmp.ge.f32.partialorder %v12064_v45, 0.0 }
0x1152   : > { %v5954_v23 = vadd.f32 -0.28449672, %v5946_v21  ;;  %v5947_v48 = vmul.f32 %v12069_v27, %v5939_v12  ;;  %v6000_v21 = vmul.f32 %v5992_v18, %v12073_v19  ;;  %v12133_v16 = vand.u32 2147483647, %v12122_v58 }
0x1153   : > { %v5964_v4 = vmul.f32 %v12045_v50, %v5956_v7  ;;  %v5957_v3 = vadd.f32 -0.28449672, %v5949_v2  ;;  %v5869_v19 = vsel %vm5861_vm15, 1.0, %v12639_v20  ;;  %v5843_v18 = vmul.f32 0.5, %v12035_v37 }
0x1154   : > { %v5962_v32 = vmul.f32 %v12049_v52, %v5954_v23  ;;  %v5955_v46 = vadd.f32 -0.28449672, %v5947_v48  ;;  %v6014_v33 = vmul.f32 1.442695, %v6000_v21  ;;  %v5887_v38 = vmul.f32 0.3275911, %v12133_v16 }
0x1155   : > { %v5972_v60 = vadd.f32 0.2548296, %v5964_v4  ;;  %v5965_v8 = vmul.f32 %v12061_v15, %v5957_v3  ;;  %vm5865_vm2 = vcmp.ge.f32.partialorder %v12091_v49, 0.0  ;;  %vm5862_vm3 = vcmp.ge.f32.partialorder %v12076_v17, 0.0 }
0x1156   : > { %v5970_v61 = vadd.f32 0.2548296, %v5962_v32  ;;  %v5873_v49 = vsel %vm5865_vm2, 1.0, %v12639_v20  ;;  %vm5863_vm4 = vcmp.ge.f32.partialorder %v12122_v58, 0.0 }
0x1157   : > { %v5980_v24 = vmul.f32 %v12045_v50, %v5972_v60  ;;  %v5973_v28 = vadd.f32 0.2548296, %v5965_v8  ;;  %v5963_v50 = vmul.f32 %v12069_v27, %v5955_v46  ;;  %v5895_v8 = vadd.f32 1.0, %v5887_v38  ;;  %v6087_v38 = vld [vmem:[%s12421_s10 + $0xc8] sm:$0xff] }
0x1158   : > { %v5978_v41 = vmul.f32 %v12049_v52, %v5970_v61  ;;  %v5897_v52 = vadd.f32 1.0, %v5889_v53  ;;  %v12124_v51 = vpop.eup %7988  ;;  %v5871_v58 = vsel %vm5863_vm4, 1.0, %v12639_v20 }
0x1159   : > { %v6020_v11 = vmul.f32 %v7983_v25, %v5980_v24  ;;  %v5981_v39 = vmul.f32 %v12061_v15, %v5973_v28  ;;  %v5971_v55 = vadd.f32 0.2548296, %v5963_v50  ;;  %v5920_v7 = vmul.f32 1.0614054, %v12124_v51  ;;  %v7991_v26 = vpop.eup %7990 }
0x115a   : > { %v6018_v6 = vmul.f32 %v7985_v13, %v5978_v41  ;;  %7994 = vrcp.f32 %v5897_v52  ;;  %v5844_v15 = vmul.f32 0.5, %v12014_v43  ;;  %v5990_v43 = vsub.f32 0.0, %v12088_v47  ;;  %v12143_v32 = vpop.eup %7992 }
0x115b   : > { %v6028_v0 = vsub.f32 1.0, %v6020_v11  ;;  %v6021_v14 = vmul.f32 %v7987_v29, %v5981_v39  ;;  %v5979_v40 = vmul.f32 %v12069_v27, %v5971_v55  ;;  %v5928_v12 = vadd.f32 -1.4531521, %v5920_v7  ;;  %v6071_v29 = vld [vmem:[%s12421_s10 + $0x48] sm:$0xff] }
0x115c   : > { %v6026_v54 = vsub.f32 1.0, %v6018_v6  ;;  %v5867_v27 = vsel %vm5859_vm0, 1.0, %v12639_v20  ;;  %v5918_v61 = vmul.f32 1.0614054, %v12143_v32  ;;  %v5993_v24 = vsub.f32 0.0, %v12102_v62 }
0x115d   : > { %v6036_v31 = vmul.f32 %v6028_v0, %v5868_v44  ;;  %v6029_v4 = vsub.f32 1.0, %v6021_v14  ;;  %v6019_v2 = vmul.f32 %v7991_v26, %v5979_v40  ;;  %v5936_v63 = vmul.f32 %v12124_v51, %v5928_v12 }
0x115e   : > { %v6034_v23 = vmul.f32 %v6026_v54, %v5866_v30  ;;  %v5926_v53 = vadd.f32 -1.4531521, %v5918_v61  ;;  %v5998_v13 = vmul.f32 %v5990_v43, %v12088_v47  ;;  %7996 = vrcp.f32 %v5895_v8  ;;  %v6095_v61 = vld [vmem:[%s12421_s10 + $0x108] sm:$0xff] }
0x115f   : > { %v6044_v60 = vadd.f32 1.0, %v6036_v31  ;;  %v6037_v3 = vmul.f32 %v6029_v4, %v5869_v19  ;;  %v6027_v48 = vsub.f32 1.0, %v6019_v2  ;;  %v5944_v41 = vadd.f32 1.4214138, %v5936_v63 }
0x1160   : > { %v6042_v56 = vadd.f32 1.0, %v6034_v23  ;;  %7998 = vpow2.f32 %v6014_v33  ;;  %v5934_v47 = vmul.f32 %v12143_v32, %v5926_v53  ;;  %v6001_v6 = vmul.f32 %v5993_v24, %v12102_v62  ;;  %v6079_v62 = vld [vmem:[%s12421_s10 + $0x88] sm:$0xff] }
0x1161   : > { %v6045_v46 = vadd.f32 1.0, %v6037_v3  ;;  %v6035_v25 = vmul.f32 %v6027_v48, %v5867_v27  ;;  %v6052_v44 = vmul.f32 %v6044_v60, %v5844_v15  ;;  %v5952_v50 = vmul.f32 %v12124_v51, %v5944_v41  ;;  %v6083_v23 = vld [vmem:[%s12421_s10 + $0xa8] sm:$0xff] }
0x1162   : > { %v6050_v37 = vmul.f32 %v6042_v56, %v5842_v36  ;;  %v5942_v54 = vadd.f32 1.4214138, %v5934_v47  ;;  %v7319_v21 = vcombine.high %v6071_v29, %v6075_v1  ;;  %v6010_v40 = vmul.f32 1.442695, %v5998_v13  ;;  %v6091_v60 = vld [vmem:[%s12421_s10 + $0xe8] sm:$0xff] }
0x1163   : > { %v6053_v11 = vmul.f32 %v6045_v46, %v5845_v42  ;;  %v6043_v28 = vadd.f32 1.0, %v6035_v25  ;;  %v5960_v0 = vadd.f32 -0.28449672, %v5952_v50  ;;  %v6016_v15 = vmul.f32 1.442695, %v6001_v6  ;;  %v6099_v24 = vld [vmem:[%s12421_s10 + $0x128] sm:$0xff] }
0x1164   : > { %v12158_v30 = vpop.eup %7994  ;;  %v5950_v26 = vmul.f32 %v12143_v32, %v5942_v54  ;;  %v5991_v36 = vsub.f32 0.0, %v12133_v16  ;;  %v7318_v12 = vcombine.low %v6071_v29, %v6075_v1  ;;  %8000 = vpow2.f32 %v6010_v40  ;;  %v6107_v1 = vld [vmem:[%s12421_s10 + $0x168] sm:$0xff] }
0x1165   : > { %v6051_v52 = vmul.f32 %v6043_v28, %v5843_v18  ;;  %v5921_v39 = vmul.f32 1.0614054, %v12158_v30  ;;  %v12163_v55 = vpack.c.bf16 %v6053_v11, %v6052_v44  ;;  %v5968_v14 = vmul.f32 %v12124_v51, %v5960_v0  ;;  %v6103_v44 = vld [vmem:[%s12421_s10 + $0x148] sm:$0xff] }
0x1166   : > { %v5958_v2 = vadd.f32 -0.28449672, %v5950_v26  ;;  %v7327_v43 = vcombine.high %v6079_v62, %v6083_v23  ;;  %8002 = vpow2.f32 %v6016_v15  ;;  %v5999_v22 = vmul.f32 %v5991_v36, %v12133_v16 }
0x1167   : > { %v12165_v31 = vpack.c.bf16 %v6051_v52, %v6050_v37  ;;  %v5929_v7 = vadd.f32 -1.4531521, %v5921_v39  ;;  %v5976_v19 = vadd.f32 0.2548296, %v5968_v14  ;;  %v7326_v63 = vcombine.low %v6079_v62, %v6083_v23 }
0x1168   : > { %v12189_v3 = vpop.eup %7996  ;;  %v5966_v35 = vmul.f32 %v12143_v32, %v5958_v2  ;;  %v7335_v56 = vcombine.high %v6087_v38, %v6091_v60  ;;  %v6012_v25 = vmul.f32 1.442695, %v5999_v22  ;;  %v7334_v53 = vcombine.low %v6087_v38, %v6091_v60  ;;  %v6119_v2 = vld [vmem:[%s12421_s10 + $0x1c8] sm:$0xff] }
0x1169   : > { %v5937_v4 = vmul.f32 %v12158_v30, %v5929_v7  ;;  %6479 = vmatmul.mubr.bf16.vlgmr.msra.gmra.mrb[80].mxu0 %v12165_v31  ;;  %v5984_v27 = vmul.f32 %v12124_v51, %v5976_v19  ;;  %v5919_v51 = vmul.f32 1.0614054, %v12189_v3  ;;  %v7343_v13 = vcombine.high %v6095_v61, %v6099_v24  ;;  %v6115_v7 = vld [vmem:[%s12421_s10 + $0x1a8] sm:$0xff] }
0x116a   : > { %6520 = vmatpush1.bf16.msra.mxu0 %v7310_v9  ;;  %6488 = vmatprep.mubr.bf16.mxu0 %v12993_v59  ;;  %v7999_v48 = vpop.eup %7998  ;;  %v5974_v42 = vadd.f32 0.2548296, %v5966_v35  ;;  %8004 = vpow2.f32 %v6012_v25  ;;  %v5872_v0 = vsel %vm5864_vm1, 1.0, %v12639_v20  ;;  %v7351_v39 = vcombine.high %v6103_v44, %v6107_v1 }
0x116b   : > { %v5945_v33 = vadd.f32 1.4214138, %v5937_v4  ;;  %6521 = vmatprep.subr.bf16.mxu0 %v7319_v21  ;;  %v6024_v8 = vmul.f32 %v7999_v48, %v5984_v27  ;;  %v5927_v16 = vadd.f32 -1.4531521, %v5919_v51  ;;  %v7350_v15 = vcombine.low %v6103_v44, %v6107_v1  ;;  %v6080_v44 = vld [vmem:[%s12421_s10 + $0x90] sm:$0xff] }
0x116c   : > { %v5982_v28 = vmul.f32 %v12143_v32, %v5974_v42  ;;  %v7342_v32 = vcombine.low %v6095_v61, %v6099_v24  ;;  %v5848_v27 = vmul.f32 0.5, %v12056_v10  ;;  %v5870_v35 = vsel %vm5862_vm3, 1.0, %v12639_v20  ;;  %v6064_v10 = vld [vmem:[%s12421_s10 + $0x10] sm:$0xff] }
0x116d   : > { %v5953_v9 = vmul.f32 %v12158_v30, %v5945_v33  ;;  %v5935_v18 = vmul.f32 %v12189_v3, %v5927_v16  ;;  %v6032_v11 = vsub.f32 1.0, %v6024_v8  ;;  %v5849_v33 = vmul.f32 0.5, %v12081_v5  ;;  %v6068_v5 = vld [vmem:[%s12421_s10 + $0x30] sm:$0xff] }
0x116e   : > { %6522 = vmatpush1.bf16.msra.mxu0 %v7318_v12  ;;  %v8001_v37 = vpop.eup %8000  ;;  %v6123_v12 = vld [vmem:[%s12421_s10 + $0x1e8] sm:$0xff]  ;;  %v7313_v42 = vcombine.high %v6064_v10, %v6068_v5  ;;  %v5847_v16 = vmul.f32 0.5, %v12105_v57  ;;  %v6072_v20 = vld [vmem:[%s12421_s10 + $0x50] sm:$0xff]  ;;  %v7312_v57 = vcombine.low %v6064_v10, %v6068_v5 }
0x116f   : > { %v5961_v46 = vadd.f32 -0.28449672, %v5953_v9  ;;  %6523 = vmatprep.subr.bf16.mxu0 %v7327_v43  ;;  %v5943_v29 = vadd.f32 1.4214138, %v5935_v18  ;;  %v6040_v54 = vmul.f32 %v6032_v11, %v5872_v0  ;;  %v6022_v21 = vmul.f32 %v8001_v37, %v5982_v28  ;;  %v6084_v11 = vld [vmem:[%s12421_s10 + $0xb0] sm:$0xff] }
0x1170   : > { %v8003_v52 = vpop.eup %8002  ;;  %v7367_v9 = vcombine.high %v6119_v2, %v6123_v12  ;;  %v7366_v61 = vcombine.low %v6119_v2, %v6123_v12  ;;  %v6092_v1 = vld [vmem:[%s12421_s10 + $0xf0] sm:$0xff]  ;;  %v7328_v37 = vcombine.low %v6080_v44, %v6084_v11  ;;  %v6073_v2 = vld [vmem:[%s12421_s10 + $0x58] sm:$0xff] }
0x1171   : > { %v5969_v41 = vmul.f32 %v12158_v30, %v5961_v46  ;;  %6489 = vmatmul.mubr.bf16.gmra.mrb[84].mxu0 %v12163_v55  ;;  %v5951_v6 = vmul.f32 %v12189_v3, %v5943_v29  ;;  %v6048_v62 = vadd.f32 1.0, %v6040_v54  ;;  %v6030_v23 = vsub.f32 1.0, %v6022_v21  ;;  %v6088_v29 = vld [vmem:[%s12421_s10 + $0xd0] sm:$0xff]  ;;  %v6077_v12 = vld [vmem:[%s12421_s10 + $0x78] sm:$0xff] }
0x1172   : > { %6524 = vmatpush1.bf16.msra.mxu0 %v7326_v63  ;;  %6498 = vmatprep.mubr.bf16.mxu0 %v12993_v59  ;;  %v5846_v46 = vmul.f32 0.5, %v12059_v34  ;;  %v6076_v34 = vld [vmem:[%s12421_s10 + $0x70] sm:$0xff]  ;;  %v7336_v0 = vcombine.low %v6088_v29, %v6092_v1 }
0x1173   : > { %v5977_v50 = vadd.f32 0.2548296, %v5969_v41  ;;  %6525 = vmatprep.subr.bf16.mxu0 %v7335_v56  ;;  %v5959_v40 = vadd.f32 -0.28449672, %v5951_v6  ;;  %v6056_v51 = vmul.f32 %v6048_v62, %v5848_v27  ;;  %v6038_v48 = vmul.f32 %v6030_v23, %v5870_v35  ;;  %v6096_v6 = vld [vmem:[%s12421_s10 + $0x110] sm:$0xff]  ;;  %v6065_v62 = vld [vmem:[%s12421_s10 + $0x18] sm:$0xff] }
0x1174   : > { %v8005_v60 = vpop.eup %8004  ;;  %v7320_v28 = vcombine.low %v6072_v20, %v6076_v34  ;;  %v6108_v54 = vld [vmem:[%s12421_s10 + $0x170] sm:$0xff]  ;;  %v6069_v23 = vld [vmem:[%s12421_s10 + $0x38] sm:$0xff] }
0x1175   : > { %v5985_v47 = vmul.f32 %v12158_v30, %v5977_v50  ;;  %v6111_v30 = vld [vmem:[%s12421_s10 + $0x188] sm:$0xff]  ;;  %v5967_v26 = vmul.f32 %v12189_v3, %v5959_v40  ;;  %v6046_v24 = vadd.f32 1.0, %v6038_v48  ;;  %v7329_v50 = vcombine.high %v6080_v44, %v6084_v11  ;;  %v6112_v40 = vld [vmem:[%s12421_s10 + $0x190] sm:$0xff] }
0x1176   : > { %6526 = vmatpush1.bf16.msra.mxu0 %v7334_v53  ;;  %v7359_v36 = vcombine.high %v6111_v30, %v6115_v7  ;;  %v7358_v22 = vcombine.low %v6111_v30, %v6115_v7  ;;  %v6116_v30 = vld [vmem:[%s12421_s10 + $0x1b0] sm:$0xff]  ;;  %v7314_v27 = vcombine.low %v6065_v62, %v6069_v23 }
0x1177   : > { %v6025_v14 = vmul.f32 %v8003_v52, %v5985_v47  ;;  %6527 = vmatprep.subr.bf16.mxu0 %v7343_v13  ;;  %v5975_v4 = vadd.f32 0.2548296, %v5967_v26  ;;  %v6054_v41 = vmul.f32 %v6046_v24, %v5846_v46  ;;  %v7321_v13 = vcombine.high %v6072_v20, %v6076_v34  ;;  %v6100_v52 = vld [vmem:[%s12421_s10 + $0x130] sm:$0xff] }
0x1178   : > { %v7337_v47 = vcombine.high %v6088_v29, %v6092_v1  ;;  %v7344_v21 = vcombine.low %v6096_v6, %v6100_v52  ;;  %v6120_v26 = vld [vmem:[%s12421_s10 + $0x1d0] sm:$0xff] }
0x1179   : > { %v6033_v45 = vsub.f32 1.0, %v6025_v14  ;;  %v5983_v38 = vmul.f32 %v12189_v3, %v5975_v4  ;;  %v7315_v4 = vcombine.high %v6065_v62, %v6069_v23 }
0x117a   : > { %6528 = vmatpush1.bf16.msra.mxu0 %v7342_v32  ;;  %v7345_v32 = vcombine.high %v6096_v6, %v6100_v52 }
0x117b   : > { %v6041_v19 = vmul.f32 %v6033_v45, %v5873_v49  ;;  %6529 = vmatprep.subr.bf16.mxu0 %v7351_v39  ;;  %v6023_v56 = vmul.f32 %v8005_v60, %v5983_v38  ;;  %v6104_v39 = vld [vmem:[%s12421_s10 + $0x150] sm:$0xff]  ;;  %v7361_v45 = vcombine.high %v6112_v40, %v6116_v30  ;;  %v6085_v38 = vld [vmem:[%s12421_s10 + $0xb8] sm:$0xff]  ;;  %v7322_v60 = vcombine.low %v6073_v2, %v6077_v12 }
0x117c   : > { %v7353_v14 = vcombine.high %v6104_v39, %v6108_v54  ;;  %v7352_v7 = vcombine.low %v6104_v39, %v6108_v54  ;;  %v6124_v49 = vld [vmem:[%s12421_s10 + $0x1f0] sm:$0xff] }
0x117d   : > { %v6049_v43 = vadd.f32 1.0, %v6041_v19  ;;  %v6031_v17 = vsub.f32 1.0, %v6023_v56  ;;  %v7368_v19 = vcombine.low %v6120_v26, %v6124_v49  ;;  %v6101_v56 = vld [vmem:[%s12421_s10 + $0x138] sm:$0xff] }
0x117e   : > { %6530 = vmatpush1.bf16.msra.mxu0 %v7350_v15  ;;  %v7360_v15 = vcombine.low %v6112_v40, %v6116_v30 }
0x117f   : > { %v6057_v63 = vmul.f32 %v6049_v43, %v5849_v33  ;;  %6531 = vmatprep.subr.bf16.mxu0 %v7359_v36  ;;  %v6039_v8 = vmul.f32 %v6031_v17, %v5871_v58  ;;  %v7369_v36 = vcombine.high %v6120_v26, %v6124_v49  ;;  %v7323_v33 = vcombine.high %v6073_v2, %v6077_v12  ;;  %v6081_v43 = vld [vmem:[%s12421_s10 + $0x98] sm:$0xff] }
0x1180   : > { %v7331_v35 = vcombine.high %v6081_v43, %v6085_v38  ;;  %v6105_v17 = vld [vmem:[%s12421_s10 + $0x158] sm:$0xff] }
0x1181   : > { %v12247_v3 = vpack.c.bf16 %v6057_v63, %v6056_v51  ;;  %v6047_v25 = vadd.f32 1.0, %v6039_v8  ;;  %v7330_v51 = vcombine.low %v6081_v43, %v6085_v38  ;;  %v6097_v63 = vld [vmem:[%s12421_s10 + $0x118] sm:$0xff] }
0x1182   : > { %6532 = vmatpush1.bf16.msra.mxu0 %v7358_v22  ;;  %v6089_v22 = vld [vmem:[%s12421_s10 + $0xd8] sm:$0xff]  ;;  %v7347_v5 = vcombine.high %v6097_v63, %v6101_v56 }
0x1183   : > { %6533 = vmatprep.subr.bf16.mxu0 %v7367_v9  ;;  %v6055_v18 = vmul.f32 %v6047_v25, %v5847_v16  ;;  %v6093_v9 = vld [vmem:[%s12421_s10 + $0xf8] sm:$0xff] }
0x1184   : > { %v7339_v48 = vcombine.high %v6089_v22, %v6093_v9  ;;  %v7338_v10 = vcombine.low %v6089_v22, %v6093_v9  ;;  %v6109_v58 = vld [vmem:[%s12421_s10 + $0x178] sm:$0xff] }
0x1185   : > { %v12252_v53 = vpack.c.bf16 %v6055_v18, %v6054_v41  ;;  %v7355_v24 = vcombine.high %v6105_v17, %v6109_v58  ;;  %v6113_v8 = vld [vmem:[%s12421_s10 + $0x198] sm:$0xff]  ;;  %v7354_v46 = vcombine.low %v6105_v17, %v6109_v58 }
0x1186   : > { %6534 = vmatpush1.bf16.msra.mxu0 %v7366_v61  ;;  %v7346_v61 = vcombine.low %v6097_v63, %v6101_v56  ;;  %v6121_v25 = vld [vmem:[%s12421_s10 + $0x1d8] sm:$0xff] }
0x1187   : > { %6592 = vmatprep.subr.bf16.mxu0 %v7313_v42  ;;  %6499 = vmatmul.mubr.bf16.gmra.mrb[88].mxu0 %v12252_v53  ;;  %v6117_v42 = vld [vmem:[%s12421_s10 + $0x1b8] sm:$0xff] }
0x1188   : > { %6508 = vmatprep.mubr.bf16.mxu0 %v12993_v59  ;;  %v7363_v16 = vcombine.high %v6113_v8, %v6117_v42  ;;  %v6125_v41 = vld [vmem:[%s12421_s10 + $0x1f8] sm:$0xff]  ;;  %v7362_v18 = vcombine.low %v6113_v8, %v6117_v42 }
0x1189   : > { %v7371_v20 = vcombine.high %v6121_v25, %v6125_v41  ;;  %v7370_v34 = vcombine.low %v6121_v25, %v6125_v41 }
0x118f   : > { %6509 = vmatmul.mubr.bf16.gmra.mrb[92].mxu0 %v12247_v3 }
0x1190   : > { %6551 = vmatprep.mubr.bf16.mxu0 %v12993_v59 }
0x1197   : > { %6552 = vmatmul.mubr.bf16.vlgmr.msra.gmra.mrb[96].mxu0 %v12165_v31 }
0x1198   : > { %6593 = vmatpush1.bf16.msra.mxu0 %v7312_v57  ;;  %6561 = vmatprep.mubr.bf16.mxu0 %v12993_v59 }
0x1199   : > { %6594 = vmatprep.subr.bf16.mxu0 %v7321_v13 }
0x119c   : > { %6595 = vmatpush1.bf16.msra.mxu0 %v7320_v28 }
0x119d   : > { %6596 = vmatprep.subr.bf16.mxu0 %v7329_v50 }
0x119f   : > { %6562 = vmatmul.mubr.bf16.gmra.mrb[100].mxu0 %v12163_v55 }
0x11a0   : > { %6597 = vmatpush1.bf16.msra.mxu0 %v7328_v37  ;;  %6571 = vmatprep.mubr.bf16.mxu0 %v12993_v59 }
0x11a1   : > { %6598 = vmatprep.subr.bf16.mxu0 %v7337_v47 }
0x11a4   : > { %6599 = vmatpush1.bf16.msra.mxu0 %v7336_v0 }
0x11a5   : > { %6600 = vmatprep.subr.bf16.mxu0 %v7345_v32 }
0x11a7   : > { %6572 = vmatmul.mubr.bf16.gmra.mrb[104].mxu0 %v12252_v53 }
0x11a8   : > { %6601 = vmatpush1.bf16.msra.mxu0 %v7344_v21  ;;  %6581 = vmatprep.mubr.bf16.mxu0 %v12993_v59 }
0x11a9   : > { %6602 = vmatprep.subr.bf16.mxu0 %v7353_v14 }
0x11ac   : > { %6603 = vmatpush1.bf16.msra.mxu0 %v7352_v7 }
0x11ad   : > { %6604 = vmatprep.subr.bf16.mxu0 %v7361_v45 }
0x11af   : > { %6582 = vmatmul.mubr.bf16.gmra.mrb[108].mxu0 %v12247_v3 }
0x11b0   : > { %6605 = vmatpush1.bf16.msra.mxu0 %v7360_v15  ;;  %6624 = vmatprep.mubr.bf16.mxu0 %v12993_v59 }
0x11b1   : > { %6606 = vmatprep.subr.bf16.mxu0 %v7369_v36 }
0x11b4   : > { %6607 = vmatpush1.bf16.msra.mxu0 %v7368_v19 }
0x11b5   : > { %6665 = vmatprep.subr.bf16.mxu0 %v7315_v4 }
0x11b7   : > { %6625 = vmatmul.mubr.bf16.vlgmr.msra.gmra.mrb[112].mxu0 %v12165_v31 }
0x11b8   : > { %6666 = vmatpush1.bf16.msra.mxu0 %v7314_v27  ;;  %6634 = vmatprep.mubr.bf16.mxu0 %v12993_v59 }
0x11b9   : > { %6667 = vmatprep.subr.bf16.mxu0 %v7323_v33 }
0x11bc   : > { %6668 = vmatpush1.bf16.msra.mxu0 %v7322_v60 }
0x11bd   : > { %6669 = vmatprep.subr.bf16.mxu0 %v7331_v35 }
0x11bf   : > { %6635 = vmatmul.mubr.bf16.gmra.mrb[116].mxu0 %v12163_v55 }
0x11c0   : > { %6670 = vmatpush1.bf16.msra.mxu0 %v7330_v51  ;;  %6644 = vmatprep.mubr.bf16.mxu0 %v12993_v59 }
0x11c1   : > { %6671 = vmatprep.subr.bf16.mxu0 %v7339_v48 }
0x11c4   : > { %6672 = vmatpush1.bf16.msra.mxu0 %v7338_v10 }
0x11c5   : > { %6673 = vmatprep.subr.bf16.mxu0 %v7347_v5 }
0x11c7   : > { %6645 = vmatmul.mubr.bf16.gmra.mrb[120].mxu0 %v12252_v53 }
0x11c8   : > { %6674 = vmatpush1.bf16.msra.mxu0 %v7346_v61  ;;  %6654 = vmatprep.mubr.bf16.mxu0 %v12993_v59 }
0x11c9   : > { %6675 = vmatprep.subr.bf16.mxu0 %v7355_v24 }
0x11cc   : > { %6676 = vmatpush1.bf16.msra.mxu0 %v7354_v46 }
0x11cd   : > { %6677 = vmatprep.subr.bf16.mxu0 %v7363_v16 }
0x11cf   : > { %6655 = vmatmul.mubr.bf16.gmra.mrb[124].mxu0 %v12247_v3 }
0x11d0   : > { %6678 = vmatpush1.bf16.msra.mxu0 %v7362_v18  ;;  %6697 = vmatprep.mubr.bf16.mxu0 %v12993_v59 }
0x11d1   : > { %6679 = vmatprep.subr.bf16.mxu0 %v7371_v20 }
0x11d4   : > { %6680 = vmatpush1.bf16.msra.mxu0 %v7370_v34 }
0x11d7   : > { %6698 = vmatmul.mubr.bf16.vlgmr.msra.gmra.mrb[128].mxu0 %v12165_v31 }
0x11d8   : > { %6707 = vmatprep.mubr.bf16.mxu0 %v12993_v59 }
0x11df   : > { %6708 = vmatmul.mubr.bf16.gmra.mrb[132].mxu0 %v12163_v55 }
0x11e0   : > { %6717 = vmatprep.mubr.bf16.mxu0 %v12993_v59 }
0x11e7   : > { %6718 = vmatmul.mubr.bf16.gmra.mrb[136].mxu0 %v12252_v53 }
0x11e8   : > { %6727 = vmatprep.mubr.bf16.mxu0 %v12993_v59 }
0x11ef   : > { %6728 = vmatmul.mubr.bf16.gmra.mrb[140].mxu0 %v12247_v3 }
0x123c   : > { %v6480_v57 = vpop.f32.mrb[80].mxu0 }
0x123d   : > { %v6482_v13 = vpop.f32.mrb[81].mxu0 }
0x123e   : > { %v6484_v44 = vpop.f32.mrb[82].mxu0 }
0x123f   : > { %v6738_v11 = vmax.f32 %v6480_v57, %v6484_v44  ;;  %v6486_v28 = vpop.f32.mrb[83].mxu0 }
0x1240   : > { %v6751_v50 = vmax.f32 %v6482_v13, %v6486_v28 }
0x1244   : > { %v6490_v29 = vpop.f32.mrb[84].mxu0 }
0x1245   : > { %v6739_v31 = vmax.f32 %v6738_v11, %v6490_v29  ;;  %v6492_v1 = vpop.f32.mrb[85].mxu0 }
0x1246   : > { %v6752_v37 = vmax.f32 %v6751_v50, %v6492_v1  ;;  %v6494_v47 = vpop.f32.mrb[86].mxu0 }
0x1247   : > { %v6740_v55 = vmax.f32 %v6739_v31, %v6494_v47  ;;  %v6496_v6 = vpop.f32.mrb[87].mxu0 }
0x1248   : > { %v6753_v52 = vmax.f32 %v6752_v37, %v6496_v6  ;;  %v8240_v6 = vmov 1966171168  }
0x125a   : > { %v6500_v0 = vpop.f32.mrb[88].mxu0 }
0x125b   : > { %v6741_v53 = vmax.f32 %v6740_v55, %v6500_v0  ;;  %v6502_v32 = vpop.f32.mrb[89].mxu0 }
0x125c   : > { %v6754_v59 = vmax.f32 %v6753_v52, %v6502_v32  ;;  %v6504_v39 = vpop.f32.mrb[90].mxu0  ;;  %v6855_v52 = vunpack.c.l.s4 %v8240_v6 }
0x125d   : > { %v6742_v3 = vmax.f32 %v6741_v53, %v6504_v39  ;;  %v6506_v54 = vpop.f32.mrb[91].mxu0 }
0x125e   : > { %v6755_v21 = vmax.f32 %v6754_v59, %v6506_v54 }
0x1262   : > { %v6510_v14 = vpop.f32.mrb[92].mxu0 }
0x1263   : > { %v6743_v40 = vmax.f32 %v6742_v3, %v6510_v14  ;;  %v6512_v30 = vpop.f32.mrb[93].mxu0 }
0x1264   : > { %v6756_v7 = vmax.f32 %v6755_v21, %v6512_v30  ;;  %v6514_v45 = vpop.f32.mrb[94].mxu0 }
0x1265   : > { %v6744_v26 = vmax.f32 %v6743_v40, %v6514_v45  ;;  %v6516_v49 = vpop.f32.mrb[95].mxu0  ;;  %v6856_v40 = vunpack.c.0.s8 %v6855_v52 }
0x1266   : > { %v6757_v15 = vmax.f32 %v6756_v7, %v6516_v49 }
0x1267   : > { %v6745_v36 = vrot.slane %v6744_v26, 4 }
0x1268   : > { %v6758_v62 = vrot.slane %v6757_v15, 4 }
0x1269   : > { %v6746_v23 = vmax.f32 %v6744_v26, %v6745_v36 }
0x126a   : > { %v6759_v19 = vmax.f32 %v6757_v15, %v6758_v62  ;;  %v6553_v4 = vpop.f32.mrb[96].mxu0  ;;  %v12994_v15 = vld [vmem:[#allocation16_spill] sm:$0xff] }
0x126b   : > { %v6747_v2 = vrot.slane %v6746_v23, 2  ;;  %v6555_v12 = vpop.f32.mrb[97].mxu0  ;;  %v12372_v36 = vsub.s32 %v6856_v40, %v12994_v15 }
0x126c   : > { %v6760_v27 = vrot.slane %v6759_v19, 2  ;;  %v6557_v33 = vpop.f32.mrb[98].mxu0 }
0x126d   : > { %v6748_v43 = vmax.f32 %v6746_v23, %v6747_v2  ;;  %v6764_v38 = vmax.f32 %v6553_v4, %v6557_v33  ;;  %v6559_v60 = vpop.f32.mrb[99].mxu0 }
0x126e   : > { %v6761_v35 = vmax.f32 %v6759_v19, %v6760_v27  ;;  %v6777_v22 = vmax.f32 %v6555_v12, %v6559_v60 }
0x126f   : > { %v6749_v9 = vrot.slane %v6748_v43, 1 }
0x1270   : > { %v6762_v51 = vrot.slane %v6761_v35, 1 }
0x1271   : > { %v6750_v48 = vmax.f32 %v6748_v43, %v6749_v9 }
0x1272   : > { %v6763_v63 = vmax.f32 %v6761_v35, %v6762_v51  ;;  %v6563_v56 = vpop.f32.mrb[100].mxu0 }
0x1273   : > { %v6765_v10 = vmax.f32 %v6764_v38, %v6563_v56  ;;  %v6565_v5 = vpop.f32.mrb[101].mxu0 }
0x1274   : > { %v6850_v17 = vcombine.low %v6750_v48, %v6763_v63  ;;  %v6778_v58 = vmax.f32 %v6777_v22, %v6565_v5  ;;  %v6567_v61 = vpop.f32.mrb[102].mxu0 }
0x1275   : > { %v6766_v24 = vmax.f32 %v6765_v10, %v6567_v61  ;;  %v6569_v8 = vpop.f32.mrb[103].mxu0 }
0x1276   : > { %v6779_v42 = vmax.f32 %v6778_v58, %v6569_v8  ;;  %v12375_v38 = vrot.slane %v6850_v17, %v12372_v36 }
0x127a   : > { %v6573_v46 = vpop.f32.mrb[104].mxu0 }
0x127b   : > { %v6767_v16 = vmax.f32 %v6766_v24, %v6573_v46  ;;  %v6575_v25 = vpop.f32.mrb[105].mxu0 }
0x127c   : > { %v6780_v41 = vmax.f32 %v6779_v42, %v6575_v25  ;;  %v6577_v18 = vpop.f32.mrb[106].mxu0 }
0x127d   : > { %v6768_v20 = vmax.f32 %v6767_v16, %v6577_v18  ;;  %v6579_v34 = vpop.f32.mrb[107].mxu0 }
0x127e   : > { %v6781_v57 = vmax.f32 %v6780_v41, %v6579_v34 }
0x1282   : > { %v6583_v13 = vpop.f32.mrb[108].mxu0 }
0x1283   : > { %v6769_v44 = vmax.f32 %v6768_v20, %v6583_v13  ;;  %v6585_v11 = vpop.f32.mrb[109].mxu0 }
0x1284   : > { %v6782_v28 = vmax.f32 %v6781_v57, %v6585_v11  ;;  %v6587_v50 = vpop.f32.mrb[110].mxu0 }
0x1285   : > { %v6770_v29 = vmax.f32 %v6769_v44, %v6587_v50  ;;  %v6589_v31 = vpop.f32.mrb[111].mxu0 }
0x1286   : > { %v6783_v1 = vmax.f32 %v6782_v28, %v6589_v31 }
0x1287   : > { %v6771_v37 = vrot.slane %v6770_v29, 4 }
0x1288   : > { %v6784_v47 = vrot.slane %v6783_v1, 4 }
0x1289   : > { %v6772_v55 = vmax.f32 %v6770_v29, %v6771_v37 }
0x128a   : > { %v6785_v0 = vmax.f32 %v6783_v1, %v6784_v47  ;;  %v6626_v53 = vpop.f32.mrb[112].mxu0 }
0x128b   : > { %v6773_v32 = vrot.slane %v6772_v55, 2  ;;  %v6628_v59 = vpop.f32.mrb[113].mxu0 }
0x128c   : > { %v6786_v39 = vrot.slane %v6785_v0, 2  ;;  %v6630_v3 = vpop.f32.mrb[114].mxu0 }
0x128d   : > { %v6774_v54 = vmax.f32 %v6772_v55, %v6773_v32  ;;  %v6790_v21 = vmax.f32 %v6626_v53, %v6630_v3  ;;  %v6632_v14 = vpop.f32.mrb[115].mxu0 }
0x128e   : > { %v6787_v30 = vmax.f32 %v6785_v0, %v6786_v39  ;;  %v6803_v7 = vmax.f32 %v6628_v59, %v6632_v14 }
0x128f   : > { %v6775_v45 = vrot.slane %v6774_v54, 1 }
0x1290   : > { %v6788_v26 = vrot.slane %v6787_v30, 1 }
0x1291   : > { %v6776_v49 = vmax.f32 %v6774_v54, %v6775_v45 }
0x1292   : > { %v6789_v62 = vmax.f32 %v6787_v30, %v6788_v26  ;;  %v6636_v23 = vpop.f32.mrb[116].mxu0 }
0x1293   : > { %v6791_v19 = vmax.f32 %v6790_v21, %v6636_v23  ;;  %v6638_v4 = vpop.f32.mrb[117].mxu0 }
0x1294   : > { %v6851_v2 = vcombine.low %v6776_v49, %v6789_v62  ;;  %v6804_v12 = vmax.f32 %v6803_v7, %v6638_v4  ;;  %v6640_v27 = vpop.f32.mrb[118].mxu0 }
0x1295   : > { %v6792_v33 = vmax.f32 %v6791_v19, %v6640_v27  ;;  %v6642_v43 = vpop.f32.mrb[119].mxu0 }
0x1296   : > { %v12378_v60 = vrot.slane %v6851_v2, %v12372_v36  ;;  %v6805_v35 = vmax.f32 %v6804_v12, %v6642_v43 }
0x1298   : > { %v6882_v22 = vcombine.low %v12375_v38, %v12378_v60 }
0x129a   : > { %v6646_v9 = vpop.f32.mrb[120].mxu0 }
0x129b   : > { %v6793_v51 = vmax.f32 %v6792_v33, %v6646_v9  ;;  %v6648_v48 = vpop.f32.mrb[121].mxu0 }
0x129c   : > { %v6806_v63 = vmax.f32 %v6805_v35, %v6648_v48  ;;  %v6650_v56 = vpop.f32.mrb[122].mxu0 }
0x129d   : > { %v6794_v10 = vmax.f32 %v6793_v51, %v6650_v56  ;;  %v6652_v5 = vpop.f32.mrb[123].mxu0 }
0x129e   : > { %v6807_v58 = vmax.f32 %v6806_v63, %v6652_v5 }
0x12a2   : > { %v6656_v61 = vpop.f32.mrb[124].mxu0 }
0x12a3   : > { %v6795_v24 = vmax.f32 %v6794_v10, %v6656_v61  ;;  %v6658_v8 = vpop.f32.mrb[125].mxu0 }
0x12a4   : > { %v6808_v17 = vmax.f32 %v6807_v58, %v6658_v8  ;;  %v6660_v42 = vpop.f32.mrb[126].mxu0 }
0x12a5   : > { %v6796_v46 = vmax.f32 %v6795_v24, %v6660_v42  ;;  %v6662_v16 = vpop.f32.mrb[127].mxu0 }
0x12a6   : > { %v6809_v25 = vmax.f32 %v6808_v17, %v6662_v16 }
0x12a7   : > { %v6797_v41 = vrot.slane %v6796_v46, 4 }
0x12a8   : > { %v6810_v18 = vrot.slane %v6809_v25, 4 }
0x12a9   : > { %v6798_v20 = vmax.f32 %v6796_v46, %v6797_v41 }
0x12aa   : > { %v6811_v34 = vmax.f32 %v6809_v25, %v6810_v18  ;;  %v6699_v57 = vpop.f32.mrb[128].mxu0  ;;  %v6890_v25 = vrot.slane %v6882_v22, %v12372_v36 }
0x12ab   : > { %v6799_v13 = vrot.slane %v6798_v20, 2  ;;  %v6701_v44 = vpop.f32.mrb[129].mxu0 }
0x12ac   : > { %v6812_v11 = vrot.slane %v6811_v34, 2  ;;  %v6703_v28 = vpop.f32.mrb[130].mxu0 }
0x12ad   : > { %v6800_v50 = vmax.f32 %v6798_v20, %v6799_v13  ;;  %v6816_v29 = vmax.f32 %v6699_v57, %v6703_v28  ;;  %v6705_v31 = vpop.f32.mrb[131].mxu0 }
0x12ae   : > { %v6813_v1 = vmax.f32 %v6811_v34, %v6812_v11  ;;  %v6829_v37 = vmax.f32 %v6701_v44, %v6705_v31 }
0x12af   : > { %v6801_v47 = vrot.slane %v6800_v50, 1 }
0x12b0   : > { %v6814_v55 = vrot.slane %v6813_v1, 1 }
0x12b1   : > { %v6802_v6 = vmax.f32 %v6800_v50, %v6801_v47 }
0x12b2   : > { %v6815_v52 = vmax.f32 %v6813_v1, %v6814_v55  ;;  %v6709_v0 = vpop.f32.mrb[132].mxu0 }
0x12b3   : > { %v6817_v53 = vmax.f32 %v6816_v29, %v6709_v0  ;;  %v6711_v32 = vpop.f32.mrb[133].mxu0 }
0x12b4   : > { %v6852_v59 = vcombine.low %v6802_v6, %v6815_v52  ;;  %v6830_v39 = vmax.f32 %v6829_v37, %v6711_v32  ;;  %v6713_v3 = vpop.f32.mrb[134].mxu0 }
0x12b5   : > { %v6818_v54 = vmax.f32 %v6817_v53, %v6713_v3  ;;  %v6715_v21 = vpop.f32.mrb[135].mxu0 }
0x12b6   : > { %v6831_v14 = vmax.f32 %v6830_v39, %v6715_v21  ;;  %v6874_v42 = vrot.slane %v6852_v59, %v12372_v36 }
0x12ba   : > { %v6719_v40 = vpop.f32.mrb[136].mxu0 }
0x12bb   : > { %v6819_v30 = vmax.f32 %v6818_v54, %v6719_v40  ;;  %v6721_v7 = vpop.f32.mrb[137].mxu0 }
0x12bc   : > { %v6832_v45 = vmax.f32 %v6831_v14, %v6721_v7  ;;  %v6723_v26 = vpop.f32.mrb[138].mxu0 }
0x12bd   : > { %v6820_v49 = vmax.f32 %v6819_v30, %v6723_v26  ;;  %v6725_v15 = vpop.f32.mrb[139].mxu0 }
0x12be   : > { %v6833_v62 = vmax.f32 %v6832_v45, %v6725_v15 }
0x12c2   : > { %v6729_v23 = vpop.f32.mrb[140].mxu0 }
0x12c3   : > { %v6821_v19 = vmax.f32 %v6820_v49, %v6729_v23  ;;  %v6731_v4 = vpop.f32.mrb[141].mxu0 }
0x12c4   : > { %v6834_v2 = vmax.f32 %v6833_v62, %v6731_v4  ;;  %v6733_v12 = vpop.f32.mrb[142].mxu0 }
0x12c5   : > { %v6822_v27 = vmax.f32 %v6821_v19, %v6733_v12  ;;  %v6735_v33 = vpop.f32.mrb[143].mxu0 }
0x12c6   : > { %v6835_v43 = vmax.f32 %v6834_v2, %v6735_v33 }
0x12c7   : > { %v6823_v35 = vrot.slane %v6822_v27, 4 }
0x12c8   : > { %v6836_v9 = vrot.slane %v6835_v43, 4 }
0x12c9   : > { %v6824_v51 = vmax.f32 %v6822_v27, %v6823_v35 }
0x12ca   : > { %v6837_v48 = vmax.f32 %v6835_v43, %v6836_v9 }
0x12cb   : > { %v6825_v63 = vrot.slane %v6824_v51, 2 }
0x12cc   : > { %v6838_v56 = vrot.slane %v6837_v48, 2 }
0x12cd   : > { %v6826_v10 = vmax.f32 %v6824_v51, %v6825_v63 }
0x12ce   : > { %v6839_v5 = vmax.f32 %v6837_v48, %v6838_v56 }
0x12cf   : > { %v6827_v58 = vrot.slane %v6826_v10, 1 }
0x12d0   : > { %v6840_v61 = vrot.slane %v6839_v5, 1 }
0x12d1   : > { %v6828_v24 = vmax.f32 %v6826_v10, %v6827_v58 }
0x12d2   : > { %v6841_v8 = vmax.f32 %v6839_v5, %v6840_v61 }
0x12d4   : > { %v6853_v17 = vcombine.low %v6828_v24, %v6841_v8 }
0x12d6   : > { %v6881_v46 = vrot.slane %v6853_v17, %v12372_v36 }
0x12d8   : > { %v6883_v16 = vcombine.low %v6874_v42, %v6881_v46 }
0x12da   : > { %v6897_v41 = vrot.slane %v6883_v16, %v12372_v36 }
0x12dc   : > { %v6898_v18 = vcombine.low %v6890_v25, %v6897_v41 }
0x12de   : > { %6900 = vst [vmem:[%s566_s20] sm:$0xff] %v6898_v18 }
0x12df PF: > { %s24_s21 = sadd.s32 1, %s8230_s21   ;;  %s12995_s17 = sld [smem:[#allocation13_spill]] }
0x12e0   : > { %p21_p10 = scmp.ge.s32.totalorder %s24_s21, 10   ;;  %s12996_s18 = sld [smem:[#allocation14_spill]] }
0x12e1   : > { %s12997_s19 = sld [smem:[#allocation15_spill]]  ;;  %s12998_s20 = smov %s13004_s13 }
0x12e2   :  { %23 = sbr.rel (!%p21_p10) target bundleno = 7 (0x7), region = 131 }
0x12e9   :  { %6928 = vsyncpa [#allocation4], 1 }
0x12ea   :  { %6930 = vsyncpa [#allocation4 + $0x1], 1 }
0x12eb   :  { %6931 = vsyncpa [#allocation6], 1 }
0x12ec   :  { %6932 = vsyncpa [#allocation9], 1 }

</bundles_post_ra>
